<compile_context>
chip_gen: v7x
topology: tpu7x:2x2x1
jax: 0.10.0
libtpu: 0.0.40
codegen_flags: <defaults>
</compile_context>

<pallas_src>
import jax
import jax.numpy as jnp
from jax.experimental import pallas as pl
from jax.experimental.pallas import tpu as pltpu

LANE = 128       # TPU lane width (channels axis)
W_LO = 8         # left spatial halo, 8-aligned so interior stores are unmasked


def _round_up(x, m):
    return (x + m - 1) // m * m


# ---------------------------------------------------------------------------
# In-kernel helpers
# ---------------------------------------------------------------------------
def _store_padded(dst_ref, interior, H, W, w_lo):
    """Write `interior` (B, H, W, C) into the halo-padded scratch dst_ref.

    dst_ref has shape (B, H+2, WP, C) with the image placed at
    [1:H+1, w_lo:w_lo+W].  Only the halo ring that the 3x3 taps actually read
    (rows 0 / H+1 and columns w_lo-1 / w_lo+W) is zeroed, every grid step, so
    the kernel stays correct when the batch grid axis is partitioned across
    TensorCores ("parallel").  The interior store is sublane-aligned
    (offset w_lo = 8).
    """
    B, _, _, C = interior.shape
    WP = dst_ref.shape[2]
    zrow = jnp.zeros((B, 1, WP, C), dst_ref.dtype)
    dst_ref[:, 0:1, :, :] = zrow                              # top halo row
    dst_ref[:, H + 1:H + 2, :, :] = zrow                      # bottom halo row
    zcol = jnp.zeros((B, H, 1, C), dst_ref.dtype)
    dst_ref[:, 1:H + 1, w_lo - 1:w_lo, :] = zcol              # left halo col
    dst_ref[:, 1:H + 1, w_lo + W:w_lo + W + 1, :] = zcol      # right halo col
    dst_ref[:, 1:H + 1, w_lo:w_lo + W, :] = interior.astype(dst_ref.dtype)


def _im2col_patch(xpad_ref, B, H, W, C, w_lo):
    """Build the fused-K im2col patch (B*H*W, 9*C) from the padded scratch.

    K is laid out as (tap, channel), matching the weight packing below, so the
    whole 3x3 conv becomes a single MXU matmul with K = 9*C.
    """
    taps = []
    for kh in range(3):
        for kw in range(3):
            c0 = w_lo - 1 + kw
            taps.append(xpad_ref[:, kh:kh + H, c0:c0 + W, :])
    patch = jnp.concatenate(taps, axis=-1)            # (B, H, W, 9*C)
    return patch.reshape(B * H * W, 9 * C)


def _make_resblock_kernel(has_proj, *, B, H, W, CIp, COp, mxu_dtype):
    """Residual block kernel for a block of B images (stride=1)."""

    def kernel(*refs):
        if has_proj:
            (x_ref, w1_ref, s1_ref, b1_ref, w2_ref, s2_ref, b2_ref,
             ws_ref, ss_ref, bs_ref, out_ref, xpad_ref, ypad_ref) = refs
        else:
            (x_ref, w1_ref, s1_ref, b1_ref, w2_ref, s2_ref, b2_ref,
             out_ref, xpad_ref, ypad_ref) = refs

        M = B * H * W

        # ---- in-kernel halo pad of x (MXU-operand dtype) -------------------
        _store_padded(xpad_ref, x_ref[...].astype(mxu_dtype), H, W, W_LO)

        # ---- conv1 (single fused-K matmul, f32 accumulate) -> bn1 -> relu --
        p1 = _im2col_patch(xpad_ref, B, H, W, CIp, W_LO)      # (M, 9*CIp)
        y1 = jnp.dot(p1, w1_ref[...], preferred_element_type=jnp.float32)
        y1 = jnp.maximum(y1 * s1_ref[...] + b1_ref[...], 0.0)  # (M, COp) f32

        # ---- re-pad y1 for conv2 -------------------------------------------
        _store_padded(ypad_ref, y1.reshape(B, H, W, COp), H, W, W_LO)

        # ---- conv2 -> bn2 ---------------------------------------------------
        p2 = _im2col_patch(ypad_ref, B, H, W, COp, W_LO)      # (M, 9*COp)
        y2 = jnp.dot(p2, w2_ref[...], preferred_element_type=jnp.float32)
        y2 = y2 * s2_ref[...] + b2_ref[...]

        # ---- shortcut -------------------------------------------------------
        if has_proj:
            xc = x_ref[...].reshape(M, CIp).astype(mxu_dtype)
            res = jnp.dot(xc, ws_ref[...], preferred_element_type=jnp.float32)
            res = res * ss_ref[...] + bs_ref[...]
        else:
            res = x_ref[...].reshape(M, COp)                  # identity, f32

        out = jnp.maximum(y2 + res, 0.0)
        out_ref[...] = out.reshape(B, H, W, COp).astype(out_ref.dtype)

    return kernel


# ---------------------------------------------------------------------------
# Wrapper glue: layout changes, channel padding, BN folding, pallas_call setup
# ---------------------------------------------------------------------------
def _fold_bn(gamma, beta, mean, var, cpad, eps=1e-5):
    scale = gamma / jnp.sqrt(var + eps)
    bias = beta - mean * scale
    pad = cpad - gamma.shape[0]
    scale = jnp.pad(scale, (0, pad)).reshape(1, cpad).astype(jnp.float32)
    bias = jnp.pad(bias, (0, pad)).reshape(1, cpad).astype(jnp.float32)
    return scale, bias


def _pack_conv3x3(w_oihw, cip, cop, dtype):
    # (Cout, Cin, 3, 3) -> (9*Cin_pad, Cout_pad); K laid out as (tap, cin)
    # to match the im2col patch built in-kernel.
    co, ci, _, _ = w_oihw.shape
    w = jnp.transpose(w_oihw, (2, 3, 1, 0))                   # (3, 3, Cin, Cout)
    w = jnp.pad(w, ((0, 0), (0, 0), (0, cip - ci), (0, cop - co)))
    return w.reshape(9 * cip, cop).astype(dtype)


def _pick_batch_block(N, H, W):
    # Stack several images per grid step so the matmul M-dim (= B_blk*H*W) is
    # tall and the ~0.35us per-grid-step overhead is amortized.
    b = max(1, min(N, 4096 // max(1, H * W)))
    while N % b:
        b -= 1
    return b


def residual_block_pallas(x_nchw, params, stride=1, mxu_dtype=jnp.float32):
    """Pallas TPU forward of ResidualBlock (inference-mode BN).

    mxu_dtype=jnp.bfloat16 is recommended on v6e/v7x (MXU operands in bf16,
    f32 accumulation, f32 elementwise); float32 keeps exact PyTorch semantics.
    """
    assert stride == 1, "stride>1 not implemented"  # TODO(synk): strided conv
    N, Cin, H, W = x_nchw.shape
    Cout = params["w1"].shape[0]
    has_proj = (stride != 1) or (Cin != Cout)

    CIp = _round_up(Cin, LANE)                 # lane-dense input channels
    COp = _round_up(Cout, LANE)                # lane-dense output channels
    WP = W_LO + _round_up(W + 1, 8)            # padded W extent of the scratch

    B_blk = _pick_batch_block(N, H, W)
    grid = (N // B_blk,)

    # NCHW -> NHWC (channels on the 128-lane axis) + zero-pad channels.
    x_nhwc = jnp.transpose(x_nchw, (0, 2, 3, 1)).astype(jnp.float32)
    x_nhwc = jnp.pad(x_nhwc, ((0, 0), (0, 0), (0, 0), (0, CIp - Cin)))

    w1 = _pack_conv3x3(params["w1"], CIp, COp, mxu_dtype)
    w2 = _pack_conv3x3(params["w2"], COp, COp, mxu_dtype)
    s1, b1 = _fold_bn(*params["bn1"], cpad=COp)
    s2, b2 = _fold_bn(*params["bn2"], cpad=COp)

    vec_spec = pl.BlockSpec((1, COp), lambda n: (0, 0))
    in_specs = [
        pl.BlockSpec((B_blk, H, W, CIp), lambda n: (n, 0, 0, 0)),
        pl.BlockSpec((9 * CIp, COp), lambda n: (0, 0)),
        vec_spec, vec_spec,
        pl.BlockSpec((9 * COp, COp), lambda n: (0, 0)),
        vec_spec, vec_spec,
    ]
    inputs = [x_nhwc, w1, s1, b1, w2, s2, b2]

    if has_proj:
        ws = params["ws"].reshape(Cout, Cin).T                 # (Cin, Cout)
        ws = jnp.pad(ws, ((0, CIp - Cin), (0, COp - Cout))).astype(mxu_dtype)
        ss, bs = _fold_bn(*params["bns"], cpad=COp)
        in_specs += [pl.BlockSpec((CIp, COp), lambda n: (0, 0)),
                     vec_spec, vec_spec]
        inputs += [ws, ss, bs]

    kernel = _make_resblock_kernel(has_proj, B=B_blk, H=H, W=W,
                                   CIp=CIp, COp=COp, mxu_dtype=mxu_dtype)

    out_nhwc = pl.pallas_call(
        kernel,
        out_shape=jax.ShapeDtypeStruct((N, H, W, COp), jnp.float32),
        grid_spec=pltpu.PrefetchScalarGridSpec(
            num_scalar_prefetch=0,
            grid=grid,
            in_specs=in_specs,
            out_specs=pl.BlockSpec((B_blk, H, W, COp),
                                   lambda n: (n, 0, 0, 0)),
            scratch_shapes=[
                pltpu.VMEM((B_blk, H + 2, WP, CIp), mxu_dtype),  # padded x
                pltpu.VMEM((B_blk, H + 2, WP, COp), mxu_dtype),  # padded y1
            ],
        ),
        # Batch steps are independent: "parallel" lets v7x shard the grid
        # across its 2 TensorCores (neutral on v5e/v6e).
        compiler_params=pltpu.CompilerParams(
            dimension_semantics=("parallel",)),
    )(*inputs)

    out = out_nhwc[:, :, :, :Cout]                 # drop padded lanes
    return jnp.transpose(out, (0, 3, 1, 2))        # back to NCHW


# ---------------------------------------------------------------------------
# Pure-JAX reference (correctness check only)
# ---------------------------------------------------------------------------
def residual_block_ref(x, params, stride=1):
    def conv(x, w, stride, pad):
        return jax.lax.conv_general_dilated(
            x, w, (stride, stride), ((pad, pad), (pad, pad)),
            dimension_numbers=("NCHW", "OIHW", "NCHW"))

    def bn(x, p, eps=1e-5):
        g, b, m, v = [t[None, :, None, None] for t in p]
        return (x - m) / jnp.sqrt(v + eps) * g + b

    out = jax.nn.relu(bn(conv(x, params["w1"], stride, 1), params["bn1"]))
    out = bn(conv(out, params["w2"], 1, 1), params["bn2"])
    Cin, Cout = x.shape[1], params["w1"].shape[0]
    if stride != 1 or Cin != Cout:
        res = bn(conv(x, params["ws"], stride, 0), params["bns"])
    else:
        res = x
    return jax.nn.relu(out + res)


# ---------------------------------------------------------------------------
def _make_params(key, cin, cout, has_proj):
    ks = jax.random.split(key, 12)

    def bn_params(k):
        k1, k2, k3, k4 = jax.random.split(k, 4)
        gamma = 1.0 + 0.1 * jax.random.normal(k1, (cout,), jnp.float32)
        beta = 0.1 * jax.random.normal(k2, (cout,), jnp.float32)
        mean = 0.1 * jax.random.normal(k3, (cout,), jnp.float32)
        var = jax.random.uniform(k4, (cout,), jnp.float32, 0.5, 1.5)
        return (gamma, beta, mean, var)

    params = {
        "w1": 0.1 * jax.random.normal(ks[0], (cout, cin, 3, 3), jnp.float32),
        "bn1": bn_params(ks[1]),
        "w2": 0.1 * jax.random.normal(ks[2], (cout, cout, 3, 3), jnp.float32),
        "bn2": bn_params(ks[3]),
    }
    if has_proj:
        params["ws"] = 0.1 * jax.random.normal(ks[4], (cout, cin, 1, 1),
                                               jnp.float32)
        params["bns"] = bn_params(ks[5])
    return params


if __name__ == "__main__":
    key = jax.random.PRNGKey(0)
    k_x1, k_p1, k_x2, k_p2 = jax.random.split(key, 4)

    # Case 1: projection shortcut (in_channels != out_channels), stride=1.
    x1 = jax.random.normal(k_x1, (2, 4, 16, 16), jnp.float32)
    p1 = _make_params(k_p1, 4, 8, has_proj=True)
    # Case 2: identity shortcut (in_channels == out_channels), stride=1.
    x2 = jax.random.normal(k_x2, (2, 8, 16, 16), jnp.float32)
    p2 = _make_params(k_p2, 8, 8, has_proj=False)

    ref1 = residual_block_ref(x1, p1, stride=1)
    ref2 = residual_block_ref(x2, p2, stride=1)

    # f32 MXU operands: exact module semantics, tight tolerance.
    out1 = jax.block_until_ready(
        residual_block_pallas(x1, p1, stride=1, mxu_dtype=jnp.float32))
    assert out1.shape == (2, 8, 16, 16)
    assert jnp.allclose(out1, ref1, atol=1e-3, rtol=1e-3), "proj f32 mismatch"

    out2 = jax.block_until_ready(
        residual_block_pallas(x2, p2, stride=1, mxu_dtype=jnp.float32))
    assert out2.shape == (2, 8, 16, 16)
    assert jnp.allclose(out2, ref2, atol=1e-3, rtol=1e-3), "id f32 mismatch"

    # bf16 MXU operands (v6e/v7x fast path): same kernel/packing code, only the
    # matmul-operand dtype changes, so this is a loose rounding-level sanity
    # check (structural correctness is proven by the f32 run above).
    out1b = jax.block_until_ready(
        residual_block_pallas(x1, p1, stride=1, mxu_dtype=jnp.bfloat16))
    assert jnp.allclose(out1b, ref1, atol=1e-1, rtol=1e-1), "proj bf16 mismatch"

    out2b = jax.block_until_ready(
        residual_block_pallas(x2, p2, stride=1, mxu_dtype=jnp.bfloat16))
    assert jnp.allclose(out2b, ref2, atol=1e-1, rtol=1e-1), "id bf16 mismatch"

    print("KERNEL_OK")
</pallas_src>

<mosaic_0001>
module attributes {stable_mosaic.version = 11 : i64} {
  func.func @kernel(%arg0: i32, %arg1: memref<2x16x16x128xf32, #tpu.memory_space<vmem>>, %arg2: memref<1152x128xf32, #tpu.memory_space<vmem>>, %arg3: memref<1x128xf32, #tpu.memory_space<vmem>>, %arg4: memref<1x128xf32, #tpu.memory_space<vmem>>, %arg5: memref<1152x128xf32, #tpu.memory_space<vmem>>, %arg6: memref<1x128xf32, #tpu.memory_space<vmem>>, %arg7: memref<1x128xf32, #tpu.memory_space<vmem>>, %arg8: memref<128x128xf32, #tpu.memory_space<vmem>>, %arg9: memref<1x128xf32, #tpu.memory_space<vmem>>, %arg10: memref<1x128xf32, #tpu.memory_space<vmem>>, %arg11: memref<2x16x16x128xf32, #tpu.memory_space<vmem>>, %arg12: memref<2x18x32x128xf32, #tpu.memory_space<vmem>>, %arg13: memref<2x18x32x128xf32, #tpu.memory_space<vmem>>) attributes {dimension_semantics = [#tpu.dimension_semantics<parallel>], iteration_bounds = array<i64: 1>, scalar_prefetch = 0 : i64, scratch_operands = 2 : i64, tpu.core_type = #tpu.core_type<tc>, window_params = [{transform_indices = @transform_0, window_bounds = array<i64: 2, 16, 16, 128>}, {pipeline_mode = #tpu.pipeline_mode<synchronous>, transform_indices = @transform_1, window_bounds = array<i64: 1152, 128>}, {pipeline_mode = #tpu.pipeline_mode<synchronous>, transform_indices = @transform_2, window_bounds = array<i64: 1, 128>}, {pipeline_mode = #tpu.pipeline_mode<synchronous>, transform_indices = @transform_3, window_bounds = array<i64: 1, 128>}, {pipeline_mode = #tpu.pipeline_mode<synchronous>, transform_indices = @transform_4, window_bounds = array<i64: 1152, 128>}, {pipeline_mode = #tpu.pipeline_mode<synchronous>, transform_indices = @transform_5, window_bounds = array<i64: 1, 128>}, {pipeline_mode = #tpu.pipeline_mode<synchronous>, transform_indices = @transform_6, window_bounds = array<i64: 1, 128>}, {pipeline_mode = #tpu.pipeline_mode<synchronous>, transform_indices = @transform_7, window_bounds = array<i64: 128, 128>}, {pipeline_mode = #tpu.pipeline_mode<synchronous>, transform_indices = @transform_8, window_bounds = array<i64: 1, 128>}, {pipeline_mode = #tpu.pipeline_mode<synchronous>, transform_indices = @transform_9, window_bounds = array<i64: 1, 128>}, {transform_indices = @transform_10, window_bounds = array<i64: 2, 16, 16, 128>}]} {
    %c0 = arith.constant 0 : index
    %c0_0 = arith.constant 0 : index
    %c0_1 = arith.constant 0 : index
    %c0_2 = arith.constant 0 : index
    %0 = vector.load %arg1[%c0, %c0_0, %c0_1, %c0_2] : memref<2x16x16x128xf32, #tpu.memory_space<vmem>>, vector<2x16x16x128xf32>
    %cst = arith.constant 0.000000e+00 : f32
    %1 = vector.broadcast %cst : f32 to vector<2x1x32x128xf32>
    %c0_3 = arith.constant 0 : index
    %c0_4 = arith.constant 0 : index
    %c0_5 = arith.constant 0 : index
    %c0_6 = arith.constant 0 : index
    %2 = vector.load %arg12[%c0_3, %c0_4, %c0_5, %c0_6] : memref<2x18x32x128xf32, #tpu.memory_space<vmem>>, vector<2x1x32x128xf32>
    tpu.vector_store %arg12[%c0_3, %c0_4, %c0_5, %c0_6], %1 {strides = array<i32>} : memref<2x18x32x128xf32, #tpu.memory_space<vmem>>, vector<2x1x32x128xf32>,
    %c0_7 = arith.constant 0 : index
    %c17 = arith.constant 17 : index
    %c0_8 = arith.constant 0 : index
    %c0_9 = arith.constant 0 : index
    %3 = vector.load %arg12[%c0_7, %c17, %c0_8, %c0_9] : memref<2x18x32x128xf32, #tpu.memory_space<vmem>>, vector<2x1x32x128xf32>
    tpu.vector_store %arg12[%c0_7, %c17, %c0_8, %c0_9], %1 {strides = array<i32>} : memref<2x18x32x128xf32, #tpu.memory_space<vmem>>, vector<2x1x32x128xf32>,
    %cst_10 = arith.constant 0.000000e+00 : f32
    %4 = vector.broadcast %cst_10 : f32 to vector<2x16x1x128xf32>
    %c0_11 = arith.constant 0 : index
    %c1 = arith.constant 1 : index
    %c7 = arith.constant 7 : index
    %c0_12 = arith.constant 0 : index
    %5 = vector.load %arg12[%c0_11, %c1, %c7, %c0_12] : memref<2x18x32x128xf32, #tpu.memory_space<vmem>>, vector<2x16x1x128xf32>
    tpu.vector_store %arg12[%c0_11, %c1, %c7, %c0_12], %4 {strides = array<i32>} : memref<2x18x32x128xf32, #tpu.memory_space<vmem>>, vector<2x16x1x128xf32>,
    %c0_13 = arith.constant 0 : index
    %c1_14 = arith.constant 1 : index
    %c24 = arith.constant 24 : index
    %c0_15 = arith.constant 0 : index
    %6 = vector.load %arg12[%c0_13, %c1_14, %c24, %c0_15] : memref<2x18x32x128xf32, #tpu.memory_space<vmem>>, vector<2x16x1x128xf32>
    tpu.vector_store %arg12[%c0_13, %c1_14, %c24, %c0_15], %4 {strides = array<i32>} : memref<2x18x32x128xf32, #tpu.memory_space<vmem>>, vector<2x16x1x128xf32>,
    %c0_16 = arith.constant 0 : index
    %c1_17 = arith.constant 1 : index
    %c8 = arith.constant 8 : index
    %c0_18 = arith.constant 0 : index
    %7 = vector.load %arg12[%c0_16, %c1_17, %c8, %c0_18] : memref<2x18x32x128xf32, #tpu.memory_space<vmem>>, vector<2x16x16x128xf32>
    tpu.vector_store %arg12[%c0_16, %c1_17, %c8, %c0_18], %0 {strides = array<i32>} : memref<2x18x32x128xf32, #tpu.memory_space<vmem>>, vector<2x16x16x128xf32>,
    %c0_19 = arith.constant 0 : index
    %c0_20 = arith.constant 0 : index
    %c7_21 = arith.constant 7 : index
    %c0_22 = arith.constant 0 : index
    %8 = vector.load %arg12[%c0_19, %c0_20, %c7_21, %c0_22] : memref<2x18x32x128xf32, #tpu.memory_space<vmem>>, vector<2x16x16x128xf32>
    %c0_23 = arith.constant 0 : index
    %c0_24 = arith.constant 0 : index
    %c8_25 = arith.constant 8 : index
    %c0_26 = arith.constant 0 : index
    %9 = vector.load %arg12[%c0_23, %c0_24, %c8_25, %c0_26] : memref<2x18x32x128xf32, #tpu.memory_space<vmem>>, vector<2x16x16x128xf32>
    %c0_27 = arith.constant 0 : index
    %c0_28 = arith.constant 0 : index
    %c9 = arith.constant 9 : index
    %c0_29 = arith.constant 0 : index
    %10 = vector.load %arg12[%c0_27, %c0_28, %c9, %c0_29] : memref<2x18x32x128xf32, #tpu.memory_space<vmem>>, vector<2x16x16x128xf32>
    %c0_30 = arith.constant 0 : index
    %c1_31 = arith.constant 1 : index
    %c7_32 = arith.constant 7 : index
    %c0_33 = arith.constant 0 : index
    %11 = vector.load %arg12[%c0_30, %c1_31, %c7_32, %c0_33] : memref<2x18x32x128xf32, #tpu.memory_space<vmem>>, vector<2x16x16x128xf32>
    %c0_34 = arith.constant 0 : index
    %c1_35 = arith.constant 1 : index
    %c8_36 = arith.constant 8 : index
    %c0_37 = arith.constant 0 : index
    %12 = vector.load %arg12[%c0_34, %c1_35, %c8_36, %c0_37] : memref<2x18x32x128xf32, #tpu.memory_space<vmem>>, vector<2x16x16x128xf32>
    %c0_38 = arith.constant 0 : index
    %c1_39 = arith.constant 1 : index
    %c9_40 = arith.constant 9 : index
    %c0_41 = arith.constant 0 : index
    %13 = vector.load %arg12[%c0_38, %c1_39, %c9_40, %c0_41] : memref<2x18x32x128xf32, #tpu.memory_space<vmem>>, vector<2x16x16x128xf32>
    %c0_42 = arith.constant 0 : index
    %c2 = arith.constant 2 : index
    %c7_43 = arith.constant 7 : index
    %c0_44 = arith.constant 0 : index
    %14 = vector.load %arg12[%c0_42, %c2, %c7_43, %c0_44] : memref<2x18x32x128xf32, #tpu.memory_space<vmem>>, vector<2x16x16x128xf32>
    %c0_45 = arith.constant 0 : index
    %c2_46 = arith.constant 2 : index
    %c8_47 = arith.constant 8 : index
    %c0_48 = arith.constant 0 : index
    %15 = vector.load %arg12[%c0_45, %c2_46, %c8_47, %c0_48] : memref<2x18x32x128xf32, #tpu.memory_space<vmem>>, vector<2x16x16x128xf32>
    %c0_49 = arith.constant 0 : index
    %c2_50 = arith.constant 2 : index
    %c9_51 = arith.constant 9 : index
    %c0_52 = arith.constant 0 : index
    %16 = vector.load %arg12[%c0_49, %c2_50, %c9_51, %c0_52] : memref<2x18x32x128xf32, #tpu.memory_space<vmem>>, vector<2x16x16x128xf32>
    %17 = tpu.concatenate %8, %9, %10, %11, %12, %13, %14, %15, %16 in 3 : vector<2x16x16x128xf32>, vector<2x16x16x128xf32>, vector<2x16x16x128xf32>, vector<2x16x16x128xf32>, vector<2x16x16x128xf32>, vector<2x16x16x128xf32>, vector<2x16x16x128xf32>, vector<2x16x16x128xf32>, vector<2x16x16x128xf32> -> vector<2x16x16x1152xf32>
    %18 = vector.shape_cast %17 : vector<2x16x16x1152xf32> to vector<512x1152xf32>
    %c0_53 = arith.constant 0 : index
    %c0_54 = arith.constant 0 : index
    %19 = vector.load %arg2[%c0_53, %c0_54] : memref<1152x128xf32, #tpu.memory_space<vmem>>, vector<1152x128xf32>
    %cst_55 = arith.constant dense<0.000000e+00> : vector<512x128xf32>
    %20 = tpu.matmul %18, %19, %cst_55 {dimension_numbers = #tpu.dot_dimension_numbers<[1], [0], [0], [1], [0, 0, 1, 1], [], []>} : vector<512x1152xf32>, vector<1152x128xf32>, vector<512x128xf32> -> vector<512x128xf32>
    %c0_56 = arith.constant 0 : index
    %c0_57 = arith.constant 0 : index
    %21 = vector.load %arg3[%c0_56, %c0_57] : memref<1x128xf32, #tpu.memory_space<vmem>>, vector<1x128xf32>
    %22 = vector.broadcast %21 : vector<1x128xf32> to vector<512x128xf32>
    %23 = arith.mulf %20, %22 : vector<512x128xf32>
    %c0_58 = arith.constant 0 : index
    %c0_59 = arith.constant 0 : index
    %24 = vector.load %arg4[%c0_58, %c0_59] : memref<1x128xf32, #tpu.memory_space<vmem>>, vector<1x128xf32>
    %25 = vector.broadcast %24 : vector<1x128xf32> to vector<512x128xf32>
    %26 = arith.addf %23, %25 : vector<512x128xf32>
    %cst_60 = arith.constant 0.000000e+00 : f32
    %27 = vector.broadcast %cst_60 : f32 to vector<512x128xf32>
    %28 = arith.maximumf %26, %27 : vector<512x128xf32>
    %29 = vector.shape_cast %28 : vector<512x128xf32> to vector<2x16x16x128xf32>
    %cst_61 = arith.constant 0.000000e+00 : f32
    %30 = vector.broadcast %cst_61 : f32 to vector<2x1x32x128xf32>
    %c0_62 = arith.constant 0 : index
    %c0_63 = arith.constant 0 : index
    %c0_64 = arith.constant 0 : index
    %c0_65 = arith.constant 0 : index
    %31 = vector.load %arg13[%c0_62, %c0_63, %c0_64, %c0_65] : memref<2x18x32x128xf32, #tpu.memory_space<vmem>>, vector<2x1x32x128xf32>
    tpu.vector_store %arg13[%c0_62, %c0_63, %c0_64, %c0_65], %30 {strides = array<i32>} : memref<2x18x32x128xf32, #tpu.memory_space<vmem>>, vector<2x1x32x128xf32>,
    %c0_66 = arith.constant 0 : index
    %c17_67 = arith.constant 17 : index
    %c0_68 = arith.constant 0 : index
    %c0_69 = arith.constant 0 : index
    %32 = vector.load %arg13[%c0_66, %c17_67, %c0_68, %c0_69] : memref<2x18x32x128xf32, #tpu.memory_space<vmem>>, vector<2x1x32x128xf32>
    tpu.vector_store %arg13[%c0_66, %c17_67, %c0_68, %c0_69], %30 {strides = array<i32>} : memref<2x18x32x128xf32, #tpu.memory_space<vmem>>, vector<2x1x32x128xf32>,
    %cst_70 = arith.constant 0.000000e+00 : f32
    %33 = vector.broadcast %cst_70 : f32 to vector<2x16x1x128xf32>
    %c0_71 = arith.constant 0 : index
    %c1_72 = arith.constant 1 : index
    %c7_73 = arith.constant 7 : index
    %c0_74 = arith.constant 0 : index
    %34 = vector.load %arg13[%c0_71, %c1_72, %c7_73, %c0_74] : memref<2x18x32x128xf32, #tpu.memory_space<vmem>>, vector<2x16x1x128xf32>
    tpu.vector_store %arg13[%c0_71, %c1_72, %c7_73, %c0_74], %33 {strides = array<i32>} : memref<2x18x32x128xf32, #tpu.memory_space<vmem>>, vector<2x16x1x128xf32>,
    %c0_75 = arith.constant 0 : index
    %c1_76 = arith.constant 1 : index
    %c24_77 = arith.constant 24 : index
    %c0_78 = arith.constant 0 : index
    %35 = vector.load %arg13[%c0_75, %c1_76, %c24_77, %c0_78] : memref<2x18x32x128xf32, #tpu.memory_space<vmem>>, vector<2x16x1x128xf32>
    tpu.vector_store %arg13[%c0_75, %c1_76, %c24_77, %c0_78], %33 {strides = array<i32>} : memref<2x18x32x128xf32, #tpu.memory_space<vmem>>, vector<2x16x1x128xf32>,
    %c0_79 = arith.constant 0 : index
    %c1_80 = arith.constant 1 : index
    %c8_81 = arith.constant 8 : index
    %c0_82 = arith.constant 0 : index
    %36 = vector.load %arg13[%c0_79, %c1_80, %c8_81, %c0_82] : memref<2x18x32x128xf32, #tpu.memory_space<vmem>>, vector<2x16x16x128xf32>
    tpu.vector_store %arg13[%c0_79, %c1_80, %c8_81, %c0_82], %29 {strides = array<i32>} : memref<2x18x32x128xf32, #tpu.memory_space<vmem>>, vector<2x16x16x128xf32>,
    %c0_83 = arith.constant 0 : index
    %c0_84 = arith.constant 0 : index
    %c7_85 = arith.constant 7 : index
    %c0_86 = arith.constant 0 : index
    %37 = vector.load %arg13[%c0_83, %c0_84, %c7_85, %c0_86] : memref<2x18x32x128xf32, #tpu.memory_space<vmem>>, vector<2x16x16x128xf32>
    %c0_87 = arith.constant 0 : index
    %c0_88 = arith.constant 0 : index
    %c8_89 = arith.constant 8 : index
    %c0_90 = arith.constant 0 : index
    %38 = vector.load %arg13[%c0_87, %c0_88, %c8_89, %c0_90] : memref<2x18x32x128xf32, #tpu.memory_space<vmem>>, vector<2x16x16x128xf32>
    %c0_91 = arith.constant 0 : index
    %c0_92 = arith.constant 0 : index
    %c9_93 = arith.constant 9 : index
    %c0_94 = arith.constant 0 : index
    %39 = vector.load %arg13[%c0_91, %c0_92, %c9_93, %c0_94] : memref<2x18x32x128xf32, #tpu.memory_space<vmem>>, vector<2x16x16x128xf32>
    %c0_95 = arith.constant 0 : index
    %c1_96 = arith.constant 1 : index
    %c7_97 = arith.constant 7 : index
    %c0_98 = arith.constant 0 : index
    %40 = vector.load %arg13[%c0_95, %c1_96, %c7_97, %c0_98] : memref<2x18x32x128xf32, #tpu.memory_space<vmem>>, vector<2x16x16x128xf32>
    %c0_99 = arith.constant 0 : index
    %c1_100 = arith.constant 1 : index
    %c8_101 = arith.constant 8 : index
    %c0_102 = arith.constant 0 : index
    %41 = vector.load %arg13[%c0_99, %c1_100, %c8_101, %c0_102] : memref<2x18x32x128xf32, #tpu.memory_space<vmem>>, vector<2x16x16x128xf32>
    %c0_103 = arith.constant 0 : index
    %c1_104 = arith.constant 1 : index
    %c9_105 = arith.constant 9 : index
    %c0_106 = arith.constant 0 : index
    %42 = vector.load %arg13[%c0_103, %c1_104, %c9_105, %c0_106] : memref<2x18x32x128xf32, #tpu.memory_space<vmem>>, vector<2x16x16x128xf32>
    %c0_107 = arith.constant 0 : index
    %c2_108 = arith.constant 2 : index
    %c7_109 = arith.constant 7 : index
    %c0_110 = arith.constant 0 : index
    %43 = vector.load %arg13[%c0_107, %c2_108, %c7_109, %c0_110] : memref<2x18x32x128xf32, #tpu.memory_space<vmem>>, vector<2x16x16x128xf32>
    %c0_111 = arith.constant 0 : index
    %c2_112 = arith.constant 2 : index
    %c8_113 = arith.constant 8 : index
    %c0_114 = arith.constant 0 : index
    %44 = vector.load %arg13[%c0_111, %c2_112, %c8_113, %c0_114] : memref<2x18x32x128xf32, #tpu.memory_space<vmem>>, vector<2x16x16x128xf32>
    %c0_115 = arith.constant 0 : index
    %c2_116 = arith.constant 2 : index
    %c9_117 = arith.constant 9 : index
    %c0_118 = arith.constant 0 : index
    %45 = vector.load %arg13[%c0_115, %c2_116, %c9_117, %c0_118] : memref<2x18x32x128xf32, #tpu.memory_space<vmem>>, vector<2x16x16x128xf32>
    %46 = tpu.concatenate %37, %38, %39, %40, %41, %42, %43, %44, %45 in 3 : vector<2x16x16x128xf32>, vector<2x16x16x128xf32>, vector<2x16x16x128xf32>, vector<2x16x16x128xf32>, vector<2x16x16x128xf32>, vector<2x16x16x128xf32>, vector<2x16x16x128xf32>, vector<2x16x16x128xf32>, vector<2x16x16x128xf32> -> vector<2x16x16x1152xf32>
    %47 = vector.shape_cast %46 : vector<2x16x16x1152xf32> to vector<512x1152xf32>
    %c0_119 = arith.constant 0 : index
    %c0_120 = arith.constant 0 : index
    %48 = vector.load %arg5[%c0_119, %c0_120] : memref<1152x128xf32, #tpu.memory_space<vmem>>, vector<1152x128xf32>
    %cst_121 = arith.constant dense<0.000000e+00> : vector<512x128xf32>
    %49 = tpu.matmul %47, %48, %cst_121 {dimension_numbers = #tpu.dot_dimension_numbers<[1], [0], [0], [1], [0, 0, 1, 1], [], []>} : vector<512x1152xf32>, vector<1152x128xf32>, vector<512x128xf32> -> vector<512x128xf32>
    %c0_122 = arith.constant 0 : index
    %c0_123 = arith.constant 0 : index
    %50 = vector.load %arg6[%c0_122, %c0_123] : memref<1x128xf32, #tpu.memory_space<vmem>>, vector<1x128xf32>
    %51 = vector.broadcast %50 : vector<1x128xf32> to vector<512x128xf32>
    %52 = arith.mulf %49, %51 : vector<512x128xf32>
    %c0_124 = arith.constant 0 : index
    %c0_125 = arith.constant 0 : index
    %53 = vector.load %arg7[%c0_124, %c0_125] : memref<1x128xf32, #tpu.memory_space<vmem>>, vector<1x128xf32>
    %54 = vector.broadcast %53 : vector<1x128xf32> to vector<512x128xf32>
    %55 = arith.addf %52, %54 : vector<512x128xf32>
    %c0_126 = arith.constant 0 : index
    %c0_127 = arith.constant 0 : index
    %c0_128 = arith.constant 0 : index
    %c0_129 = arith.constant 0 : index
    %56 = vector.load %arg1[%c0_126, %c0_127, %c0_128, %c0_129] : memref<2x16x16x128xf32, #tpu.memory_space<vmem>>, vector<2x16x16x128xf32>
    %57 = vector.shape_cast %56 : vector<2x16x16x128xf32> to vector<512x128xf32>
    %c0_130 = arith.constant 0 : index
    %c0_131 = arith.constant 0 : index
    %58 = vector.load %arg8[%c0_130, %c0_131] : memref<128x128xf32, #tpu.memory_space<vmem>>, vector<128x128xf32>
    %cst_132 = arith.constant dense<0.000000e+00> : vector<512x128xf32>
    %59 = tpu.matmul %57, %58, %cst_132 {dimension_numbers = #tpu.dot_dimension_numbers<[1], [0], [0], [1], [0, 0, 1, 1], [], []>} : vector<512x128xf32>, vector<128x128xf32>, vector<512x128xf32> -> vector<512x128xf32>
    %c0_133 = arith.constant 0 : index
    %c0_134 = arith.constant 0 : index
    %60 = vector.load %arg9[%c0_133, %c0_134] : memref<1x128xf32, #tpu.memory_space<vmem>>, vector<1x128xf32>
    %61 = vector.broadcast %60 : vector<1x128xf32> to vector<512x128xf32>
    %62 = arith.mulf %59, %61 : vector<512x128xf32>
    %c0_135 = arith.constant 0 : index
    %c0_136 = arith.constant 0 : index
    %63 = vector.load %arg10[%c0_135, %c0_136] : memref<1x128xf32, #tpu.memory_space<vmem>>, vector<1x128xf32>
    %64 = vector.broadcast %63 : vector<1x128xf32> to vector<512x128xf32>
    %65 = arith.addf %62, %64 : vector<512x128xf32>
    %66 = arith.addf %55, %65 : vector<512x128xf32>
    %cst_137 = arith.constant 0.000000e+00 : f32
    %67 = vector.broadcast %cst_137 : f32 to vector<512x128xf32>
    %68 = arith.maximumf %66, %67 : vector<512x128xf32>
    %69 = vector.shape_cast %68 : vector<512x128xf32> to vector<2x16x16x128xf32>
    %c0_138 = arith.constant 0 : index
    %c0_139 = arith.constant 0 : index
    %c0_140 = arith.constant 0 : index
    %c0_141 = arith.constant 0 : index
    %70 = vector.load %arg11[%c0_138, %c0_139, %c0_140, %c0_141] : memref<2x16x16x128xf32, #tpu.memory_space<vmem>>, vector<2x16x16x128xf32>
    tpu.vector_store %arg11[%c0_138, %c0_139, %c0_140, %c0_141], %69 {strides = array<i32>} : memref<2x16x16x128xf32, #tpu.memory_space<vmem>>, vector<2x16x16x128xf32>,
    return
  }
  func.func @transform_0(%arg0: i32) -> (i32, i32, i32, i32) {
    %c0_i32 = arith.constant 0 : i32
    %c0_i32_0 = arith.constant 0 : i32
    %c0_i32_1 = arith.constant 0 : i32
    %c0_i32_2 = arith.constant 0 : i32
    return %arg0, %c0_i32, %c0_i32_0, %c0_i32_1 : i32, i32, i32, i32
  }
  func.func @transform_1(%arg0: i32) -> (i32, i32) {
    %c0_i32 = arith.constant 0 : i32
    %c0_i32_0 = arith.constant 0 : i32
    %c0_i32_1 = arith.constant 0 : i32
    return %c0_i32, %c0_i32_0 : i32, i32
  }
  func.func @transform_2(%arg0: i32) -> (i32, i32) {
    %c0_i32 = arith.constant 0 : i32
    %c0_i32_0 = arith.constant 0 : i32
    %c0_i32_1 = arith.constant 0 : i32
    return %c0_i32, %c0_i32_0 : i32, i32
  }
  func.func @transform_3(%arg0: i32) -> (i32, i32) {
    %c0_i32 = arith.constant 0 : i32
    %c0_i32_0 = arith.constant 0 : i32
    %c0_i32_1 = arith.constant 0 : i32
    return %c0_i32, %c0_i32_0 : i32, i32
  }
  func.func @transform_4(%arg0: i32) -> (i32, i32) {
    %c0_i32 = arith.constant 0 : i32
    %c0_i32_0 = arith.constant 0 : i32
    %c0_i32_1 = arith.constant 0 : i32
    return %c0_i32, %c0_i32_0 : i32, i32
  }
  func.func @transform_5(%arg0: i32) -> (i32, i32) {
    %c0_i32 = arith.constant 0 : i32
    %c0_i32_0 = arith.constant 0 : i32
    %c0_i32_1 = arith.constant 0 : i32
    return %c0_i32, %c0_i32_0 : i32, i32
  }
  func.func @transform_6(%arg0: i32) -> (i32, i32) {
    %c0_i32 = arith.constant 0 : i32
    %c0_i32_0 = arith.constant 0 : i32
    %c0_i32_1 = arith.constant 0 : i32
    return %c0_i32, %c0_i32_0 : i32, i32
  }
  func.func @transform_7(%arg0: i32) -> (i32, i32) {
    %c0_i32 = arith.constant 0 : i32
    %c0_i32_0 = arith.constant 0 : i32
    %c0_i32_1 = arith.constant 0 : i32
    return %c0_i32, %c0_i32_0 : i32, i32
  }
  func.func @transform_8(%arg0: i32) -> (i32, i32) {
    %c0_i32 = arith.constant 0 : i32
    %c0_i32_0 = arith.constant 0 : i32
    %c0_i32_1 = arith.constant 0 : i32
    return %c0_i32, %c0_i32_0 : i32, i32
  }
  func.func @transform_9(%arg0: i32) -> (i32, i32) {
    %c0_i32 = arith.constant 0 : i32
    %c0_i32_0 = arith.constant 0 : i32
    %c0_i32_1 = arith.constant 0 : i32
    return %c0_i32, %c0_i32_0 : i32, i32
  }
  func.func @transform_10(%arg0: i32) -> (i32, i32, i32, i32) {
    %c0_i32 = arith.constant 0 : i32
    %c0_i32_0 = arith.constant 0 : i32
    %c0_i32_1 = arith.constant 0 : i32
    %c0_i32_2 = arith.constant 0 : i32
    return %arg0, %c0_i32, %c0_i32_0, %c0_i32_1 : i32, i32, i32, i32
  }
}

</mosaic_0001>

<bundles_post_ra>
// kernel: tpu_custom_call.1
= control target key start
LH: loop header
LB: loop body
LE: loop exit
PB: predicated region body
PF: predicated region fallthrough
CT: control target
= control target key end

     0   :  { %15 = vsyncpa [#allocation5], 0  ;;  %s12272_s0 = inlined_call_operand.hbm [shape: f32[2,16,16,128], index: 0, kind: input, shape index: {}]   ;;  %s12273_s1 = inlined_call_operand.hbm [shape: f32[1152,128], index: 1, kind: input, shape index: {}]   ;;  %s12274_s2 = inlined_call_operand.vmem [shape: f32[1,128], index: 2, kind: input, shape index: {}]   ;;  %s12275_s3 = inlined_call_operand.vmem [shape: f32[1,128], index: 3, kind: input, shape index: {}]   ;;  %s12276_s4 = inlined_call_operand.hbm [shape: f32[1152,128], index: 4, kind: input, shape index: {}]   ;;  %s12277_s5 = inlined_call_operand.vmem [shape: f32[1,128], index: 5, kind: input, shape index: {}]   ;;  %s12278_s6 = inlined_call_operand.vmem [shape: f32[1,128], index: 6, kind: input, shape index: {}]   ;;  %s12279_s7 = inlined_call_operand.hbm [shape: f32[128,128], index: 7, kind: input, shape index: {}]   ;;  %s12280_s8 = inlined_call_operand.vmem [shape: f32[1,128], index: 8, kind: input, shape index: {}]   ;;  %s12281_s9 = inlined_call_operand.vmem [shape: f32[1,128], index: 9, kind: input, shape index: {}]   ;;  %s12282_s10 = inlined_call_operand.hbm [shape: f32[2,16,16,128], index: 10, kind: output, shape index: {}]  }
   0x1   :  { %16 = vsyncpa [#allocation8], 0 }
   0x2   :  { %17 = vsyncpa [#allocation11], 0 }
   0x3   :  { %18 = vsyncpa [#allocation6], 0  ;;  %s8932_s13 = smov [#allocation7]   ;;  %s8933_s15 = smov [#allocation4]  }
   0x4   :  { %s36_s14 = sshll.u32 %s8932_s13, 4  ;;  %s24_s16 = sshll.u32 %s8933_s15, 4  ;;  %s37_s14 = int_to_ptr.vmem [resolvable:$true] %s36_s14  ;;  %s8996_s16 = int_to_ptr.vmem [resolvable:$true] %s24_s16 }
   0x5   :  { %s8814_s19 = scalar_lea.hbm %s12273_s1, 18432 }
   0x6   :  { %p8815_p0 = scmp.ne.s32.totalorder %s12273_s1, %s8814_s19  ;;  %p8818_p1 = scmp.lt.u32.totalorder %s8814_s19, %s12273_s1 }
   0x8   :  { %p8820_p2 = pnand %p8818_p1, %p8815_p0 }
   0xa   :  { %8823 = shalt.err (!%p8820_p2)
}
   0xb   :  { %s8824_s24 = scalar_lea.vmem %s37_s14, 18432  ;;  %p8829_p4 = scmp.lt.s32.totalorder %s37_s14, %s37_s14 }
   0xc   :  { %p8825_p3 = scmp.ne.s32.totalorder %s37_s14, %s8824_s24  ;;  %p8830_p5 = scmp.lt.s32.totalorder %s8824_s24, %s8824_s24 }
   0xe   :  { %p8831_p6 = por %p8830_p5, %p8829_p4 }
  0x10   :  { %p8832_p7 = pnand %p8831_p6, %p8825_p3 }
  0x12   :  { %8835 = shalt.err (!%p8832_p7)
}
  0x13   :  { %s8934_s25 = smov 128   ;;  %s8935_s26 = smov 8  }
  0x14   :  { %42 = dma.hbm_to_vmem [thread:$0]  %s12273_s1, 18432, %s37_s14, [#allocation8], %s8934_s25, %s8934_s25, %s8935_s26  }
  0x15   :  { %s8836_s11 = scalar_lea.hbm %s12272_s0, 8192 }
  0x16   :  { %p8837_p8 = scmp.ne.s32.totalorder %s12272_s0, %s8836_s11  ;;  %p8840_p9 = scmp.lt.u32.totalorder %s8836_s11, %s12272_s0 }
  0x18   :  { %p8842_p10 = pnand %p8840_p9, %p8837_p8 }
  0x1a   :  { %8845 = shalt.err (!%p8842_p10)
}
  0x1b   :  { %s8846_s18 = scalar_lea.vmem %s8996_s16, 8192  ;;  %p8851_p12 = scmp.lt.s32.totalorder %s8996_s16, %s8996_s16 }
  0x1c   :  { %p8847_p11 = scmp.ne.s32.totalorder %s8996_s16, %s8846_s18  ;;  %p8852_p13 = scmp.lt.s32.totalorder %s8846_s18, %s8846_s18 }
  0x1e   :  { %p8853_p0 = por %p8852_p13, %p8851_p12 }
  0x20   :  { %p8854_p1 = pnand %p8853_p0, %p8847_p11 }
  0x22   :  { %8857 = shalt.err (!%p8854_p1)
}
  0x23   :  { %30 = dma.hbm_to_vmem [thread:$0]  %s12272_s0, 8192, %s8996_s16, [#allocation5], %s8934_s25, %s8934_s25, %s8935_s26  }
  0x24   :  { %s8936_s19 = smov [#allocation9]   ;;  %s8937_s21 = smov [#allocation10]  }
  0x25   :  { %s52_s20 = sshll.u32 %s8936_s19, 4  ;;  %s68_s22 = sshll.u32 %s8937_s21, 4  ;;  %s53_s20 = int_to_ptr.vmem [resolvable:$true] %s52_s20  ;;  %s9033_s22 = int_to_ptr.vmem [resolvable:$true] %s68_s22 }
  0x26   :  { %s8858_s27 = scalar_lea.hbm %s12276_s4, 18432 }
  0x27   :  { %p8859_p2 = scmp.ne.s32.totalorder %s12276_s4, %s8858_s27  ;;  %p8862_p3 = scmp.lt.u32.totalorder %s8858_s27, %s12276_s4 }
  0x29   :  { %p8864_p4 = pnand %p8862_p3, %p8859_p2 }
  0x2b   :  { %8867 = shalt.err (!%p8864_p4)
}
  0x2c   :  { %s8868_s0 = scalar_lea.vmem %s53_s20, 18432  ;;  %p8873_p6 = scmp.lt.s32.totalorder %s53_s20, %s53_s20 }
  0x2d   :  { %p8869_p5 = scmp.ne.s32.totalorder %s53_s20, %s8868_s0  ;;  %p8874_p7 = scmp.lt.s32.totalorder %s8868_s0, %s8868_s0 }
  0x2f   :  { %p8875_p8 = por %p8874_p7, %p8873_p6 }
  0x31   :  { %p8876_p9 = pnand %p8875_p8, %p8869_p5 }
  0x33   :  { %8879 = shalt.err (!%p8876_p9)
}
  0x34   :  { %58 = dma.hbm_to_vmem [thread:$0]  %s12276_s4, 18432, %s53_s20, [#allocation8], %s8934_s25, %s8934_s25, %s8935_s26  }
  0x35   :  { %s8880_s17 = scalar_lea.hbm %s12279_s7, 2048 }
  0x36   :  { %p8881_p10 = scmp.ne.s32.totalorder %s12279_s7, %s8880_s17  ;;  %p8884_p11 = scmp.lt.u32.totalorder %s8880_s17, %s12279_s7 }
  0x38   :  { %p8886_p12 = pnand %p8884_p11, %p8881_p10 }
  0x3a   :  { %8889 = shalt.err (!%p8886_p12)
}
  0x3b   :  { %s8890_s21 = scalar_lea.vmem %s9033_s22, 2048  ;;  %p8895_p0 = scmp.lt.s32.totalorder %s9033_s22, %s9033_s22 }
  0x3c   :  { %p8891_p13 = scmp.ne.s32.totalorder %s9033_s22, %s8890_s21  ;;  %p8896_p1 = scmp.lt.s32.totalorder %s8890_s21, %s8890_s21 }
  0x3e   :  { %p8897_p2 = por %p8896_p1, %p8895_p0 }
  0x40   :  { %p8898_p3 = pnand %p8897_p2, %p8891_p13 }
  0x42   :  { %8901 = shalt.err (!%p8898_p3)
}
  0x43   :  { %74 = dma.hbm_to_vmem [thread:$0]  %s12279_s7, 2048, %s9033_s22, [#allocation11], %s8934_s25, %s8934_s25, %s8935_s26  }
  0x44   :  { %8924 = dma.done.wait [#allocation5], 8192  }
  0x45   :  { %8925 = vsyncadd [#allocation5], 4294959104 }
  0x46   :  { %8926 = dma.done.wait [#allocation8], 36864  }
  0x47   :  { %8927 = vsyncadd [#allocation8], 4294930432 }
  0x48   :  { %8928 = dma.done.wait [#allocation11], 2048  }
  0x49   :  { %8929 = vsyncadd [#allocation11], 4294965248  ;;  %v12283_v0 = vmov 0.0|0.0   ;;  %v8939_v1 = vmov 0.0   ;;  %v878_v2 = vld [vmem:[#allocation7] sm:$0xff]  ;;  %v879_v3 = vld [vmem:[#allocation7 + $0x8] sm:$0xff] }
  0x4a   :  { %7535 = vmatprep.subr.bf16.mxu0 %v12283_v0  ;;  %156 = vst [vmem:[#allocation2 + $0x8] sm:$0xff] %v8939_v1  ;;  %1086 = vmatprep.mubr.f32.mxu0 %v8939_v1  ;;  %155 = vst [vmem:[#allocation2] sm:$0xff] %v8939_v1  ;;  %v880_v4 = vld [vmem:[#allocation7 + $0x10] sm:$0xff]  ;;  %v7536_v5 = vpack.c.bf16 %v879_v3, %v878_v2  ;;  %v881_v6 = vld [vmem:[#allocation7 + $0x18] sm:$0xff] }
  0x4b   :  { %157 = vst [vmem:[#allocation2 + $0x10] sm:$0xff] %v8939_v1  ;;  %158 = vst [vmem:[#allocation2 + $0x18] sm:$0xff] %v8939_v1  ;;  %v7539_v7 = vpack.c.bf16 %v881_v6, %v880_v4  ;;  %v882_v8 = vld [vmem:[#allocation7 + $0x20] sm:$0xff]  ;;  %v883_v9 = vld [vmem:[#allocation7 + $0x28] sm:$0xff] }
  0x4c   :  { %159 = vst [vmem:[#allocation2 + $0x240] sm:$0xff] %v8939_v1  ;;  %160 = vst [vmem:[#allocation2 + $0x248] sm:$0xff] %v8939_v1  ;;  %7537 = vmatpush1.bf16.msra.mxu0 %v7536_v5  ;;  %v7542_v10 = vpack.c.bf16 %v883_v9, %v882_v8  ;;  %v884_v11 = vld [vmem:[#allocation7 + $0x30] sm:$0xff]  ;;  %v885_v12 = vld [vmem:[#allocation7 + $0x38] sm:$0xff] }
  0x4d   :  { %161 = vst [vmem:[#allocation2 + $0x250] sm:$0xff] %v8939_v1  ;;  %162 = vst [vmem:[#allocation2 + $0x258] sm:$0xff] %v8939_v1  ;;  %7538 = vmatprep.subr.bf16.mxu0 %v12283_v0  ;;  %v7545_v13 = vpack.c.bf16 %v885_v12, %v884_v11  ;;  %v886_v14 = vld [vmem:[#allocation7 + $0x40] sm:$0xff]  ;;  %v887_v15 = vld [vmem:[#allocation7 + $0x48] sm:$0xff] }
  0x4e   :  { %164 = vst [vmem:[#allocation2 + $0x220] sm:$0xff] %v8939_v1  ;;  %165 = vst [vmem:[#allocation2 + $0x228] sm:$0xff] %v8939_v1  ;;  %v9235_v16 = vld [vmem:[#allocation4] sm:$0xff]  ;;  %v9237_v17 = vld [vmem:[#allocation4 + $0x8] sm:$0xff]  ;;  %v7548_v23 = vpack.c.bf16 %v887_v15, %v886_v14 }
  0x4f   :  { %166 = vst [vmem:[#allocation2 + $0x230] sm:$0xff] %v8939_v1  ;;  %167 = vst [vmem:[#allocation2 + $0x238] sm:$0xff] %v8939_v1  ;;  %v9239_v18 = vld [vmem:[#allocation4 + $0x10] sm:$0xff]  ;;  %v9244_v19 = vld [vmem:[#allocation4 + $0x18] sm:$0xff] }
  0x50   :  { %168 = vst [vmem:[#allocation2 + $0x460] sm:$0xff] %v8939_v1  ;;  %169 = vst [vmem:[#allocation2 + $0x468] sm:$0xff] %v8939_v1  ;;  %7540 = vmatpush1.bf16.msra.mxu0 %v7539_v7  ;;  %v9247_v20 = vld [vmem:[#allocation4 + $0x20] sm:$0xff]  ;;  %v9249_v21 = vld [vmem:[#allocation4 + $0x28] sm:$0xff] }
  0x51   :  { %170 = vst [vmem:[#allocation2 + $0x470] sm:$0xff] %v8939_v1  ;;  %171 = vst [vmem:[#allocation2 + $0x478] sm:$0xff] %v8939_v1  ;;  %7541 = vmatprep.subr.bf16.mxu0 %v12283_v0  ;;  %v9251_v22 = vld [vmem:[#allocation4 + $0x30] sm:$0xff]  ;;  %v889_v25 = vld [vmem:[#allocation7 + $0x58] sm:$0xff] }
  0x52   :  { %173 = vst [vmem:[#allocation2 + $0x27] sm:$0x1] %v8939_v1  ;;  %174 = vst [vmem:[#allocation2 + $0x47] sm:$0x1] %v8939_v1  ;;  %v888_v24 = vld [vmem:[#allocation7 + $0x50] sm:$0xff]  ;;  %v9256_v26 = vld [vmem:[#allocation4 + $0x38] sm:$0xff] }
  0x53   :  { %175 = vst [vmem:[#allocation2 + $0x67] sm:$0x1] %v8939_v1  ;;  %176 = vst [vmem:[#allocation2 + $0x87] sm:$0x1] %v8939_v1  ;;  %v9260_v27 = vld [vmem:[#allocation4 + $0x40] sm:$0xff]  ;;  %v9262_v28 = vld [vmem:[#allocation4 + $0x48] sm:$0xff]  ;;  %v7551_v34 = vpack.c.bf16 %v889_v25, %v888_v24 }
  0x54   :  { %177 = vst [vmem:[#allocation2 + $0xa7] sm:$0x1] %v8939_v1  ;;  %178 = vst [vmem:[#allocation2 + $0xc7] sm:$0x1] %v8939_v1  ;;  %7543 = vmatpush1.bf16.msra.mxu0 %v7542_v10  ;;  %v9264_v29 = vld [vmem:[#allocation4 + $0x50] sm:$0xff]  ;;  %v9269_v30 = vld [vmem:[#allocation4 + $0x58] sm:$0xff] }
  0x55   :  { %179 = vst [vmem:[#allocation2 + $0xe7] sm:$0x1] %v8939_v1  ;;  %180 = vst [vmem:[#allocation2 + $0x107] sm:$0x1] %v8939_v1  ;;  %7544 = vmatprep.subr.bf16.mxu0 %v12283_v0  ;;  %v9272_v31 = vld [vmem:[#allocation4 + $0x60] sm:$0xff]  ;;  %v9274_v32 = vld [vmem:[#allocation4 + $0x68] sm:$0xff] }
  0x56   :  { %181 = vst [vmem:[#allocation2 + $0x127] sm:$0x1] %v8939_v1  ;;  %182 = vst [vmem:[#allocation2 + $0x147] sm:$0x1] %v8939_v1  ;;  %v9276_v33 = vld [vmem:[#allocation4 + $0x70] sm:$0xff]  ;;  %v9281_v35 = vld [vmem:[#allocation4 + $0x78] sm:$0xff] }
  0x57   :  { %183 = vst [vmem:[#allocation2 + $0x167] sm:$0x1] %v8939_v1  ;;  %184 = vst [vmem:[#allocation2 + $0x187] sm:$0x1] %v8939_v1  ;;  %v890_v36 = vld [vmem:[#allocation7 + $0x60] sm:$0xff]  ;;  %v891_v37 = vld [vmem:[#allocation7 + $0x68] sm:$0xff] }
  0x58   :  { %185 = vst [vmem:[#allocation2 + $0x1a7] sm:$0x1] %v8939_v1  ;;  %186 = vst [vmem:[#allocation2 + $0x1c7] sm:$0x1] %v8939_v1  ;;  %7546 = vmatpush1.bf16.msra.mxu0 %v7545_v13  ;;  %v9285_v38 = vld [vmem:[#allocation4 + $0x80] sm:$0xff]  ;;  %v9287_v39 = vld [vmem:[#allocation4 + $0x88] sm:$0xff]  ;;  %v7554_v40 = vpack.c.bf16 %v891_v37, %v890_v36 }
  0x59   :  { %187 = vst [vmem:[#allocation2 + $0x1e7] sm:$0x1] %v8939_v1  ;;  %188 = vst [vmem:[#allocation2 + $0x207] sm:$0x1] %v8939_v1  ;;  %7547 = vmatprep.subr.bf16.mxu0 %v12283_v0  ;;  %v9291_v41 = vld [vmem:[#allocation4 + $0x90] sm:$0xff]  ;;  %v893_v43 = vld [vmem:[#allocation7 + $0x78] sm:$0xff] }
  0x5a   :  { %189 = vst [vmem:[#allocation2 + $0x267] sm:$0x1] %v8939_v1  ;;  %190 = vst [vmem:[#allocation2 + $0x287] sm:$0x1] %v8939_v1  ;;  %v892_v42 = vld [vmem:[#allocation7 + $0x70] sm:$0xff]  ;;  %v9295_v44 = vld [vmem:[#allocation4 + $0x98] sm:$0xff] }
  0x5b   :  { %191 = vst [vmem:[#allocation2 + $0x2a7] sm:$0x1] %v8939_v1  ;;  %192 = vst [vmem:[#allocation2 + $0x2c7] sm:$0x1] %v8939_v1  ;;  %v7557_v45 = vpack.c.bf16 %v893_v43, %v892_v42  ;;  %v9298_v46 = vld [vmem:[#allocation4 + $0xa0] sm:$0xff]  ;;  %v9300_v47 = vld [vmem:[#allocation4 + $0xa8] sm:$0xff] }
  0x5c   :  { %193 = vst [vmem:[#allocation2 + $0x2e7] sm:$0x1] %v8939_v1  ;;  %194 = vst [vmem:[#allocation2 + $0x307] sm:$0x1] %v8939_v1  ;;  %7549 = vmatpush1.bf16.msra.mxu0 %v7548_v23  ;;  %v894_v48 = vld [vmem:[#allocation7 + $0x80] sm:$0xff]  ;;  %v895_v49 = vld [vmem:[#allocation7 + $0x88] sm:$0xff] }
  0x5d   :  { %195 = vst [vmem:[#allocation2 + $0x327] sm:$0x1] %v8939_v1  ;;  %196 = vst [vmem:[#allocation2 + $0x347] sm:$0x1] %v8939_v1  ;;  %7550 = vmatprep.subr.bf16.mxu0 %v12283_v0  ;;  %v9305_v50 = vld [vmem:[#allocation4 + $0xb0] sm:$0xff]  ;;  %v9308_v51 = vld [vmem:[#allocation4 + $0xb8] sm:$0xff]  ;;  %v7560_v52 = vpack.c.bf16 %v895_v49, %v894_v48 }
  0x5e   :  { %197 = vst [vmem:[#allocation2 + $0x367] sm:$0x1] %v8939_v1  ;;  %198 = vst [vmem:[#allocation2 + $0x387] sm:$0x1] %v8939_v1  ;;  %v896_v53 = vld [vmem:[#allocation7 + $0x90] sm:$0xff]  ;;  %v897_v54 = vld [vmem:[#allocation7 + $0x98] sm:$0xff] }
  0x5f   :  { %199 = vst [vmem:[#allocation2 + $0x3a7] sm:$0x1] %v8939_v1  ;;  %200 = vst [vmem:[#allocation2 + $0x3c7] sm:$0x1] %v8939_v1  ;;  %v9312_v55 = vld [vmem:[#allocation4 + $0xc0] sm:$0xff]  ;;  %v7563_v56 = vpack.c.bf16 %v897_v54, %v896_v53  ;;  %v899_v58 = vld [vmem:[#allocation7 + $0xa8] sm:$0xff] }
  0x60   :  { %201 = vst [vmem:[#allocation2 + $0x3e7] sm:$0x1] %v8939_v1  ;;  %202 = vst [vmem:[#allocation2 + $0x407] sm:$0x1] %v8939_v1  ;;  %7552 = vmatpush1.bf16.msra.mxu0 %v7551_v34  ;;  %v898_v57 = vld [vmem:[#allocation7 + $0xa0] sm:$0xff]  ;;  %v9316_v59 = vld [vmem:[#allocation4 + $0xc8] sm:$0xff] }
  0x61   :  { %203 = vst [vmem:[#allocation2 + $0x427] sm:$0x1] %v8939_v1  ;;  %204 = vst [vmem:[#allocation2 + $0x447] sm:$0x1] %v8939_v1  ;;  %7553 = vmatprep.subr.bf16.mxu0 %v12283_v0  ;;  %v7566_v60 = vpack.c.bf16 %v899_v58, %v898_v57  ;;  %v900_v61 = vld [vmem:[#allocation7 + $0xb0] sm:$0xff]  ;;  %v901_v62 = vld [vmem:[#allocation7 + $0xb8] sm:$0xff] }
  0x62   :  { %205 = vst [vmem:[#allocation2 + $0x38] sm:$0x1] %v8939_v1  ;;  %206 = vst [vmem:[#allocation2 + $0x58] sm:$0x1] %v8939_v1  ;;  %v9320_v63 = vld [vmem:[#allocation4 + $0xd0] sm:$0xff]  ;;  %v7569_v2 = vpack.c.bf16 %v901_v62, %v900_v61  ;;  %v902_v3 = vld [vmem:[#allocation7 + $0xc0] sm:$0xff] }
  0x63   :  { %207 = vst [vmem:[#allocation2 + $0x78] sm:$0x1] %v8939_v1  ;;  %208 = vst [vmem:[#allocation2 + $0x98] sm:$0x1] %v8939_v1  ;;  %v903_v4 = vld [vmem:[#allocation7 + $0xc8] sm:$0xff]  ;;  %v9324_v5 = vld [vmem:[#allocation4 + $0xd8] sm:$0xff] }
  0x64   :  { %209 = vst [vmem:[#allocation2 + $0xb8] sm:$0x1] %v8939_v1  ;;  %210 = vst [vmem:[#allocation2 + $0xd8] sm:$0x1] %v8939_v1  ;;  %7555 = vmatpush1.bf16.msra.mxu0 %v7554_v40  ;;  %v7572_v6 = vpack.c.bf16 %v903_v4, %v902_v3  ;;  %v904_v7 = vld [vmem:[#allocation7 + $0xd0] sm:$0xff]  ;;  %v905_v8 = vld [vmem:[#allocation7 + $0xd8] sm:$0xff] }
  0x65   :  { %211 = vst [vmem:[#allocation2 + $0xf8] sm:$0x1] %v8939_v1  ;;  %212 = vst [vmem:[#allocation2 + $0x118] sm:$0x1] %v8939_v1  ;;  %7556 = vmatprep.subr.bf16.mxu0 %v12283_v0  ;;  %v9328_v9 = vld [vmem:[#allocation4 + $0xe0] sm:$0xff]  ;;  %v7575_v10 = vpack.c.bf16 %v905_v8, %v904_v7  ;;  %v907_v12 = vld [vmem:[#allocation7 + $0xe8] sm:$0xff] }
  0x66   :  { %213 = vst [vmem:[#allocation2 + $0x138] sm:$0x1] %v8939_v1  ;;  %214 = vst [vmem:[#allocation2 + $0x158] sm:$0x1] %v8939_v1  ;;  %v906_v11 = vld [vmem:[#allocation7 + $0xe0] sm:$0xff]  ;;  %v9332_v13 = vld [vmem:[#allocation4 + $0xe8] sm:$0xff] }
  0x67   :  { %215 = vst [vmem:[#allocation2 + $0x178] sm:$0x1] %v8939_v1  ;;  %216 = vst [vmem:[#allocation2 + $0x198] sm:$0x1] %v8939_v1  ;;  %v7578_v14 = vpack.c.bf16 %v907_v12, %v906_v11  ;;  %v908_v15 = vld [vmem:[#allocation7 + $0xf0] sm:$0xff]  ;;  %v909_v23 = vld [vmem:[#allocation7 + $0xf8] sm:$0xff] }
  0x68   :  { %217 = vst [vmem:[#allocation2 + $0x1b8] sm:$0x1] %v8939_v1  ;;  %218 = vst [vmem:[#allocation2 + $0x1d8] sm:$0x1] %v8939_v1  ;;  %7558 = vmatpush1.bf16.msra.mxu0 %v7557_v45  ;;  %v7581_v24 = vpack.c.bf16 %v909_v23, %v908_v15  ;;  %v910_v25 = vld [vmem:[#allocation7 + $0x100] sm:$0xff]  ;;  %v911_v34 = vld [vmem:[#allocation7 + $0x108] sm:$0xff] }
  0x69   :  { %219 = vst [vmem:[#allocation2 + $0x1f8] sm:$0x1] %v8939_v1  ;;  %220 = vst [vmem:[#allocation2 + $0x218] sm:$0x1] %v8939_v1  ;;  %7559 = vmatprep.subr.bf16.mxu0 %v12283_v0  ;;  %v301_v36 = vld [vmem:[#allocation2 + $0x7] sm:$0xff]  ;;  %v7584_v37 = vpack.c.bf16 %v911_v34, %v910_v25  ;;  %v912_v40 = vld [vmem:[#allocation7 + $0x110] sm:$0xff] }
  0x6a   :  { %221 = vst [vmem:[#allocation2 + $0x278] sm:$0x1] %v8939_v1  ;;  %222 = vst [vmem:[#allocation2 + $0x298] sm:$0x1] %v8939_v1  ;;  %v913_v42 = vld [vmem:[#allocation7 + $0x118] sm:$0xff]  ;;  %v9338_v43 = vld [vmem:[#allocation4 + $0x100] sm:$0xff] }
  0x6b   :  { %223 = vst [vmem:[#allocation2 + $0x2b8] sm:$0x1] %v8939_v1  ;;  %224 = vst [vmem:[#allocation2 + $0x2d8] sm:$0x1] %v8939_v1  ;;  %v302_v45 = vld [vmem:[#allocation2 + $0xf] sm:$0xff]  ;;  %v7587_v48 = vpack.c.bf16 %v913_v42, %v912_v40  ;;  %v914_v49 = vld [vmem:[#allocation7 + $0x120] sm:$0xff] }
  0x6c   :  { %225 = vst [vmem:[#allocation2 + $0x2f8] sm:$0x1] %v8939_v1  ;;  %226 = vst [vmem:[#allocation2 + $0x318] sm:$0x1] %v8939_v1  ;;  %7561 = vmatpush1.bf16.msra.mxu0 %v7560_v52  ;;  %v915_v52 = vld [vmem:[#allocation7 + $0x128] sm:$0xff]  ;;  %v917_v57 = vld [vmem:[#allocation7 + $0x138] sm:$0xff] }
  0x6d   :  { %227 = vst [vmem:[#allocation2 + $0x338] sm:$0x1] %v8939_v1  ;;  %228 = vst [vmem:[#allocation2 + $0x358] sm:$0x1] %v8939_v1  ;;  %7562 = vmatprep.subr.bf16.mxu0 %v12283_v0  ;;  %v9343_v53 = vld [vmem:[#allocation4 + $0x108] sm:$0xff]  ;;  %v9350_v58 = vld [vmem:[#allocation4 + $0x110] sm:$0xff] }
  0x6e   :  { %229 = vst [vmem:[#allocation2 + $0x378] sm:$0x1] %v8939_v1  ;;  %230 = vst [vmem:[#allocation2 + $0x398] sm:$0x1] %v8939_v1  ;;  %v918_v61 = vld [vmem:[#allocation7 + $0x140] sm:$0xff]  ;;  %v919_v62 = vld [vmem:[#allocation7 + $0x148] sm:$0xff] }
  0x6f   :  { %231 = vst [vmem:[#allocation2 + $0x3b8] sm:$0x1] %v8939_v1  ;;  %232 = vst [vmem:[#allocation2 + $0x3d8] sm:$0x1] %v8939_v1  ;;  %v920_v4 = vld [vmem:[#allocation7 + $0x150] sm:$0xff]  ;;  %v9366_v7 = vld [vmem:[#allocation4 + $0x120] sm:$0xff] }
  0x70   :  { %233 = vst [vmem:[#allocation2 + $0x3f8] sm:$0x1] %v8939_v1  ;;  %234 = vst [vmem:[#allocation2 + $0x418] sm:$0x1] %v8939_v1  ;;  %7564 = vmatpush1.bf16.msra.mxu0 %v7563_v56  ;;  %v7590_v56 = vpack.c.bf16 %v915_v52, %v914_v49  ;;  %v923_v11 = vld [vmem:[#allocation7 + $0x168] sm:$0xff]  ;;  %v924_v15 = vld [vmem:[#allocation7 + $0x170] sm:$0xff] }
  0x71   :  { %235 = vst [vmem:[#allocation2 + $0x438] sm:$0x1] %v8939_v1  ;;  %236 = vst [vmem:[#allocation2 + $0x458] sm:$0x1] %v8939_v1  ;;  %7565 = vmatprep.subr.bf16.mxu0 %v12283_v0  ;;  %v9374_v12 = vld [vmem:[#allocation4 + $0x128] sm:$0xff]  ;;  %v925_v23 = vld [vmem:[#allocation7 + $0x178] sm:$0xff] }
  0x72   :  { %3153 = vst [vmem:[#allocation3] sm:$0xff] %v8939_v1  ;;  %3154 = vst [vmem:[#allocation3 + $0x8] sm:$0xff] %v8939_v1  ;;  %v926_v34 = vld [vmem:[#allocation7 + $0x180] sm:$0xff]  ;;  %v928_v42 = vld [vmem:[#allocation7 + $0x190] sm:$0xff] }
  0x73   :  { %3155 = vst [vmem:[#allocation3 + $0x10] sm:$0xff] %v8939_v1  ;;  %3156 = vst [vmem:[#allocation3 + $0x18] sm:$0xff] %v8939_v1  ;;  %v930_v52 = vld [vmem:[#allocation7 + $0x1a0] sm:$0xff] }
  0x74   :  { %3157 = vst [vmem:[#allocation3 + $0x240] sm:$0xff] %v8939_v1  ;;  %3158 = vst [vmem:[#allocation3 + $0x248] sm:$0xff] %v8939_v1  ;;  %7567 = vmatpush1.bf16.msra.mxu0 %v7566_v60 }
  0x75   :  { %3159 = vst [vmem:[#allocation3 + $0x250] sm:$0xff] %v8939_v1  ;;  %3160 = vst [vmem:[#allocation3 + $0x258] sm:$0xff] %v8939_v1  ;;  %7568 = vmatprep.subr.bf16.mxu0 %v12283_v0 }
  0x76   :  { %3162 = vst [vmem:[#allocation3 + $0x220] sm:$0xff] %v8939_v1  ;;  %3163 = vst [vmem:[#allocation3 + $0x228] sm:$0xff] %v8939_v1 }
  0x77   :  { %3164 = vst [vmem:[#allocation3 + $0x230] sm:$0xff] %v8939_v1  ;;  %3165 = vst [vmem:[#allocation3 + $0x238] sm:$0xff] %v8939_v1 }
  0x78   :  { %3166 = vst [vmem:[#allocation3 + $0x460] sm:$0xff] %v8939_v1  ;;  %3167 = vst [vmem:[#allocation3 + $0x468] sm:$0xff] %v8939_v1  ;;  %7570 = vmatpush1.bf16.msra.mxu0 %v7569_v2  ;;  %v9358_v2 = vld [vmem:[#allocation4 + $0x118] sm:$0xff] }
  0x79   :  { %3168 = vst [vmem:[#allocation3 + $0x470] sm:$0xff] %v8939_v1  ;;  %3169 = vst [vmem:[#allocation3 + $0x478] sm:$0xff] %v8939_v1  ;;  %7571 = vmatprep.subr.bf16.mxu0 %v12283_v0 }
  0x7a   :  { %3171 = vst [vmem:[#allocation3 + $0x27] sm:$0x1] %v8939_v1  ;;  %3172 = vst [vmem:[#allocation3 + $0x47] sm:$0x1] %v8939_v1 }
  0x7b   :  { %3173 = vst [vmem:[#allocation3 + $0x67] sm:$0x1] %v8939_v1  ;;  %3174 = vst [vmem:[#allocation3 + $0x87] sm:$0x1] %v8939_v1 }
  0x7c   :  { %3175 = vst [vmem:[#allocation3 + $0xa7] sm:$0x1] %v8939_v1  ;;  %3176 = vst [vmem:[#allocation3 + $0xc7] sm:$0x1] %v8939_v1  ;;  %7573 = vmatpush1.bf16.msra.mxu0 %v7572_v6  ;;  %v921_v6 = vld [vmem:[#allocation7 + $0x158] sm:$0xff] }
  0x7d   :  { %3177 = vst [vmem:[#allocation3 + $0xe7] sm:$0x1] %v8939_v1  ;;  %3178 = vst [vmem:[#allocation3 + $0x107] sm:$0x1] %v8939_v1  ;;  %7574 = vmatprep.subr.bf16.mxu0 %v12283_v0 }
  0x7e   :  { %3179 = vst [vmem:[#allocation3 + $0x127] sm:$0x1] %v8939_v1  ;;  %3180 = vst [vmem:[#allocation3 + $0x147] sm:$0x1] %v8939_v1 }
  0x7f   :  { %3181 = vst [vmem:[#allocation3 + $0x167] sm:$0x1] %v8939_v1  ;;  %3182 = vst [vmem:[#allocation3 + $0x187] sm:$0x1] %v8939_v1 }
  0x80   :  { %3183 = vst [vmem:[#allocation3 + $0x1a7] sm:$0x1] %v8939_v1  ;;  %3184 = vst [vmem:[#allocation3 + $0x1c7] sm:$0x1] %v8939_v1  ;;  %7576 = vmatpush1.bf16.msra.mxu0 %v7575_v10  ;;  %v922_v10 = vld [vmem:[#allocation7 + $0x160] sm:$0xff] }
  0x81   :  { %3185 = vst [vmem:[#allocation3 + $0x1e7] sm:$0x1] %v8939_v1  ;;  %3186 = vst [vmem:[#allocation3 + $0x207] sm:$0x1] %v8939_v1  ;;  %7577 = vmatprep.subr.bf16.mxu0 %v12283_v0 }
  0x82   :  { %3187 = vst [vmem:[#allocation3 + $0x267] sm:$0x1] %v8939_v1  ;;  %3188 = vst [vmem:[#allocation3 + $0x287] sm:$0x1] %v8939_v1 }
  0x83   :  { %3189 = vst [vmem:[#allocation3 + $0x2a7] sm:$0x1] %v8939_v1  ;;  %3190 = vst [vmem:[#allocation3 + $0x2c7] sm:$0x1] %v8939_v1 }
  0x84   :  { %3191 = vst [vmem:[#allocation3 + $0x2e7] sm:$0x1] %v8939_v1  ;;  %3192 = vst [vmem:[#allocation3 + $0x307] sm:$0x1] %v8939_v1  ;;  %7579 = vmatpush1.bf16.msra.mxu0 %v7578_v14 }
  0x85   :  { %3193 = vst [vmem:[#allocation3 + $0x327] sm:$0x1] %v8939_v1  ;;  %3194 = vst [vmem:[#allocation3 + $0x347] sm:$0x1] %v8939_v1  ;;  %7580 = vmatprep.subr.bf16.mxu0 %v12283_v0 }
  0x86   :  { %3195 = vst [vmem:[#allocation3 + $0x367] sm:$0x1] %v8939_v1  ;;  %3196 = vst [vmem:[#allocation3 + $0x387] sm:$0x1] %v8939_v1 }
  0x87   :  { %3197 = vst [vmem:[#allocation3 + $0x3a7] sm:$0x1] %v8939_v1  ;;  %3198 = vst [vmem:[#allocation3 + $0x3c7] sm:$0x1] %v8939_v1 }
  0x88   :  { %3199 = vst [vmem:[#allocation3 + $0x3e7] sm:$0x1] %v8939_v1  ;;  %3200 = vst [vmem:[#allocation3 + $0x407] sm:$0x1] %v8939_v1  ;;  %7582 = vmatpush1.bf16.msra.mxu0 %v7581_v24  ;;  %v9382_v24 = vld [vmem:[#allocation4 + $0x130] sm:$0xff] }
  0x89   :  { %3201 = vst [vmem:[#allocation3 + $0x427] sm:$0x1] %v8939_v1  ;;  %3202 = vst [vmem:[#allocation3 + $0x447] sm:$0x1] %v8939_v1  ;;  %7583 = vmatprep.subr.bf16.mxu0 %v12283_v0 }
  0x8a   :  { %3203 = vst [vmem:[#allocation3 + $0x38] sm:$0x1] %v8939_v1  ;;  %3204 = vst [vmem:[#allocation3 + $0x58] sm:$0x1] %v8939_v1 }
  0x8b   :  { %3205 = vst [vmem:[#allocation3 + $0x78] sm:$0x1] %v8939_v1  ;;  %3206 = vst [vmem:[#allocation3 + $0x98] sm:$0x1] %v8939_v1  ;;  %1087 = vmatmul.mubr.f32.vlgmr.msra.gmra.mrb[0].mxu0 %v301_v36  ;;  %v927_v36 = vld [vmem:[#allocation7 + $0x188] sm:$0xff] }
  0x8c   :  { %3207 = vst [vmem:[#allocation3 + $0xb8] sm:$0x1] %v8939_v1  ;;  %3208 = vst [vmem:[#allocation3 + $0xd8] sm:$0x1] %v8939_v1  ;;  %7585 = vmatpush1.bf16.msra.mxu0 %v7584_v37  ;;  %1091 = vmatprep.mubr.f32.mxu0 %v8939_v1  ;;  %v9390_v37 = vld [vmem:[#allocation4 + $0x138] sm:$0xff] }
  0x8d   :  { %3209 = vst [vmem:[#allocation3 + $0xf8] sm:$0x1] %v8939_v1  ;;  %3210 = vst [vmem:[#allocation3 + $0x118] sm:$0x1] %v8939_v1  ;;  %7586 = vmatprep.subr.bf16.mxu0 %v12283_v0 }
  0x8e   :  { %3211 = vst [vmem:[#allocation3 + $0x138] sm:$0x1] %v8939_v1  ;;  %3212 = vst [vmem:[#allocation3 + $0x158] sm:$0x1] %v8939_v1 }
  0x8f   :  { %3213 = vst [vmem:[#allocation3 + $0x178] sm:$0x1] %v8939_v1  ;;  %3214 = vst [vmem:[#allocation3 + $0x198] sm:$0x1] %v8939_v1  ;;  %1092 = vmatmul.mubr.f32.gmra.mrb[2].mxu0 %v302_v45  ;;  %v929_v45 = vld [vmem:[#allocation7 + $0x198] sm:$0xff] }
  0x90   :  { %3215 = vst [vmem:[#allocation3 + $0x1b8] sm:$0x1] %v8939_v1  ;;  %3216 = vst [vmem:[#allocation3 + $0x1d8] sm:$0x1] %v8939_v1  ;;  %1096 = vmatprep.mubr.f32.mxu0 %v9235_v16  ;;  %7588 = vmatpush1.bf16.msra.mxu0 %v7587_v48  ;;  %v9398_v48 = vld [vmem:[#allocation4 + $0x140] sm:$0xff] }
  0x91   :  { %3217 = vst [vmem:[#allocation3 + $0x1f8] sm:$0x1] %v8939_v1  ;;  %3218 = vst [vmem:[#allocation3 + $0x218] sm:$0x1] %v8939_v1  ;;  %7589 = vmatprep.subr.bf16.mxu0 %v12283_v0 }
  0x92   :  { %3219 = vst [vmem:[#allocation3 + $0x278] sm:$0x1] %v8939_v1  ;;  %3220 = vst [vmem:[#allocation3 + $0x298] sm:$0x1] %v8939_v1 }
  0x93   :  { %3221 = vst [vmem:[#allocation3 + $0x2b8] sm:$0x1] %v8939_v1  ;;  %3222 = vst [vmem:[#allocation3 + $0x2d8] sm:$0x1] %v8939_v1 }
  0x94   :  { %3223 = vst [vmem:[#allocation3 + $0x2f8] sm:$0x1] %v8939_v1  ;;  %3224 = vst [vmem:[#allocation3 + $0x318] sm:$0x1] %v8939_v1  ;;  %7591 = vmatpush1.bf16.msra.mxu0 %v7590_v56  ;;  %v931_v56 = vld [vmem:[#allocation7 + $0x1a8] sm:$0xff] }
  0x95   :  { %3225 = vst [vmem:[#allocation3 + $0x338] sm:$0x1] %v8939_v1  ;;  %3226 = vst [vmem:[#allocation3 + $0x358] sm:$0x1] %v8939_v1  ;;  %7592 = vmatprep.subr.bf16.mxu0 %v12283_v0 }
  0x96   :  { %3227 = vst [vmem:[#allocation3 + $0x378] sm:$0x1] %v8939_v1  ;;  %3228 = vst [vmem:[#allocation3 + $0x398] sm:$0x1] %v8939_v1 }
  0x97   :  { %3229 = vst [vmem:[#allocation3 + $0x3b8] sm:$0x1] %v8939_v1  ;;  %3230 = vst [vmem:[#allocation3 + $0x3d8] sm:$0x1] %v8939_v1 }
  0x98   :  { %3231 = vst [vmem:[#allocation3 + $0x3f8] sm:$0x1] %v8939_v1  ;;  %3232 = vst [vmem:[#allocation3 + $0x418] sm:$0x1] %v8939_v1 }
  0x99   :  { %3233 = vst [vmem:[#allocation3 + $0x438] sm:$0x1] %v8939_v1  ;;  %3234 = vst [vmem:[#allocation3 + $0x458] sm:$0x1] %v8939_v1  ;;  %v916_v1 = vld [vmem:[#allocation7 + $0x130] sm:$0xff] }
  0x9a   :  { %237 = vst [vmem:[#allocation2 + $0x28] sm:$0xff] %v9235_v16  ;;  %238 = vst [vmem:[#allocation2 + $0x30] sm:$0xff] %v9237_v17  ;;  %v7593_v16 = vpack.c.bf16 %v917_v57, %v916_v1  ;;  %v9406_v1 = vld [vmem:[#allocation4 + $0x148] sm:$0xff] }
  0x9b   :  { %239 = vst [vmem:[#allocation2 + $0x48] sm:$0xff] %v9239_v18  ;;  %240 = vst [vmem:[#allocation2 + $0x50] sm:$0xff] %v9244_v19 }
  0x9c   :  { %241 = vst [vmem:[#allocation2 + $0x68] sm:$0xff] %v9247_v20  ;;  %242 = vst [vmem:[#allocation2 + $0x70] sm:$0xff] %v9249_v21  ;;  %7594 = vmatpush1.bf16.msra.mxu0 %v7593_v16  ;;  %v9414_v16 = vld [vmem:[#allocation4 + $0x150] sm:$0xff] }
  0x9d   :  { %243 = vst [vmem:[#allocation2 + $0x88] sm:$0xff] %v9251_v22  ;;  %244 = vst [vmem:[#allocation2 + $0x90] sm:$0xff] %v9256_v26  ;;  %7595 = vmatprep.subr.bf16.mxu0 %v12283_v0 }
  0x9e   :  { %245 = vst [vmem:[#allocation2 + $0xa8] sm:$0xff] %v9260_v27  ;;  %246 = vst [vmem:[#allocation2 + $0xb0] sm:$0xff] %v9262_v28 }
  0x9f   :  { %247 = vst [vmem:[#allocation2 + $0xc8] sm:$0xff] %v9264_v29  ;;  %248 = vst [vmem:[#allocation2 + $0xd0] sm:$0xff] %v9269_v30 }
  0xa0   :  { %249 = vst [vmem:[#allocation2 + $0xe8] sm:$0xff] %v9272_v31  ;;  %250 = vst [vmem:[#allocation2 + $0xf0] sm:$0xff] %v9274_v32 }
  0xa1   :  { %251 = vst [vmem:[#allocation2 + $0x108] sm:$0xff] %v9276_v33  ;;  %252 = vst [vmem:[#allocation2 + $0x110] sm:$0xff] %v9281_v35  ;;  %v9347_v54 = vld [vmem:[#allocation2 + $0x27] sm:$0xff]  ;;  %v9355_v60 = vld [vmem:[#allocation2 + $0x2f] sm:$0xff] }
  0xa2   :  { %253 = vst [vmem:[#allocation2 + $0x128] sm:$0xff] %v9285_v38  ;;  %254 = vst [vmem:[#allocation2 + $0x130] sm:$0xff] %v9287_v39  ;;  %1097 = vmatmul.mubr.f32.gmra.mrb[4].mxu0 %v9347_v54  ;;  %v9363_v3 = vld [vmem:[#allocation2 + $0x47] sm:$0xff]  ;;  %v9371_v8 = vld [vmem:[#allocation2 + $0x4f] sm:$0xff] }
  0xa3   :  { %255 = vst [vmem:[#allocation2 + $0x148] sm:$0xff] %v9291_v41  ;;  %256 = vst [vmem:[#allocation2 + $0x150] sm:$0xff] %v9295_v44  ;;  %1101 = vmatprep.mubr.f32.mxu0 %v9237_v17  ;;  %v7596_v17 = vpack.c.bf16 %v919_v62, %v918_v61  ;;  %v9379_v14 = vld [vmem:[#allocation2 + $0x67] sm:$0xff]  ;;  %v9387_v25 = vld [vmem:[#allocation2 + $0x6f] sm:$0xff] }
  0xa4   :  { %257 = vst [vmem:[#allocation2 + $0x168] sm:$0xff] %v9298_v46  ;;  %258 = vst [vmem:[#allocation2 + $0x170] sm:$0xff] %v9300_v47  ;;  %v9395_v40 = vld [vmem:[#allocation2 + $0x87] sm:$0xff]  ;;  %v9403_v49 = vld [vmem:[#allocation2 + $0x8f] sm:$0xff] }
  0xa5   :  { %259 = vst [vmem:[#allocation2 + $0x188] sm:$0xff] %v9305_v50  ;;  %260 = vst [vmem:[#allocation2 + $0x190] sm:$0xff] %v9308_v51  ;;  %7597 = vmatpush1.bf16.msra.mxu0 %v7596_v17  ;;  %v9411_v57 = vld [vmem:[#allocation2 + $0xa7] sm:$0xff]  ;;  %v9419_v61 = vld [vmem:[#allocation2 + $0xaf] sm:$0xff] }
  0xa6   :  { %261 = vst [vmem:[#allocation2 + $0x1a8] sm:$0xff] %v9312_v55  ;;  %262 = vst [vmem:[#allocation2 + $0x1b0] sm:$0xff] %v9316_v59  ;;  %1102 = vmatmul.mubr.f32.gmra.mrb[6].mxu0 %v9355_v60  ;;  %7598 = vmatprep.subr.bf16.mxu0 %v12283_v0  ;;  %v9427_v62 = vld [vmem:[#allocation2 + $0xc7] sm:$0xff] }
  0xa7   :  { %263 = vst [vmem:[#allocation2 + $0x1c8] sm:$0xff] %v9320_v63  ;;  %264 = vst [vmem:[#allocation2 + $0x1d0] sm:$0xff] %v9324_v5  ;;  %1106 = vmatprep.mubr.f32.mxu0 %v9239_v18  ;;  %v7599_v18 = vpack.c.bf16 %v921_v6, %v920_v4  ;;  %v9429_v17 = vld [vmem:[#allocation4 + $0x160] sm:$0xff]  ;;  %v933_v4 = vld [vmem:[#allocation7 + $0x1b8] sm:$0xff] }
  0xa8   :  { %265 = vst [vmem:[#allocation2 + $0x1e8] sm:$0xff] %v9328_v9  ;;  %266 = vst [vmem:[#allocation2 + $0x1f0] sm:$0xff] %v9332_v13  ;;  %v9434_v6 = vld [vmem:[#allocation2 + $0xcf] sm:$0xff] }
  0xa9   :  { %269 = vst [vmem:[#allocation2 + $0x268] sm:$0xff] %v9338_v43  ;;  %270 = vst [vmem:[#allocation2 + $0x270] sm:$0xff] %v9343_v53  ;;  %7600 = vmatpush1.bf16.msra.mxu0 %v7599_v18 }
  0xaa   :  { %271 = vst [vmem:[#allocation2 + $0x288] sm:$0xff] %v9350_v58  ;;  %272 = vst [vmem:[#allocation2 + $0x290] sm:$0xff] %v9358_v2  ;;  %1107 = vmatmul.mubr.f32.gmra.mrb[8].mxu0 %v9363_v3  ;;  %7601 = vmatprep.subr.bf16.mxu0 %v12283_v0 }
  0xab   :  { %273 = vst [vmem:[#allocation2 + $0x2a8] sm:$0xff] %v9366_v7  ;;  %1111 = vmatprep.mubr.f32.mxu0 %v9244_v19  ;;  %274 = vst [vmem:[#allocation2 + $0x2b0] sm:$0xff] %v9374_v12  ;;  %v7602_v19 = vpack.c.bf16 %v923_v11, %v922_v10  ;;  %v9436_v10 = vld [vmem:[#allocation4 + $0x168] sm:$0xff]  ;;  %v9444_v11 = vld [vmem:[#allocation4 + $0x170] sm:$0xff] }
  0xac   :  { %275 = vst [vmem:[#allocation2 + $0x2c8] sm:$0xff] %v9382_v24  ;;  %276 = vst [vmem:[#allocation2 + $0x2d0] sm:$0xff] %v9390_v37 }
  0xad   :  { %7603 = vmatpush1.bf16.msra.mxu0 %v7602_v19  ;;  %277 = vst [vmem:[#allocation2 + $0x2e8] sm:$0xff] %v9398_v48  ;;  %278 = vst [vmem:[#allocation2 + $0x2f0] sm:$0xff] %v9406_v1  ;;  %v9451_v19 = vld [vmem:[#allocation4 + $0x178] sm:$0xff] }
  0xae   :  { %1112 = vmatmul.mubr.f32.gmra.mrb[10].mxu0 %v9371_v8  ;;  %7604 = vmatprep.subr.bf16.mxu0 %v12283_v0  ;;  %279 = vst [vmem:[#allocation2 + $0x308] sm:$0xff] %v9414_v16  ;;  %281 = vst [vmem:[#allocation2 + $0x328] sm:$0xff] %v9429_v17 }
  0xaf   :  { %1116 = vmatprep.mubr.f32.mxu0 %v9247_v20  ;;  %v7605_v20 = vpack.c.bf16 %v925_v23, %v924_v15  ;;  %282 = vst [vmem:[#allocation2 + $0x330] sm:$0xff] %v9436_v10  ;;  %283 = vst [vmem:[#allocation2 + $0x348] sm:$0xff] %v9444_v11  ;;  %v9458_v15 = vld [vmem:[#allocation4 + $0x180] sm:$0xff] }
  0xb0   :  { %284 = vst [vmem:[#allocation2 + $0x350] sm:$0xff] %v9451_v19  ;;  %v934_v23 = vld [vmem:[#allocation7 + $0x1c0] sm:$0xff]  ;;  %285 = vst [vmem:[#allocation2 + $0x368] sm:$0xff] %v9458_v15 }
  0xb1   :  { %7606 = vmatpush1.bf16.msra.mxu0 %v7605_v20  ;;  %v935_v20 = vld [vmem:[#allocation7 + $0x1c8] sm:$0xff] }
  0xb2   :  { %1117 = vmatmul.mubr.f32.gmra.mrb[12].mxu0 %v9379_v14  ;;  %7607 = vmatprep.subr.bf16.mxu0 %v12283_v0 }
  0xb3   :  { %1121 = vmatprep.mubr.f32.mxu0 %v9249_v21  ;;  %v7608_v21 = vpack.c.bf16 %v927_v36, %v926_v34  ;;  %v7620_v34 = vpack.c.bf16 %v935_v20, %v934_v23  ;;  %v9465_v36 = vld [vmem:[#allocation4 + $0x188] sm:$0xff]  ;;  %v938_v23 = vld [vmem:[#allocation7 + $0x1e0] sm:$0xff] }
  0xb4   :  { %286 = vst [vmem:[#allocation2 + $0x370] sm:$0xff] %v9465_v36  ;;  %v939_v20 = vld [vmem:[#allocation7 + $0x1e8] sm:$0xff] }
  0xb5   :  { %7609 = vmatpush1.bf16.msra.mxu0 %v7608_v21  ;;  %v9473_v21 = vld [vmem:[#allocation4 + $0x190] sm:$0xff] }
  0xb6   :  { %1122 = vmatmul.mubr.f32.gmra.mrb[14].mxu0 %v9387_v25  ;;  %7610 = vmatprep.subr.bf16.mxu0 %v12283_v0  ;;  %287 = vst [vmem:[#allocation2 + $0x388] sm:$0xff] %v9473_v21 }
  0xb7   :  { %1126 = vmatprep.mubr.f32.mxu0 %v9251_v22  ;;  %v7611_v22 = vpack.c.bf16 %v929_v45, %v928_v42  ;;  %v9480_v42 = vld [vmem:[#allocation4 + $0x198] sm:$0xff]  ;;  %v9487_v45 = vld [vmem:[#allocation4 + $0x1a0] sm:$0xff] }
  0xb8   :  { %288 = vst [vmem:[#allocation2 + $0x390] sm:$0xff] %v9480_v42  ;;  %289 = vst [vmem:[#allocation2 + $0x3a8] sm:$0xff] %v9487_v45 }
  0xb9   :  { %7612 = vmatpush1.bf16.msra.mxu0 %v7611_v22  ;;  %v936_v22 = vld [vmem:[#allocation7 + $0x1d0] sm:$0xff] }
  0xba   :  { %1127 = vmatmul.mubr.f32.gmra.mrb[16].mxu0 %v9395_v40  ;;  %7613 = vmatprep.subr.bf16.mxu0 %v12283_v0 }
  0xbb   :  { %1131 = vmatprep.mubr.f32.mxu0 %v9256_v26  ;;  %v7614_v26 = vpack.c.bf16 %v931_v56, %v930_v52  ;;  %v937_v52 = vld [vmem:[#allocation7 + $0x1d8] sm:$0xff] }
  0xbc   :  { %v7623_v56 = vpack.c.bf16 %v937_v52, %v936_v22  ;;  %v9523_v22 = vld [vmem:[#allocation4 + $0x1c8] sm:$0xff]  ;;  %v9531_v52 = vld [vmem:[#allocation4 + $0x1d0] sm:$0xff] }
  0xbd   :  { %7615 = vmatpush1.bf16.msra.mxu0 %v7614_v26  ;;  %v9494_v26 = vld [vmem:[#allocation4 + $0x1a8] sm:$0xff]  ;;  %294 = vst [vmem:[#allocation2 + $0x3f0] sm:$0xff] %v9523_v22  ;;  %295 = vst [vmem:[#allocation2 + $0x408] sm:$0xff] %v9531_v52 }
  0xbe   :  { %1132 = vmatmul.mubr.f32.gmra.mrb[18].mxu0 %v9403_v49  ;;  %7616 = vmatprep.subr.bf16.mxu0 %v12283_v0  ;;  %290 = vst [vmem:[#allocation2 + $0x3b0] sm:$0xff] %v9494_v26 }
  0xbf   :  { %1136 = vmatprep.mubr.f32.mxu0 %v9260_v27  ;;  %v9422_v27 = vld [vmem:[#allocation4 + $0x158] sm:$0xff] }
  0xc0   :  { %280 = vst [vmem:[#allocation2 + $0x310] sm:$0xff] %v9422_v27 }
  0xc2   :  { %1137 = vmatmul.mubr.f32.gmra.mrb[20].mxu0 %v9411_v57 }
  0xc3   :  { %1141 = vmatprep.mubr.f32.mxu0 %v9262_v28  ;;  %v932_v28 = vld [vmem:[#allocation7 + $0x1b0] sm:$0xff] }
  0xc4   :  { %v7617_v18 = vpack.c.bf16 %v933_v4, %v932_v28  ;;  %v9502_v28 = vld [vmem:[#allocation4 + $0x1b0] sm:$0xff]  ;;  %v9509_v4 = vld [vmem:[#allocation4 + $0x1b8] sm:$0xff] }
  0xc5   :  { %291 = vst [vmem:[#allocation2 + $0x3c8] sm:$0xff] %v9502_v28  ;;  %292 = vst [vmem:[#allocation2 + $0x3d0] sm:$0xff] %v9509_v4 }
  0xc6   :  { %1142 = vmatmul.mubr.f32.gmra.mrb[22].mxu0 %v9419_v61 }
  0xc7   :  { %1146 = vmatprep.mubr.f32.mxu0 %v9264_v29  ;;  %7618 = vmatpush1.bf16.msra.mxu0 %v7617_v18  ;;  %v9442_v29 = vld [vmem:[#allocation2 + $0xe7] sm:$0xff] }
  0xc8   :  { %7619 = vmatprep.subr.bf16.mxu0 %v12283_v0  ;;  %v9516_v18 = vld [vmem:[#allocation4 + $0x1c0] sm:$0xff] }
  0xc9   :  { %293 = vst [vmem:[#allocation2 + $0x3e8] sm:$0xff] %v9516_v18 }
  0xca   :  { %1147 = vmatmul.mubr.f32.gmra.mrb[24].mxu0 %v9427_v62 }
  0xcb   :  { %1151 = vmatprep.mubr.f32.mxu0 %v9269_v30  ;;  %v9449_v30 = vld [vmem:[#allocation2 + $0xef] sm:$0xff]  ;;  %7621 = vmatpush1.bf16.msra.mxu0 %v7620_v34  ;;  %v7626_v34 = vpack.c.bf16 %v939_v20, %v938_v23  ;;  %v9545_v23 = vld [vmem:[#allocation4 + $0x1e0] sm:$0xff] }
  0xcc   :  { %7622 = vmatprep.subr.bf16.mxu0 %v12283_v0  ;;  %v940_v20 = vld [vmem:[#allocation7 + $0x1f0] sm:$0xff]  ;;  %297 = vst [vmem:[#allocation2 + $0x428] sm:$0xff] %v9545_v23 }
  0xce   :  { %1152 = vmatmul.mubr.f32.gmra.mrb[26].mxu0 %v9434_v6 }
  0xcf   :  { %1156 = vmatprep.mubr.f32.mxu0 %v9272_v31  ;;  %v9456_v31 = vld [vmem:[#allocation2 + $0x107] sm:$0xff]  ;;  %7624 = vmatpush1.bf16.msra.mxu0 %v7623_v56  ;;  %v9538_v56 = vld [vmem:[#allocation4 + $0x1d8] sm:$0xff] }
  0xd0   :  { %7625 = vmatprep.subr.bf16.mxu0 %v12283_v0  ;;  %296 = vst [vmem:[#allocation2 + $0x410] sm:$0xff] %v9538_v56 }
  0xd2   :  { %1157 = vmatmul.mubr.f32.gmra.mrb[28].mxu0 %v9442_v29 }
  0xd3   :  { %1161 = vmatprep.mubr.f32.mxu0 %v9274_v32  ;;  %v9463_v32 = vld [vmem:[#allocation2 + $0x10f] sm:$0xff]  ;;  %7627 = vmatpush1.bf16.msra.mxu0 %v7626_v34  ;;  %v941_v34 = vld [vmem:[#allocation7 + $0x1f8] sm:$0xff] }
  0xd4   :  { %7628 = vmatprep.subr.bf16.mxu0 %v12283_v0  ;;  %v7629_v0 = vpack.c.bf16 %v941_v34, %v940_v20  ;;  %v333_v20 = vld [vmem:[#allocation2 + $0x247] sm:$0xff]  ;;  %v334_v34 = vld [vmem:[#allocation2 + $0x24f] sm:$0xff] }
  0xd6   :  { %1162 = vmatmul.mubr.f32.gmra.mrb[30].mxu0 %v9449_v30 }
  0xd7   :  { %1166 = vmatprep.mubr.f32.mxu0 %v9276_v33  ;;  %v9471_v33 = vld [vmem:[#allocation2 + $0x127] sm:$0xff]  ;;  %7630 = vmatpush1.bf16.msra.mxu0 %v7629_v0 }
  0xd8   :  { %v8808_v0 = vld [vmem:[#allocation2 + $0x8] sm:$0xff] }
  0xda   :  { %1167 = vmatmul.mubr.f32.gmra.mrb[32].mxu0 %v9456_v31 }
  0xdb   :  { %1171 = vmatprep.mubr.f32.mxu0 %v9281_v35  ;;  %v9478_v35 = vld [vmem:[#allocation2 + $0x12f] sm:$0xff] }
  0xde   :  { %1172 = vmatmul.mubr.f32.gmra.mrb[34].mxu0 %v9463_v32 }
  0xdf   :  { %1176 = vmatprep.mubr.f32.mxu0 %v9285_v38  ;;  %v9485_v38 = vld [vmem:[#allocation2 + $0x147] sm:$0xff] }
  0xe2   :  { %1177 = vmatmul.mubr.f32.gmra.mrb[36].mxu0 %v9471_v33 }
  0xe3   :  { %1181 = vmatprep.mubr.f32.mxu0 %v9287_v39  ;;  %v9492_v39 = vld [vmem:[#allocation2 + $0x14f] sm:$0xff] }
  0xe6   :  { %1182 = vmatmul.mubr.f32.gmra.mrb[38].mxu0 %v9478_v35 }
  0xe7   :  { %1186 = vmatprep.mubr.f32.mxu0 %v9291_v41  ;;  %v9500_v41 = vld [vmem:[#allocation2 + $0x167] sm:$0xff] }
  0xea   :  { %1187 = vmatmul.mubr.f32.gmra.mrb[40].mxu0 %v9485_v38 }
  0xeb   :  { %1191 = vmatprep.mubr.f32.mxu0 %v9295_v44  ;;  %v9507_v44 = vld [vmem:[#allocation2 + $0x16f] sm:$0xff] }
  0xee   :  { %1192 = vmatmul.mubr.f32.gmra.mrb[42].mxu0 %v9492_v39 }
  0xef   :  { %1196 = vmatprep.mubr.f32.mxu0 %v9298_v46  ;;  %v9514_v46 = vld [vmem:[#allocation2 + $0x187] sm:$0xff] }
  0xf2   :  { %1197 = vmatmul.mubr.f32.gmra.mrb[44].mxu0 %v9500_v41 }
  0xf3   :  { %1201 = vmatprep.mubr.f32.mxu0 %v9300_v47  ;;  %v9521_v47 = vld [vmem:[#allocation2 + $0x18f] sm:$0xff] }
  0xf6   :  { %1202 = vmatmul.mubr.f32.gmra.mrb[46].mxu0 %v9507_v44 }
  0xf7   :  { %1206 = vmatprep.mubr.f32.mxu0 %v9305_v50  ;;  %v9529_v50 = vld [vmem:[#allocation2 + $0x1a7] sm:$0xff] }
  0xfa   :  { %1207 = vmatmul.mubr.f32.gmra.mrb[48].mxu0 %v9514_v46 }
  0xfb   :  { %1211 = vmatprep.mubr.f32.mxu0 %v9308_v51  ;;  %v9536_v51 = vld [vmem:[#allocation2 + $0x1af] sm:$0xff] }
  0xfc   :  { %12340 = vst [vmem:[#allocation17_spill] sm:$0xff] %v9536_v51 }
  0xfe   :  { %1212 = vmatmul.mubr.f32.gmra.mrb[50].mxu0 %v9521_v47 }
  0xff   :  { %1216 = vmatprep.mubr.f32.mxu0 %v9312_v55  ;;  %v9543_v55 = vld [vmem:[#allocation2 + $0x1c7] sm:$0xff] }
 0x100   :  { %12341 = vst [vmem:[#allocation18_spill] sm:$0xff] %v9543_v55 }
 0x102   :  { %1217 = vmatmul.mubr.f32.gmra.mrb[52].mxu0 %v9529_v50 }
 0x103   :  { %1221 = vmatprep.mubr.f32.mxu0 %v9316_v59  ;;  %v9550_v59 = vld [vmem:[#allocation2 + $0x1cf] sm:$0xff] }
 0x106   :  { %1222 = vmatmul.mubr.f32.gmra.mrb[54].mxu0 %v9536_v51  ;;  %v9552_v51 = vld [vmem:[#allocation4 + $0x1e8] sm:$0xff] }
 0x107   :  { %1226 = vmatprep.mubr.f32.mxu0 %v9320_v63  ;;  %298 = vst [vmem:[#allocation2 + $0x430] sm:$0xff] %v9552_v51  ;;  %v12342_v63 = vmov 0.0|0.0  }
 0x108   :  { %7631 = vmatprep.subr.bf16.mxu0 %v12342_v63 }
 0x10a   :  { %1227 = vmatmul.mubr.f32.gmra.mrb[56].mxu0 %v9543_v55  ;;  %v9558_v55 = vld [vmem:[#allocation2 + $0x1e7] sm:$0xff] }
 0x10b   :  { %1231 = vmatprep.mubr.f32.mxu0 %v9324_v5  ;;  %v9562_v5 = vld [vmem:[#allocation2 + $0x1ef] sm:$0xff] }
 0x10c   :  { %12343 = vst [vmem:[#allocation19_spill] sm:$0xff] %v9562_v5 }
 0x10e   :  { %1232 = vmatmul.mubr.f32.gmra.mrb[58].mxu0 %v9550_v59 }
 0x10f   :  { %1236 = vmatprep.mubr.f32.mxu0 %v9328_v9  ;;  %v9566_v9 = vld [vmem:[#allocation2 + $0x267] sm:$0xff] }
 0x112   :  { %1237 = vmatmul.mubr.f32.gmra.mrb[60].mxu0 %v9558_v55 }
 0x113   :  { %1241 = vmatprep.mubr.f32.mxu0 %v9332_v13  ;;  %v9570_v13 = vld [vmem:[#allocation2 + $0x26f] sm:$0xff] }
 0x116   :  { %1242 = vmatmul.mubr.f32.gmra.mrb[62].mxu0 %v9562_v5  ;;  %v9574_v5 = vld [vmem:[#allocation2 + $0x287] sm:$0xff] }
 0x117   :  { %1246 = vmatprep.mubr.f32.mxu0 %v8808_v0 }
 0x11a   :  { %1247 = vmatmul.mubr.f32.gmra.mrb[64].mxu0 %v333_v20  ;;  %v9679_v20 = vld [vmem:[#allocation4 + $0xf8] sm:$0xff] }
 0x11b   :  { %1251 = vmatprep.mubr.f32.mxu0 %v8808_v0  ;;  %v9578_v0 = vld [vmem:[#allocation2 + $0x28f] sm:$0xff]  ;;  %12348 = vst [vmem:[#allocation24_spill] sm:$0xff] %v9679_v20  ;;  %268 = vst [vmem:[#allocation2 + $0x210] sm:$0xff] %v9679_v20 }
 0x11e   :  { %1252 = vmatmul.mubr.f32.gmra.mrb[66].mxu0 %v334_v34  ;;  %v942_v34 = vld [vmem:[#allocation7 + $0x200] sm:$0xff] }
 0x11f   :  { %1256 = vmatprep.mubr.f32.mxu0 %v9338_v43  ;;  %v9582_v43 = vld [vmem:[#allocation2 + $0x2a7] sm:$0xff] }
 0x122   :  { %1257 = vmatmul.mubr.f32.gmra.mrb[68].mxu0 %v9566_v9 }
 0x123   :  { %1261 = vmatprep.mubr.f32.mxu0 %v9343_v53  ;;  %v9586_v53 = vld [vmem:[#allocation2 + $0x2af] sm:$0xff] }
 0x126   :  { %1262 = vmatmul.mubr.f32.gmra.mrb[70].mxu0 %v9570_v13 }
 0x127   :  { %1266 = vmatprep.mubr.f32.mxu0 %v9350_v58  ;;  %v9590_v58 = vld [vmem:[#allocation2 + $0x2c7] sm:$0xff] }
 0x12a   :  { %1267 = vmatmul.mubr.f32.gmra.mrb[72].mxu0 %v9574_v5 }
 0x12b   :  { %1271 = vmatprep.mubr.f32.mxu0 %v9358_v2  ;;  %v9594_v2 = vld [vmem:[#allocation2 + $0x2cf] sm:$0xff] }
 0x12e   :  { %1272 = vmatmul.mubr.f32.gmra.mrb[74].mxu0 %v9578_v0 }
 0x12f   :  { %1276 = vmatprep.mubr.f32.mxu0 %v9366_v7  ;;  %v9598_v7 = vld [vmem:[#allocation2 + $0x2e7] sm:$0xff] }
 0x132   :  { %1277 = vmatmul.mubr.f32.gmra.mrb[76].mxu0 %v9582_v43 }
 0x133   :  { %1281 = vmatprep.mubr.f32.mxu0 %v9374_v12  ;;  %v9602_v12 = vld [vmem:[#allocation2 + $0x2ef] sm:$0xff] }
 0x136   :  { %1282 = vmatmul.mubr.f32.gmra.mrb[78].mxu0 %v9586_v53 }
 0x137   :  { %1286 = vmatprep.mubr.f32.mxu0 %v9382_v24  ;;  %v9606_v24 = vld [vmem:[#allocation2 + $0x307] sm:$0xff] }
 0x13a   :  { %1287 = vmatmul.mubr.f32.gmra.mrb[80].mxu0 %v9590_v58 }
 0x13b   :  { %1291 = vmatprep.mubr.f32.mxu0 %v9390_v37  ;;  %v9610_v37 = vld [vmem:[#allocation2 + $0x30f] sm:$0xff] }
 0x13e   :  { %1292 = vmatmul.mubr.f32.gmra.mrb[82].mxu0 %v9594_v2 }
 0x13f   :  { %1296 = vmatprep.mubr.f32.mxu0 %v9398_v48  ;;  %v9614_v48 = vld [vmem:[#allocation2 + $0x327] sm:$0xff] }
 0x142   :  { %1297 = vmatmul.mubr.f32.gmra.mrb[84].mxu0 %v9598_v7 }
 0x143   :  { %1301 = vmatprep.mubr.f32.mxu0 %v9406_v1  ;;  %v9618_v1 = vld [vmem:[#allocation2 + $0x32f] sm:$0xff] }
 0x146   :  { %1302 = vmatmul.mubr.f32.gmra.mrb[86].mxu0 %v9602_v12 }
 0x147   :  { %1306 = vmatprep.mubr.f32.mxu0 %v9414_v16  ;;  %v9622_v16 = vld [vmem:[#allocation2 + $0x347] sm:$0xff] }
 0x14a   :  { %1307 = vmatmul.mubr.f32.gmra.mrb[88].mxu0 %v9606_v24 }
 0x14b   :  { %1311 = vmatprep.mubr.f32.mxu0 %v9422_v27  ;;  %v9626_v27 = vld [vmem:[#allocation2 + $0x34f] sm:$0xff] }
 0x14e   :  { %1312 = vmatmul.mubr.f32.gmra.mrb[90].mxu0 %v9610_v37 }
 0x14f   :  { %1316 = vmatprep.mubr.f32.mxu0 %v9429_v17  ;;  %v9630_v17 = vld [vmem:[#allocation2 + $0x367] sm:$0xff] }
 0x152   :  { %1317 = vmatmul.mubr.f32.gmra.mrb[92].mxu0 %v9614_v48 }
 0x153   :  { %1321 = vmatprep.mubr.f32.mxu0 %v9436_v10  ;;  %v9634_v10 = vld [vmem:[#allocation2 + $0x36f] sm:$0xff] }
 0x156   :  { %1322 = vmatmul.mubr.f32.gmra.mrb[94].mxu0 %v9618_v1 }
 0x157   :  { %1326 = vmatprep.mubr.f32.mxu0 %v9444_v11  ;;  %v9638_v11 = vld [vmem:[#allocation2 + $0x387] sm:$0xff] }
 0x15a   :  { %1327 = vmatmul.mubr.f32.gmra.mrb[96].mxu0 %v9622_v16 }
 0x15b   :  { %1331 = vmatprep.mubr.f32.mxu0 %v9451_v19  ;;  %v9642_v19 = vld [vmem:[#allocation2 + $0x38f] sm:$0xff] }
 0x15e   :  { %1332 = vmatmul.mubr.f32.gmra.mrb[98].mxu0 %v9626_v27 }
 0x15f   :  { %1336 = vmatprep.mubr.f32.mxu0 %v9458_v15  ;;  %v9646_v15 = vld [vmem:[#allocation2 + $0x3a7] sm:$0xff] }
 0x162   :  { %1337 = vmatmul.mubr.f32.gmra.mrb[100].mxu0 %v9630_v17 }
 0x163   :  { %1341 = vmatprep.mubr.f32.mxu0 %v9465_v36  ;;  %v9650_v36 = vld [vmem:[#allocation2 + $0x3af] sm:$0xff] }
 0x166   :  { %1342 = vmatmul.mubr.f32.gmra.mrb[102].mxu0 %v9634_v10 }
 0x167   :  { %1346 = vmatprep.mubr.f32.mxu0 %v9473_v21  ;;  %v9654_v21 = vld [vmem:[#allocation2 + $0x3c7] sm:$0xff] }
 0x16a   :  { %1347 = vmatmul.mubr.f32.gmra.mrb[104].mxu0 %v9638_v11 }
 0x16b   :  { %1351 = vmatprep.mubr.f32.mxu0 %v9480_v42  ;;  %v9658_v42 = vld [vmem:[#allocation2 + $0x3cf] sm:$0xff] }
 0x16e   :  { %1352 = vmatmul.mubr.f32.gmra.mrb[106].mxu0 %v9642_v19 }
 0x16f   :  { %1356 = vmatprep.mubr.f32.mxu0 %v9487_v45  ;;  %v9662_v45 = vld [vmem:[#allocation2 + $0x3e7] sm:$0xff] }
 0x172   :  { %1357 = vmatmul.mubr.f32.gmra.mrb[108].mxu0 %v9646_v15 }
 0x173   :  { %1361 = vmatprep.mubr.f32.mxu0 %v9494_v26  ;;  %v9666_v26 = vld [vmem:[#allocation2 + $0x3ef] sm:$0xff] }
 0x174   :  { %12344 = vst [vmem:[#allocation20_spill] sm:$0xff] %v9666_v26 }
 0x176   :  { %1362 = vmatmul.mubr.f32.gmra.mrb[110].mxu0 %v9650_v36 }
 0x177   :  { %1366 = vmatprep.mubr.f32.mxu0 %v9502_v28  ;;  %v9670_v28 = vld [vmem:[#allocation2 + $0x407] sm:$0xff] }
 0x178   :  { %12345 = vst [vmem:[#allocation21_spill] sm:$0xff] %v9670_v28 }
 0x17a   :  { %1367 = vmatmul.mubr.f32.gmra.mrb[112].mxu0 %v9654_v21 }
 0x17b   :  { %1371 = vmatprep.mubr.f32.mxu0 %v9509_v4  ;;  %v9672_v4 = vld [vmem:[#allocation4 + $0xf0] sm:$0xff] }
 0x17c   :  { %12346 = vst [vmem:[#allocation22_spill] sm:$0xff] %v9672_v4  ;;  %267 = vst [vmem:[#allocation2 + $0x208] sm:$0xff] %v9672_v4  ;;  %v429_v4 = vld [vmem:[#allocation2 + $0x9] sm:$0xff] }
 0x17e   :  { %1372 = vmatmul.mubr.f32.gmra.mrb[114].mxu0 %v9658_v42 }
 0x17f   :  { %1376 = vmatprep.mubr.f32.mxu0 %v9516_v18  ;;  %v9677_v18 = vld [vmem:[#allocation2 + $0x40f] sm:$0xff] }
 0x180   :  { %12347 = vst [vmem:[#allocation23_spill] sm:$0xff] %v9677_v18 }
 0x182   :  { %1377 = vmatmul.mubr.f32.gmra.mrb[116].mxu0 %v9662_v45 }
 0x183   :  { %1381 = vmatprep.mubr.f32.mxu0 %v9523_v22  ;;  %v9684_v22 = vld [vmem:[#allocation2 + $0x427] sm:$0xff] }
 0x184   :  { %12349 = vst [vmem:[#allocation25_spill] sm:$0xff] %v9684_v22 }
 0x186   :  { %1382 = vmatmul.mubr.f32.gmra.mrb[118].mxu0 %v9666_v26  ;;  %v947_v26 = vld [vmem:[#allocation7 + $0x228] sm:$0xff] }
 0x187   :  { %1386 = vmatprep.mubr.f32.mxu0 %v9531_v52  ;;  %v9688_v52 = vld [vmem:[#allocation2 + $0x42f] sm:$0xff] }
 0x188   :  { %12350 = vst [vmem:[#allocation26_spill] sm:$0xff] %v9688_v52 }
 0x18a   :  { %1387 = vmatmul.mubr.f32.gmra.mrb[120].mxu0 %v9670_v28  ;;  %v944_v28 = vld [vmem:[#allocation7 + $0x210] sm:$0xff] }
 0x18b   :  { %1391 = vmatprep.mubr.f32.mxu0 %v9538_v56  ;;  %v943_v56 = vld [vmem:[#allocation7 + $0x208] sm:$0xff] }
 0x18c   :  { %v7632_v20 = vpack.c.bf16 %v943_v56, %v942_v34  ;;  %v948_v34 = vld [vmem:[#allocation7 + $0x230] sm:$0xff] }
 0x18d   :  { %v9710_v56 = vld [vmem:[#allocation2 + $0x51] sm:$0xff] }
 0x18e   :  { %1392 = vmatmul.mubr.f32.gmra.mrb[122].mxu0 %v9677_v18  ;;  %v945_v18 = vld [vmem:[#allocation7 + $0x218] sm:$0xff] }
 0x18f   :  { %1396 = vmatprep.mubr.f32.mxu0 %v9545_v23  ;;  %v430_v23 = vld [vmem:[#allocation2 + $0x11] sm:$0xff] }
 0x192   :  { %1397 = vmatmul.mubr.f32.gmra.mrb[124].mxu0 %v9684_v22  ;;  %v7635_v22 = vpack.c.bf16 %v945_v18, %v944_v28  ;;  %v950_v18 = vld [vmem:[#allocation7 + $0x240] sm:$0xff] }
 0x193   :  { %1401 = vmatprep.mubr.f32.mxu0 %v9552_v51  ;;  %v946_v51 = vld [vmem:[#allocation7 + $0x220] sm:$0xff] }
 0x196   :  { %1402 = vmatmul.mubr.f32.gmra.mrb[126].mxu0 %v9688_v52  ;;  %v9695_v52 = vld [vmem:[#allocation2 + $0x29] sm:$0xff] }
 0x197   :  { %1471 = vmatprep.mubr.f32.mxu0 %v9347_v54  ;;  %v7638_v54 = vpack.c.bf16 %v947_v26, %v946_v51  ;;  %v9705_v26 = vld [vmem:[#allocation2 + $0x49] sm:$0xff]  ;;  %v954_v51 = vld [vmem:[#allocation7 + $0x260] sm:$0xff] }
 0x19a   :  { %1472 = vmatmul.mubr.f32.vlgmr.msra.gmra.mrb[0].mxu0 %v429_v4  ;;  %v949_v4 = vld [vmem:[#allocation7 + $0x238] sm:$0xff] }
 0x19b   :  { %7633 = vmatpush1.bf16.msra.mxu0 %v7632_v20  ;;  %1476 = vmatprep.mubr.f32.mxu0 %v9355_v60  ;;  %v9700_v60 = vld [vmem:[#allocation2 + $0x31] sm:$0xff]  ;;  %v7641_v28 = vpack.c.bf16 %v949_v4, %v948_v34 }
 0x19c   :  { %7634 = vmatprep.subr.bf16.mxu0 %v12342_v63  ;;  %v956_v4 = vld [vmem:[#allocation7 + $0x270] sm:$0xff] }
 0x19e   :  { %1477 = vmatmul.mubr.f32.gmra.mrb[2].mxu0 %v430_v23 }
 0x19f   :  { %1481 = vmatprep.mubr.f32.mxu0 %v9363_v3  ;;  %7636 = vmatpush1.bf16.msra.mxu0 %v7635_v22  ;;  %v951_v3 = vld [vmem:[#allocation7 + $0x248] sm:$0xff]  ;;  %v952_v22 = vld [vmem:[#allocation7 + $0x250] sm:$0xff] }
 0x1a0   :  { %7637 = vmatprep.subr.bf16.mxu0 %v12342_v63  ;;  %v7644_v20 = vpack.c.bf16 %v951_v3, %v950_v18  ;;  %v958_v3 = vld [vmem:[#allocation7 + $0x280] sm:$0xff] }
 0x1a2   :  { %1482 = vmatmul.mubr.f32.gmra.mrb[4].mxu0 %v9695_v52 }
 0x1a3   :  { %1486 = vmatprep.mubr.f32.mxu0 %v9371_v8  ;;  %7639 = vmatpush1.bf16.msra.mxu0 %v7638_v54  ;;  %v953_v8 = vld [vmem:[#allocation7 + $0x258] sm:$0xff]  ;;  %v9715_v54 = vld [vmem:[#allocation2 + $0x69] sm:$0xff] }
 0x1a4   :  { %7640 = vmatprep.subr.bf16.mxu0 %v12342_v63  ;;  %v7647_v23 = vpack.c.bf16 %v953_v8, %v952_v22  ;;  %v960_v8 = vld [vmem:[#allocation7 + $0x290] sm:$0xff] }
 0x1a6   :  { %1487 = vmatmul.mubr.f32.gmra.mrb[6].mxu0 %v9700_v60 }
 0x1a7   :  { %1491 = vmatprep.mubr.f32.mxu0 %v9379_v14  ;;  %7642 = vmatpush1.bf16.msra.mxu0 %v7641_v28  ;;  %v955_v14 = vld [vmem:[#allocation7 + $0x268] sm:$0xff]  ;;  %v9720_v28 = vld [vmem:[#allocation2 + $0x71] sm:$0xff] }
 0x1a8   :  { %7643 = vmatprep.subr.bf16.mxu0 %v12342_v63  ;;  %v7650_v34 = vpack.c.bf16 %v955_v14, %v954_v51  ;;  %v962_v14 = vld [vmem:[#allocation7 + $0x2a0] sm:$0xff] }
 0x1aa   :  { %1492 = vmatmul.mubr.f32.gmra.mrb[8].mxu0 %v9705_v26 }
 0x1ab   :  { %1496 = vmatprep.mubr.f32.mxu0 %v9387_v25  ;;  %7645 = vmatpush1.bf16.msra.mxu0 %v7644_v20  ;;  %v957_v25 = vld [vmem:[#allocation7 + $0x278] sm:$0xff]  ;;  %v9725_v20 = vld [vmem:[#allocation2 + $0x89] sm:$0xff] }
 0x1ac   :  { %7646 = vmatprep.subr.bf16.mxu0 %v12342_v63  ;;  %v7653_v18 = vpack.c.bf16 %v957_v25, %v956_v4  ;;  %v964_v25 = vld [vmem:[#allocation7 + $0x2b0] sm:$0xff] }
 0x1ae   :  { %1497 = vmatmul.mubr.f32.gmra.mrb[10].mxu0 %v9710_v56 }
 0x1af   :  { %1501 = vmatprep.mubr.f32.mxu0 %v9395_v40  ;;  %7648 = vmatpush1.bf16.msra.mxu0 %v7647_v23  ;;  %v959_v40 = vld [vmem:[#allocation7 + $0x288] sm:$0xff]  ;;  %v9730_v23 = vld [vmem:[#allocation2 + $0x91] sm:$0xff] }
 0x1b0   :  { %7649 = vmatprep.subr.bf16.mxu0 %v12342_v63  ;;  %v7656_v22 = vpack.c.bf16 %v959_v40, %v958_v3  ;;  %v9749_v3 = vld [vmem:[#allocation2 + $0xd1] sm:$0xff]  ;;  %v9754_v40 = vld [vmem:[#allocation2 + $0xe9] sm:$0xff] }
 0x1b2   :  { %1502 = vmatmul.mubr.f32.gmra.mrb[12].mxu0 %v9715_v54 }
 0x1b3   :  { %1506 = vmatprep.mubr.f32.mxu0 %v9403_v49  ;;  %7651 = vmatpush1.bf16.msra.mxu0 %v7650_v34  ;;  %v961_v49 = vld [vmem:[#allocation7 + $0x298] sm:$0xff]  ;;  %v9735_v34 = vld [vmem:[#allocation2 + $0xa9] sm:$0xff] }
 0x1b4   :  { %7652 = vmatprep.subr.bf16.mxu0 %v12342_v63  ;;  %v7659_v51 = vpack.c.bf16 %v961_v49, %v960_v8  ;;  %v967_v8 = vld [vmem:[#allocation7 + $0x2c8] sm:$0xff] }
 0x1b6   :  { %1507 = vmatmul.mubr.f32.gmra.mrb[14].mxu0 %v9720_v28 }
 0x1b7   :  { %1511 = vmatprep.mubr.f32.mxu0 %v9411_v57  ;;  %7654 = vmatpush1.bf16.msra.mxu0 %v7653_v18  ;;  %v963_v57 = vld [vmem:[#allocation7 + $0x2a8] sm:$0xff]  ;;  %v965_v18 = vld [vmem:[#allocation7 + $0x2b8] sm:$0xff] }
 0x1b8   :  { %7655 = vmatprep.subr.bf16.mxu0 %v12342_v63  ;;  %v7662_v4 = vpack.c.bf16 %v963_v57, %v962_v14  ;;  %v969_v14 = vld [vmem:[#allocation7 + $0x2d8] sm:$0xff] }
 0x1ba   :  { %1512 = vmatmul.mubr.f32.gmra.mrb[16].mxu0 %v9725_v20 }
 0x1bb   :  { %1516 = vmatprep.mubr.f32.mxu0 %v9419_v61  ;;  %7657 = vmatpush1.bf16.msra.mxu0 %v7656_v22  ;;  %v9740_v61 = vld [vmem:[#allocation2 + $0xb1] sm:$0xff]  ;;  %v966_v22 = vld [vmem:[#allocation7 + $0x2c0] sm:$0xff] }
 0x1bc   :  { %7658 = vmatprep.subr.bf16.mxu0 %v12342_v63  ;;  %v7668_v49 = vpack.c.bf16 %v967_v8, %v966_v22  ;;  %v9805_v22 = vld [vmem:[#allocation2 + $0x1a9] sm:$0xff] }
 0x1bd   :  { %v9813_v8 = vld [vmem:[#allocation2 + $0x1c9] sm:$0xff] }
 0x1be   :  { %1517 = vmatmul.mubr.f32.gmra.mrb[18].mxu0 %v9730_v23 }
 0x1bf   :  { %1521 = vmatprep.mubr.f32.mxu0 %v9427_v62  ;;  %7660 = vmatpush1.bf16.msra.mxu0 %v7659_v51  ;;  %v9745_v62 = vld [vmem:[#allocation2 + $0xc9] sm:$0xff] }
 0x1c0   :  { %7661 = vmatprep.subr.bf16.mxu0 %v12342_v63  ;;  %v968_v51 = vld [vmem:[#allocation7 + $0x2d0] sm:$0xff] }
 0x1c1   :  { %v7671_v57 = vpack.c.bf16 %v969_v14, %v968_v51  ;;  %v972_v51 = vld [vmem:[#allocation7 + $0x2f0] sm:$0xff]  ;;  %v973_v14 = vld [vmem:[#allocation7 + $0x2f8] sm:$0xff] }
 0x1c2   :  { %1522 = vmatmul.mubr.f32.gmra.mrb[20].mxu0 %v9735_v34 }
 0x1c3   :  { %1526 = vmatprep.mubr.f32.mxu0 %v9434_v6  ;;  %7663 = vmatpush1.bf16.msra.mxu0 %v7662_v4  ;;  %v7665_v6 = vpack.c.bf16 %v965_v18, %v964_v25  ;;  %v970_v4 = vld [vmem:[#allocation7 + $0x2e0] sm:$0xff]  ;;  %v971_v25 = vld [vmem:[#allocation7 + $0x2e8] sm:$0xff] }
 0x1c4   :  { %7664 = vmatprep.subr.bf16.mxu0 %v12342_v63  ;;  %v12351_v18 = vld [vmem:[#allocation17_spill] sm:$0xff] }
 0x1c6   :  { %1527 = vmatmul.mubr.f32.gmra.mrb[22].mxu0 %v9740_v61 }
 0x1c7   :  { %1531 = vmatprep.mubr.f32.mxu0 %v9442_v29  ;;  %7666 = vmatpush1.bf16.msra.mxu0 %v7665_v6  ;;  %v9758_v29 = vld [vmem:[#allocation2 + $0xf1] sm:$0xff]  ;;  %v7674_v6 = vpack.c.bf16 %v971_v25, %v970_v4  ;;  %v523_v25 = vld [vmem:[#allocation2 + $0x207] sm:$0xff] }
 0x1c8   :  { %7667 = vmatprep.subr.bf16.mxu0 %v12342_v63  ;;  %v9820_v4 = vld [vmem:[#allocation2 + $0x1d1] sm:$0xff] }
 0x1ca   :  { %1532 = vmatmul.mubr.f32.gmra.mrb[24].mxu0 %v9745_v62 }
 0x1cb   :  { %1536 = vmatprep.mubr.f32.mxu0 %v9449_v30  ;;  %v9762_v30 = vld [vmem:[#allocation2 + $0x109] sm:$0xff]  ;;  %7669 = vmatpush1.bf16.msra.mxu0 %v7668_v49 }
 0x1cc   :  { %7670 = vmatprep.subr.bf16.mxu0 %v12342_v63  ;;  %v9815_v49 = vld [vmem:[#allocation4 + $0x1f0] sm:$0xff] }
 0x1cd   :  { %12353 = vst [vmem:[#allocation17_spill] sm:$0xff] %v9815_v49  ;;  %299 = vst [vmem:[#allocation2 + $0x448] sm:$0xff] %v9815_v49  ;;  %v9947_v49 = vld [vmem:[#allocation2 + $0x429] sm:$0xff] }
 0x1ce   :  { %1537 = vmatmul.mubr.f32.gmra.mrb[26].mxu0 %v9749_v3  ;;  %12367 = vst [vmem:[#allocation27_spill] sm:$0xff] %v9947_v49 }
 0x1cf   :  { %1541 = vmatprep.mubr.f32.mxu0 %v9456_v31  ;;  %v9766_v31 = vld [vmem:[#allocation2 + $0x111] sm:$0xff]  ;;  %7672 = vmatpush1.bf16.msra.mxu0 %v7671_v57 }
 0x1d0   :  { %7673 = vmatprep.subr.bf16.mxu0 %v12342_v63  ;;  %v12354_v57 = vld [vmem:[#allocation19_spill] sm:$0xff] }
 0x1d2   :  { %1542 = vmatmul.mubr.f32.gmra.mrb[28].mxu0 %v9754_v40 }
 0x1d3   :  { %1546 = vmatprep.mubr.f32.mxu0 %v9463_v32  ;;  %v9771_v32 = vld [vmem:[#allocation2 + $0x129] sm:$0xff]  ;;  %7675 = vmatpush1.bf16.msra.mxu0 %v7674_v6 }
 0x1d4   :  { %7676 = vmatprep.subr.bf16.mxu0 %v12342_v63  ;;  %v524_v6 = vld [vmem:[#allocation2 + $0x20f] sm:$0xff] }
 0x1d6   :  { %1547 = vmatmul.mubr.f32.gmra.mrb[30].mxu0 %v9758_v29 }
 0x1d7   :  { %1551 = vmatprep.mubr.f32.mxu0 %v9471_v33  ;;  %v9775_v33 = vld [vmem:[#allocation2 + $0x131] sm:$0xff] }
 0x1da   :  { %1552 = vmatmul.mubr.f32.gmra.mrb[32].mxu0 %v9762_v30 }
 0x1db   :  { %1556 = vmatprep.mubr.f32.mxu0 %v9478_v35  ;;  %v9779_v35 = vld [vmem:[#allocation2 + $0x149] sm:$0xff] }
 0x1de   :  { %1557 = vmatmul.mubr.f32.gmra.mrb[34].mxu0 %v9766_v31 }
 0x1df   :  { %1561 = vmatprep.mubr.f32.mxu0 %v9485_v38  ;;  %v9783_v38 = vld [vmem:[#allocation2 + $0x151] sm:$0xff] }
 0x1e2   :  { %1562 = vmatmul.mubr.f32.gmra.mrb[36].mxu0 %v9771_v32 }
 0x1e3   :  { %1566 = vmatprep.mubr.f32.mxu0 %v9492_v39  ;;  %v9788_v39 = vld [vmem:[#allocation2 + $0x169] sm:$0xff] }
 0x1e6   :  { %1567 = vmatmul.mubr.f32.gmra.mrb[38].mxu0 %v9775_v33 }
 0x1e7   :  { %1571 = vmatprep.mubr.f32.mxu0 %v9500_v41  ;;  %v9792_v41 = vld [vmem:[#allocation2 + $0x171] sm:$0xff] }
 0x1ea   :  { %1572 = vmatmul.mubr.f32.gmra.mrb[40].mxu0 %v9779_v35 }
 0x1eb   :  { %1576 = vmatprep.mubr.f32.mxu0 %v9507_v44  ;;  %v9796_v44 = vld [vmem:[#allocation2 + $0x189] sm:$0xff] }
 0x1ee   :  { %1577 = vmatmul.mubr.f32.gmra.mrb[42].mxu0 %v9783_v38 }
 0x1ef   :  { %1581 = vmatprep.mubr.f32.mxu0 %v9514_v46  ;;  %v9800_v46 = vld [vmem:[#allocation2 + $0x191] sm:$0xff] }
 0x1f2   :  { %1582 = vmatmul.mubr.f32.gmra.mrb[44].mxu0 %v9788_v39 }
 0x1f3   :  { %1586 = vmatprep.mubr.f32.mxu0 %v9521_v47  ;;  %v12352_v47 = vld [vmem:[#allocation18_spill] sm:$0xff] }
 0x1f6   :  { %1587 = vmatmul.mubr.f32.gmra.mrb[46].mxu0 %v9792_v41 }
 0x1f7   :  { %1591 = vmatprep.mubr.f32.mxu0 %v9529_v50  ;;  %v9809_v50 = vld [vmem:[#allocation2 + $0x1b1] sm:$0xff] }
 0x1fa   :  { %1592 = vmatmul.mubr.f32.gmra.mrb[48].mxu0 %v9796_v44 }
 0x1fb   :  { %1596 = vmatprep.mubr.f32.mxu0 %v12351_v18  ;;  %v9822_v18 = vld [vmem:[#allocation4 + $0x1f8] sm:$0xff] }
 0x1fc   :  { %12355 = vst [vmem:[#allocation18_spill] sm:$0xff] %v9822_v18  ;;  %300 = vst [vmem:[#allocation2 + $0x450] sm:$0xff] %v9822_v18  ;;  %v9944_v18 = vld [vmem:[#allocation2 + $0x411] sm:$0xff] }
 0x1fe   :  { %1597 = vmatmul.mubr.f32.gmra.mrb[50].mxu0 %v9800_v46 }
 0x1ff   :  { %1601 = vmatprep.mubr.f32.mxu0 %v12352_v47  ;;  %v9830_v47 = vld [vmem:[#allocation2 + $0x1f1] sm:$0xff] }
 0x202   :  { %1602 = vmatmul.mubr.f32.gmra.mrb[52].mxu0 %v9805_v22 }
 0x203   :  { %1606 = vmatprep.mubr.f32.mxu0 %v9550_v59  ;;  %v7677_v59 = vpack.c.bf16 %v973_v14, %v972_v51  ;;  %v461_v51 = vld [vmem:[#allocation2 + $0x249] sm:$0xff]  ;;  %v462_v14 = vld [vmem:[#allocation2 + $0x251] sm:$0xff] }
 0x205   :  { %7678 = vmatpush1.bf16.msra.mxu0 %v7677_v59  ;;  %v9840_v59 = vld [vmem:[#allocation2 + $0x271] sm:$0xff] }
 0x206   :  { %1607 = vmatmul.mubr.f32.gmra.mrb[54].mxu0 %v9809_v50  ;;  %7679 = vmatprep.subr.bf16.mxu0 %v12342_v63 }
 0x207   :  { %1611 = vmatprep.mubr.f32.mxu0 %v9558_v55  ;;  %v9827_v55 = vld [vmem:[#allocation2 + $0x1e9] sm:$0xff] }
 0x20a   :  { %1612 = vmatmul.mubr.f32.gmra.mrb[56].mxu0 %v9813_v8 }
 0x20b   :  { %1616 = vmatprep.mubr.f32.mxu0 %v12354_v57  ;;  %v9836_v57 = vld [vmem:[#allocation2 + $0x269] sm:$0xff] }
 0x20e   :  { %1617 = vmatmul.mubr.f32.gmra.mrb[58].mxu0 %v9820_v4 }
 0x20f   :  { %1621 = vmatprep.mubr.f32.mxu0 %v523_v25  ;;  %v9928_v25 = vld [vmem:[#allocation2 + $0x3d1] sm:$0xff] }
 0x212   :  { %1622 = vmatmul.mubr.f32.gmra.mrb[60].mxu0 %v9827_v55 }
 0x213   :  { %1626 = vmatprep.mubr.f32.mxu0 %v524_v6  ;;  %v9932_v6 = vld [vmem:[#allocation2 + $0x3e9] sm:$0xff] }
 0x216   :  { %1627 = vmatmul.mubr.f32.gmra.mrb[62].mxu0 %v9830_v47 }
 0x217   :  { %1631 = vmatprep.mubr.f32.mxu0 %v9566_v9  ;;  %v9844_v9 = vld [vmem:[#allocation2 + $0x289] sm:$0xff] }
 0x21a   :  { %1632 = vmatmul.mubr.f32.gmra.mrb[64].mxu0 %v461_v51  ;;  %v9936_v51 = vld [vmem:[#allocation2 + $0x3f1] sm:$0xff] }
 0x21b   :  { %1636 = vmatprep.mubr.f32.mxu0 %v9570_v13  ;;  %v9848_v13 = vld [vmem:[#allocation2 + $0x291] sm:$0xff] }
 0x21e   :  { %1637 = vmatmul.mubr.f32.gmra.mrb[66].mxu0 %v462_v14  ;;  %v9940_v14 = vld [vmem:[#allocation2 + $0x409] sm:$0xff] }
 0x21f   :  { %1641 = vmatprep.mubr.f32.mxu0 %v9574_v5  ;;  %v9852_v5 = vld [vmem:[#allocation2 + $0x2a9] sm:$0xff] }
 0x222   :  { %1642 = vmatmul.mubr.f32.gmra.mrb[68].mxu0 %v9836_v57 }
 0x223   :  { %1646 = vmatprep.mubr.f32.mxu0 %v9578_v0  ;;  %v9856_v0 = vld [vmem:[#allocation2 + $0x2b1] sm:$0xff] }
 0x226   :  { %1647 = vmatmul.mubr.f32.gmra.mrb[70].mxu0 %v9840_v59 }
 0x227   :  { %1651 = vmatprep.mubr.f32.mxu0 %v9582_v43  ;;  %v9860_v43 = vld [vmem:[#allocation2 + $0x2c9] sm:$0xff] }
 0x22a   :  { %1652 = vmatmul.mubr.f32.gmra.mrb[72].mxu0 %v9844_v9 }
 0x22b   :  { %1656 = vmatprep.mubr.f32.mxu0 %v9586_v53  ;;  %v9864_v53 = vld [vmem:[#allocation2 + $0x2d1] sm:$0xff] }
 0x22e   :  { %1657 = vmatmul.mubr.f32.gmra.mrb[74].mxu0 %v9848_v13 }
 0x22f   :  { %1661 = vmatprep.mubr.f32.mxu0 %v9590_v58  ;;  %v9868_v58 = vld [vmem:[#allocation2 + $0x2e9] sm:$0xff] }
 0x232   :  { %1662 = vmatmul.mubr.f32.gmra.mrb[76].mxu0 %v9852_v5 }
 0x233   :  { %1666 = vmatprep.mubr.f32.mxu0 %v9594_v2  ;;  %v9872_v2 = vld [vmem:[#allocation2 + $0x2f1] sm:$0xff] }
 0x236   :  { %1667 = vmatmul.mubr.f32.gmra.mrb[78].mxu0 %v9856_v0 }
 0x237   :  { %1671 = vmatprep.mubr.f32.mxu0 %v9598_v7  ;;  %v9876_v7 = vld [vmem:[#allocation2 + $0x309] sm:$0xff] }
 0x23a   :  { %1672 = vmatmul.mubr.f32.gmra.mrb[80].mxu0 %v9860_v43 }
 0x23b   :  { %1676 = vmatprep.mubr.f32.mxu0 %v9602_v12  ;;  %v9880_v12 = vld [vmem:[#allocation2 + $0x311] sm:$0xff] }
 0x23e   :  { %1677 = vmatmul.mubr.f32.gmra.mrb[82].mxu0 %v9864_v53 }
 0x23f   :  { %1681 = vmatprep.mubr.f32.mxu0 %v9606_v24  ;;  %v9884_v24 = vld [vmem:[#allocation2 + $0x329] sm:$0xff] }
 0x242   :  { %1682 = vmatmul.mubr.f32.gmra.mrb[84].mxu0 %v9868_v58 }
 0x243   :  { %1686 = vmatprep.mubr.f32.mxu0 %v9610_v37  ;;  %v9888_v37 = vld [vmem:[#allocation2 + $0x331] sm:$0xff] }
 0x246   :  { %1687 = vmatmul.mubr.f32.gmra.mrb[86].mxu0 %v9872_v2 }
 0x247   :  { %1691 = vmatprep.mubr.f32.mxu0 %v9614_v48  ;;  %v9892_v48 = vld [vmem:[#allocation2 + $0x349] sm:$0xff] }
 0x24a   :  { %1692 = vmatmul.mubr.f32.gmra.mrb[88].mxu0 %v9876_v7 }
 0x24b   :  { %1696 = vmatprep.mubr.f32.mxu0 %v9618_v1  ;;  %v9896_v1 = vld [vmem:[#allocation2 + $0x351] sm:$0xff] }
 0x24e   :  { %1697 = vmatmul.mubr.f32.gmra.mrb[90].mxu0 %v9880_v12 }
 0x24f   :  { %1701 = vmatprep.mubr.f32.mxu0 %v9622_v16  ;;  %v9900_v16 = vld [vmem:[#allocation2 + $0x369] sm:$0xff] }
 0x252   :  { %1702 = vmatmul.mubr.f32.gmra.mrb[92].mxu0 %v9884_v24 }
 0x253   :  { %1706 = vmatprep.mubr.f32.mxu0 %v9626_v27  ;;  %v9904_v27 = vld [vmem:[#allocation2 + $0x371] sm:$0xff] }
 0x256   :  { %1707 = vmatmul.mubr.f32.gmra.mrb[94].mxu0 %v9888_v37 }
 0x257   :  { %1711 = vmatprep.mubr.f32.mxu0 %v9630_v17  ;;  %v9908_v17 = vld [vmem:[#allocation2 + $0x389] sm:$0xff] }
 0x25a   :  { %1712 = vmatmul.mubr.f32.gmra.mrb[96].mxu0 %v9892_v48 }
 0x25b   :  { %1716 = vmatprep.mubr.f32.mxu0 %v9634_v10  ;;  %v9912_v10 = vld [vmem:[#allocation2 + $0x391] sm:$0xff] }
 0x25e   :  { %1717 = vmatmul.mubr.f32.gmra.mrb[98].mxu0 %v9896_v1 }
 0x25f   :  { %1721 = vmatprep.mubr.f32.mxu0 %v9638_v11  ;;  %v9916_v11 = vld [vmem:[#allocation2 + $0x3a9] sm:$0xff] }
 0x262   :  { %1722 = vmatmul.mubr.f32.gmra.mrb[100].mxu0 %v9900_v16 }
 0x263   :  { %1726 = vmatprep.mubr.f32.mxu0 %v9642_v19  ;;  %v9920_v19 = vld [vmem:[#allocation2 + $0x3b1] sm:$0xff] }
 0x266   :  { %1727 = vmatmul.mubr.f32.gmra.mrb[102].mxu0 %v9904_v27 }
 0x267   :  { %1731 = vmatprep.mubr.f32.mxu0 %v9646_v15  ;;  %v9924_v15 = vld [vmem:[#allocation2 + $0x3c9] sm:$0xff] }
 0x268   :  { %12356 = vst [vmem:[#allocation19_spill] sm:$0xff] %v9924_v15 }
 0x26a   :  { %1732 = vmatmul.mubr.f32.gmra.mrb[104].mxu0 %v9908_v17 }
 0x26b   :  { %1736 = vmatprep.mubr.f32.mxu0 %v9650_v36  ;;  %v12357_v36 = vld [vmem:[#allocation20_spill] sm:$0xff] }
 0x26c   :  { %12358 = vst [vmem:[#allocation20_spill] sm:$0xff] %v9928_v25 }
 0x26e   :  { %1737 = vmatmul.mubr.f32.gmra.mrb[106].mxu0 %v9912_v10 }
 0x26f   :  { %1741 = vmatprep.mubr.f32.mxu0 %v9654_v21  ;;  %v12359_v21 = vld [vmem:[#allocation21_spill] sm:$0xff] }
 0x270   :  { %12360 = vst [vmem:[#allocation21_spill] sm:$0xff] %v9932_v6 }
 0x272   :  { %1742 = vmatmul.mubr.f32.gmra.mrb[108].mxu0 %v9916_v11 }
 0x273   :  { %1746 = vmatprep.mubr.f32.mxu0 %v9658_v42  ;;  %v12361_v42 = vld [vmem:[#allocation23_spill] sm:$0xff] }
 0x274   :  { %12362 = vst [vmem:[#allocation23_spill] sm:$0xff] %v9936_v51 }
 0x276   :  { %1747 = vmatmul.mubr.f32.gmra.mrb[110].mxu0 %v9920_v19 }
 0x277   :  { %1751 = vmatprep.mubr.f32.mxu0 %v9662_v45  ;;  %v12363_v45 = vld [vmem:[#allocation25_spill] sm:$0xff] }
 0x278   :  { %12364 = vst [vmem:[#allocation25_spill] sm:$0xff] %v9940_v14 }
 0x27a   :  { %1752 = vmatmul.mubr.f32.gmra.mrb[112].mxu0 %v9924_v15  ;;  %v977_v15 = vld [vmem:[#allocation7 + $0x318] sm:$0xff] }
 0x27b   :  { %1756 = vmatprep.mubr.f32.mxu0 %v12357_v36  ;;  %v12365_v36 = vld [vmem:[#allocation26_spill] sm:$0xff] }
 0x27c   :  { %12366 = vst [vmem:[#allocation26_spill] sm:$0xff] %v9944_v18 }
 0x27e   :  { %1757 = vmatmul.mubr.f32.gmra.mrb[114].mxu0 %v9928_v25  ;;  %v976_v25 = vld [vmem:[#allocation7 + $0x310] sm:$0xff] }
 0x27f   :  { %1761 = vmatprep.mubr.f32.mxu0 %v12359_v21  ;;  %v555_v21 = vld [vmem:[#allocation2 + $0x447] sm:$0xff] }
 0x282   :  { %1762 = vmatmul.mubr.f32.gmra.mrb[116].mxu0 %v9932_v6  ;;  %v975_v6 = vld [vmem:[#allocation7 + $0x308] sm:$0xff] }
 0x283   :  { %1766 = vmatprep.mubr.f32.mxu0 %v12361_v42  ;;  %v556_v42 = vld [vmem:[#allocation2 + $0x44f] sm:$0xff] }
 0x286   :  { %1767 = vmatmul.mubr.f32.gmra.mrb[118].mxu0 %v9936_v51  ;;  %v9950_v51 = vld [vmem:[#allocation2 + $0x431] sm:$0xff] }
 0x287   :  { %1771 = vmatprep.mubr.f32.mxu0 %v12363_v45  ;;  %12368 = vst [vmem:[#allocation28_spill] sm:$0xff] %v9950_v51  ;;  %v974_v45 = vld [vmem:[#allocation7 + $0x300] sm:$0xff] }
 0x28a   :  { %1772 = vmatmul.mubr.f32.gmra.mrb[120].mxu0 %v9940_v14  ;;  %v7680_v14 = vpack.c.bf16 %v975_v6, %v974_v45  ;;  %v980_v6 = vld [vmem:[#allocation7 + $0x330] sm:$0xff]  ;;  %v981_v45 = vld [vmem:[#allocation7 + $0x338] sm:$0xff] }
 0x28b   :  { %1776 = vmatprep.mubr.f32.mxu0 %v12365_v36  ;;  %v557_v36 = vld [vmem:[#allocation2 + $0x28] sm:$0xff] }
 0x28e   :  { %1777 = vmatmul.mubr.f32.gmra.mrb[122].mxu0 %v9944_v18  ;;  %v7683_v18 = vpack.c.bf16 %v977_v15, %v976_v25  ;;  %v7689_v15 = vpack.c.bf16 %v981_v45, %v980_v6  ;;  %v982_v25 = vld [vmem:[#allocation7 + $0x340] sm:$0xff]  ;;  %v988_v45 = vld [vmem:[#allocation7 + $0x370] sm:$0xff] }
 0x28f   :  { %1781 = vmatprep.mubr.f32.mxu0 %v555_v21  ;;  %v558_v21 = vld [vmem:[#allocation2 + $0x30] sm:$0xff] }
 0x292   :  { %1782 = vmatmul.mubr.f32.gmra.mrb[124].mxu0 %v9947_v49  ;;  %v979_v49 = vld [vmem:[#allocation7 + $0x328] sm:$0xff] }
 0x293   :  { %1786 = vmatprep.mubr.f32.mxu0 %v556_v42  ;;  %v978_v42 = vld [vmem:[#allocation7 + $0x320] sm:$0xff] }
 0x296   :  { %1787 = vmatmul.mubr.f32.gmra.mrb[126].mxu0 %v9950_v51  ;;  %v9957_v51 = vld [vmem:[#allocation2 + $0x48] sm:$0xff] }
 0x297   :  { %1856 = vmatprep.mubr.f32.mxu0 %v9695_v52  ;;  %v7686_v52 = vpack.c.bf16 %v979_v49, %v978_v42  ;;  %v9967_v49 = vld [vmem:[#allocation2 + $0x68] sm:$0xff]  ;;  %v986_v42 = vld [vmem:[#allocation7 + $0x360] sm:$0xff] }
 0x29a   :  { %1857 = vmatmul.mubr.f32.vlgmr.msra.gmra.mrb[0].mxu0 %v557_v36  ;;  %v9972_v36 = vld [vmem:[#allocation2 + $0x70] sm:$0xff] }
 0x29b   :  { %7681 = vmatpush1.bf16.msra.mxu0 %v7680_v14  ;;  %1861 = vmatprep.mubr.f32.mxu0 %v9700_v60  ;;  %v9962_v60 = vld [vmem:[#allocation2 + $0x50] sm:$0xff] }
 0x29c   :  { %7682 = vmatprep.subr.bf16.mxu0 %v12342_v63  ;;  %v984_v14 = vld [vmem:[#allocation7 + $0x350] sm:$0xff] }
 0x29e   :  { %1862 = vmatmul.mubr.f32.gmra.mrb[2].mxu0 %v558_v21 }
 0x29f   :  { %1866 = vmatprep.mubr.f32.mxu0 %v9705_v26  ;;  %7684 = vmatpush1.bf16.msra.mxu0 %v7683_v18  ;;  %v983_v26 = vld [vmem:[#allocation7 + $0x348] sm:$0xff] }
 0x2a0   :  { %7685 = vmatprep.subr.bf16.mxu0 %v12342_v63  ;;  %v7692_v18 = vpack.c.bf16 %v983_v26, %v982_v25  ;;  %v990_v26 = vld [vmem:[#allocation7 + $0x380] sm:$0xff] }
 0x2a2   :  { %1867 = vmatmul.mubr.f32.gmra.mrb[4].mxu0 %v9957_v51 }
 0x2a3   :  { %1871 = vmatprep.mubr.f32.mxu0 %v9710_v56  ;;  %7687 = vmatpush1.bf16.msra.mxu0 %v7686_v52  ;;  %v985_v56 = vld [vmem:[#allocation7 + $0x358] sm:$0xff]  ;;  %v9977_v52 = vld [vmem:[#allocation2 + $0x88] sm:$0xff] }
 0x2a4   :  { %7688 = vmatprep.subr.bf16.mxu0 %v12342_v63  ;;  %v7695_v21 = vpack.c.bf16 %v985_v56, %v984_v14  ;;  %v992_v56 = vld [vmem:[#allocation7 + $0x390] sm:$0xff] }
 0x2a6   :  { %1872 = vmatmul.mubr.f32.gmra.mrb[6].mxu0 %v9962_v60 }
 0x2a7   :  { %1876 = vmatprep.mubr.f32.mxu0 %v9715_v54  ;;  %7690 = vmatpush1.bf16.msra.mxu0 %v7689_v15  ;;  %v987_v54 = vld [vmem:[#allocation7 + $0x368] sm:$0xff]  ;;  %v9982_v15 = vld [vmem:[#allocation2 + $0x90] sm:$0xff] }
 0x2a8   :  { %7691 = vmatprep.subr.bf16.mxu0 %v12342_v63  ;;  %v7698_v6 = vpack.c.bf16 %v987_v54, %v986_v42  ;;  %v994_v54 = vld [vmem:[#allocation7 + $0x3a0] sm:$0xff] }
 0x2aa   :  { %1877 = vmatmul.mubr.f32.gmra.mrb[8].mxu0 %v9967_v49 }
 0x2ab   :  { %1881 = vmatprep.mubr.f32.mxu0 %v9720_v28  ;;  %7693 = vmatpush1.bf16.msra.mxu0 %v7692_v18  ;;  %v989_v28 = vld [vmem:[#allocation7 + $0x378] sm:$0xff]  ;;  %v9987_v18 = vld [vmem:[#allocation2 + $0xa8] sm:$0xff] }
 0x2ac   :  { %7694 = vmatprep.subr.bf16.mxu0 %v12342_v63  ;;  %v7701_v25 = vpack.c.bf16 %v989_v28, %v988_v45  ;;  %v996_v28 = vld [vmem:[#allocation7 + $0x3b0] sm:$0xff] }
 0x2ae   :  { %1882 = vmatmul.mubr.f32.gmra.mrb[10].mxu0 %v9972_v36 }
 0x2af   :  { %1886 = vmatprep.mubr.f32.mxu0 %v9725_v20  ;;  %7696 = vmatpush1.bf16.msra.mxu0 %v7695_v21  ;;  %v991_v20 = vld [vmem:[#allocation7 + $0x388] sm:$0xff]  ;;  %v9992_v21 = vld [vmem:[#allocation2 + $0xb0] sm:$0xff] }
 0x2b0   :  { %7697 = vmatprep.subr.bf16.mxu0 %v12342_v63  ;;  %v7704_v14 = vpack.c.bf16 %v991_v20, %v990_v26  ;;  %v10011_v26 = vld [vmem:[#allocation2 + $0xf0] sm:$0xff]  ;;  %v10016_v20 = vld [vmem:[#allocation2 + $0x108] sm:$0xff] }
 0x2b2   :  { %1887 = vmatmul.mubr.f32.gmra.mrb[12].mxu0 %v9977_v52 }
 0x2b3   :  { %1891 = vmatprep.mubr.f32.mxu0 %v9730_v23  ;;  %7699 = vmatpush1.bf16.msra.mxu0 %v7698_v6  ;;  %v993_v23 = vld [vmem:[#allocation7 + $0x398] sm:$0xff]  ;;  %v9997_v6 = vld [vmem:[#allocation2 + $0xc8] sm:$0xff] }
 0x2b4   :  { %7700 = vmatprep.subr.bf16.mxu0 %v12342_v63  ;;  %v7707_v42 = vpack.c.bf16 %v993_v23, %v992_v56  ;;  %v999_v56 = vld [vmem:[#allocation7 + $0x3c8] sm:$0xff] }
 0x2b6   :  { %1892 = vmatmul.mubr.f32.gmra.mrb[14].mxu0 %v9982_v15 }
 0x2b7   :  { %1896 = vmatprep.mubr.f32.mxu0 %v9735_v34  ;;  %7702 = vmatpush1.bf16.msra.mxu0 %v7701_v25  ;;  %v995_v34 = vld [vmem:[#allocation7 + $0x3a8] sm:$0xff]  ;;  %v997_v25 = vld [vmem:[#allocation7 + $0x3b8] sm:$0xff] }
 0x2b8   :  { %7703 = vmatprep.subr.bf16.mxu0 %v12342_v63  ;;  %v7710_v45 = vpack.c.bf16 %v995_v34, %v994_v54  ;;  %v1001_v54 = vld [vmem:[#allocation7 + $0x3d8] sm:$0xff] }
 0x2ba   :  { %1897 = vmatmul.mubr.f32.gmra.mrb[16].mxu0 %v9987_v18 }
 0x2bb   :  { %1901 = vmatprep.mubr.f32.mxu0 %v9740_v61  ;;  %7705 = vmatpush1.bf16.msra.mxu0 %v7704_v14  ;;  %v10002_v61 = vld [vmem:[#allocation2 + $0xd0] sm:$0xff]  ;;  %v998_v14 = vld [vmem:[#allocation7 + $0x3c0] sm:$0xff] }
 0x2bc   :  { %7706 = vmatprep.subr.bf16.mxu0 %v12342_v63  ;;  %v7716_v23 = vpack.c.bf16 %v999_v56, %v998_v14  ;;  %v1005_v14 = vld [vmem:[#allocation7 + $0x3f8] sm:$0xff] }
 0x2be   :  { %1902 = vmatmul.mubr.f32.gmra.mrb[18].mxu0 %v9992_v21 }
 0x2bf   :  { %1906 = vmatprep.mubr.f32.mxu0 %v9745_v62  ;;  %7708 = vmatpush1.bf16.msra.mxu0 %v7707_v42  ;;  %v10007_v62 = vld [vmem:[#allocation2 + $0xe8] sm:$0xff]  ;;  %v1000_v42 = vld [vmem:[#allocation7 + $0x3d0] sm:$0xff] }
 0x2c0   :  { %7709 = vmatprep.subr.bf16.mxu0 %v12342_v63  ;;  %v7719_v34 = vpack.c.bf16 %v1001_v54, %v1000_v42  ;;  %v12370_v42 = vld [vmem:[#allocation24_spill] sm:$0xff]  ;;  %v1006_v54 = vld [vmem:[#allocation7 + $0x400] sm:$0xff] }
 0x2c2   :  { %1907 = vmatmul.mubr.f32.gmra.mrb[20].mxu0 %v9997_v6 }
 0x2c3   :  { %1911 = vmatprep.mubr.f32.mxu0 %v9749_v3  ;;  %7711 = vmatpush1.bf16.msra.mxu0 %v7710_v45  ;;  %v7713_v3 = vpack.c.bf16 %v997_v25, %v996_v28  ;;  %v1002_v45 = vld [vmem:[#allocation7 + $0x3e0] sm:$0xff]  ;;  %v1003_v28 = vld [vmem:[#allocation7 + $0x3e8] sm:$0xff] }
 0x2c4   :  { %7712 = vmatprep.subr.bf16.mxu0 %v12342_v63  ;;  %v7722_v25 = vpack.c.bf16 %v1003_v28, %v1002_v45  ;;  %v590_v45 = vld [vmem:[#allocation2 + $0x270] sm:$0xff] }
 0x2c6   :  { %1912 = vmatmul.mubr.f32.gmra.mrb[22].mxu0 %v10002_v61 }
 0x2c7   :  { %1916 = vmatprep.mubr.f32.mxu0 %v9754_v40  ;;  %7714 = vmatpush1.bf16.msra.mxu0 %v7713_v3  ;;  %v10020_v40 = vld [vmem:[#allocation2 + $0x110] sm:$0xff] }
 0x2c8   :  { %7715 = vmatprep.subr.bf16.mxu0 %v12342_v63  ;;  %v1004_v3 = vld [vmem:[#allocation7 + $0x3f0] sm:$0xff] }
 0x2c9   :  { %v7725_v56 = vpack.c.bf16 %v1005_v14, %v1004_v3  ;;  %v10110_v3 = vld [vmem:[#allocation2 + $0x2b0] sm:$0xff]  ;;  %v1009_v14 = vld [vmem:[#allocation7 + $0x418] sm:$0xff] }
 0x2ca   :  { %1917 = vmatmul.mubr.f32.gmra.mrb[24].mxu0 %v10007_v62 }
 0x2cb   :  { %1921 = vmatprep.mubr.f32.mxu0 %v9758_v29  ;;  %v10024_v29 = vld [vmem:[#allocation2 + $0x128] sm:$0xff]  ;;  %7717 = vmatpush1.bf16.msra.mxu0 %v7716_v23 }
 0x2cc   :  { %7718 = vmatprep.subr.bf16.mxu0 %v12342_v63  ;;  %v10081_v23 = vld [vmem:[#allocation2 + $0x209] sm:$0xff] }
 0x2ce   :  { %1922 = vmatmul.mubr.f32.gmra.mrb[26].mxu0 %v10011_v26 }
 0x2cf   :  { %1926 = vmatprep.mubr.f32.mxu0 %v9762_v30  ;;  %v10028_v30 = vld [vmem:[#allocation2 + $0x130] sm:$0xff]  ;;  %7720 = vmatpush1.bf16.msra.mxu0 %v7719_v34  ;;  %v1007_v34 = vld [vmem:[#allocation7 + $0x408] sm:$0xff] }
 0x2d0   :  { %7721 = vmatprep.subr.bf16.mxu0 %v12342_v63  ;;  %v10092_v28 = vpack.c.bf16 %v1007_v34, %v1006_v54  ;;  %v1013_v54 = vld [vmem:[#allocation7 + $0x438] sm:$0xff] }
 0x2d2   :  { %1927 = vmatmul.mubr.f32.gmra.mrb[28].mxu0 %v10016_v20  ;;  %8015 = vmatprep.subr.bf16.mxu1 %v10092_v28 }
 0x2d3   :  { %1931 = vmatprep.mubr.f32.mxu0 %v9766_v31  ;;  %v10033_v31 = vld [vmem:[#allocation2 + $0x148] sm:$0xff]  ;;  %7723 = vmatpush1.bf16.msra.mxu0 %v7722_v25 }
 0x2d4   :  { %7724 = vmatprep.subr.bf16.mxu0 %v12342_v63  ;;  %8023 = vmatpush3.bf16.msra.mxu1 %v10092_v28  ;;  %v10098_v25 = vld [vmem:[#allocation2 + $0x288] sm:$0xff] }
 0x2d6   :  { %1932 = vmatmul.mubr.f32.gmra.mrb[30].mxu0 %v10020_v40 }
 0x2d7   :  { %1936 = vmatprep.mubr.f32.mxu0 %v9771_v32  ;;  %v10037_v32 = vld [vmem:[#allocation2 + $0x150] sm:$0xff]  ;;  %7726 = vmatpush1.bf16.msra.mxu0 %v7725_v56 }
 0x2d8   :  { %7728 = vmatprep.subr.bf16.mxu0 %v10092_v28 }
 0x2da   :  { %1937 = vmatmul.mubr.f32.gmra.mrb[32].mxu0 %v10024_v29 }
 0x2db   :  { %1941 = vmatprep.mubr.f32.mxu0 %v9775_v33  ;;  %v10041_v33 = vld [vmem:[#allocation2 + $0x168] sm:$0xff] }
 0x2de   :  { %1942 = vmatmul.mubr.f32.gmra.mrb[34].mxu0 %v10028_v30 }
 0x2df   :  { %1946 = vmatprep.mubr.f32.mxu0 %v9779_v35  ;;  %v10045_v35 = vld [vmem:[#allocation2 + $0x170] sm:$0xff] }
 0x2e2   :  { %1947 = vmatmul.mubr.f32.gmra.mrb[36].mxu0 %v10033_v31 }
 0x2e3   :  { %1951 = vmatprep.mubr.f32.mxu0 %v9783_v38  ;;  %v10050_v38 = vld [vmem:[#allocation2 + $0x188] sm:$0xff] }
 0x2e6   :  { %1952 = vmatmul.mubr.f32.gmra.mrb[38].mxu0 %v10037_v32 }
 0x2e7   :  { %1956 = vmatprep.mubr.f32.mxu0 %v9788_v39  ;;  %v10054_v39 = vld [vmem:[#allocation2 + $0x190] sm:$0xff] }
 0x2ea   :  { %1957 = vmatmul.mubr.f32.gmra.mrb[40].mxu0 %v10041_v33 }
 0x2eb   :  { %1961 = vmatprep.mubr.f32.mxu0 %v9792_v41  ;;  %v10058_v41 = vld [vmem:[#allocation2 + $0x1a8] sm:$0xff] }
 0x2ee   :  { %1962 = vmatmul.mubr.f32.gmra.mrb[42].mxu0 %v10045_v35 }
 0x2ef   :  { %1966 = vmatprep.mubr.f32.mxu0 %v9796_v44  ;;  %v10062_v44 = vld [vmem:[#allocation2 + $0x1b0] sm:$0xff] }
 0x2f2   :  { %1967 = vmatmul.mubr.f32.gmra.mrb[44].mxu0 %v10050_v38 }
 0x2f3   :  { %1971 = vmatprep.mubr.f32.mxu0 %v9800_v46  ;;  %v10067_v46 = vld [vmem:[#allocation2 + $0x1c8] sm:$0xff] }
 0x2f6   :  { %1972 = vmatmul.mubr.f32.gmra.mrb[46].mxu0 %v10054_v39 }
 0x2f7   :  { %1976 = vmatprep.mubr.f32.mxu0 %v9805_v22  ;;  %v10071_v22 = vld [vmem:[#allocation2 + $0x1d0] sm:$0xff] }
 0x2fa   :  { %1977 = vmatmul.mubr.f32.gmra.mrb[48].mxu0 %v10058_v41 }
 0x2fb   :  { %1981 = vmatprep.mubr.f32.mxu0 %v9809_v50  ;;  %v10075_v50 = vld [vmem:[#allocation2 + $0x1e8] sm:$0xff] }
 0x2fe   :  { %1982 = vmatmul.mubr.f32.gmra.mrb[50].mxu0 %v10062_v44 }
 0x2ff   :  { %1986 = vmatprep.mubr.f32.mxu0 %v9813_v8  ;;  %v10079_v8 = vld [vmem:[#allocation2 + $0x1f0] sm:$0xff] }
 0x302   :  { %1987 = vmatmul.mubr.f32.gmra.mrb[52].mxu0 %v10067_v46 }
 0x303   :  { %1991 = vmatprep.mubr.f32.mxu0 %v9820_v4  ;;  %v10085_v4 = vld [vmem:[#allocation2 + $0x211] sm:$0xff] }
 0x306   :  { %1992 = vmatmul.mubr.f32.gmra.mrb[54].mxu0 %v10071_v22 }
 0x307   :  { %1996 = vmatprep.mubr.f32.mxu0 %v9827_v55  ;;  %v12369_v55 = vld [vmem:[#allocation22_spill] sm:$0xff] }
 0x30a   :  { %1997 = vmatmul.mubr.f32.gmra.mrb[56].mxu0 %v10075_v50 }
 0x30b   :  { %2001 = vmatprep.mubr.f32.mxu0 %v9830_v47  ;;  %v589_v47 = vld [vmem:[#allocation2 + $0x268] sm:$0xff] }
 0x30e   :  { %2002 = vmatmul.mubr.f32.gmra.mrb[58].mxu0 %v10079_v8 }
 0x30f   :  { %2006 = vmatprep.mubr.f32.mxu0 %v10081_v23 }
 0x312   :  { %2007 = vmatmul.mubr.f32.gmra.mrb[60].mxu0 %v12369_v55  ;;  %v10146_v55 = vld [vmem:[#allocation2 + $0x330] sm:$0xff] }
 0x313   :  { %2011 = vmatprep.mubr.f32.mxu0 %v10085_v4 }
 0x316   :  { %2012 = vmatmul.mubr.f32.gmra.mrb[62].mxu0 %v12370_v42  ;;  %v1011_v42 = vld [vmem:[#allocation7 + $0x428] sm:$0xff] }
 0x317   :  { %2016 = vmatprep.mubr.f32.mxu0 %v9836_v57  ;;  %v10102_v57 = vld [vmem:[#allocation2 + $0x290] sm:$0xff] }
 0x31a   :  { %2017 = vmatmul.mubr.f32.gmra.mrb[64].mxu0 %v589_v47 }
 0x31b   :  { %2021 = vmatprep.mubr.f32.mxu0 %v9840_v59  ;;  %v10106_v59 = vld [vmem:[#allocation2 + $0x2a8] sm:$0xff] }
 0x31e   :  { %2022 = vmatmul.mubr.f32.gmra.mrb[66].mxu0 %v590_v45  ;;  %v1014_v45 = vld [vmem:[#allocation7 + $0x440] sm:$0xff] }
 0x31f   :  { %2026 = vmatprep.mubr.f32.mxu0 %v9844_v9  ;;  %v10114_v9 = vld [vmem:[#allocation2 + $0x2c8] sm:$0xff] }
 0x322   :  { %2027 = vmatmul.mubr.f32.gmra.mrb[68].mxu0 %v10098_v25 }
 0x323   :  { %2031 = vmatprep.mubr.f32.mxu0 %v9848_v13  ;;  %v10118_v13 = vld [vmem:[#allocation2 + $0x2d0] sm:$0xff] }
 0x326   :  { %2032 = vmatmul.mubr.f32.gmra.mrb[70].mxu0 %v10102_v57 }
 0x327   :  { %2036 = vmatprep.mubr.f32.mxu0 %v9852_v5  ;;  %v10122_v5 = vld [vmem:[#allocation2 + $0x2e8] sm:$0xff] }
 0x32a   :  { %2037 = vmatmul.mubr.f32.gmra.mrb[72].mxu0 %v10106_v59 }
 0x32b   :  { %2041 = vmatprep.mubr.f32.mxu0 %v9856_v0  ;;  %v1008_v0 = vld [vmem:[#allocation7 + $0x410] sm:$0xff] }
 0x32c   :  { %v10128_v56 = vpack.c.bf16 %v1009_v14, %v1008_v0  ;;  %v10182_v0 = vld [vmem:[#allocation2 + $0x3a8] sm:$0xff] }
 0x32d   :  { %12373 = vst [vmem:[#allocation29_spill] sm:$0xff] %v10182_v0 }
 0x32e   :  { %2042 = vmatmul.mubr.f32.gmra.mrb[74].mxu0 %v10110_v3  ;;  %8016 = vmatprep.subr.bf16.mxu1 %v10128_v56 }
 0x32f   :  { %2046 = vmatprep.mubr.f32.mxu0 %v9860_v43  ;;  %v10126_v43 = vld [vmem:[#allocation2 + $0x2f0] sm:$0xff]  ;;  %8024 = vmatpush3.bf16.msra.mxu1 %v10128_v56 }
 0x332   :  { %2047 = vmatmul.mubr.f32.gmra.mrb[76].mxu0 %v10114_v9 }
 0x333   :  { %2051 = vmatprep.mubr.f32.mxu0 %v9864_v53  ;;  %v10134_v53 = vld [vmem:[#allocation2 + $0x308] sm:$0xff] }
 0x336   :  { %2052 = vmatmul.mubr.f32.gmra.mrb[78].mxu0 %v10118_v13 }
 0x337   :  { %2056 = vmatprep.mubr.f32.mxu0 %v9868_v58  ;;  %v10138_v58 = vld [vmem:[#allocation2 + $0x310] sm:$0xff] }
 0x33a   :  { %2057 = vmatmul.mubr.f32.gmra.mrb[80].mxu0 %v10122_v5 }
 0x33b   :  { %2061 = vmatprep.mubr.f32.mxu0 %v9872_v2  ;;  %v10142_v2 = vld [vmem:[#allocation2 + $0x328] sm:$0xff] }
 0x33e   :  { %2062 = vmatmul.mubr.f32.gmra.mrb[82].mxu0 %v10126_v43 }
 0x33f   :  { %2066 = vmatprep.mubr.f32.mxu0 %v9876_v7  ;;  %v10150_v7 = vld [vmem:[#allocation2 + $0x348] sm:$0xff] }
 0x342   :  { %2067 = vmatmul.mubr.f32.gmra.mrb[84].mxu0 %v10134_v53 }
 0x343   :  { %2071 = vmatprep.mubr.f32.mxu0 %v9880_v12  ;;  %v10154_v12 = vld [vmem:[#allocation2 + $0x350] sm:$0xff] }
 0x346   :  { %2072 = vmatmul.mubr.f32.gmra.mrb[86].mxu0 %v10138_v58 }
 0x347   :  { %2076 = vmatprep.mubr.f32.mxu0 %v9884_v24  ;;  %v10158_v24 = vld [vmem:[#allocation2 + $0x368] sm:$0xff] }
 0x34a   :  { %2077 = vmatmul.mubr.f32.gmra.mrb[88].mxu0 %v10142_v2 }
 0x34b   :  { %2081 = vmatprep.mubr.f32.mxu0 %v9888_v37  ;;  %v1010_v37 = vld [vmem:[#allocation7 + $0x420] sm:$0xff] }
 0x34c   :  { %v10164_v47 = vpack.c.bf16 %v1011_v42, %v1010_v37  ;;  %v1017_v37 = vld [vmem:[#allocation7 + $0x458] sm:$0xff]  ;;  %v10190_v42 = vld [vmem:[#allocation2 + $0x3b0] sm:$0xff] }
 0x34d   :  { %12374 = vst [vmem:[#allocation30_spill] sm:$0xff] %v10190_v42 }
 0x34e   :  { %2082 = vmatmul.mubr.f32.gmra.mrb[90].mxu0 %v10146_v55  ;;  %8017 = vmatprep.subr.bf16.mxu1 %v10164_v47 }
 0x34f   :  { %2086 = vmatprep.mubr.f32.mxu0 %v9892_v48  ;;  %v10162_v48 = vld [vmem:[#allocation2 + $0x370] sm:$0xff]  ;;  %8025 = vmatpush3.bf16.msra.mxu1 %v10164_v47 }
 0x352   :  { %2087 = vmatmul.mubr.f32.gmra.mrb[92].mxu0 %v10150_v7 }
 0x353   :  { %2091 = vmatprep.mubr.f32.mxu0 %v9896_v1  ;;  %v10170_v1 = vld [vmem:[#allocation2 + $0x388] sm:$0xff] }
 0x354   :  { %12371 = vst [vmem:[#allocation22_spill] sm:$0xff] %v10170_v1 }
 0x356   :  { %2092 = vmatmul.mubr.f32.gmra.mrb[94].mxu0 %v10154_v12 }
 0x357   :  { %2096 = vmatprep.mubr.f32.mxu0 %v9900_v16  ;;  %v1012_v16 = vld [vmem:[#allocation7 + $0x430] sm:$0xff] }
 0x358   :  { %v10176_v34 = vpack.c.bf16 %v1013_v54, %v1012_v16  ;;  %v1019_v54 = vld [vmem:[#allocation7 + $0x468] sm:$0xff] }
 0x35a   :  { %2097 = vmatmul.mubr.f32.gmra.mrb[96].mxu0 %v10158_v24  ;;  %8018 = vmatprep.subr.bf16.mxu1 %v10176_v34 }
 0x35b   :  { %2101 = vmatprep.mubr.f32.mxu0 %v9904_v27  ;;  %v10174_v27 = vld [vmem:[#allocation2 + $0x390] sm:$0xff]  ;;  %8026 = vmatpush3.bf16.msra.mxu1 %v10176_v34 }
 0x35c   :  { %12372 = vst [vmem:[#allocation24_spill] sm:$0xff] %v10174_v27 }
 0x35e   :  { %2102 = vmatmul.mubr.f32.gmra.mrb[98].mxu0 %v10162_v48 }
 0x35f   :  { %2106 = vmatprep.mubr.f32.mxu0 %v9908_v17  ;;  %v1015_v17 = vld [vmem:[#allocation7 + $0x448] sm:$0xff] }
 0x360   :  { %v10184_v14 = vpack.c.bf16 %v1015_v17, %v1014_v45  ;;  %v12375_v45 = vld [vmem:[#allocation19_spill] sm:$0xff]  ;;  %v10198_v17 = vld [vmem:[#allocation2 + $0x3c8] sm:$0xff] }
 0x361   :  { %12376 = vst [vmem:[#allocation19_spill] sm:$0xff] %v10198_v17 }
 0x362   :  { %2107 = vmatmul.mubr.f32.gmra.mrb[100].mxu0 %v10170_v1  ;;  %8019 = vmatprep.subr.bf16.mxu1 %v10184_v14  ;;  %v10223_v1 = vld [vmem:[#allocation2 + $0x408] sm:$0xff] }
 0x363   :  { %2111 = vmatprep.mubr.f32.mxu0 %v9912_v10  ;;  %8027 = vmatpush3.bf16.msra.mxu1 %v10184_v14  ;;  %v1016_v10 = vld [vmem:[#allocation7 + $0x450] sm:$0xff] }
 0x364   :  { %v10192_v16 = vpack.c.bf16 %v1017_v37, %v1016_v10  ;;  %v1021_v10 = vld [vmem:[#allocation7 + $0x478] sm:$0xff] }
 0x365   :  { %v12377_v37 = vld [vmem:[#allocation20_spill] sm:$0xff] }
 0x366   :  { %2112 = vmatmul.mubr.f32.gmra.mrb[102].mxu0 %v10174_v27  ;;  %8020 = vmatprep.subr.bf16.mxu1 %v10192_v16 }
 0x367   :  { %2116 = vmatprep.mubr.f32.mxu0 %v9916_v11  ;;  %8028 = vmatpush3.bf16.msra.mxu1 %v10192_v16  ;;  %v1018_v11 = vld [vmem:[#allocation7 + $0x460] sm:$0xff] }
 0x36a   :  { %2117 = vmatmul.mubr.f32.gmra.mrb[104].mxu0 %v10182_v0  ;;  %v10200_v0 = vpack.c.bf16 %v1019_v54, %v1018_v11  ;;  %v838_v11 = vld [vmem:[#allocation2 + $0x1c9] sm:$0xff]  ;;  %v12379_v54 = vld [vmem:[#allocation21_spill] sm:$0xff] }
 0x36b   :  { %2121 = vmatprep.mubr.f32.mxu0 %v9920_v19  ;;  %v1020_v19 = vld [vmem:[#allocation7 + $0x470] sm:$0xff]  ;;  %7219 = vmatprep.mubr.f32.mxu1 %v838_v11 }
 0x36c   :  { %8021 = vmatprep.subr.bf16.mxu1 %v10200_v0  ;;  %v10208_v27 = vpack.c.bf16 %v1021_v10, %v1020_v19  ;;  %v12380_v19 = vld [vmem:[#allocation23_spill] sm:$0xff] }
 0x36d   :  { %8029 = vmatpush3.bf16.msra.mxu1 %v10200_v0  ;;  %v10219_v10 = vld [vmem:[#allocation2 + $0x3f0] sm:$0xff] }
 0x36e   :  { %2122 = vmatmul.mubr.f32.gmra.mrb[106].mxu0 %v10190_v42  ;;  %v10206_v42 = vld [vmem:[#allocation2 + $0x3d0] sm:$0xff]  ;;  %8022 = vmatprep.subr.bf16.mxu1 %v10208_v27 }
 0x36f   :  { %2126 = vmatprep.mubr.f32.mxu0 %v12375_v45  ;;  %12378 = vst [vmem:[#allocation20_spill] sm:$0xff] %v10206_v42  ;;  %v10214_v45 = vld [vmem:[#allocation2 + $0x3e8] sm:$0xff]  ;;  %v10228_v11 = vld [vmem:[#allocation2 + $0x410] sm:$0xff] }
 0x370   :  { %12383 = vst [vmem:[#allocation21_spill] sm:$0xff] %v10228_v11 }
 0x371   :  { %8030 = vmatpush3.bf16.msra.mxu1 %v10208_v27 }
 0x372   :  { %2127 = vmatmul.mubr.f32.gmra.mrb[108].mxu0 %v10198_v17  ;;  %v839_v17 = vld [vmem:[#allocation2 + $0x1d1] sm:$0xff]  ;;  %7759 = vmatprep.subr.bf16.mxu1 %v12342_v63 }
 0x373   :  { %2131 = vmatprep.mubr.f32.mxu0 %v12377_v37  ;;  %v840_v37 = vld [vmem:[#allocation2 + $0x1e9] sm:$0xff]  ;;  %v10243_v63 = vld [vmem:[#allocation2 + $0x451] sm:$0xff] }
 0x374   :  { %7220 = vmatmul.mubr.f32.vlgmr.msra.gmra.mrb[0].mxu1 %v839_v17  ;;  %v12382_v17 = vld [vmem:[#allocation26_spill] sm:$0xff] }
 0x375   :  { %7222 = vmatprep.mubr.f32.mxu1 %v840_v37  ;;  %v12386_v37 = vld [vmem:[#allocation28_spill] sm:$0xff] }
 0x376   :  { %2132 = vmatmul.mubr.f32.gmra.mrb[110].mxu0 %v10206_v42  ;;  %v12381_v42 = vld [vmem:[#allocation25_spill] sm:$0xff] }
 0x377   :  { %2136 = vmatprep.mubr.f32.mxu0 %v12379_v54  ;;  %v841_v54 = vld [vmem:[#allocation2 + $0x1f1] sm:$0xff] }
 0x378   :  { %7223 = vmatmul.mubr.f32.gmra.mrb[2].mxu1 %v841_v54  ;;  %v10237_v54 = vld [vmem:[#allocation2 + $0x430] sm:$0xff] }
 0x379   :  { %7225 = vmatprep.mubr.f32.mxu1 %v10081_v23  ;;  %12387 = vst [vmem:[#allocation25_spill] sm:$0xff] %v10237_v54  ;;  %v10239_v23 = vld [vmem:[#allocation2 + $0x449] sm:$0xff] }
 0x37a   :  { %2137 = vmatmul.mubr.f32.gmra.mrb[112].mxu0 %v10214_v45 }
 0x37b   :  { %2141 = vmatprep.mubr.f32.mxu0 %v12380_v19  ;;  %v12384_v19 = vld [vmem:[#allocation27_spill] sm:$0xff] }
 0x37c   :  { %7226 = vmatmul.mubr.f32.gmra.mrb[4].mxu1 %v10085_v4  ;;  %v845_v4 = vld [vmem:[#allocation2 + $0x231] sm:$0xff] }
 0x37e   :  { %2142 = vmatmul.mubr.f32.gmra.mrb[114].mxu0 %v10219_v10 }
 0x37f   :  { %2146 = vmatprep.mubr.f32.mxu0 %v12381_v42  ;;  %v10233_v42 = vld [vmem:[#allocation2 + $0x428] sm:$0xff] }
 0x380   :  { %12385 = vst [vmem:[#allocation23_spill] sm:$0xff] %v10233_v42 }
 0x382   :  { %2147 = vmatmul.mubr.f32.gmra.mrb[116].mxu0 %v10223_v1 }
 0x383   :  { %2151 = vmatprep.mubr.f32.mxu0 %v12382_v17  ;;  %v844_v17 = vld [vmem:[#allocation2 + $0x229] sm:$0xff] }
 0x384   :  { %7228 = vmatprep.mubr.f32.mxu1 %v844_v17  ;;  %v687_v17 = vld [vmem:[#allocation2 + $0x4f] sm:$0xff] }
 0x385   :  { %7229 = vmatmul.mubr.f32.gmra.mrb[6].mxu1 %v845_v4  ;;  %v848_v4 = vld [vmem:[#allocation2 + $0x2a9] sm:$0xff] }
 0x386   :  { %2152 = vmatmul.mubr.f32.gmra.mrb[118].mxu0 %v10228_v11  ;;  %v686_v11 = vld [vmem:[#allocation2 + $0x47] sm:$0xff] }
 0x387   :  { %2156 = vmatprep.mubr.f32.mxu0 %v12384_v19  ;;  %v12388_v19 = vld [vmem:[#allocation17_spill] sm:$0xff] }
 0x38a   :  { %2157 = vmatmul.mubr.f32.gmra.mrb[120].mxu0 %v10233_v42  ;;  %v12389_v42 = vld [vmem:[#allocation18_spill] sm:$0xff] }
 0x38b   :  { %2161 = vmatprep.mubr.f32.mxu0 %v12386_v37  ;;  %v846_v37 = vld [vmem:[#allocation2 + $0x289] sm:$0xff] }
 0x38c   :  { %7231 = vmatprep.mubr.f32.mxu1 %v846_v37  ;;  %v860_v37 = vld [vmem:[#allocation2 + $0x369] sm:$0xff] }
 0x38e   :  { %2162 = vmatmul.mubr.f32.gmra.mrb[122].mxu0 %v10237_v54  ;;  %v847_v54 = vld [vmem:[#allocation2 + $0x291] sm:$0xff] }
 0x38f   :  { %2166 = vmatprep.mubr.f32.mxu0 %v10239_v23  ;;  %7232 = vmatmul.mubr.f32.gmra.mrb[8].mxu1 %v847_v54  ;;  %v857_v54 = vld [vmem:[#allocation2 + $0x331] sm:$0xff] }
 0x390   :  { %7234 = vmatprep.mubr.f32.mxu1 %v848_v4  ;;  %v862_v4 = vld [vmem:[#allocation2 + $0x389] sm:$0xff] }
 0x392   :  { %2167 = vmatmul.mubr.f32.gmra.mrb[124].mxu0 %v12388_v19  ;;  %v858_v19 = vld [vmem:[#allocation2 + $0x349] sm:$0xff] }
 0x393   :  { %2171 = vmatprep.mubr.f32.mxu0 %v10243_v63 }
 0x396   :  { %2172 = vmatmul.mubr.f32.gmra.mrb[126].mxu0 %v12389_v42  ;;  %v688_v42 = vld [vmem:[#allocation2 + $0x67] sm:$0xff] }
 0x397   :  { %2241 = vmatprep.mubr.f32.mxu0 %v9957_v51  ;;  %v849_v51 = vld [vmem:[#allocation2 + $0x2b1] sm:$0xff] }
 0x398   :  { %7235 = vmatmul.mubr.f32.gmra.mrb[10].mxu1 %v849_v51  ;;  %v864_v51 = vld [vmem:[#allocation2 + $0x3a9] sm:$0xff] }
 0x39a   :  { %2242 = vmatmul.mubr.f32.vlgmr.msra.gmra.mrb[0].mxu0 %v686_v11  ;;  %v855_v11 = vld [vmem:[#allocation2 + $0x311] sm:$0xff] }
 0x39b   :  { %7730 = vmatpush3.bf16.msra.mxu0 %v10092_v28  ;;  %2246 = vmatprep.mubr.f32.mxu0 %v9962_v60  ;;  %v689_v28 = vld [vmem:[#allocation2 + $0x6f] sm:$0xff] }
 0x39c   :  { %7732 = vmatprep.subr.bf16.mxu0 %v10128_v56  ;;  %v850_v60 = vld [vmem:[#allocation2 + $0x2c9] sm:$0xff] }
 0x39d   :  { %7237 = vmatprep.mubr.f32.mxu1 %v850_v60  ;;  %v866_v60 = vld [vmem:[#allocation2 + $0x3c9] sm:$0xff] }
 0x39e   :  { %2247 = vmatmul.mubr.f32.gmra.mrb[2].mxu0 %v687_v17  ;;  %v700_v17 = vld [vmem:[#allocation2 + $0x127] sm:$0xff] }
 0x39f   :  { %2251 = vmatprep.mubr.f32.mxu0 %v9967_v49  ;;  %7734 = vmatpush3.bf16.msra.mxu0 %v10128_v56  ;;  %v690_v49 = vld [vmem:[#allocation2 + $0x87] sm:$0xff]  ;;  %v851_v56 = vld [vmem:[#allocation2 + $0x2d1] sm:$0xff] }
 0x3a0   :  { %7736 = vmatprep.subr.bf16.mxu0 %v10164_v47  ;;  %7238 = vmatmul.mubr.f32.gmra.mrb[12].mxu1 %v851_v56  ;;  %v868_v56 = vld [vmem:[#allocation2 + $0x3e9] sm:$0xff] }
 0x3a2   :  { %2252 = vmatmul.mubr.f32.gmra.mrb[4].mxu0 %v688_v42  ;;  %v702_v42 = vld [vmem:[#allocation2 + $0x147] sm:$0xff] }
 0x3a3   :  { %2256 = vmatprep.mubr.f32.mxu0 %v9972_v36  ;;  %7738 = vmatpush3.bf16.msra.mxu0 %v10164_v47  ;;  %v691_v36 = vld [vmem:[#allocation2 + $0x8f] sm:$0xff] }
 0x3a4   :  { %7740 = vmatprep.subr.bf16.mxu0 %v10176_v34  ;;  %v852_v47 = vld [vmem:[#allocation2 + $0x2e9] sm:$0xff] }
 0x3a5   :  { %7240 = vmatprep.mubr.f32.mxu1 %v852_v47  ;;  %v870_v47 = vld [vmem:[#allocation2 + $0x409] sm:$0xff] }
 0x3a6   :  { %2257 = vmatmul.mubr.f32.gmra.mrb[6].mxu0 %v689_v28  ;;  %v704_v28 = vld [vmem:[#allocation2 + $0x167] sm:$0xff] }
 0x3a7   :  { %2261 = vmatprep.mubr.f32.mxu0 %v9977_v52  ;;  %7742 = vmatpush3.bf16.msra.mxu0 %v10176_v34  ;;  %v692_v52 = vld [vmem:[#allocation2 + $0xa7] sm:$0xff]  ;;  %v853_v34 = vld [vmem:[#allocation2 + $0x2f1] sm:$0xff] }
 0x3a8   :  { %7744 = vmatprep.subr.bf16.mxu0 %v10184_v14  ;;  %7241 = vmatmul.mubr.f32.gmra.mrb[14].mxu1 %v853_v34  ;;  %v872_v34 = vld [vmem:[#allocation2 + $0x429] sm:$0xff] }
 0x3aa   :  { %2262 = vmatmul.mubr.f32.gmra.mrb[8].mxu0 %v690_v49  ;;  %v706_v49 = vld [vmem:[#allocation2 + $0x187] sm:$0xff] }
 0x3ab   :  { %2266 = vmatprep.mubr.f32.mxu0 %v9982_v15  ;;  %7746 = vmatpush3.bf16.msra.mxu0 %v10184_v14  ;;  %v693_v15 = vld [vmem:[#allocation2 + $0xaf] sm:$0xff] }
 0x3ac   :  { %7748 = vmatprep.subr.bf16.mxu0 %v10192_v16  ;;  %v854_v14 = vld [vmem:[#allocation2 + $0x309] sm:$0xff] }
 0x3ad   :  { %7243 = vmatprep.mubr.f32.mxu1 %v854_v14  ;;  %v778_v14 = vld [vmem:[#allocation2 + $0x208] sm:$0xff] }
 0x3ae   :  { %2267 = vmatmul.mubr.f32.gmra.mrb[10].mxu0 %v691_v36  ;;  %7244 = vmatmul.mubr.f32.gmra.mrb[16].mxu1 %v855_v11  ;;  %v708_v36 = vld [vmem:[#allocation2 + $0x1a7] sm:$0xff] }
 0x3af   :  { %2271 = vmatprep.mubr.f32.mxu0 %v9987_v18  ;;  %7750 = vmatpush3.bf16.msra.mxu0 %v10192_v16  ;;  %v694_v18 = vld [vmem:[#allocation2 + $0xc7] sm:$0xff]  ;;  %v695_v16 = vld [vmem:[#allocation2 + $0xcf] sm:$0xff] }
 0x3b0   :  { %7752 = vmatprep.subr.bf16.mxu0 %v10200_v0  ;;  %v876_v11 = vld [vmem:[#allocation2 + $0x469] sm:$0xff] }
 0x3b2   :  { %2272 = vmatmul.mubr.f32.gmra.mrb[12].mxu0 %v692_v52  ;;  %v710_v52 = vld [vmem:[#allocation2 + $0x1c7] sm:$0xff] }
 0x3b3   :  { %2276 = vmatprep.mubr.f32.mxu0 %v9992_v21  ;;  %7754 = vmatpush3.bf16.msra.mxu0 %v10200_v0  ;;  %v856_v21 = vld [vmem:[#allocation2 + $0x329] sm:$0xff] }
 0x3b4   :  { %7756 = vmatprep.subr.bf16.mxu0 %v10208_v27  ;;  %v696_v0 = vld [vmem:[#allocation2 + $0xe7] sm:$0xff]  ;;  %7246 = vmatprep.mubr.f32.mxu1 %v856_v21 }
 0x3b5   :  { %7247 = vmatmul.mubr.f32.gmra.mrb[18].mxu1 %v857_v54  ;;  %v718_v21 = vld [vmem:[#allocation2 + $0x287] sm:$0xff] }
 0x3b6   :  { %2277 = vmatmul.mubr.f32.gmra.mrb[14].mxu0 %v693_v15  ;;  %7249 = vmatprep.mubr.f32.mxu1 %v858_v19  ;;  %v712_v15 = vld [vmem:[#allocation2 + $0x1e7] sm:$0xff] }
 0x3b7   :  { %2281 = vmatprep.mubr.f32.mxu0 %v9997_v6  ;;  %7758 = vmatpush3.bf16.msra.mxu0 %v10208_v27  ;;  %v697_v6 = vld [vmem:[#allocation2 + $0xef] sm:$0xff]  ;;  %v698_v27 = vld [vmem:[#allocation2 + $0x107] sm:$0xff] }
 0x3b8   :  { %v720_v54 = vld [vmem:[#allocation2 + $0x2a7] sm:$0xff] }
 0x3b9   :  { %v722_v19 = vld [vmem:[#allocation2 + $0x2c7] sm:$0xff] }
 0x3ba   :  { %2282 = vmatmul.mubr.f32.gmra.mrb[16].mxu0 %v694_v18  ;;  %v779_v18 = vld [vmem:[#allocation2 + $0x210] sm:$0xff] }
 0x3bb   :  { %2286 = vmatprep.mubr.f32.mxu0 %v10002_v61  ;;  %v859_v61 = vld [vmem:[#allocation2 + $0x351] sm:$0xff] }
 0x3bc   :  { %7250 = vmatmul.mubr.f32.gmra.mrb[20].mxu1 %v859_v61 }
 0x3bd   :  { %7252 = vmatprep.mubr.f32.mxu1 %v860_v37  ;;  %v12391_v37 = vld [vmem:[#allocation24_spill] sm:$0xff] }
 0x3be   :  { %2287 = vmatmul.mubr.f32.gmra.mrb[18].mxu0 %v695_v16  ;;  %v10293_v16 = vld [vmem:[#allocation2 + $0x8] sm:$0xff] }
 0x3bf   :  { %2291 = vmatprep.mubr.f32.mxu0 %v10007_v62  ;;  %v699_v62 = vld [vmem:[#allocation2 + $0x10f] sm:$0xff] }
 0x3c2   :  { %2292 = vmatmul.mubr.f32.gmra.mrb[20].mxu0 %v696_v0  ;;  %v719_v0 = vld [vmem:[#allocation2 + $0x28f] sm:$0xff] }
 0x3c3   :  { %2296 = vmatprep.mubr.f32.mxu0 %v10011_v26  ;;  %v861_v26 = vld [vmem:[#allocation2 + $0x371] sm:$0xff] }
 0x3c4   :  { %7253 = vmatmul.mubr.f32.gmra.mrb[22].mxu1 %v861_v26 }
 0x3c5   :  { %7255 = vmatprep.mubr.f32.mxu1 %v862_v4  ;;  %v12393_v4 = vld [vmem:[#allocation30_spill] sm:$0xff] }
 0x3c6   :  { %2297 = vmatmul.mubr.f32.gmra.mrb[22].mxu0 %v697_v6  ;;  %v721_v6 = vld [vmem:[#allocation2 + $0x2af] sm:$0xff] }
 0x3c7   :  { %2301 = vmatprep.mubr.f32.mxu0 %v10016_v20  ;;  %v701_v20 = vld [vmem:[#allocation2 + $0x12f] sm:$0xff] }
 0x3ca   :  { %2302 = vmatmul.mubr.f32.gmra.mrb[24].mxu0 %v698_v27 }
 0x3cb   :  { %2306 = vmatprep.mubr.f32.mxu0 %v10020_v40  ;;  %v863_v40 = vld [vmem:[#allocation2 + $0x391] sm:$0xff] }
 0x3cc   :  { %7256 = vmatmul.mubr.f32.gmra.mrb[24].mxu1 %v863_v40 }
 0x3cd   :  { %7258 = vmatprep.mubr.f32.mxu1 %v864_v51  ;;  %v12394_v51 = vld [vmem:[#allocation19_spill] sm:$0xff] }
 0x3ce   :  { %2307 = vmatmul.mubr.f32.gmra.mrb[26].mxu0 %v699_v62  ;;  %v12390_v62 = vld [vmem:[#allocation22_spill] sm:$0xff] }
 0x3cf   :  { %2311 = vmatprep.mubr.f32.mxu0 %v10024_v29  ;;  %v703_v29 = vld [vmem:[#allocation2 + $0x14f] sm:$0xff] }
 0x3d2   :  { %2312 = vmatmul.mubr.f32.gmra.mrb[28].mxu0 %v700_v17  ;;  %v735_v17 = vld [vmem:[#allocation2 + $0x38f] sm:$0xff] }
 0x3d3   :  { %2316 = vmatprep.mubr.f32.mxu0 %v10028_v30  ;;  %v865_v30 = vld [vmem:[#allocation2 + $0x3b1] sm:$0xff] }
 0x3d4   :  { %7259 = vmatmul.mubr.f32.gmra.mrb[26].mxu1 %v865_v30  ;;  %v12395_v30 = vld [vmem:[#allocation20_spill] sm:$0xff] }
 0x3d5   :  { %7261 = vmatprep.mubr.f32.mxu1 %v866_v60 }
 0x3d6   :  { %2317 = vmatmul.mubr.f32.gmra.mrb[30].mxu0 %v701_v20  ;;  %v12392_v20 = vld [vmem:[#allocation29_spill] sm:$0xff] }
 0x3d7   :  { %2321 = vmatprep.mubr.f32.mxu0 %v10033_v31  ;;  %v705_v31 = vld [vmem:[#allocation2 + $0x16f] sm:$0xff] }
 0x3da   :  { %2322 = vmatmul.mubr.f32.gmra.mrb[32].mxu0 %v702_v42  ;;  %v737_v42 = vld [vmem:[#allocation2 + $0x3af] sm:$0xff] }
 0x3db   :  { %2326 = vmatprep.mubr.f32.mxu0 %v10037_v32  ;;  %v867_v32 = vld [vmem:[#allocation2 + $0x3d1] sm:$0xff] }
 0x3dc   :  { %7262 = vmatmul.mubr.f32.gmra.mrb[28].mxu1 %v867_v32 }
 0x3dd   :  { %7264 = vmatprep.mubr.f32.mxu1 %v868_v56  ;;  %v740_v56 = vld [vmem:[#allocation2 + $0x3e7] sm:$0xff] }
 0x3de   :  { %2327 = vmatmul.mubr.f32.gmra.mrb[34].mxu0 %v703_v29 }
 0x3df   :  { %2331 = vmatprep.mubr.f32.mxu0 %v10041_v33  ;;  %v707_v33 = vld [vmem:[#allocation2 + $0x18f] sm:$0xff] }
 0x3e2   :  { %2332 = vmatmul.mubr.f32.gmra.mrb[36].mxu0 %v704_v28  ;;  %v738_v28 = vld [vmem:[#allocation2 + $0x3c7] sm:$0xff] }
 0x3e3   :  { %2336 = vmatprep.mubr.f32.mxu0 %v10045_v35  ;;  %v869_v35 = vld [vmem:[#allocation2 + $0x3f1] sm:$0xff] }
 0x3e4   :  { %7265 = vmatmul.mubr.f32.gmra.mrb[30].mxu1 %v869_v35 }
 0x3e5   :  { %7267 = vmatprep.mubr.f32.mxu1 %v870_v47 }
 0x3e6   :  { %2337 = vmatmul.mubr.f32.gmra.mrb[38].mxu0 %v705_v31  ;;  %v739_v31 = vld [vmem:[#allocation2 + $0x3cf] sm:$0xff] }
 0x3e7   :  { %2341 = vmatprep.mubr.f32.mxu0 %v10050_v38  ;;  %v709_v38 = vld [vmem:[#allocation2 + $0x1af] sm:$0xff] }
 0x3ea   :  { %2342 = vmatmul.mubr.f32.gmra.mrb[40].mxu0 %v706_v49 }
 0x3eb   :  { %2346 = vmatprep.mubr.f32.mxu0 %v10054_v39  ;;  %v871_v39 = vld [vmem:[#allocation2 + $0x411] sm:$0xff] }
 0x3ec   :  { %7268 = vmatmul.mubr.f32.gmra.mrb[32].mxu1 %v871_v39 }
 0x3ed   :  { %7270 = vmatprep.mubr.f32.mxu1 %v872_v34  ;;  %v742_v34 = vld [vmem:[#allocation2 + $0x407] sm:$0xff] }
 0x3ee   :  { %2347 = vmatmul.mubr.f32.gmra.mrb[42].mxu0 %v707_v33 }
 0x3ef   :  { %2351 = vmatprep.mubr.f32.mxu0 %v10058_v41  ;;  %v711_v41 = vld [vmem:[#allocation2 + $0x1cf] sm:$0xff] }
 0x3f2   :  { %2352 = vmatmul.mubr.f32.gmra.mrb[44].mxu0 %v708_v36 }
 0x3f3   :  { %2356 = vmatprep.mubr.f32.mxu0 %v10062_v44  ;;  %v873_v44 = vld [vmem:[#allocation2 + $0x431] sm:$0xff] }
 0x3f4   :  { %7271 = vmatmul.mubr.f32.gmra.mrb[34].mxu1 %v873_v44  ;;  %v12396_v44 = vld [vmem:[#allocation21_spill] sm:$0xff] }
 0x3f5   :  { %7273 = vmatprep.mubr.f32.mxu1 %v10239_v23  ;;  %v716_v23 = vld [vmem:[#allocation2 + $0x227] sm:$0xff] }
 0x3f6   :  { %2357 = vmatmul.mubr.f32.gmra.mrb[46].mxu0 %v709_v38  ;;  %v741_v38 = vld [vmem:[#allocation2 + $0x3ef] sm:$0xff] }
 0x3f7   :  { %2361 = vmatprep.mubr.f32.mxu0 %v10067_v46  ;;  %v713_v46 = vld [vmem:[#allocation2 + $0x1ef] sm:$0xff] }
 0x3f8   :  { %7274 = vmatmul.mubr.f32.gmra.mrb[36].mxu1 %v10243_v63  ;;  %v717_v63 = vld [vmem:[#allocation2 + $0x22f] sm:$0xff] }
 0x3f9   :  { %7276 = vmatprep.mubr.f32.mxu1 %v876_v11  ;;  %v744_v11 = vld [vmem:[#allocation2 + $0x427] sm:$0xff] }
 0x3fa   :  { %2362 = vmatmul.mubr.f32.gmra.mrb[48].mxu0 %v710_v52 }
 0x3fb   :  { %2366 = vmatprep.mubr.f32.mxu0 %v10071_v22  ;;  %v714_v22 = vld [vmem:[#allocation2 + $0x207] sm:$0xff] }
 0x3fe   :  { %2367 = vmatmul.mubr.f32.gmra.mrb[50].mxu0 %v711_v41 }
 0x3ff   :  { %2371 = vmatprep.mubr.f32.mxu0 %v10075_v50  ;;  %v715_v50 = vld [vmem:[#allocation2 + $0x20f] sm:$0xff] }
 0x402   :  { %2372 = vmatmul.mubr.f32.gmra.mrb[52].mxu0 %v712_v15 }
 0x403   :  { %2376 = vmatprep.mubr.f32.mxu0 %v10079_v8  ;;  %v877_v8 = vld [vmem:[#allocation2 + $0x471] sm:$0xff] }
 0x404   :  { %7277 = vmatmul.mubr.f32.gmra.mrb[38].mxu1 %v877_v8  ;;  %v12398_v8 = vld [vmem:[#allocation25_spill] sm:$0xff] }
 0x405   :  { %4084 = vmatprep.mubr.f32.mxu1 %v10293_v16 }
 0x406   :  { %2377 = vmatmul.mubr.f32.gmra.mrb[54].mxu0 %v713_v46  ;;  %v743_v46 = vld [vmem:[#allocation2 + $0x40f] sm:$0xff] }
 0x407   :  { %2381 = vmatprep.mubr.f32.mxu0 %v778_v14 }
 0x40a   :  { %2382 = vmatmul.mubr.f32.gmra.mrb[56].mxu0 %v714_v22 }
 0x40b   :  { %2386 = vmatprep.mubr.f32.mxu0 %v779_v18 }
 0x40e   :  { %2387 = vmatmul.mubr.f32.gmra.mrb[58].mxu0 %v715_v50  ;;  %v12397_v50 = vld [vmem:[#allocation23_spill] sm:$0xff] }
 0x40f   :  { %2391 = vmatprep.mubr.f32.mxu0 %v10293_v16 }
 0x412   :  { %2392 = vmatmul.mubr.f32.gmra.mrb[60].mxu0 %v716_v23 }
 0x413   :  { %2396 = vmatprep.mubr.f32.mxu0 %v10293_v16 }
 0x416   :  { %2397 = vmatmul.mubr.f32.gmra.mrb[62].mxu0 %v717_v63  ;;  %v745_v63 = vld [vmem:[#allocation2 + $0x42f] sm:$0xff] }
 0x417   :  { %2401 = vmatprep.mubr.f32.mxu0 %v10098_v25  ;;  %v723_v25 = vld [vmem:[#allocation2 + $0x2cf] sm:$0xff] }
 0x41a   :  { %2402 = vmatmul.mubr.f32.gmra.mrb[64].mxu0 %v718_v21  ;;  %v810_v21 = vld [vmem:[#allocation2 + $0x448] sm:$0xff] }
 0x41b   :  { %2406 = vmatprep.mubr.f32.mxu0 %v10102_v57  ;;  %v724_v57 = vld [vmem:[#allocation2 + $0x2e7] sm:$0xff] }
 0x41e   :  { %2407 = vmatmul.mubr.f32.gmra.mrb[66].mxu0 %v719_v0 }
 0x41f   :  { %2411 = vmatprep.mubr.f32.mxu0 %v10106_v59  ;;  %v725_v59 = vld [vmem:[#allocation2 + $0x2ef] sm:$0xff] }
 0x422   :  { %2412 = vmatmul.mubr.f32.gmra.mrb[68].mxu0 %v720_v54 }
 0x423   :  { %2416 = vmatprep.mubr.f32.mxu0 %v10110_v3  ;;  %v726_v3 = vld [vmem:[#allocation2 + $0x307] sm:$0xff] }
 0x426   :  { %2417 = vmatmul.mubr.f32.gmra.mrb[70].mxu0 %v721_v6 }
 0x427   :  { %2421 = vmatprep.mubr.f32.mxu0 %v10114_v9  ;;  %v727_v9 = vld [vmem:[#allocation2 + $0x30f] sm:$0xff] }
 0x42a   :  { %2422 = vmatmul.mubr.f32.gmra.mrb[72].mxu0 %v722_v19 }
 0x42b   :  { %2426 = vmatprep.mubr.f32.mxu0 %v10118_v13  ;;  %v728_v13 = vld [vmem:[#allocation2 + $0x327] sm:$0xff] }
 0x42e   :  { %2427 = vmatmul.mubr.f32.gmra.mrb[74].mxu0 %v723_v25  ;;  %v746_v25 = vld [vmem:[#allocation2 + $0x447] sm:$0xff] }
 0x42f   :  { %2431 = vmatprep.mubr.f32.mxu0 %v10122_v5  ;;  %v729_v5 = vld [vmem:[#allocation2 + $0x32f] sm:$0xff] }
 0x432   :  { %2432 = vmatmul.mubr.f32.gmra.mrb[76].mxu0 %v724_v57  ;;  %v811_v57 = vld [vmem:[#allocation2 + $0x450] sm:$0xff] }
 0x433   :  { %2436 = vmatprep.mubr.f32.mxu0 %v10126_v43  ;;  %v730_v43 = vld [vmem:[#allocation2 + $0x347] sm:$0xff] }
 0x436   :  { %2437 = vmatmul.mubr.f32.gmra.mrb[78].mxu0 %v725_v59 }
 0x437   :  { %2441 = vmatprep.mubr.f32.mxu0 %v10134_v53  ;;  %v731_v53 = vld [vmem:[#allocation2 + $0x34f] sm:$0xff] }
 0x43a   :  { %2442 = vmatmul.mubr.f32.gmra.mrb[80].mxu0 %v726_v3 }
 0x43b   :  { %2446 = vmatprep.mubr.f32.mxu0 %v10138_v58 }
 0x43e   :  { %2447 = vmatmul.mubr.f32.gmra.mrb[82].mxu0 %v727_v9  ;;  %v747_v9 = vld [vmem:[#allocation2 + $0x44f] sm:$0xff] }
 0x43f   :  { %2451 = vmatprep.mubr.f32.mxu0 %v10142_v2  ;;  %v732_v2 = vld [vmem:[#allocation2 + $0x367] sm:$0xff] }
 0x442   :  { %2452 = vmatmul.mubr.f32.gmra.mrb[84].mxu0 %v728_v13 }
 0x443   :  { %2456 = vmatprep.mubr.f32.mxu0 %v10146_v55  ;;  %v733_v55 = vld [vmem:[#allocation2 + $0x36f] sm:$0xff] }
 0x446   :  { %2457 = vmatmul.mubr.f32.gmra.mrb[86].mxu0 %v729_v5 }
 0x447   :  { %2461 = vmatprep.mubr.f32.mxu0 %v10150_v7  ;;  %v10312_v27 = vpop.f32.mrb[0].mxu1 }
 0x448   :  { %v10314_v58 = vpop.f32.mrb[1].mxu1 }
 0x44a   :  { %2462 = vmatmul.mubr.f32.gmra.mrb[88].mxu0 %v730_v43 }
 0x44b   :  { %2466 = vmatprep.mubr.f32.mxu0 %v10154_v12  ;;  %v10318_v61 = vpop.f32.mrb[2].mxu1  ;;  %v734_v12 = vld [vmem:[#allocation2 + $0x387] sm:$0xff] }
 0x44c   :  { %v10320_v7 = vpop.f32.mrb[3].mxu1 }
 0x44e   :  { %2467 = vmatmul.mubr.f32.gmra.mrb[90].mxu0 %v731_v53 }
 0x44f   :  { %2471 = vmatprep.mubr.f32.mxu0 %v10158_v24  ;;  %v10324_v26 = vpop.f32.mrb[4].mxu1 }
 0x450   :  { %v10326_v24 = vpop.f32.mrb[5].mxu1 }
 0x452   :  { %2472 = vmatmul.mubr.f32.gmra.mrb[92].mxu0 %v732_v2  ;;  %v748_v2 = vld [vmem:[#allocation2 + $0x467] sm:$0xff] }
 0x453   :  { %2476 = vmatprep.mubr.f32.mxu0 %v10162_v48  ;;  %v736_v48 = vld [vmem:[#allocation2 + $0x3a7] sm:$0xff] }
 0x456   :  { %2477 = vmatmul.mubr.f32.gmra.mrb[94].mxu0 %v733_v55 }
 0x457   :  { %2481 = vmatprep.mubr.f32.mxu0 %v12390_v62 }
 0x458   :  { %v10330_v40 = vpop.f32.mrb[6].mxu1 }
 0x459   :  { %v10332_v29 = vpop.f32.mrb[7].mxu1 }
 0x45a   :  { %2482 = vmatmul.mubr.f32.gmra.mrb[96].mxu0 %v734_v12  ;;  %v749_v12 = vld [vmem:[#allocation2 + $0x46f] sm:$0xff] }
 0x45b   :  { %2486 = vmatprep.mubr.f32.mxu0 %v12391_v37  ;;  %v814_v37 = vld [vmem:[#allocation2 + $0x49] sm:$0xff] }
 0x45e   :  { %2487 = vmatmul.mubr.f32.gmra.mrb[98].mxu0 %v735_v17 }
 0x45f   :  { %2491 = vmatprep.mubr.f32.mxu0 %v12392_v20 }
 0x462   :  { %2492 = vmatmul.mubr.f32.gmra.mrb[100].mxu0 %v736_v48  ;;  %v10336_v60 = vpop.f32.mrb[8].mxu1 }
 0x463   :  { %2496 = vmatprep.mubr.f32.mxu0 %v12393_v4  ;;  %v10340_v32 = vpop.f32.mrb[9].mxu1 }
 0x466   :  { %2497 = vmatmul.mubr.f32.gmra.mrb[102].mxu0 %v737_v42  ;;  %v815_v42 = vld [vmem:[#allocation2 + $0x51] sm:$0xff] }
 0x467   :  { %2501 = vmatprep.mubr.f32.mxu0 %v12394_v51  ;;  %v816_v51 = vld [vmem:[#allocation2 + $0x69] sm:$0xff] }
 0x46a   :  { %2502 = vmatmul.mubr.f32.gmra.mrb[104].mxu0 %v738_v28 }
 0x46b   :  { %2506 = vmatprep.mubr.f32.mxu0 %v12395_v30  ;;  %v10346_v47 = vpop.f32.mrb[10].mxu1 }
 0x46c   :  { %v10350_v39 = vpop.f32.mrb[11].mxu1 }
 0x46d   :  { %v10338_v49 = vpop.f32.mrb[0].mxu0 }
 0x46e   :  { %v2245_v33 = vpop.f32.mrb[1].mxu0  ;;  %2507 = vmatmul.mubr.f32.gmra.mrb[106].mxu0 %v739_v31  ;;  %v817_v31 = vld [vmem:[#allocation2 + $0x71] sm:$0xff] }
 0x46f   :  { %2511 = vmatprep.mubr.f32.mxu0 %v10214_v45  ;;  %v818_v33 = vld [vmem:[#allocation2 + $0x89] sm:$0xff] }
 0x471   :  { %v10343_v36 = vpop.f32.mrb[2].mxu0 }
 0x472   :  { %v2250_v35 = vpop.f32.mrb[3].mxu0  ;;  %2512 = vmatmul.mubr.f32.gmra.mrb[108].mxu0 %v740_v56 }
 0x473   :  { %2516 = vmatprep.mubr.f32.mxu0 %v10219_v10  ;;  %v10356_v10 = vpop.f32.mrb[12].mxu1 }
 0x474   :  { %v10360_v22 = vpop.f32.mrb[13].mxu1 }
 0x475   :  { %v10348_v52 = vpop.f32.mrb[4].mxu0 }
 0x476   :  { %v2255_v41 = vpop.f32.mrb[5].mxu0  ;;  %2517 = vmatmul.mubr.f32.gmra.mrb[110].mxu0 %v741_v38 }
 0x477   :  { %2521 = vmatprep.mubr.f32.mxu0 %v10223_v1 }
 0x479   :  { %v10353_v45 = vpop.f32.mrb[6].mxu0 }
 0x47a   :  { %v2260_v15 = vpop.f32.mrb[7].mxu0  ;;  %2522 = vmatmul.mubr.f32.gmra.mrb[112].mxu0 %v742_v34  ;;  %v819_v34 = vld [vmem:[#allocation2 + $0x91] sm:$0xff] }
 0x47b   :  { %2526 = vmatprep.mubr.f32.mxu0 %v12396_v44  ;;  %v10366_v0 = vpop.f32.mrb[14].mxu1  ;;  %v820_v15 = vld [vmem:[#allocation2 + $0xa9] sm:$0xff] }
 0x47c   :  { %v10370_v6 = vpop.f32.mrb[15].mxu1 }
 0x47d   :  { %v10358_v14 = vpop.f32.mrb[8].mxu0 }
 0x47e   :  { %v2265_v18 = vpop.f32.mrb[9].mxu0  ;;  %2527 = vmatmul.mubr.f32.gmra.mrb[114].mxu0 %v743_v46 }
 0x47f   :  { %2531 = vmatprep.mubr.f32.mxu0 %v12397_v50  ;;  %v821_v18 = vld [vmem:[#allocation2 + $0xb1] sm:$0xff]  ;;  %v822_v50 = vld [vmem:[#allocation2 + $0xc9] sm:$0xff] }
 0x481   :  { %v10363_v1 = vpop.f32.mrb[10].mxu0  ;;  %v10374_v13 = vpop.f32.mrb[16].mxu1 }
 0x482   :  { %v2270_v23 = vpop.f32.mrb[11].mxu0  ;;  %2532 = vmatmul.mubr.f32.gmra.mrb[116].mxu0 %v744_v11  ;;  %v10378_v43 = vpop.f32.mrb[17].mxu1 }
 0x483   :  { %2536 = vmatprep.mubr.f32.mxu0 %v12398_v8 }
 0x485   :  { %v10368_v54 = vpop.f32.mrb[12].mxu0 }
 0x486   :  { %v2275_v19 = vpop.f32.mrb[13].mxu0  ;;  %2537 = vmatmul.mubr.f32.gmra.mrb[118].mxu0 %v745_v63 }
 0x487   :  { %2541 = vmatprep.mubr.f32.mxu0 %v810_v21  ;;  %v823_v21 = vld [vmem:[#allocation2 + $0xd1] sm:$0xff]  ;;  %v824_v19 = vld [vmem:[#allocation2 + $0xe9] sm:$0xff] }
 0x488   :  { %v10384_v17 = vpop.f32.mrb[18].mxu1 }
 0x489   :  { %v10372_v59 = vpop.f32.mrb[14].mxu0  ;;  %v10388_v48 = vpop.f32.mrb[19].mxu1 }
 0x48a   :  { %v2280_v3 = vpop.f32.mrb[15].mxu0  ;;  %2542 = vmatmul.mubr.f32.gmra.mrb[120].mxu0 %v746_v25 }
 0x48b   :  { %2546 = vmatprep.mubr.f32.mxu0 %v811_v57  ;;  %v825_v3 = vld [vmem:[#allocation2 + $0xf1] sm:$0xff] }
 0x48d   :  { %v10376_v5 = vpop.f32.mrb[16].mxu0 }
 0x48e   :  { %12399 = vst [vmem:[#allocation26_spill] sm:$0xff] %v10376_v5  ;;  %v2285_v53 = vpop.f32.mrb[17].mxu0  ;;  %2547 = vmatmul.mubr.f32.gmra.mrb[122].mxu0 %v747_v9  ;;  %v826_v9 = vld [vmem:[#allocation2 + $0x109] sm:$0xff] }
 0x48f   :  { %2551 = vmatprep.mubr.f32.mxu0 %v10293_v16  ;;  %v10392_v56 = vpop.f32.mrb[20].mxu1 }
 0x490   :  { %v10396_v38 = vpop.f32.mrb[21].mxu1 }
 0x491   :  { %v10381_v55 = vpop.f32.mrb[18].mxu0 }
 0x492   :  { %12400 = vst [vmem:[#allocation27_spill] sm:$0xff] %v10381_v55  ;;  %v2290_v62 = vpop.f32.mrb[19].mxu0  ;;  %2552 = vmatmul.mubr.f32.gmra.mrb[124].mxu0 %v748_v2  ;;  %v4008_v55 = vld [vmem:[#allocation9 + $0x420] sm:$0xff] }
 0x493   :  { %2556 = vmatprep.mubr.f32.mxu0 %v10293_v16 }
 0x495   :  { %v10386_v20 = vpop.f32.mrb[20].mxu0 }
 0x496   :  { %12401 = vst [vmem:[#allocation28_spill] sm:$0xff] %v10386_v20  ;;  %v2295_v4 = vpop.f32.mrb[21].mxu0  ;;  %2557 = vmatmul.mubr.f32.gmra.mrb[126].mxu0 %v749_v12 }
 0x497   :  { %7183 = vmatprep.mubr.f32.mxu0 %v814_v37  ;;  %v10400_v11 = vpop.f32.mrb[22].mxu1  ;;  %v827_v37 = vld [vmem:[#allocation2 + $0x111] sm:$0xff]  ;;  %v828_v4 = vld [vmem:[#allocation2 + $0x129] sm:$0xff] }
 0x498   :  { %v10404_v8 = vpop.f32.mrb[23].mxu1 }
 0x499   :  { %v10390_v28 = vpop.f32.mrb[22].mxu0 }
 0x49a   :  { %12402 = vst [vmem:[#allocation17_spill] sm:$0xff] %v10390_v28  ;;  %v2300_v30 = vpop.f32.mrb[23].mxu0  ;;  %7184 = vmatmul.mubr.f32.vlgmr.msra.gmra.mrb[128].mxu0 %v815_v42  ;;  %v3876_v42 = vld [vmem:[#allocation9] sm:$0xff] }
 0x49b   :  { %7186 = vmatprep.mubr.f32.mxu0 %v816_v51  ;;  %v3877_v51 = vld [vmem:[#allocation9 + $0x8] sm:$0xff] }
 0x49d   :  { %v10394_v35 = vpop.f32.mrb[24].mxu0 }
 0x49e   :  { %12403 = vst [vmem:[#allocation18_spill] sm:$0xff] %v10394_v35  ;;  %v2305_v41 = vpop.f32.mrb[25].mxu0  ;;  %7187 = vmatmul.mubr.f32.gmra.mrb[130].mxu0 %v817_v31  ;;  %v7760_v31 = vpack.c.bf16 %v3877_v51, %v3876_v42 }
 0x49f   :  { %7189 = vmatprep.mubr.f32.mxu0 %v818_v33  ;;  %v10408_v53 = vpop.f32.mrb[24].mxu1  ;;  %v829_v41 = vld [vmem:[#allocation2 + $0x131] sm:$0xff] }
 0x4a0   :  { %v10412_v62 = vpop.f32.mrb[25].mxu1  ;;  %7761 = vmatpush1.bf16.msra.mxu1 %v7760_v31  ;;  %v833_v31 = vld [vmem:[#allocation2 + $0x171] sm:$0xff] }
 0x4a1   :  { %v10398_v44 = vpop.f32.mrb[26].mxu0 }
 0x4a2   :  { %12404 = vst [vmem:[#allocation22_spill] sm:$0xff] %v10398_v44  ;;  %v2310_v46 = vpop.f32.mrb[27].mxu0  ;;  %7190 = vmatmul.mubr.f32.gmra.mrb[132].mxu0 %v819_v34  ;;  %v830_v34 = vld [vmem:[#allocation2 + $0x149] sm:$0xff] }
 0x4a3   :  { %7192 = vmatprep.mubr.f32.mxu0 %v820_v15  ;;  %v12409_v15 = vmov 0.0|0.0   ;;  %v3878_v46 = vld [vmem:[#allocation9 + $0x10] sm:$0xff] }
 0x4a4   :  { %7762 = vmatprep.subr.bf16.mxu1 %v12409_v15 }
 0x4a5   :  { %v10402_v23 = vpop.f32.mrb[28].mxu0 }
 0x4a6   :  { %12405 = vst [vmem:[#allocation24_spill] sm:$0xff] %v10402_v23  ;;  %v2315_v63 = vpop.f32.mrb[29].mxu0  ;;  %7193 = vmatmul.mubr.f32.gmra.mrb[134].mxu0 %v821_v18  ;;  %v3879_v18 = vld [vmem:[#allocation9 + $0x18] sm:$0xff] }
 0x4a7   :  { %7195 = vmatprep.mubr.f32.mxu0 %v822_v50  ;;  %v10417_v50 = vpop.f32.mrb[26].mxu1 }
 0x4a9   :  { %v10406_v25 = vpop.f32.mrb[30].mxu0 }
 0x4aa   :  { %12406 = vst [vmem:[#allocation29_spill] sm:$0xff] %v10406_v25  ;;  %v2320_v57 = vpop.f32.mrb[31].mxu0  ;;  %7196 = vmatmul.mubr.f32.gmra.mrb[136].mxu0 %v823_v21  ;;  %v7763_v21 = vpack.c.bf16 %v3879_v18, %v3878_v46 }
 0x4ab   :  { %7198 = vmatprep.mubr.f32.mxu0 %v824_v19  ;;  %v10421_v19 = vpop.f32.mrb[27].mxu1 }
 0x4ac   :  { %7764 = vmatpush1.bf16.msra.mxu1 %v7763_v21 }
 0x4ad   :  { %v10410_v2 = vpop.f32.mrb[32].mxu0  ;;  %7765 = vmatprep.subr.bf16.mxu1 %v12409_v15 }
 0x4ae   :  { %12407 = vst [vmem:[#allocation30_spill] sm:$0xff] %v10410_v2  ;;  %v2325_v12 = vpop.f32.mrb[33].mxu0  ;;  %7199 = vmatmul.mubr.f32.gmra.mrb[138].mxu0 %v825_v3  ;;  %v831_v3 = vld [vmem:[#allocation2 + $0x151] sm:$0xff] }
 0x4af   :  { %7201 = vmatprep.mubr.f32.mxu0 %v826_v9  ;;  %v832_v9 = vld [vmem:[#allocation2 + $0x169] sm:$0xff]  ;;  %v3880_v12 = vld [vmem:[#allocation9 + $0x20] sm:$0xff]  ;;  %v10427_v46 = vpop.f32.mrb[28].mxu1 }
 0x4b1   :  { %v10414_v30 = vpop.f32.mrb[34].mxu0 }
 0x4b2   :  { %12408 = vst [vmem:[#allocation19_spill] sm:$0xff] %v10414_v30  ;;  %v2330_v33 = vpop.f32.mrb[35].mxu0  ;;  %7202 = vmatmul.mubr.f32.gmra.mrb[140].mxu0 %v827_v37  ;;  %v3881_v37 = vld [vmem:[#allocation9 + $0x28] sm:$0xff] }
 0x4b3   :  { %7204 = vmatprep.mubr.f32.mxu0 %v828_v4  ;;  %v7766_v42 = vpack.c.bf16 %v3881_v37, %v3880_v12  ;;  %v834_v33 = vld [vmem:[#allocation2 + $0x189] sm:$0xff]  ;;  %v835_v12 = vld [vmem:[#allocation2 + $0x191] sm:$0xff] }
 0x4b4   :  { %v3885_v37 = vld [vmem:[#allocation9 + $0x48] sm:$0xff] }
 0x4b5   :  { %v10419_v63 = vpop.f32.mrb[36].mxu0  ;;  %7767 = vmatpush1.bf16.msra.mxu1 %v7766_v42 }
 0x4b6   :  { %12410 = vst [vmem:[#allocation20_spill] sm:$0xff] %v10419_v63  ;;  %v2335_v57 = vpop.f32.mrb[37].mxu0  ;;  %7205 = vmatmul.mubr.f32.gmra.mrb[142].mxu0 %v829_v41  ;;  %7768 = vmatprep.subr.bf16.mxu1 %v12409_v15  ;;  %v3882_v41 = vld [vmem:[#allocation9 + $0x30] sm:$0xff] }
 0x4b7   :  { %7207 = vmatprep.mubr.f32.mxu0 %v830_v34  ;;  %v3883_v34 = vld [vmem:[#allocation9 + $0x38] sm:$0xff]  ;;  %v10431_v57 = vpop.f32.mrb[29].mxu1 }
 0x4b8   :  { %v7769_v21 = vpack.c.bf16 %v3883_v34, %v3882_v41 }
 0x4b9   :  { %v10424_v4 = vpop.f32.mrb[38].mxu0 }
 0x4ba   :  { %12411 = vst [vmem:[#allocation21_spill] sm:$0xff] %v10424_v4  ;;  %v2340_v51 = vpop.f32.mrb[39].mxu0  ;;  %7208 = vmatmul.mubr.f32.gmra.mrb[144].mxu0 %v831_v3  ;;  %7770 = vmatpush1.bf16.msra.mxu1 %v7769_v21  ;;  %v836_v3 = vld [vmem:[#allocation2 + $0x1a9] sm:$0xff] }
 0x4bb   :  { %7210 = vmatprep.mubr.f32.mxu0 %v832_v9  ;;  %7771 = vmatprep.subr.bf16.mxu1 %v12409_v15  ;;  %v3884_v9 = vld [vmem:[#allocation9 + $0x40] sm:$0xff] }
 0x4bc   :  { %v7772_v51 = vpack.c.bf16 %v3885_v37, %v3884_v9 }
 0x4bd   :  { %v10429_v18 = vpop.f32.mrb[40].mxu0 }
 0x4be   :  { %12412 = vst [vmem:[#allocation23_spill] sm:$0xff] %v10429_v18  ;;  %v2345_v63 = vpop.f32.mrb[41].mxu0  ;;  %7211 = vmatmul.mubr.f32.gmra.mrb[146].mxu0 %v833_v31  ;;  %v837_v18 = vld [vmem:[#allocation2 + $0x1b1] sm:$0xff]  ;;  %7773 = vmatpush1.bf16.msra.mxu1 %v7772_v51 }
 0x4bf   :  { %7213 = vmatprep.mubr.f32.mxu0 %v834_v33  ;;  %7774 = vmatprep.subr.bf16.mxu1 %v12409_v15  ;;  %v3886_v63 = vld [vmem:[#allocation9 + $0x50] sm:$0xff]  ;;  %v3887_v31 = vld [vmem:[#allocation9 + $0x58] sm:$0xff]  ;;  %v10437_v33 = vpop.f32.mrb[30].mxu1 }
 0x4c0   :  { %v7775_v34 = vpack.c.bf16 %v3887_v31, %v3886_v63  ;;  %v10441_v21 = vpop.f32.mrb[31].mxu1  ;;  %v3891_v63 = vld [vmem:[#allocation9 + $0x78] sm:$0xff] }
 0x4c1   :  { %v10434_v42 = vpop.f32.mrb[42].mxu0  ;;  %v10447_v51 = vpop.f32.mrb[32].mxu1 }
 0x4c2   :  { %12413 = vst [vmem:[#allocation25_spill] sm:$0xff] %v10434_v42  ;;  %v2350_v4 = vpop.f32.mrb[43].mxu0  ;;  %7214 = vmatmul.mubr.f32.gmra.mrb[148].mxu0 %v835_v12  ;;  %7776 = vmatpush1.bf16.msra.mxu1 %v7775_v34  ;;  %v3889_v12 = vld [vmem:[#allocation9 + $0x68] sm:$0xff]  ;;  %v10454_v34 = vpop.f32.mrb[33].mxu1 }
 0x4c3   :  { %7216 = vmatprep.mubr.f32.mxu0 %v836_v3  ;;  %7777 = vmatprep.subr.bf16.mxu1 %v12409_v15  ;;  %v3888_v4 = vld [vmem:[#allocation9 + $0x60] sm:$0xff]  ;;  %v3893_v42 = vld [vmem:[#allocation9 + $0x88] sm:$0xff] }
 0x4c4   :  { %v7778_v9 = vpack.c.bf16 %v3889_v12, %v3888_v4  ;;  %v10460_v12 = vld [vmem:[%s12275_s3] ss:$0 sm:$0xff] }
 0x4c5   :  { %v10439_v41 = vpop.f32.mrb[44].mxu0 }
 0x4c6   :  { %12414 = vst [vmem:[#allocation31_spill] sm:$0xff] %v10439_v41  ;;  %v2355_v2 = vpop.f32.mrb[45].mxu0  ;;  %7217 = vmatmul.mubr.f32.gmra.mrb[150].mxu0 %v837_v18  ;;  %7779 = vmatpush1.bf16.msra.mxu1 %v7778_v9  ;;  %v3890_v41 = vld [vmem:[#allocation9 + $0x70] sm:$0xff] }
 0x4c7   :  { %7780 = vmatprep.subr.bf16.mxu1 %v12409_v15  ;;  %v10452_v2 = vld [vmem:[%s12274_s2] ss:$0 sm:$0xff]  ;;  %v7781_v18 = vpack.c.bf16 %v3891_v63, %v3890_v41  ;;  %v10467_v25 = vpop.f32.mrb[34].mxu1 }
 0x4c8   :  { %v10470_v44 = vpop.f32.mrb[35].mxu1 }
 0x4c9   :  { %v10444_v3 = vpop.f32.mrb[46].mxu0 }
 0x4ca   :  { %12415 = vst [vmem:[#allocation32_spill] sm:$0xff] %v10444_v3  ;;  %v2360_v37 = vpop.f32.mrb[47].mxu0  ;;  %7782 = vmatpush1.bf16.msra.mxu1 %v7781_v18  ;;  %v3895_v18 = vld [vmem:[#allocation9 + $0x98] sm:$0xff] }
 0x4cb   :  { %7783 = vmatprep.subr.bf16.mxu1 %v12409_v15  ;;  %v3892_v37 = vld [vmem:[#allocation9 + $0x80] sm:$0xff] }
 0x4cc   :  { %v7784_v23 = vpack.c.bf16 %v3893_v42, %v3892_v37  ;;  %v3896_v37 = vld [vmem:[#allocation9 + $0xa0] sm:$0xff] }
 0x4cd   :  { %v2363_v31 = vpop.f32.mrb[48].mxu0 }
 0x4ce   :  { %v2749_v3 = vadd.f32 %v10314_v58, %v2363_v31  ;;  %v2365_v4 = vpop.f32.mrb[49].mxu0  ;;  %7785 = vmatpush1.bf16.msra.mxu1 %v7784_v23 }
 0x4cf   :  { %7786 = vmatprep.subr.bf16.mxu1 %v12409_v15 }
 0x4d0   :  { %v2978_v9 = vmul.f32 %v10452_v2, %v2749_v3  ;;  %v3894_v3 = vld [vmem:[#allocation9 + $0x90] sm:$0xff] }
 0x4d1   :  { %v2368_v30 = vpop.f32.mrb[50].mxu0  ;;  %v7787_v20 = vpack.c.bf16 %v3895_v18, %v3894_v3  ;;  %v3899_v18 = vld [vmem:[#allocation9 + $0xb8] sm:$0xff] }
 0x4d2   :  { %v3049_v41 = vadd.f32 %v10460_v12, %v2978_v9  ;;  %v2754_v63 = vadd.f32 %v10312_v27, %v2368_v30  ;;  %v2370_v58 = vpop.f32.mrb[51].mxu0 }
 0x4d3   :  { %7788 = vmatpush1.bf16.msra.mxu1 %v7787_v20  ;;  %v10479_v20 = vpop.f32.mrb[36].mxu1 }
 0x4d4   :  { %v3113_v31 = vmax.f32 %v3049_v41, 0.0  ;;  %v2979_v4 = vmul.f32 %v10452_v2, %v2754_v63  ;;  %7789 = vmatprep.subr.bf16.mxu1 %v12409_v15  ;;  %v3897_v41 = vld [vmem:[#allocation9 + $0xa8] sm:$0xff] }
 0x4d5   :  { %v2373_v35 = vpop.f32.mrb[52].mxu0  ;;  %v7790_v58 = vpack.c.bf16 %v3897_v41, %v3896_v37  ;;  %v3900_v41 = vld [vmem:[#allocation9 + $0xc0] sm:$0xff] }
 0x4d6   :  { %3259 = vst [vmem:[#allocation3 + $0x1a8] sm:$0xff] %v3113_v31  ;;  %v3050_v42 = vadd.f32 %v10460_v12, %v2979_v4  ;;  %v2759_v27 = vadd.f32 %v10320_v7, %v2373_v35  ;;  %v2375_v30 = vpop.f32.mrb[53].mxu0  ;;  %v3898_v35 = vld [vmem:[#allocation9 + $0xb0] sm:$0xff] }
 0x4d7   :  { %7791 = vmatpush1.bf16.msra.mxu1 %v7790_v58  ;;  %v7793_v30 = vpack.c.bf16 %v3899_v18, %v3898_v35 }
 0x4d8   :  { %v3114_v23 = vmax.f32 %v3050_v42, 0.0  ;;  %v2980_v9 = vmul.f32 %v10452_v2, %v2759_v27  ;;  %7792 = vmatprep.subr.bf16.mxu1 %v12409_v15  ;;  %v10482_v27 = vpop.f32.mrb[37].mxu1 }
 0x4d9   :  { %v2378_v63 = vpop.f32.mrb[54].mxu0 }
 0x4da   :  { %3260 = vst [vmem:[#allocation3 + $0x1b0] sm:$0xff] %v3114_v23  ;;  %v3051_v28 = vadd.f32 %v10460_v12, %v2980_v9  ;;  %v2764_v31 = vadd.f32 %v10318_v61, %v2378_v63  ;;  %v2380_v3 = vpop.f32.mrb[55].mxu0  ;;  %v3901_v63 = vld [vmem:[#allocation9 + $0xc8] sm:$0xff] }
 0x4db   :  { %7794 = vmatpush1.bf16.msra.mxu1 %v7793_v30  ;;  %v4005_v3 = vld [vmem:[#allocation9 + $0x408] sm:$0xff]  ;;  %v7796_v5 = vpack.c.bf16 %v3901_v63, %v3900_v41  ;;  %v10491_v30 = vpop.f32.mrb[38].mxu1 }
 0x4dc   :  { %v3115_v4 = vmax.f32 %v3051_v28, 0.0  ;;  %v2981_v7 = vmul.f32 %v10452_v2, %v2764_v31  ;;  %7795 = vmatprep.subr.bf16.mxu1 %v12409_v15  ;;  %v4004_v31 = vld [vmem:[#allocation9 + $0x400] sm:$0xff]  ;;  %v10494_v41 = vpop.f32.mrb[39].mxu1 }
 0x4dd   :  { %v2383_v42 = vpop.f32.mrb[56].mxu0 }
 0x4de   :  { %3261 = vst [vmem:[#allocation3 + $0x1c8] sm:$0xff] %v3115_v4  ;;  %v3052_v23 = vadd.f32 %v10460_v12, %v2981_v7  ;;  %v2769_v61 = vadd.f32 %v10326_v24, %v2383_v42  ;;  %v2385_v9 = vpop.f32.mrb[57].mxu0  ;;  %v7951_v24 = vpack.c.bf16 %v4005_v3, %v4004_v31 }
 0x4df   :  { %7797 = vmatpush1.bf16.msra.mxu1 %v7796_v5 }
 0x4e0   :  { %v3116_v28 = vmax.f32 %v3052_v23, 0.0  ;;  %v2982_v37 = vmul.f32 %v10452_v2, %v2769_v61  ;;  %7952 = vmatprep.subr.bf16.mxu0 %v7951_v24  ;;  %7798 = vmatprep.subr.bf16.mxu1 %v12409_v15  ;;  %v3902_v23 = vld [vmem:[#allocation9 + $0xd0] sm:$0xff]  ;;  %v3903_v61 = vld [vmem:[#allocation9 + $0xd8] sm:$0xff] }
 0x4e1   :  { %v2388_v58 = vpop.f32.mrb[58].mxu0  ;;  %7954 = vmatpush3.bf16.msra.mxu0 %v7951_v24 }
 0x4e2   :  { %3262 = vst [vmem:[#allocation3 + $0x1d0] sm:$0xff] %v3116_v28  ;;  %v3053_v4 = vadd.f32 %v10460_v12, %v2982_v37  ;;  %v2774_v7 = vadd.f32 %v10324_v26, %v2388_v58  ;;  %v2390_v35 = vpop.f32.mrb[59].mxu0  ;;  %v4006_v28 = vld [vmem:[#allocation9 + $0x410] sm:$0xff]  ;;  %v4007_v37 = vld [vmem:[#allocation9 + $0x418] sm:$0xff]  ;;  %v7799_v26 = vpack.c.bf16 %v3903_v61, %v3902_v23  ;;  %v4009_v23 = vld [vmem:[#allocation9 + $0x428] sm:$0xff] }
 0x4e3   :  { %v7955_v31 = vpack.c.bf16 %v4007_v37, %v4006_v28  ;;  %v3905_v35 = vld [vmem:[#allocation9 + $0xe8] sm:$0xff] }
 0x4e4   :  { %v3117_v18 = vmax.f32 %v3053_v4, 0.0  ;;  %v2983_v42 = vmul.f32 %v10452_v2, %v2774_v7  ;;  %7800 = vmatpush1.bf16.msra.mxu1 %v7799_v26  ;;  %v3904_v7 = vld [vmem:[#allocation9 + $0xe0] sm:$0xff]  ;;  %v3906_v26 = vld [vmem:[#allocation9 + $0xf0] sm:$0xff] }
 0x4e5   :  { %v2393_v9 = vpop.f32.mrb[60].mxu0  ;;  %7956 = vmatprep.subr.bf16.mxu0 %v7955_v31  ;;  %7801 = vmatprep.subr.bf16.mxu1 %v12409_v15 }
 0x4e6   :  { %3263 = vst [vmem:[#allocation3 + $0x1e8] sm:$0xff] %v3117_v18  ;;  %v3054_v5 = vadd.f32 %v10460_v12, %v2983_v42  ;;  %v2779_v63 = vadd.f32 %v10332_v29, %v2393_v9  ;;  %v2395_v58 = vpop.f32.mrb[61].mxu0  ;;  %7958 = vmatpush3.bf16.msra.mxu0 %v7955_v31  ;;  %v7802_v18 = vpack.c.bf16 %v3905_v35, %v3904_v7  ;;  %v4011_v31 = vld [vmem:[#allocation9 + $0x438] sm:$0xff] }
 0x4e7   :  { %v7959_v9 = vpack.c.bf16 %v4009_v23, %v4008_v55  ;;  %v4010_v58 = vld [vmem:[#allocation9 + $0x430] sm:$0xff] }
 0x4e8   :  { %v3118_v3 = vmax.f32 %v3054_v5, 0.0  ;;  %v2984_v4 = vmul.f32 %v10452_v2, %v2779_v63  ;;  %7803 = vmatpush1.bf16.msra.mxu1 %v7802_v18  ;;  %v3907_v5 = vld [vmem:[#allocation9 + $0xf8] sm:$0xff]  ;;  %v7963_v7 = vpack.c.bf16 %v4011_v31, %v4010_v58  ;;  %v4012_v18 = vld [vmem:[#allocation9 + $0x440] sm:$0xff]  ;;  %v3300_v31 = vld [vmem:[#allocation3 + $0xf] sm:$0xff] }
 0x4e9   :  { %v2398_v24 = vpop.f32.mrb[62].mxu0  ;;  %7960 = vmatprep.subr.bf16.mxu0 %v7959_v9  ;;  %7804 = vmatprep.subr.bf16.mxu1 %v12409_v15  ;;  %v4015_v58 = vld [vmem:[#allocation9 + $0x458] sm:$0xff] }
 0x4ea   :  { %3264 = vst [vmem:[#allocation3 + $0x1f0] sm:$0xff] %v3118_v3  ;;  %v3055_v42 = vadd.f32 %v10460_v12, %v2984_v4  ;;  %v2784_v29 = vadd.f32 %v10330_v40, %v2398_v24  ;;  %v2400_v61 = vpop.f32.mrb[63].mxu0  ;;  %7962 = vmatpush3.bf16.msra.mxu0 %v7959_v9  ;;  %v7805_v3 = vpack.c.bf16 %v3907_v5, %v3906_v26 }
 0x4eb   :  { %7964 = vmatprep.subr.bf16.mxu0 %v7963_v7 }
 0x4ec   :  { %v3119_v28 = vmax.f32 %v3055_v42, 0.0  ;;  %v2985_v37 = vmul.f32 %v10452_v2, %v2784_v29  ;;  %7806 = vmatpush1.bf16.msra.mxu1 %v7805_v3  ;;  %v4013_v42 = vld [vmem:[#allocation9 + $0x448] sm:$0xff] }
 0x4ed   :  { %v2403_v63 = vpop.f32.mrb[64].mxu0  ;;  %7807 = vmatprep.subr.bf16.mxu1 %v12409_v15  ;;  %v3299_v29 = vld [vmem:[#allocation3 + $0x7] sm:$0xff] }
 0x4ee   :  { %3265 = vst [vmem:[#allocation3 + $0x208] sm:$0xff] %v3119_v28  ;;  %v3056_v4 = vadd.f32 %v10460_v12, %v2985_v37  ;;  %v2789_v40 = vadd.f32 %v10340_v32, %v2403_v63  ;;  %v2405_v55 = vpop.f32.mrb[65].mxu0  ;;  %7966 = vmatpush3.bf16.msra.mxu0 %v7963_v7  ;;  %v7967_v28 = vpack.c.bf16 %v4013_v42, %v4012_v18  ;;  %v4014_v63 = vld [vmem:[#allocation9 + $0x450] sm:$0xff] }
 0x4ef   :  { %4085 = vmatmul.mubr.f32.vlgmr.msra.gmra.mrb[40].mxu1 %v3299_v29 }
 0x4f0   :  { %v3120_v35 = vmax.f32 %v3056_v4, 0.0  ;;  %v2986_v24 = vmul.f32 %v10452_v2, %v2789_v40  ;;  %4089 = vmatprep.mubr.f32.mxu1 %v10293_v16  ;;  %7968 = vmatprep.subr.bf16.mxu0 %v7967_v28  ;;  %v7971_v40 = vpack.c.bf16 %v4015_v58, %v4014_v63 }
 0x4f1   :  { %v2408_v23 = vpop.f32.mrb[66].mxu0 }
 0x4f2   :  { %3266 = vst [vmem:[#allocation3 + $0x210] sm:$0xff] %v3120_v35  ;;  %v3057_v61 = vadd.f32 %v10460_v12, %v2986_v24  ;;  %v2794_v9 = vadd.f32 %v10336_v60, %v2408_v23  ;;  %v2410_v32 = vpop.f32.mrb[67].mxu0  ;;  %7970 = vmatpush3.bf16.msra.mxu0 %v7967_v28  ;;  %v4016_v35 = vld [vmem:[#allocation9 + $0x460] sm:$0xff]  ;;  %v4017_v24 = vld [vmem:[#allocation9 + $0x468] sm:$0xff]  ;;  %v4019_v28 = vld [vmem:[#allocation9 + $0x478] sm:$0xff] }
 0x4f3   :  { %4090 = vmatmul.mubr.f32.gmra.mrb[42].mxu1 %v3300_v31  ;;  %7972 = vmatprep.subr.bf16.mxu0 %v7971_v40  ;;  %v7975_v29 = vpack.c.bf16 %v4017_v24, %v4016_v35  ;;  %v4018_v32 = vld [vmem:[#allocation9 + $0x470] sm:$0xff] }
 0x4f4   :  { %v3121_v37 = vmax.f32 %v3057_v61, 0.0  ;;  %v2987_v26 = vmul.f32 %v10452_v2, %v2794_v9  ;;  %v7979_v63 = vpack.c.bf16 %v4019_v28, %v4018_v32 }
 0x4f5   :  { %v2413_v5 = vpop.f32.mrb[68].mxu0 }
 0x4f6   :  { %3267 = vst [vmem:[#allocation3 + $0x268] sm:$0xff] %v3121_v37  ;;  %v3058_v3 = vadd.f32 %v10460_v12, %v2987_v26  ;;  %v2799_v4 = vadd.f32 %v10350_v39, %v2413_v5  ;;  %v2415_v60 = vpop.f32.mrb[69].mxu0  ;;  %7974 = vmatpush3.bf16.msra.mxu0 %v7971_v40  ;;  %v3908_v40 = vld [vmem:[#allocation9 + $0x100] sm:$0xff] }
 0x4f7   :  { %7976 = vmatprep.subr.bf16.mxu0 %v7975_v29 }
 0x4f8   :  { %v3122_v55 = vmax.f32 %v3058_v3, 0.0  ;;  %v2988_v16 = vmul.f32 %v10452_v2, %v2799_v4 }
 0x4f9   :  { %v2418_v7 = vpop.f32.mrb[70].mxu0 }
 0x4fa   :  { %3268 = vst [vmem:[#allocation3 + $0x270] sm:$0xff] %v3122_v55  ;;  %v3059_v23 = vadd.f32 %v10460_v12, %v2988_v16  ;;  %v2804_v18 = vadd.f32 %v10346_v47, %v2418_v7  ;;  %v2420_v42 = vpop.f32.mrb[71].mxu0  ;;  %7978 = vmatpush3.bf16.msra.mxu0 %v7975_v29  ;;  %v3909_v55 = vld [vmem:[#allocation9 + $0x108] sm:$0xff] }
 0x4fb   :  { %7980 = vmatprep.subr.bf16.mxu0 %v7979_v63  ;;  %v7808_v16 = vpack.c.bf16 %v3909_v55, %v3908_v40 }
 0x4fc   :  { %v3123_v61 = vmax.f32 %v3059_v23, 0.0  ;;  %v2989_v39 = vmul.f32 %v10452_v2, %v2804_v18 }
 0x4fd   :  { %v2423_v9 = vpop.f32.mrb[72].mxu0  ;;  %7809 = vmatpush1.bf16.msra.mxu1 %v7808_v16 }
 0x4fe   :  { %3269 = vst [vmem:[#allocation3 + $0x288] sm:$0xff] %v3123_v61  ;;  %v3060_v37 = vadd.f32 %v10460_v12, %v2989_v39  ;;  %v2809_v26 = vadd.f32 %v10360_v22, %v2423_v9  ;;  %v2425_v5 = vpop.f32.mrb[73].mxu0  ;;  %7982 = vmatpush3.bf16.msra.mxu0 %v7979_v63  ;;  %7810 = vmatprep.subr.bf16.mxu1 %v12409_v15 }
 0x500   :  { %v3124_v58 = vmax.f32 %v3060_v37, 0.0  ;;  %v2990_v47 = vmul.f32 %v10452_v2, %v2809_v26 }
 0x501   :  { %v2428_v31 = vpop.f32.mrb[74].mxu0 }
 0x502   :  { %3270 = vst [vmem:[#allocation3 + $0x290] sm:$0xff] %v3124_v58  ;;  %v3061_v3 = vadd.f32 %v10460_v12, %v2990_v47  ;;  %v2814_v4 = vadd.f32 %v10356_v10, %v2428_v31  ;;  %v2430_v60 = vpop.f32.mrb[75].mxu0 }
 0x503   :  { %v3911_v60 = vld [vmem:[#allocation9 + $0x118] sm:$0xff] }
 0x504   :  { %v3125_v7 = vmax.f32 %v3061_v3, 0.0  ;;  %v2991_v22 = vmul.f32 %v10452_v2, %v2814_v4  ;;  %v3910_v4 = vld [vmem:[#allocation9 + $0x110] sm:$0xff] }
 0x505   :  { %v2433_v35 = vpop.f32.mrb[76].mxu0  ;;  %v7811_v40 = vpack.c.bf16 %v3911_v60, %v3910_v4 }
 0x506   :  { %3271 = vst [vmem:[#allocation3 + $0x2a8] sm:$0xff] %v3125_v7  ;;  %v3062_v24 = vadd.f32 %v10460_v12, %v2991_v22  ;;  %v2819_v23 = vadd.f32 %v10370_v6, %v2433_v35  ;;  %v2435_v18 = vpop.f32.mrb[77].mxu0 }
 0x507   :  { %7812 = vmatpush1.bf16.msra.mxu1 %v7811_v40 }
 0x508   :  { %v3126_v42 = vmax.f32 %v3062_v24, 0.0  ;;  %v2992_v10 = vmul.f32 %v10452_v2, %v2819_v23  ;;  %7813 = vmatprep.subr.bf16.mxu1 %v12409_v15 }
 0x509   :  { %v2438_v29 = vpop.f32.mrb[78].mxu0 }
 0x50a   :  { %3272 = vst [vmem:[#allocation3 + $0x2b0] sm:$0xff] %v3126_v42  ;;  %v3063_v61 = vadd.f32 %v10460_v12, %v2992_v10  ;;  %v2824_v39 = vadd.f32 %v10366_v0, %v2438_v29  ;;  %v2440_v9 = vpop.f32.mrb[79].mxu0 }
 0x50c   :  { %v3127_v32 = vmax.f32 %v3063_v61, 0.0  ;;  %v2993_v28 = vmul.f32 %v10452_v2, %v2824_v39 }
 0x50d   :  { %v2443_v37 = vpop.f32.mrb[80].mxu0 }
 0x50e   :  { %3273 = vst [vmem:[#allocation3 + $0x2c8] sm:$0xff] %v3127_v32  ;;  %v3064_v6 = vadd.f32 %v10460_v12, %v2993_v28  ;;  %v2829_v26 = vadd.f32 %v10378_v43, %v2443_v37  ;;  %v2445_v5 = vpop.f32.mrb[81].mxu0 }
 0x510   :  { %v3128_v63 = vmax.f32 %v3064_v6, 0.0  ;;  %v2994_v58 = vmul.f32 %v10452_v2, %v2829_v26 }
 0x511   :  { %v2448_v47 = vpop.f32.mrb[82].mxu0 }
 0x512   :  { %3274 = vst [vmem:[#allocation3 + $0x2d0] sm:$0xff] %v3128_v63  ;;  %v3065_v31 = vadd.f32 %v10460_v12, %v2994_v58  ;;  %v2834_v0 = vadd.f32 %v10374_v13, %v2448_v47  ;;  %v2450_v3 = vpop.f32.mrb[83].mxu0  ;;  %v3912_v63 = vld [vmem:[#allocation9 + $0x120] sm:$0xff]  ;;  %v3913_v58 = vld [vmem:[#allocation9 + $0x128] sm:$0xff] }
 0x513   :  { %v7814_v47 = vpack.c.bf16 %v3913_v58, %v3912_v63  ;;  %v3916_v63 = vld [vmem:[#allocation9 + $0x140] sm:$0xff]  ;;  %v3917_v58 = vld [vmem:[#allocation9 + $0x148] sm:$0xff] }
 0x514   :  { %v3129_v55 = vmax.f32 %v3065_v31, 0.0  ;;  %v2995_v16 = vmul.f32 %v10452_v2, %v2834_v0 }
 0x515   :  { %v2453_v7 = vpop.f32.mrb[84].mxu0  ;;  %7815 = vmatpush1.bf16.msra.mxu1 %v7814_v47 }
 0x516   :  { %3275 = vst [vmem:[#allocation3 + $0x2e8] sm:$0xff] %v3129_v55  ;;  %v3066_v43 = vadd.f32 %v10460_v12, %v2995_v16  ;;  %v2839_v22 = vadd.f32 %v10388_v48, %v2453_v7  ;;  %v2455_v35 = vpop.f32.mrb[85].mxu0  ;;  %7816 = vmatprep.subr.bf16.mxu1 %v12409_v15  ;;  %v3914_v55 = vld [vmem:[#allocation9 + $0x130] sm:$0xff]  ;;  %v3915_v16 = vld [vmem:[#allocation9 + $0x138] sm:$0xff] }
 0x518   :  { %v3130_v24 = vmax.f32 %v3066_v43, 0.0  ;;  %v2996_v13 = vmul.f32 %v10452_v2, %v2839_v22  ;;  %v7817_v43 = vpack.c.bf16 %v3915_v16, %v3914_v55 }
 0x519   :  { %v2458_v23 = vpop.f32.mrb[86].mxu0 }
 0x51a   :  { %3276 = vst [vmem:[#allocation3 + $0x2f0] sm:$0xff] %v3130_v24  ;;  %v3067_v18 = vadd.f32 %v10460_v12, %v2996_v13  ;;  %v2844_v42 = vadd.f32 %v10384_v17, %v2458_v23  ;;  %v2460_v10 = vpop.f32.mrb[87].mxu0  ;;  %7818 = vmatpush1.bf16.msra.mxu1 %v7817_v43 }
 0x51b   :  { %7819 = vmatprep.subr.bf16.mxu1 %v12409_v15 }
 0x51c   :  { %v3131_v29 = vmax.f32 %v3067_v18, 0.0  ;;  %v2997_v61 = vmul.f32 %v10452_v2, %v2844_v42 }
 0x51d   :  { %v2463_v39 = vpop.f32.mrb[88].mxu0 }
 0x51e   :  { %3277 = vst [vmem:[#allocation3 + $0x308] sm:$0xff] %v3131_v29  ;;  %v3068_v48 = vadd.f32 %v10460_v12, %v2997_v61  ;;  %v2849_v9 = vadd.f32 %v10396_v38, %v2463_v39  ;;  %v2465_v32 = vpop.f32.mrb[89].mxu0 }
 0x520   :  { %v3132_v28 = vmax.f32 %v3068_v48, 0.0  ;;  %v2998_v37 = vmul.f32 %v10452_v2, %v2849_v9 }
 0x521   :  { %v2468_v6 = vpop.f32.mrb[90].mxu0 }
 0x522   :  { %3278 = vst [vmem:[#allocation3 + $0x310] sm:$0xff] %v3132_v28  ;;  %v3069_v26 = vadd.f32 %v10460_v12, %v2998_v37  ;;  %v2854_v17 = vadd.f32 %v10392_v56, %v2468_v6  ;;  %v2470_v5 = vpop.f32.mrb[91].mxu0 }
 0x524   :  { %v3133_v31 = vmax.f32 %v3069_v26, 0.0  ;;  %v2999_v0 = vmul.f32 %v10452_v2, %v2854_v17 }
 0x525   :  { %v2473_v3 = vpop.f32.mrb[92].mxu0 }
 0x526   :  { %3279 = vst [vmem:[#allocation3 + $0x328] sm:$0xff] %v3133_v31  ;;  %v3070_v38 = vadd.f32 %v10460_v12, %v2999_v0  ;;  %v2859_v4 = vadd.f32 %v10404_v8, %v2473_v3  ;;  %v2475_v60 = vpop.f32.mrb[93].mxu0  ;;  %v7820_v31 = vpack.c.bf16 %v3917_v58, %v3916_v63 }
 0x528   :  { %v3134_v40 = vmax.f32 %v3070_v38, 0.0  ;;  %v3000_v56 = vmul.f32 %v10452_v2, %v2859_v4  ;;  %7821 = vmatpush1.bf16.msra.mxu1 %v7820_v31 }
 0x529   :  { %v2478_v7 = vpop.f32.mrb[94].mxu0  ;;  %7822 = vmatprep.subr.bf16.mxu1 %v12409_v15 }
 0x52a   :  { %3280 = vst [vmem:[#allocation3 + $0x330] sm:$0xff] %v3134_v40  ;;  %v3071_v22 = vadd.f32 %v10460_v12, %v3000_v56  ;;  %v2864_v35 = vadd.f32 %v10400_v11, %v2478_v7  ;;  %v2480_v24 = vpop.f32.mrb[95].mxu0 }
 0x52c   :  { %v3135_v13 = vmax.f32 %v3071_v22, 0.0  ;;  %v3001_v8 = vmul.f32 %v10452_v2, %v2864_v35 }
 0x52d   :  { %v2483_v23 = vpop.f32.mrb[96].mxu0 }
 0x52e   :  { %3281 = vst [vmem:[#allocation3 + $0x348] sm:$0xff] %v3135_v13  ;;  %v3072_v18 = vadd.f32 %v10460_v12, %v3001_v8  ;;  %v2869_v42 = vadd.f32 %v10412_v62, %v2483_v23  ;;  %v2485_v10 = vpop.f32.mrb[97].mxu0 }
 0x52f   :  { %v3918_v10 = vld [vmem:[#allocation9 + $0x150] sm:$0xff] }
 0x530   :  { %v3136_v29 = vmax.f32 %v3072_v18, 0.0  ;;  %v3002_v61 = vmul.f32 %v10452_v2, %v2869_v42 }
 0x531   :  { %v2488_v39 = vpop.f32.mrb[98].mxu0 }
 0x532   :  { %3282 = vst [vmem:[#allocation3 + $0x350] sm:$0xff] %v3136_v29  ;;  %v3073_v11 = vadd.f32 %v10460_v12, %v3002_v61  ;;  %v2874_v48 = vadd.f32 %v10408_v53, %v2488_v39  ;;  %v2490_v9 = vpop.f32.mrb[99].mxu0  ;;  %v3919_v29 = vld [vmem:[#allocation9 + $0x158] sm:$0xff] }
 0x533   :  { %v7823_v39 = vpack.c.bf16 %v3919_v29, %v3918_v10 }
 0x534   :  { %v3137_v32 = vmax.f32 %v3073_v11, 0.0  ;;  %v3003_v28 = vmul.f32 %v10452_v2, %v2874_v48 }
 0x535   :  { %v2493_v37 = vpop.f32.mrb[100].mxu0  ;;  %7824 = vmatpush1.bf16.msra.mxu1 %v7823_v39 }
 0x536   :  { %3283 = vst [vmem:[#allocation3 + $0x368] sm:$0xff] %v3137_v32  ;;  %v3074_v6 = vadd.f32 %v10460_v12, %v3003_v28  ;;  %v2879_v62 = vadd.f32 %v10421_v19, %v2493_v37  ;;  %v2495_v26 = vpop.f32.mrb[101].mxu0  ;;  %7825 = vmatprep.subr.bf16.mxu1 %v12409_v15 }
 0x538   :  { %v3138_v17 = vmax.f32 %v3074_v6, 0.0  ;;  %v3004_v5 = vmul.f32 %v10452_v2, %v2879_v62 }
 0x539   :  { %v2498_v47 = vpop.f32.mrb[102].mxu0 }
 0x53a   :  { %3284 = vst [vmem:[#allocation3 + $0x370] sm:$0xff] %v3138_v17  ;;  %v3075_v53 = vadd.f32 %v10460_v12, %v3004_v5  ;;  %v2884_v0 = vadd.f32 %v10417_v50, %v2498_v47  ;;  %v2500_v3 = vpop.f32.mrb[103].mxu0 }
 0x53c   :  { %v3139_v38 = vmax.f32 %v3075_v53, 0.0  ;;  %v3005_v4 = vmul.f32 %v10452_v2, %v2884_v0 }
 0x53d   :  { %v2503_v19 = vpop.f32.mrb[104].mxu0 }
 0x53e   :  { %3285 = vst [vmem:[#allocation3 + $0x388] sm:$0xff] %v3139_v38  ;;  %v3076_v60 = vadd.f32 %v10460_v12, %v3005_v4  ;;  %v2889_v40 = vadd.f32 %v10431_v57, %v2503_v19  ;;  %v2505_v56 = vpop.f32.mrb[105].mxu0  ;;  %v3920_v4 = vld [vmem:[#allocation9 + $0x160] sm:$0xff]  ;;  %v3921_v19 = vld [vmem:[#allocation9 + $0x168] sm:$0xff] }
 0x540   :  { %v3140_v55 = vmax.f32 %v3076_v60, 0.0  ;;  %v3006_v16 = vmul.f32 %v10452_v2, %v2889_v40  ;;  %v7826_v40 = vpack.c.bf16 %v3921_v19, %v3920_v4 }
 0x541   :  { %v2508_v7 = vpop.f32.mrb[106].mxu0 }
 0x542   :  { %3286 = vst [vmem:[#allocation3 + $0x390] sm:$0xff] %v3140_v55  ;;  %v3077_v50 = vadd.f32 %v10460_v12, %v3006_v16  ;;  %v2894_v43 = vadd.f32 %v10427_v46, %v2508_v7  ;;  %v2510_v22 = vpop.f32.mrb[107].mxu0  ;;  %7827 = vmatpush1.bf16.msra.mxu1 %v7826_v40 }
 0x543   :  { %7828 = vmatprep.subr.bf16.mxu1 %v12409_v15 }
 0x544   :  { %v3141_v35 = vmax.f32 %v3077_v50, 0.0  ;;  %v3007_v24 = vmul.f32 %v10452_v2, %v2894_v43 }
 0x545   :  { %v2513_v13 = vpop.f32.mrb[108].mxu0 }
 0x546   :  { %3287 = vst [vmem:[#allocation3 + $0x3a8] sm:$0xff] %v3141_v35  ;;  %v3078_v8 = vadd.f32 %v10460_v12, %v3007_v24  ;;  %v2899_v57 = vadd.f32 %v10441_v21, %v2513_v13  ;;  %v2515_v23 = vpop.f32.mrb[109].mxu0 }
 0x548   :  { %v3142_v18 = vmax.f32 %v3078_v8, 0.0  ;;  %v3008_v42 = vmul.f32 %v10452_v2, %v2899_v57 }
 0x549   :  { %v2518_v61 = vpop.f32.mrb[110].mxu0 }
 0x54a   :  { %3288 = vst [vmem:[#allocation3 + $0x3b0] sm:$0xff] %v3142_v18  ;;  %v3079_v46 = vadd.f32 %v10460_v12, %v3008_v42  ;;  %v2904_v11 = vadd.f32 %v10437_v33, %v2518_v61  ;;  %v2520_v48 = vpop.f32.mrb[111].mxu0 }
 0x54c   :  { %v3143_v9 = vmax.f32 %v3079_v46, 0.0  ;;  %v3009_v32 = vmul.f32 %v10452_v2, %v2904_v11  ;;  %v3922_v46 = vld [vmem:[#allocation9 + $0x170] sm:$0xff]  ;;  %v3923_v11 = vld [vmem:[#allocation9 + $0x178] sm:$0xff] }
 0x54d   :  { %v2523_v21 = vpop.f32.mrb[112].mxu0 }
 0x54e   :  { %3289 = vst [vmem:[#allocation3 + $0x3c8] sm:$0xff] %v3143_v9  ;;  %v3080_v28 = vadd.f32 %v10460_v12, %v3009_v32  ;;  %v2909_v37 = vadd.f32 %v10454_v34, %v2523_v21  ;;  %v2525_v6 = vpop.f32.mrb[113].mxu0  ;;  %v7829_v9 = vpack.c.bf16 %v3923_v11, %v3922_v46 }
 0x550   :  { %v3144_v62 = vmax.f32 %v3080_v28, 0.0  ;;  %v3010_v26 = vmul.f32 %v10452_v2, %v2909_v37  ;;  %7830 = vmatpush1.bf16.msra.mxu1 %v7829_v9 }
 0x551   :  { %v2528_v17 = vpop.f32.mrb[114].mxu0  ;;  %7831 = vmatprep.subr.bf16.mxu1 %v12409_v15 }
 0x552   :  { %3290 = vst [vmem:[#allocation3 + $0x3d0] sm:$0xff] %v3144_v62  ;;  %v3081_v33 = vadd.f32 %v10460_v12, %v3010_v26  ;;  %v2914_v5 = vadd.f32 %v10447_v51, %v2528_v17  ;;  %v2530_v63 = vpop.f32.mrb[115].mxu0 }
 0x554   :  { %v3145_v58 = vmax.f32 %v3081_v33, 0.0  ;;  %v3011_v47 = vmul.f32 %v10452_v2, %v2914_v5 }
 0x555   :  { %v2533_v31 = vpop.f32.mrb[116].mxu0 }
 0x556   :  { %3291 = vst [vmem:[#allocation3 + $0x3e8] sm:$0xff] %v3145_v58  ;;  %v3082_v53 = vadd.f32 %v10460_v12, %v3011_v47  ;;  %v2919_v34 = vadd.f32 %v10470_v44, %v2533_v31  ;;  %v2535_v0 = vpop.f32.mrb[117].mxu0 }
 0x558   :  { %v3146_v3 = vmax.f32 %v3082_v53, 0.0  ;;  %v3012_v38 = vmul.f32 %v10452_v2, %v2919_v34 }
 0x559   :  { %v2538_v60 = vpop.f32.mrb[118].mxu0 }
 0x55a   :  { %3292 = vst [vmem:[#allocation3 + $0x3f0] sm:$0xff] %v3146_v3  ;;  %v3083_v51 = vadd.f32 %v10460_v12, %v3012_v38  ;;  %v2924_v56 = vadd.f32 %v10467_v25, %v2538_v60  ;;  %v2540_v55 = vpop.f32.mrb[119].mxu0 }
 0x55b   :  { %v3925_v55 = vld [vmem:[#allocation9 + $0x188] sm:$0xff] }
 0x55c   :  { %v3147_v16 = vmax.f32 %v3083_v51, 0.0  ;;  %v3013_v7 = vmul.f32 %v10452_v2, %v2924_v56  ;;  %v3924_v56 = vld [vmem:[#allocation9 + $0x180] sm:$0xff] }
 0x55d   :  { %v2543_v44 = vpop.f32.mrb[120].mxu0 }
 0x55e   :  { %3293 = vst [vmem:[#allocation3 + $0x408] sm:$0xff] %v3147_v16  ;;  %v3084_v50 = vadd.f32 %v10460_v12, %v3013_v7  ;;  %v2929_v43 = vadd.f32 %v10482_v27, %v2543_v44  ;;  %v2545_v22 = vpop.f32.mrb[121].mxu0 }
 0x560   :  { %v3148_v35 = vmax.f32 %v3084_v50, 0.0  ;;  %v3014_v24 = vmul.f32 %v10452_v2, %v2929_v43  ;;  %v7832_v50 = vpack.c.bf16 %v3925_v55, %v3924_v56 }
 0x561   :  { %v2548_v13 = vpop.f32.mrb[122].mxu0 }
 0x562   :  { %3294 = vst [vmem:[#allocation3 + $0x410] sm:$0xff] %v3148_v35  ;;  %v3085_v25 = vadd.f32 %v10460_v12, %v3014_v24  ;;  %v2934_v8 = vadd.f32 %v10479_v20, %v2548_v13  ;;  %v2550_v57 = vpop.f32.mrb[123].mxu0  ;;  %7833 = vmatpush1.bf16.msra.mxu1 %v7832_v50 }
 0x563   :  { %7834 = vmatprep.subr.bf16.mxu1 %v12409_v15 }
 0x564   :  { %v3149_v23 = vmax.f32 %v3085_v25, 0.0  ;;  %v3015_v18 = vmul.f32 %v10452_v2, %v2934_v8 }
 0x565   :  { %v2553_v42 = vpop.f32.mrb[124].mxu0 }
 0x566   :  { %3295 = vst [vmem:[#allocation3 + $0x428] sm:$0xff] %v3149_v23  ;;  %v3086_v10 = vadd.f32 %v10460_v12, %v3015_v18  ;;  %v2939_v27 = vadd.f32 %v10494_v41, %v2553_v42  ;;  %v2555_v29 = vpop.f32.mrb[125].mxu0  ;;  %v12416_v23 = vld [vmem:[#allocation27_spill] sm:$0xff] }
 0x568   :  { %v3150_v61 = vmax.f32 %v3086_v10, 0.0  ;;  %v3016_v39 = vmul.f32 %v10452_v2, %v2939_v27  ;;  %v12417_v27 = vld [vmem:[#allocation26_spill] sm:$0xff] }
 0x569   :  { %v2558_v48 = vpop.f32.mrb[126].mxu0 }
 0x56a   :  { %3296 = vst [vmem:[#allocation3 + $0x430] sm:$0xff] %v3150_v61  ;;  %v3087_v20 = vadd.f32 %v10460_v12, %v3016_v39  ;;  %v2944_v32 = vadd.f32 %v10491_v30, %v2558_v48  ;;  %v2560_v21 = vpop.f32.mrb[127].mxu0 }
 0x56c   :  { %v3151_v28 = vmax.f32 %v3087_v20, 0.0  ;;  %v3017_v37 = vmul.f32 %v10452_v2, %v2944_v32  ;;  %v12418_v20 = vld [vmem:[#allocation17_spill] sm:$0xff] }
 0x56d   :  { %v7185_v41 = vpop.f32.mrb[128].mxu0 }
 0x56e   :  { %3297 = vst [vmem:[#allocation3 + $0x448] sm:$0xff] %v3151_v28  ;;  %v3088_v6 = vadd.f32 %v10460_v12, %v3017_v37  ;;  %v2634_v62 = vadd.f32 %v7185_v41, %v10343_v36  ;;  %v2628_v26 = vpop.f32.mrb[129].mxu0 }
 0x56f   :  { %v2629_v17 = vadd.f32 %v2628_v26, %v10338_v49 }
 0x570   :  { %v3152_v33 = vmax.f32 %v3088_v6, 0.0  ;;  %v2955_v5 = vmul.f32 %v10452_v2, %v2634_v62  ;;  %v12419_v6 = vld [vmem:[#allocation28_spill] sm:$0xff] }
 0x571   :  { %v2954_v30 = vmul.f32 %v10452_v2, %v2629_v17  ;;  %v7188_v63 = vpop.f32.mrb[130].mxu0 }
 0x572   :  { %3298 = vst [vmem:[#allocation3 + $0x450] sm:$0xff] %v3152_v33  ;;  %v3026_v58 = vadd.f32 %v10460_v12, %v2955_v5  ;;  %v2644_v47 = vadd.f32 %v7188_v63, %v10353_v45  ;;  %v2638_v31 = vpop.f32.mrb[131].mxu0 }
 0x573   :  { %v3025_v53 = vadd.f32 %v10460_v12, %v2954_v30  ;;  %v2639_v34 = vadd.f32 %v2638_v31, %v10348_v52 }
 0x574   :  { %v3090_v36 = vmax.f32 %v3026_v58, 0.0  ;;  %v2957_v0 = vmul.f32 %v10452_v2, %v2644_v47  ;;  %v12420_v47 = vld [vmem:[#allocation22_spill] sm:$0xff] }
 0x575   :  { %v3089_v49 = vmax.f32 %v3025_v53, 0.0  ;;  %v2956_v3 = vmul.f32 %v10452_v2, %v2639_v34  ;;  %v7191_v38 = vpop.f32.mrb[132].mxu0 }
 0x576   :  { %3236 = vst [vmem:[#allocation3 + $0x30] sm:$0xff] %v3090_v36  ;;  %v10622_v4 = vadd.f32 %v10460_v12, %v2957_v0  ;;  %v2654_v19 = vadd.f32 %v7191_v38, %v10363_v1  ;;  %v2648_v60 = vpop.f32.mrb[133].mxu0 }
 0x577   :  { %3235 = vst [vmem:[#allocation3 + $0x28] sm:$0xff] %v3089_v49  ;;  %v3027_v45 = vadd.f32 %v10460_v12, %v2956_v3  ;;  %v2649_v40 = vadd.f32 %v2648_v60, %v10358_v14  ;;  %4094 = vmatprep.mubr.f32.mxu1 %v3089_v49  ;;  %v12421_v49 = vld [vmem:[#allocation18_spill] sm:$0xff] }
 0x578   :  { %v3092_v52 = vmax.f32 %v10622_v4, 0.0  ;;  %v2959_v51 = vmul.f32 %v10452_v2, %v2654_v19 }
 0x579   :  { %v3091_v16 = vmax.f32 %v3027_v45, 0.0  ;;  %v2958_v7 = vmul.f32 %v10452_v2, %v2649_v40  ;;  %v7194_v44 = vpop.f32.mrb[134].mxu0  ;;  %v3926_v45 = vld [vmem:[#allocation9 + $0x190] sm:$0xff]  ;;  %v3927_v40 = vld [vmem:[#allocation9 + $0x198] sm:$0xff] }
 0x57a   :  { %3238 = vst [vmem:[#allocation3 + $0x50] sm:$0xff] %v3092_v52  ;;  %v10633_v1 = vadd.f32 %v10460_v12, %v2959_v51  ;;  %v2664_v14 = vadd.f32 %v7194_v44, %v10372_v59  ;;  %v2658_v43 = vpop.f32.mrb[135].mxu0 }
 0x57b   :  { %3237 = vst [vmem:[#allocation3 + $0x48] sm:$0xff] %v3091_v16  ;;  %v10637_v22 = vadd.f32 %v10460_v12, %v2958_v7  ;;  %v2659_v35 = vadd.f32 %v2658_v43, %v10368_v54 }
 0x57c   :  { %v3094_v24 = vmax.f32 %v10633_v1, 0.0  ;;  %v2961_v13 = vmul.f32 %v10452_v2, %v2664_v14 }
 0x57d   :  { %v3093_v25 = vmax.f32 %v10637_v22, 0.0  ;;  %v2960_v8 = vmul.f32 %v10452_v2, %v2659_v35  ;;  %v7197_v57 = vpop.f32.mrb[136].mxu0  ;;  %v12423_v35 = vld [vmem:[#allocation24_spill] sm:$0xff] }
 0x57e   :  { %3240 = vst [vmem:[#allocation3 + $0x70] sm:$0xff] %v3094_v24  ;;  %v10648_v59 = vadd.f32 %v10460_v12, %v2961_v13  ;;  %v2674_v54 = vadd.f32 %v7197_v57, %v12416_v23  ;;  %v2668_v18 = vpop.f32.mrb[137].mxu0  ;;  %v3301_v42 = vld [vmem:[#allocation3 + $0x27] sm:$0xff]  ;;  %v3302_v37 = vld [vmem:[#allocation3 + $0x2f] sm:$0xff] }
 0x57f   :  { %3239 = vst [vmem:[#allocation3 + $0x68] sm:$0xff] %v3093_v25  ;;  %v10654_v10 = vadd.f32 %v10460_v12, %v2960_v8  ;;  %v2669_v29 = vadd.f32 %v2668_v18, %v12417_v27  ;;  %4095 = vmatmul.mubr.f32.gmra.mrb[44].mxu1 %v3301_v42 }
 0x580   :  { %v3096_v61 = vmax.f32 %v10648_v59, 0.0  ;;  %v2963_v39 = vmul.f32 %v10452_v2, %v2674_v54  ;;  %4099 = vmatprep.mubr.f32.mxu1 %v3090_v36 }
 0x581   :  { %v3095_v46 = vmax.f32 %v10654_v10, 0.0  ;;  %v2962_v11 = vmul.f32 %v10452_v2, %v2669_v29  ;;  %v7200_v48 = vpop.f32.mrb[138].mxu0  ;;  %v3813_v26 = vld [vmem:[#allocation3 + $0x51] sm:$0xff] }
 0x582   :  { %3242 = vst [vmem:[#allocation3 + $0x90] sm:$0xff] %v3096_v61  ;;  %v10664_v9 = vadd.f32 %v10460_v12, %v2963_v39  ;;  %v2684_v32 = vadd.f32 %v7200_v48, %v12418_v20  ;;  %v2678_v21 = vpop.f32.mrb[139].mxu0  ;;  %v3812_v28 = vld [vmem:[#allocation3 + $0x49] sm:$0xff] }
 0x583   :  { %3241 = vst [vmem:[#allocation3 + $0x88] sm:$0xff] %v3095_v46  ;;  %v10670_v41 = vadd.f32 %v10460_v12, %v2962_v11  ;;  %v2679_v62 = vadd.f32 %v2678_v21, %v12419_v6  ;;  %7311 = vmatprep.mubr.f32.mxu0 %v3812_v28  ;;  %4100 = vmatmul.mubr.f32.gmra.mrb[46].mxu1 %v3302_v37  ;;  %v3303_v36 = vld [vmem:[#allocation3 + $0x47] sm:$0xff]  ;;  %v10711_v14 = vld [vmem:[#allocation3 + $0x4f] sm:$0xff] }
 0x584   :  { %v3098_v17 = vmax.f32 %v10664_v9, 0.0  ;;  %v2965_v33 = vmul.f32 %v10452_v2, %v2684_v32  ;;  %7312 = vmatmul.mubr.f32.vlgmr.msra.gmra.mrb[152].mxu0 %v3813_v26  ;;  %4104 = vmatprep.mubr.f32.mxu1 %v3091_v16  ;;  %v7835_v16 = vpack.c.bf16 %v3927_v40, %v3926_v45  ;;  %v12424_v29 = vld [vmem:[#allocation19_spill] sm:$0xff] }
 0x585   :  { %v3097_v5 = vmax.f32 %v10670_v41, 0.0  ;;  %v2964_v30 = vmul.f32 %v10452_v2, %v2679_v62  ;;  %v7203_v63 = vpop.f32.mrb[140].mxu0  ;;  %v3815_v38 = vld [vmem:[#allocation3 + $0x71] sm:$0xff] }
 0x586   :  { %3244 = vst [vmem:[#allocation3 + $0xb0] sm:$0xff] %v3098_v17  ;;  %v10680_v58 = vadd.f32 %v10460_v12, %v2965_v33  ;;  %v2694_v31 = vadd.f32 %v7203_v63, %v12420_v47  ;;  %v2688_v53 = vpop.f32.mrb[141].mxu0  ;;  %v3814_v34 = vld [vmem:[#allocation3 + $0x69] sm:$0xff]  ;;  %7836 = vmatpush1.bf16.msra.mxu1 %v7835_v16 }
 0x587   :  { %3243 = vst [vmem:[#allocation3 + $0xa8] sm:$0xff] %v3097_v5  ;;  %v10686_v0 = vadd.f32 %v10460_v12, %v2964_v30  ;;  %v2689_v3 = vadd.f32 %v2688_v53, %v12421_v49  ;;  %7314 = vmatprep.mubr.f32.mxu0 %v3814_v34  ;;  %4105 = vmatmul.mubr.f32.gmra.mrb[48].mxu1 %v3303_v36  ;;  %v10697_v12 = vld [vmem:[%s12274_s2] ss:$0 sm:$0xff]  ;;  %v10732_v20 = vld [vmem:[#allocation3 + $0x67] sm:$0xff]  ;;  %v10754_v53 = vld [vmem:[#allocation3 + $0x6f] sm:$0xff] }
 0x588   :  { %v3100_v19 = vmax.f32 %v10680_v58, 0.0  ;;  %v2967_v60 = vmul.f32 %v10452_v2, %v2694_v31  ;;  %7315 = vmatmul.mubr.f32.gmra.mrb[154].mxu0 %v3815_v38  ;;  %4109 = vmatprep.mubr.f32.mxu1 %v3092_v52  ;;  %v10705_v2 = vld [vmem:[%s12275_s3] ss:$0 sm:$0xff]  ;;  %v3835_v58 = vld [vmem:[#allocation3 + $0x1b1] sm:$0xff] }
 0x589   :  { %v3099_v51 = vmax.f32 %v10686_v0, 0.0  ;;  %v2966_v56 = vmul.f32 %v10697_v12, %v2689_v3  ;;  %v7206_v55 = vpop.f32.mrb[142].mxu0  ;;  %v12422_v52 = vld [vmem:[#allocation29_spill] sm:$0xff]  ;;  %v3817_v8 = vld [vmem:[#allocation3 + $0x91] sm:$0xff]  ;;  %7837 = vmatprep.subr.bf16.mxu1 %v12409_v15 }
 0x58a   :  { %3246 = vst [vmem:[#allocation3 + $0xd0] sm:$0xff] %v3100_v19  ;;  %v10708_v4 = vadd.f32 %v10705_v2, %v2967_v60  ;;  %v2704_v7 = vadd.f32 %v7206_v55, %v12422_v52  ;;  %v2698_v44 = vpop.f32.mrb[143].mxu0  ;;  %v3816_v50 = vld [vmem:[#allocation3 + $0x89] sm:$0xff]  ;;  %v12426_v30 = vld [vmem:[#allocation21_spill] sm:$0xff] }
 0x58b   :  { %3245 = vst [vmem:[#allocation3 + $0xc8] sm:$0xff] %v3099_v51  ;;  %v10716_v43 = vadd.f32 %v10705_v2, %v2966_v56  ;;  %v2699_v13 = vadd.f32 %v2698_v44, %v12423_v35  ;;  %7317 = vmatprep.mubr.f32.mxu0 %v3816_v50  ;;  %4110 = vmatmul.mubr.f32.gmra.mrb[50].mxu1 %v10711_v14  ;;  %v12428_v56 = vld [vmem:[#allocation25_spill] sm:$0xff]  ;;  %v10796_v59 = vld [vmem:[#allocation3 + $0x8f] sm:$0xff] }
 0x58c   :  { %v3102_v57 = vmax.f32 %v10708_v4, 0.0  ;;  %v2969_v23 = vmul.f32 %v10697_v12, %v2704_v7  ;;  %7318 = vmatmul.mubr.f32.gmra.mrb[156].mxu0 %v3817_v8  ;;  %4114 = vmatprep.mubr.f32.mxu1 %v3093_v25  ;;  %v12425_v25 = vld [vmem:[#allocation30_spill] sm:$0xff]  ;;  %v3928_v8 = vld [vmem:[#allocation9 + $0x1a0] sm:$0xff] }
 0x58d   :  { %v3101_v54 = vmax.f32 %v10716_v43, 0.0  ;;  %v2968_v18 = vmul.f32 %v10697_v12, %v2699_v13  ;;  %v7209_v42 = vpop.f32.mrb[144].mxu0  ;;  %v3819_v21 = vld [vmem:[#allocation3 + $0xb1] sm:$0xff]  ;;  %v10775_v7 = vld [vmem:[#allocation3 + $0x87] sm:$0xff] }
 0x58e   :  { %3248 = vst [vmem:[#allocation3 + $0xf0] sm:$0xff] %v3102_v57  ;;  %v10729_v27 = vadd.f32 %v10705_v2, %v2969_v23  ;;  %v2714_v39 = vadd.f32 %v7209_v42, %v12424_v29  ;;  %v2708_v11 = vpop.f32.mrb[145].mxu0  ;;  %v3818_v48 = vld [vmem:[#allocation3 + $0xa9] sm:$0xff]  ;;  %v3837_v43 = vld [vmem:[#allocation3 + $0x1d1] sm:$0xff] }
 0x58f   :  { %3247 = vst [vmem:[#allocation3 + $0xe8] sm:$0xff] %v3101_v54  ;;  %v10738_v22 = vadd.f32 %v10705_v2, %v2968_v18  ;;  %v2709_v32 = vadd.f32 %v2708_v11, %v12425_v25  ;;  %7320 = vmatprep.mubr.f32.mxu0 %v3818_v48  ;;  %4115 = vmatmul.mubr.f32.gmra.mrb[52].mxu1 %v10732_v20  ;;  %v3929_v23 = vld [vmem:[#allocation9 + $0x1a8] sm:$0xff]  ;;  %v12430_v48 = vld [vmem:[#allocation32_spill] sm:$0xff] }
 0x590   :  { %v3104_v28 = vmax.f32 %v10729_v27, 0.0  ;;  %v2971_v37 = vmul.f32 %v10697_v12, %v2714_v39  ;;  %7321 = vmatmul.mubr.f32.gmra.mrb[158].mxu0 %v3819_v21  ;;  %4119 = vmatprep.mubr.f32.mxu1 %v3094_v24  ;;  %v12427_v24 = vld [vmem:[#allocation20_spill] sm:$0xff]  ;;  %v7838_v39 = vpack.c.bf16 %v3929_v23, %v3928_v8  ;;  %v3840_v4 = vld [vmem:[#allocation3 + $0x209] sm:$0xff] }
 0x591   :  { %v3103_v6 = vmax.f32 %v10738_v22, 0.0  ;;  %v2970_v62 = vmul.f32 %v10697_v12, %v2709_v32  ;;  %v7212_v26 = vpop.f32.mrb[146].mxu0  ;;  %v3821_v36 = vld [vmem:[#allocation3 + $0xd1] sm:$0xff]  ;;  %v3842_v22 = vld [vmem:[#allocation3 + $0x229] sm:$0xff] }
 0x592   :  { %3250 = vst [vmem:[#allocation3 + $0x110] sm:$0xff] %v3104_v28  ;;  %v10751_v33 = vadd.f32 %v10705_v2, %v2971_v37  ;;  %v2724_v63 = vadd.f32 %v7212_v26, %v12426_v30  ;;  %v2718_v47 = vpop.f32.mrb[147].mxu0  ;;  %v3820_v31 = vld [vmem:[#allocation3 + $0xc9] sm:$0xff]  ;;  %7839 = vmatpush1.bf16.msra.mxu1 %v7838_v39  ;;  %v3839_v23 = vld [vmem:[#allocation3 + $0x1f1] sm:$0xff] }
 0x593   :  { %3249 = vst [vmem:[#allocation3 + $0x108] sm:$0xff] %v3103_v6  ;;  %v10759_v1 = vadd.f32 %v10705_v2, %v2970_v62  ;;  %v2719_v34 = vadd.f32 %v2718_v47, %v12427_v24  ;;  %7323 = vmatprep.mubr.f32.mxu0 %v3820_v31  ;;  %4120 = vmatmul.mubr.f32.gmra.mrb[54].mxu1 %v10754_v53  ;;  %v12431_v37 = vld [vmem:[#allocation31_spill] sm:$0xff] }
 0x594   :  { %v3106_v49 = vmax.f32 %v10751_v33, 0.0  ;;  %v2973_v3 = vmul.f32 %v10697_v12, %v2724_v63  ;;  %7324 = vmatmul.mubr.f32.gmra.mrb[160].mxu0 %v3821_v36  ;;  %4124 = vmatprep.mubr.f32.mxu1 %v3095_v46  ;;  %v12429_v46 = vld [vmem:[#allocation23_spill] sm:$0xff]  ;;  %v10816_v36 = vld [vmem:[#allocation3 + $0xa7] sm:$0xff] }
 0x595   :  { %v3105_v38 = vmax.f32 %v10759_v1, 0.0  ;;  %v2972_v60 = vmul.f32 %v10697_v12, %v2719_v34  ;;  %v7215_v45 = vpop.f32.mrb[148].mxu0  ;;  %v3823_v50 = vld [vmem:[#allocation3 + $0xf1] sm:$0xff]  ;;  %7840 = vmatprep.subr.bf16.mxu1 %v12409_v15  ;;  %v3848_v33 = vld [vmem:[#allocation3 + $0x2c9] sm:$0xff] }
 0x596   :  { %3252 = vst [vmem:[#allocation3 + $0x130] sm:$0xff] %v3106_v49  ;;  %v10772_v40 = vadd.f32 %v10705_v2, %v2973_v3  ;;  %v2734_v55 = vadd.f32 %v7215_v45, %v12428_v56  ;;  %v2728_v16 = vpop.f32.mrb[149].mxu0  ;;  %v3822_v52 = vld [vmem:[#allocation3 + $0xe9] sm:$0xff]  ;;  %v3845_v1 = vld [vmem:[#allocation3 + $0x291] sm:$0xff] }
 0x597   :  { %3251 = vst [vmem:[#allocation3 + $0x128] sm:$0xff] %v3105_v38  ;;  %v10780_v10 = vadd.f32 %v10705_v2, %v2972_v60  ;;  %v2729_v44 = vadd.f32 %v2728_v16, %v12429_v46  ;;  %7326 = vmatprep.mubr.f32.mxu0 %v3822_v52  ;;  %4125 = vmatmul.mubr.f32.gmra.mrb[56].mxu1 %v10775_v7  ;;  %v10831_v45 = vld [vmem:[#allocation3 + $0xaf] sm:$0xff]  ;;  %v3931_v16 = vld [vmem:[#allocation9 + $0x1b8] sm:$0xff] }
 0x598   :  { %v3108_v35 = vmax.f32 %v10772_v40, 0.0  ;;  %v2975_v13 = vmul.f32 %v10697_v12, %v2734_v55  ;;  %7327 = vmatmul.mubr.f32.gmra.mrb[162].mxu0 %v3823_v50  ;;  %4129 = vmatprep.mubr.f32.mxu1 %v3096_v61  ;;  %v3930_v55 = vld [vmem:[#allocation9 + $0x1b0] sm:$0xff]  ;;  %v10848_v50 = vld [vmem:[#allocation3 + $0xe7] sm:$0xff] }
 0x599   :  { %v3107_v18 = vmax.f32 %v10780_v10, 0.0  ;;  %v2974_v42 = vmul.f32 %v10697_v12, %v2729_v44  ;;  %v7218_v29 = vpop.f32.mrb[150].mxu0  ;;  %v3825_v26 = vld [vmem:[#allocation3 + $0x111] sm:$0xff]  ;;  %v7841_v52 = vpack.c.bf16 %v3931_v16, %v3930_v55  ;;  %v10909_v55 = vld [vmem:[#allocation3 + $0x1a7] sm:$0xff] }
 0x59a   :  { %3254 = vst [vmem:[#allocation3 + $0x150] sm:$0xff] %v3108_v35  ;;  %v10793_v11 = vadd.f32 %v10705_v2, %v2975_v13  ;;  %v2744_v25 = vadd.f32 %v7218_v29, %v12430_v48  ;;  %v2738_v32 = vpop.f32.mrb[151].mxu0  ;;  %v3824_v21 = vld [vmem:[#allocation3 + $0x109] sm:$0xff]  ;;  %v3843_v48 = vld [vmem:[#allocation3 + $0x231] sm:$0xff] }
 0x59b   :  { %3253 = vst [vmem:[#allocation3 + $0x148] sm:$0xff] %v3107_v18  ;;  %v10801_v61 = vadd.f32 %v10705_v2, %v2974_v42  ;;  %v2739_v62 = vadd.f32 %v2738_v32, %v12431_v37  ;;  %7329 = vmatprep.mubr.f32.mxu0 %v3824_v21  ;;  %4130 = vmatmul.mubr.f32.gmra.mrb[58].mxu1 %v10796_v59  ;;  %v10843_v44 = vld [vmem:[#allocation3 + $0xcf] sm:$0xff]  ;;  %v10859_v8 = vld [vmem:[#allocation3 + $0x107] sm:$0xff]  ;;  %v3935_v37 = vld [vmem:[#allocation9 + $0x1d8] sm:$0xff] }
 0x59c   :  { %v3110_v30 = vmax.f32 %v10793_v11, 0.0  ;;  %v2977_v63 = vmul.f32 %v10697_v12, %v2744_v25  ;;  %7330 = vmatmul.mubr.f32.gmra.mrb[164].mxu0 %v3825_v26  ;;  %4134 = vmatprep.mubr.f32.mxu1 %v3097_v5  ;;  %v10854_v13 = vld [vmem:[#allocation3 + $0xef] sm:$0xff] }
 0x59d   :  { %v3109_v47 = vmax.f32 %v10801_v61, 0.0  ;;  %v2976_v31 = vmul.f32 %v10697_v12, %v2739_v62  ;;  %v3827_v5 = vld [vmem:[#allocation3 + $0x131] sm:$0xff]  ;;  %7842 = vmatpush1.bf16.msra.mxu1 %v7841_v52  ;;  %v3933_v42 = vld [vmem:[#allocation9 + $0x1c8] sm:$0xff] }
 0x59e   :  { %3256 = vst [vmem:[#allocation3 + $0x170] sm:$0xff] %v3110_v30  ;;  %v10814_v24 = vadd.f32 %v10705_v2, %v2977_v63  ;;  %v3826_v34 = vld [vmem:[#allocation3 + $0x129] sm:$0xff]  ;;  %7843 = vmatprep.subr.bf16.mxu1 %v12409_v15  ;;  %v3847_v21 = vld [vmem:[#allocation3 + $0x2b1] sm:$0xff] }
 0x59f   :  { %3255 = vst [vmem:[#allocation3 + $0x168] sm:$0xff] %v3109_v47  ;;  %v10822_v41 = vadd.f32 %v10705_v2, %v2976_v31  ;;  %7332 = vmatprep.mubr.f32.mxu0 %v3826_v34  ;;  %4135 = vmatmul.mubr.f32.gmra.mrb[60].mxu1 %v10816_v36  ;;  %v10864_v39 = vld [vmem:[#allocation3 + $0x10f] sm:$0xff]  ;;  %v10869_v27 = vld [vmem:[#allocation3 + $0x127] sm:$0xff] }
 0x5a0   :  { %v3112_v12 = vmax.f32 %v10814_v24, 0.0  ;;  %7333 = vmatmul.mubr.f32.gmra.mrb[166].mxu0 %v3827_v5  ;;  %4139 = vmatprep.mubr.f32.mxu1 %v3098_v17  ;;  %v10838_v17 = vld [vmem:[#allocation3 + $0xc7] sm:$0xff]  ;;  %v10875_v25 = vld [vmem:[#allocation3 + $0x12f] sm:$0xff] }
 0x5a1   :  { %v3111_v3 = vmax.f32 %v10822_v41, 0.0  ;;  %v3829_v2 = vld [vmem:[#allocation3 + $0x151] sm:$0xff]  ;;  %v3856_v11 = vld [vmem:[#allocation3 + $0x349] sm:$0xff] }
 0x5a2   :  { %3258 = vst [vmem:[#allocation3 + $0x190] sm:$0xff] %v3112_v12  ;;  %v3828_v60 = vld [vmem:[#allocation3 + $0x149] sm:$0xff]  ;;  %v3849_v10 = vld [vmem:[#allocation3 + $0x2d1] sm:$0xff] }
 0x5a3   :  { %3257 = vst [vmem:[#allocation3 + $0x188] sm:$0xff] %v3111_v3  ;;  %7335 = vmatprep.mubr.f32.mxu0 %v3828_v60  ;;  %4140 = vmatmul.mubr.f32.gmra.mrb[62].mxu1 %v10831_v45  ;;  %v10880_v32 = vld [vmem:[#allocation3 + $0x147] sm:$0xff]  ;;  %v10885_v26 = vld [vmem:[#allocation3 + $0x14f] sm:$0xff] }
 0x5a4   :  { %7336 = vmatmul.mubr.f32.gmra.mrb[168].mxu0 %v3829_v2  ;;  %4144 = vmatprep.mubr.f32.mxu1 %v3099_v51  ;;  %v3834_v51 = vld [vmem:[#allocation3 + $0x1a9] sm:$0xff]  ;;  %v3851_v40 = vld [vmem:[#allocation3 + $0x2f1] sm:$0xff] }
 0x5a5   :  { %v3831_v56 = vld [vmem:[#allocation3 + $0x171] sm:$0xff]  ;;  %v3937_v60 = vld [vmem:[#allocation9 + $0x1e8] sm:$0xff] }
 0x5a6   :  { %v3830_v9 = vld [vmem:[#allocation3 + $0x169] sm:$0xff]  ;;  %v3853_v61 = vld [vmem:[#allocation3 + $0x311] sm:$0xff] }
 0x5a7   :  { %7338 = vmatprep.mubr.f32.mxu0 %v3830_v9  ;;  %4145 = vmatmul.mubr.f32.gmra.mrb[64].mxu1 %v10838_v17  ;;  %v10890_v63 = vld [vmem:[#allocation3 + $0x167] sm:$0xff]  ;;  %v10896_v31 = vld [vmem:[#allocation3 + $0x16f] sm:$0xff] }
 0x5a8   :  { %7339 = vmatmul.mubr.f32.gmra.mrb[170].mxu0 %v3831_v56  ;;  %4149 = vmatprep.mubr.f32.mxu1 %v3100_v19  ;;  %v3836_v19 = vld [vmem:[#allocation3 + $0x1c9] sm:$0xff]  ;;  %v3855_v5 = vld [vmem:[#allocation3 + $0x331] sm:$0xff] }
 0x5a9   :  { %v3833_v0 = vld [vmem:[#allocation3 + $0x191] sm:$0xff]  ;;  %v3858_v56 = vld [vmem:[#allocation3 + $0x369] sm:$0xff] }
 0x5aa   :  { %v3832_v46 = vld [vmem:[#allocation3 + $0x189] sm:$0xff]  ;;  %v3857_v41 = vld [vmem:[#allocation3 + $0x351] sm:$0xff] }
 0x5ab   :  { %7341 = vmatprep.mubr.f32.mxu0 %v3832_v46  ;;  %4150 = vmatmul.mubr.f32.gmra.mrb[66].mxu1 %v10843_v44  ;;  %v10901_v34 = vld [vmem:[#allocation3 + $0x187] sm:$0xff]  ;;  %v10906_v9 = vld [vmem:[#allocation3 + $0x18f] sm:$0xff] }
 0x5ac   :  { %7342 = vmatmul.mubr.f32.gmra.mrb[172].mxu0 %v3833_v0  ;;  %4154 = vmatprep.mubr.f32.mxu1 %v3101_v54  ;;  %v3838_v54 = vld [vmem:[#allocation3 + $0x1e9] sm:$0xff]  ;;  %v3859_v24 = vld [vmem:[#allocation3 + $0x371] sm:$0xff] }
 0x5ad   :  { %7344 = vmatprep.mubr.f32.mxu0 %v3834_v51  ;;  %v3860_v16 = vld [vmem:[#allocation3 + $0x389] sm:$0xff]  ;;  %v3861_v46 = vld [vmem:[#allocation3 + $0x391] sm:$0xff] }
 0x5ae   :  { %v10913_v52 = vld [vmem:[#allocation3 + $0x1af] sm:$0xff] }
 0x5af   :  { %4155 = vmatmul.mubr.f32.gmra.mrb[68].mxu1 %v10848_v50  ;;  %v3391_v0 = vld [vmem:[#allocation3 + $0x1c8] sm:$0xff] }
 0x5b0   :  { %7345 = vmatmul.mubr.f32.gmra.mrb[174].mxu0 %v3835_v58  ;;  %4159 = vmatprep.mubr.f32.mxu1 %v3102_v57  ;;  %v3932_v57 = vld [vmem:[#allocation9 + $0x1c0] sm:$0xff]  ;;  %v3862_v51 = vld [vmem:[#allocation3 + $0x3a9] sm:$0xff] }
 0x5b1   :  { %7347 = vmatprep.mubr.f32.mxu0 %v3836_v19  ;;  %v7844_v29 = vpack.c.bf16 %v3933_v42, %v3932_v57  ;;  %v10916_v58 = vld [vmem:[#allocation3 + $0x1c7] sm:$0xff]  ;;  %v3863_v19 = vld [vmem:[#allocation3 + $0x3b1] sm:$0xff] }
 0x5b2   :  { %v10919_v42 = vld [vmem:[#allocation3 + $0x1cf] sm:$0xff] }
 0x5b3   :  { %4160 = vmatmul.mubr.f32.gmra.mrb[70].mxu1 %v10854_v13 }
 0x5b4   :  { %7348 = vmatmul.mubr.f32.gmra.mrb[176].mxu0 %v3837_v43  ;;  %4164 = vmatprep.mubr.f32.mxu1 %v3103_v6  ;;  %v3841_v6 = vld [vmem:[#allocation3 + $0x211] sm:$0xff] }
 0x5b5   :  { %7350 = vmatprep.mubr.f32.mxu0 %v3838_v54  ;;  %7845 = vmatpush1.bf16.msra.mxu1 %v7844_v29  ;;  %v3392_v43 = vld [vmem:[#allocation3 + $0x1d0] sm:$0xff] }
 0x5b6   :  { %7846 = vmatprep.subr.bf16.mxu1 %v12409_v15  ;;  %v3864_v54 = vld [vmem:[#allocation3 + $0x3c9] sm:$0xff]  ;;  %v3865_v29 = vld [vmem:[#allocation3 + $0x3d1] sm:$0xff] }
 0x5b7   :  { %4165 = vmatmul.mubr.f32.gmra.mrb[72].mxu1 %v10859_v8 }
 0x5b8   :  { %7351 = vmatmul.mubr.f32.gmra.mrb[178].mxu0 %v3839_v23  ;;  %4169 = vmatprep.mubr.f32.mxu1 %v3104_v28  ;;  %v3844_v28 = vld [vmem:[#allocation3 + $0x289] sm:$0xff] }
 0x5b9   :  { %7353 = vmatprep.mubr.f32.mxu0 %v3840_v4  ;;  %v3938_v23 = vld [vmem:[#allocation9 + $0x1f0] sm:$0xff]  ;;  %v3939_v4 = vld [vmem:[#allocation9 + $0x1f8] sm:$0xff] }
 0x5ba   :  { %v7853_v57 = vpack.c.bf16 %v3939_v4, %v3938_v23  ;;  %v10956_v23 = vld [vmem:[#allocation3 + $0x2ef] sm:$0xff] }
 0x5bb   :  { %4170 = vmatmul.mubr.f32.gmra.mrb[74].mxu1 %v10864_v39  ;;  %v3407_v4 = vld [vmem:[#allocation3 + $0x308] sm:$0xff] }
 0x5bc   :  { %7354 = vmatmul.mubr.f32.gmra.mrb[180].mxu0 %v3841_v6  ;;  %4174 = vmatprep.mubr.f32.mxu1 %v3105_v38  ;;  %v3846_v38 = vld [vmem:[#allocation3 + $0x2a9] sm:$0xff] }
 0x5bd   :  { %7356 = vmatprep.mubr.f32.mxu0 %v3842_v22  ;;  %v3393_v22 = vld [vmem:[#allocation3 + $0x1e8] sm:$0xff] }
 0x5be   :  { %v3866_v6 = vld [vmem:[#allocation3 + $0x3e9] sm:$0xff] }
 0x5bf   :  { %4175 = vmatmul.mubr.f32.gmra.mrb[76].mxu1 %v10869_v27 }
 0x5c0   :  { %7357 = vmatmul.mubr.f32.gmra.mrb[182].mxu0 %v3843_v48  ;;  %4179 = vmatprep.mubr.f32.mxu1 %v3106_v49  ;;  %v3934_v49 = vld [vmem:[#allocation9 + $0x1d0] sm:$0xff]  ;;  %v10922_v48 = vld [vmem:[#allocation3 + $0x1e7] sm:$0xff] }
 0x5c1   :  { %7359 = vmatprep.mubr.f32.mxu0 %v3844_v28  ;;  %v7847_v62 = vpack.c.bf16 %v3935_v37, %v3934_v49  ;;  %v3867_v28 = vld [vmem:[#allocation3 + $0x3f1] sm:$0xff]  ;;  %v3870_v49 = vld [vmem:[#allocation3 + $0x429] sm:$0xff] }
 0x5c2   :  { %v8812_v37 = vld [vmem:[#allocation2 + $0x8] sm:$0xff] }
 0x5c3   :  { %4180 = vmatmul.mubr.f32.gmra.mrb[78].mxu1 %v10875_v25 }
 0x5c4   :  { %7360 = vmatmul.mubr.f32.gmra.mrb[184].mxu0 %v3845_v1  ;;  %4184 = vmatprep.mubr.f32.mxu1 %v3107_v18  ;;  %v3850_v18 = vld [vmem:[#allocation3 + $0x2e9] sm:$0xff] }
 0x5c5   :  { %7362 = vmatprep.mubr.f32.mxu0 %v3846_v38  ;;  %7848 = vmatpush1.bf16.msra.mxu1 %v7847_v62  ;;  %v3394_v1 = vld [vmem:[#allocation3 + $0x1f0] sm:$0xff]  ;;  %v3331_v62 = vld [vmem:[#allocation3 + $0x247] sm:$0xff] }
 0x5c6   :  { %7849 = vmatprep.subr.bf16.mxu1 %v12409_v15  ;;  %v3868_v38 = vld [vmem:[#allocation3 + $0x409] sm:$0xff] }
 0x5c7   :  { %4185 = vmatmul.mubr.f32.gmra.mrb[80].mxu1 %v10880_v32 }
 0x5c8   :  { %7363 = vmatmul.mubr.f32.gmra.mrb[186].mxu0 %v3847_v21  ;;  %4189 = vmatprep.mubr.f32.mxu1 %v3108_v35  ;;  %v3852_v35 = vld [vmem:[#allocation3 + $0x309] sm:$0xff] }
 0x5c9   :  { %7365 = vmatprep.mubr.f32.mxu0 %v3848_v33  ;;  %v10926_v21 = vld [vmem:[#allocation3 + $0x1ef] sm:$0xff] }
 0x5ca   :  { %v3869_v33 = vld [vmem:[#allocation3 + $0x411] sm:$0xff] }
 0x5cb   :  { %4190 = vmatmul.mubr.f32.gmra.mrb[82].mxu1 %v10885_v26 }
 0x5cc   :  { %7366 = vmatmul.mubr.f32.gmra.mrb[188].mxu0 %v3849_v10  ;;  %4194 = vmatprep.mubr.f32.mxu1 %v3109_v47  ;;  %v3854_v47 = vld [vmem:[#allocation3 + $0x329] sm:$0xff]  ;;  %v3871_v10 = vld [vmem:[#allocation3 + $0x431] sm:$0xff] }
 0x5cd   :  { %7368 = vmatprep.mubr.f32.mxu0 %v3850_v18  ;;  %v3872_v18 = vld [vmem:[#allocation3 + $0x449] sm:$0xff] }
 0x5cf   :  { %4195 = vmatmul.mubr.f32.gmra.mrb[84].mxu1 %v10890_v63 }
 0x5d0   :  { %7369 = vmatmul.mubr.f32.gmra.mrb[190].mxu0 %v3851_v40  ;;  %4199 = vmatprep.mubr.f32.mxu1 %v3110_v30  ;;  %v3936_v30 = vld [vmem:[#allocation9 + $0x1e0] sm:$0xff]  ;;  %v3332_v40 = vld [vmem:[#allocation3 + $0x24f] sm:$0xff] }
 0x5d1   :  { %7371 = vmatprep.mubr.f32.mxu0 %v3852_v35  ;;  %v7850_v2 = vpack.c.bf16 %v3937_v60, %v3936_v30  ;;  %v3873_v35 = vld [vmem:[#allocation3 + $0x451] sm:$0xff]  ;;  %v3399_v30 = vld [vmem:[#allocation3 + $0x288] sm:$0xff] }
 0x5d2   :  { %v10935_v60 = vld [vmem:[#allocation3 + $0x287] sm:$0xff] }
 0x5d3   :  { %4200 = vmatmul.mubr.f32.gmra.mrb[86].mxu1 %v10896_v31 }
 0x5d4   :  { %7372 = vmatmul.mubr.f32.gmra.mrb[192].mxu0 %v3853_v61  ;;  %4204 = vmatprep.mubr.f32.mxu1 %v3111_v3  ;;  %v3389_v3 = vld [vmem:[#allocation3 + $0x1a8] sm:$0xff] }
 0x5d5   :  { %7374 = vmatprep.mubr.f32.mxu0 %v3854_v47  ;;  %7851 = vmatpush1.bf16.msra.mxu1 %v7850_v2  ;;  %v3397_v61 = vld [vmem:[#allocation3 + $0x268] sm:$0xff]  ;;  %v3400_v2 = vld [vmem:[#allocation3 + $0x290] sm:$0xff] }
 0x5d6   :  { %7852 = vmatprep.subr.bf16.mxu1 %v12409_v15  ;;  %v10929_v47 = vld [vmem:[#allocation3 + $0x267] sm:$0xff] }
 0x5d7   :  { %4205 = vmatmul.mubr.f32.gmra.mrb[88].mxu1 %v10901_v34 }
 0x5d8   :  { %7375 = vmatmul.mubr.f32.gmra.mrb[194].mxu0 %v3855_v5  ;;  %4209 = vmatprep.mubr.f32.mxu1 %v3112_v12  ;;  %v3390_v12 = vld [vmem:[#allocation3 + $0x1b0] sm:$0xff] }
 0x5d9   :  { %7377 = vmatprep.mubr.f32.mxu0 %v3856_v11  ;;  %7854 = vmatpush1.bf16.msra.mxu1 %v7853_v57  ;;  %v3398_v5 = vld [vmem:[#allocation3 + $0x270] sm:$0xff]  ;;  %v10959_v57 = vld [vmem:[#allocation3 + $0x307] sm:$0xff] }
 0x5da   :  { %7855 = vmatprep.subr.bf16.mxu1 %v12409_v15  ;;  %v10932_v11 = vld [vmem:[#allocation3 + $0x26f] sm:$0xff] }
 0x5db   :  { %4210 = vmatmul.mubr.f32.gmra.mrb[90].mxu1 %v10906_v9 }
 0x5dc   :  { %7378 = vmatmul.mubr.f32.gmra.mrb[196].mxu0 %v3857_v41  ;;  %4214 = vmatprep.mubr.f32.mxu1 %v3389_v3  ;;  %v10938_v41 = vld [vmem:[#allocation3 + $0x28f] sm:$0xff] }
 0x5dd   :  { %7380 = vmatprep.mubr.f32.mxu0 %v3858_v56  ;;  %v3401_v3 = vld [vmem:[#allocation3 + $0x2a8] sm:$0xff] }
 0x5de   :  { %v10941_v56 = vld [vmem:[#allocation3 + $0x2a7] sm:$0xff] }
 0x5df   :  { %4215 = vmatmul.mubr.f32.gmra.mrb[92].mxu1 %v10909_v55 }
 0x5e0   :  { %7381 = vmatmul.mubr.f32.gmra.mrb[198].mxu0 %v3859_v24  ;;  %4219 = vmatprep.mubr.f32.mxu1 %v3390_v12  ;;  %v3402_v24 = vld [vmem:[#allocation3 + $0x2b0] sm:$0xff] }
 0x5e1   :  { %7383 = vmatprep.mubr.f32.mxu0 %v3860_v16  ;;  %v10944_v12 = vld [vmem:[#allocation3 + $0x2af] sm:$0xff] }
 0x5e2   :  { %v3403_v16 = vld [vmem:[#allocation3 + $0x2c8] sm:$0xff] }
 0x5e3   :  { %4220 = vmatmul.mubr.f32.gmra.mrb[94].mxu1 %v10913_v52 }
 0x5e4   :  { %7384 = vmatmul.mubr.f32.gmra.mrb[200].mxu0 %v3861_v46  ;;  %4224 = vmatprep.mubr.f32.mxu1 %v3391_v0  ;;  %v10947_v46 = vld [vmem:[#allocation3 + $0x2c7] sm:$0xff]  ;;  %v3404_v0 = vld [vmem:[#allocation3 + $0x2d0] sm:$0xff] }
 0x5e5   :  { %7386 = vmatprep.mubr.f32.mxu0 %v3862_v51  ;;  %v10950_v51 = vld [vmem:[#allocation3 + $0x2cf] sm:$0xff] }
 0x5e7   :  { %4225 = vmatmul.mubr.f32.gmra.mrb[96].mxu1 %v10916_v58 }
 0x5e8   :  { %7387 = vmatmul.mubr.f32.gmra.mrb[202].mxu0 %v3863_v19  ;;  %4229 = vmatprep.mubr.f32.mxu1 %v3392_v43  ;;  %v3405_v19 = vld [vmem:[#allocation3 + $0x2e8] sm:$0xff] }
 0x5e9   :  { %7389 = vmatprep.mubr.f32.mxu0 %v3864_v54  ;;  %v10953_v43 = vld [vmem:[#allocation3 + $0x2e7] sm:$0xff]  ;;  %v3406_v54 = vld [vmem:[#allocation3 + $0x2f0] sm:$0xff] }
 0x5eb   :  { %4230 = vmatmul.mubr.f32.gmra.mrb[98].mxu1 %v10919_v42 }
 0x5ec   :  { %7390 = vmatmul.mubr.f32.gmra.mrb[204].mxu0 %v3865_v29  ;;  %4234 = vmatprep.mubr.f32.mxu1 %v3393_v22  ;;  %v3408_v29 = vld [vmem:[#allocation3 + $0x310] sm:$0xff] }
 0x5ed   :  { %7392 = vmatprep.mubr.f32.mxu0 %v3866_v6  ;;  %v10962_v22 = vld [vmem:[#allocation3 + $0x30f] sm:$0xff] }
 0x5ee   :  { %v3409_v6 = vld [vmem:[#allocation3 + $0x328] sm:$0xff] }
 0x5ef   :  { %4235 = vmatmul.mubr.f32.gmra.mrb[100].mxu1 %v10922_v48 }
 0x5f0   :  { %7393 = vmatmul.mubr.f32.gmra.mrb[206].mxu0 %v3867_v28  ;;  %4239 = vmatprep.mubr.f32.mxu1 %v3394_v1  ;;  %v10965_v28 = vld [vmem:[#allocation3 + $0x327] sm:$0xff]  ;;  %v3410_v1 = vld [vmem:[#allocation3 + $0x330] sm:$0xff] }
 0x5f1   :  { %7395 = vmatprep.mubr.f32.mxu0 %v3868_v38  ;;  %v10968_v38 = vld [vmem:[#allocation3 + $0x32f] sm:$0xff] }
 0x5f3   :  { %4240 = vmatmul.mubr.f32.gmra.mrb[102].mxu1 %v10926_v21 }
 0x5f4   :  { %7396 = vmatmul.mubr.f32.gmra.mrb[208].mxu0 %v3869_v33  ;;  %4244 = vmatprep.mubr.f32.mxu1 %v8812_v37  ;;  %v3411_v33 = vld [vmem:[#allocation3 + $0x348] sm:$0xff] }
 0x5f5   :  { %7398 = vmatprep.mubr.f32.mxu0 %v3870_v49  ;;  %v10971_v49 = vld [vmem:[#allocation3 + $0x347] sm:$0xff] }
 0x5f7   :  { %4245 = vmatmul.mubr.f32.gmra.mrb[104].mxu1 %v3331_v62  ;;  %v10974_v62 = vld [vmem:[#allocation3 + $0x34f] sm:$0xff] }
 0x5f8   :  { %7399 = vmatmul.mubr.f32.gmra.mrb[210].mxu0 %v3871_v10  ;;  %4249 = vmatprep.mubr.f32.mxu1 %v8812_v37  ;;  %v3412_v37 = vld [vmem:[#allocation3 + $0x350] sm:$0xff]  ;;  %v3413_v10 = vld [vmem:[#allocation3 + $0x368] sm:$0xff] }
 0x5f9   :  { %7401 = vmatprep.mubr.f32.mxu0 %v3872_v18  ;;  %v10977_v18 = vld [vmem:[#allocation3 + $0x367] sm:$0xff] }
 0x5fb   :  { %4250 = vmatmul.mubr.f32.gmra.mrb[106].mxu1 %v3332_v40  ;;  %v3414_v40 = vld [vmem:[#allocation3 + $0x370] sm:$0xff] }
 0x5fc   :  { %7402 = vmatmul.mubr.f32.gmra.mrb[212].mxu0 %v3873_v35  ;;  %4254 = vmatprep.mubr.f32.mxu1 %v3397_v61  ;;  %v10980_v35 = vld [vmem:[#allocation3 + $0x36f] sm:$0xff] }
 0x5fd   :  { %v3415_v61 = vld [vmem:[#allocation3 + $0x388] sm:$0xff] }
 0x5ff   :  { %4255 = vmatmul.mubr.f32.gmra.mrb[108].mxu1 %v10929_v47 }
 0x600   :  { %4259 = vmatprep.mubr.f32.mxu1 %v3398_v5  ;;  %v10983_v5 = vld [vmem:[#allocation3 + $0x387] sm:$0xff] }
 0x603   :  { %4260 = vmatmul.mubr.f32.gmra.mrb[110].mxu1 %v10932_v11 }
 0x604   :  { %4264 = vmatprep.mubr.f32.mxu1 %v3399_v30  ;;  %v3416_v30 = vld [vmem:[#allocation3 + $0x390] sm:$0xff] }
 0x607   :  { %4265 = vmatmul.mubr.f32.gmra.mrb[112].mxu1 %v10935_v60 }
 0x608   :  { %4269 = vmatprep.mubr.f32.mxu1 %v3400_v2  ;;  %v10986_v2 = vld [vmem:[#allocation3 + $0x38f] sm:$0xff] }
 0x60b   :  { %4270 = vmatmul.mubr.f32.gmra.mrb[114].mxu1 %v10938_v41 }
 0x60c   :  { %4274 = vmatprep.mubr.f32.mxu1 %v3401_v3  ;;  %v3417_v3 = vld [vmem:[#allocation3 + $0x3a8] sm:$0xff] }
 0x60f   :  { %4275 = vmatmul.mubr.f32.gmra.mrb[116].mxu1 %v10941_v56 }
 0x610   :  { %4279 = vmatprep.mubr.f32.mxu1 %v3402_v24  ;;  %v10989_v24 = vld [vmem:[#allocation3 + $0x3a7] sm:$0xff] }
 0x613   :  { %4280 = vmatmul.mubr.f32.gmra.mrb[118].mxu1 %v10944_v12 }
 0x614   :  { %4284 = vmatprep.mubr.f32.mxu1 %v3403_v16  ;;  %v3418_v16 = vld [vmem:[#allocation3 + $0x3b0] sm:$0xff] }
 0x617   :  { %4285 = vmatmul.mubr.f32.gmra.mrb[120].mxu1 %v10947_v46 }
 0x618   :  { %4289 = vmatprep.mubr.f32.mxu1 %v3404_v0  ;;  %v10992_v0 = vld [vmem:[#allocation3 + $0x3af] sm:$0xff] }
 0x619   :  { %12432 = vst [vmem:[#allocation27_spill] sm:$0xff] %v10992_v0 }
 0x61b   :  { %4290 = vmatmul.mubr.f32.gmra.mrb[122].mxu1 %v10950_v51 }
 0x61c   :  { %4294 = vmatprep.mubr.f32.mxu1 %v3405_v19  ;;  %v3419_v19 = vld [vmem:[#allocation3 + $0x3c8] sm:$0xff] }
 0x61f   :  { %4295 = vmatmul.mubr.f32.gmra.mrb[124].mxu1 %v10953_v43 }
 0x620   :  { %4299 = vmatprep.mubr.f32.mxu1 %v3406_v54  ;;  %v10995_v54 = vld [vmem:[#allocation3 + $0x3c7] sm:$0xff] }
 0x621   :  { %12433 = vst [vmem:[#allocation26_spill] sm:$0xff] %v10995_v54 }
 0x623   :  { %4300 = vmatmul.mubr.f32.gmra.mrb[126].mxu1 %v10956_v23 }
 0x624   :  { %4304 = vmatprep.mubr.f32.mxu1 %v3407_v4 }
 0x627   :  { %4305 = vmatmul.mubr.f32.gmra.mrb[128].mxu1 %v10959_v57 }
 0x628   :  { %4309 = vmatprep.mubr.f32.mxu1 %v3408_v29  ;;  %v3420_v29 = vld [vmem:[#allocation3 + $0x3d0] sm:$0xff] }
 0x62b   :  { %4310 = vmatmul.mubr.f32.gmra.mrb[130].mxu1 %v10962_v22 }
 0x62c   :  { %4314 = vmatprep.mubr.f32.mxu1 %v3409_v6 }
 0x62f   :  { %4315 = vmatmul.mubr.f32.gmra.mrb[132].mxu1 %v10965_v28 }
 0x630   :  { %4319 = vmatprep.mubr.f32.mxu1 %v3410_v1  ;;  %v11002_v1 = vld [vmem:[#allocation3 + $0x3cf] sm:$0xff] }
 0x631   :  { %12436 = vst [vmem:[#allocation22_spill] sm:$0xff] %v11002_v1 }
 0x633   :  { %4320 = vmatmul.mubr.f32.gmra.mrb[134].mxu1 %v10968_v38 }
 0x634   :  { %4324 = vmatprep.mubr.f32.mxu1 %v3411_v33 }
 0x637   :  { %4325 = vmatmul.mubr.f32.gmra.mrb[136].mxu1 %v10971_v49 }
 0x638   :  { %4329 = vmatprep.mubr.f32.mxu1 %v3412_v37  ;;  %v3421_v37 = vld [vmem:[#allocation3 + $0x3e8] sm:$0xff] }
 0x63b   :  { %4330 = vmatmul.mubr.f32.gmra.mrb[138].mxu1 %v10974_v62 }
 0x63c   :  { %4334 = vmatprep.mubr.f32.mxu1 %v3413_v10 }
 0x63f   :  { %4335 = vmatmul.mubr.f32.gmra.mrb[140].mxu1 %v10977_v18 }
 0x640   :  { %4339 = vmatprep.mubr.f32.mxu1 %v3414_v40  ;;  %v11009_v40 = vld [vmem:[#allocation3 + $0x3e7] sm:$0xff] }
 0x641   :  { %12439 = vst [vmem:[#allocation24_spill] sm:$0xff] %v11009_v40 }
 0x643   :  { %4340 = vmatmul.mubr.f32.gmra.mrb[142].mxu1 %v10980_v35 }
 0x644   :  { %4344 = vmatprep.mubr.f32.mxu1 %v3415_v61 }
 0x647   :  { %4345 = vmatmul.mubr.f32.gmra.mrb[144].mxu1 %v10983_v5 }
 0x648   :  { %4349 = vmatprep.mubr.f32.mxu1 %v3416_v30  ;;  %v3422_v30 = vld [vmem:[#allocation3 + $0x3f0] sm:$0xff] }
 0x64b   :  { %4350 = vmatmul.mubr.f32.gmra.mrb[146].mxu1 %v10986_v2 }
 0x64c   :  { %4354 = vmatprep.mubr.f32.mxu1 %v3417_v3 }
 0x64f   :  { %4355 = vmatmul.mubr.f32.gmra.mrb[148].mxu1 %v10989_v24 }
 0x650   :  { %4359 = vmatprep.mubr.f32.mxu1 %v3418_v16  ;;  %v11016_v16 = vld [vmem:[#allocation3 + $0x3ef] sm:$0xff] }
 0x651   :  { %12442 = vst [vmem:[#allocation21_spill] sm:$0xff] %v11016_v16 }
 0x653   :  { %4360 = vmatmul.mubr.f32.gmra.mrb[150].mxu1 %v10992_v0  ;;  %v3945_v0 = vld [vmem:[#allocation9 + $0x228] sm:$0xff] }
 0x654   :  { %4364 = vmatprep.mubr.f32.mxu1 %v3419_v19 }
 0x657   :  { %v10997_v4 = vpop.f32.mrb[152].mxu0  ;;  %4365 = vmatmul.mubr.f32.gmra.mrb[152].mxu1 %v10995_v54  ;;  %v3428_v54 = vld [vmem:[#allocation3 + $0x11] sm:$0xff] }
 0x658   :  { %12434 = vst [vmem:[#allocation17_spill] sm:$0xff] %v10997_v4  ;;  %v11000_v6 = vpop.f32.mrb[153].mxu0  ;;  %4369 = vmatprep.mubr.f32.mxu1 %v3420_v29  ;;  %v3423_v29 = vld [vmem:[#allocation3 + $0x408] sm:$0xff] }
 0x659   :  { %12435 = vst [vmem:[#allocation28_spill] sm:$0xff] %v11000_v6 }
 0x65b   :  { %v11004_v33 = vpop.f32.mrb[154].mxu0  ;;  %4370 = vmatmul.mubr.f32.gmra.mrb[154].mxu1 %v11002_v1 }
 0x65c   :  { %12437 = vst [vmem:[#allocation18_spill] sm:$0xff] %v11004_v33  ;;  %v11007_v10 = vpop.f32.mrb[155].mxu0  ;;  %4374 = vmatprep.mubr.f32.mxu1 %v3421_v37  ;;  %v11023_v37 = vld [vmem:[#allocation3 + $0x407] sm:$0xff] }
 0x65d   :  { %12438 = vst [vmem:[#allocation29_spill] sm:$0xff] %v11007_v10  ;;  %12445 = vst [vmem:[#allocation23_spill] sm:$0xff] %v11023_v37 }
 0x65f   :  { %v11011_v61 = vpop.f32.mrb[156].mxu0  ;;  %4375 = vmatmul.mubr.f32.gmra.mrb[156].mxu1 %v11009_v40  ;;  %v3942_v40 = vld [vmem:[#allocation9 + $0x210] sm:$0xff] }
 0x660   :  { %12440 = vst [vmem:[#allocation19_spill] sm:$0xff] %v11011_v61  ;;  %v11014_v3 = vpop.f32.mrb[157].mxu0  ;;  %4379 = vmatprep.mubr.f32.mxu1 %v3422_v30  ;;  %v3424_v61 = vld [vmem:[#allocation3 + $0x410] sm:$0xff] }
 0x661   :  { %12441 = vst [vmem:[#allocation30_spill] sm:$0xff] %v11014_v3  ;;  %v11030_v30 = vld [vmem:[#allocation3 + $0x40f] sm:$0xff] }
 0x662   :  { %12448 = vst [vmem:[#allocation33_spill] sm:$0xff] %v11030_v30 }
 0x663   :  { %v11018_v19 = vpop.f32.mrb[158].mxu0  ;;  %4380 = vmatmul.mubr.f32.gmra.mrb[158].mxu1 %v11016_v16  ;;  %v11044_v16 = vld [vmem:[#allocation3 + $0x42f] sm:$0xff] }
 0x664   :  { %12443 = vst [vmem:[#allocation20_spill] sm:$0xff] %v11018_v19  ;;  %v11021_v33 = vpop.f32.mrb[159].mxu0  ;;  %4384 = vmatprep.mubr.f32.mxu1 %v3423_v29  ;;  %v3425_v19 = vld [vmem:[#allocation3 + $0x428] sm:$0xff]  ;;  %12454 = vst [vmem:[#allocation39_spill] sm:$0xff] %v11044_v16 }
 0x665   :  { %12444 = vst [vmem:[#allocation25_spill] sm:$0xff] %v11021_v33  ;;  %v11037_v29 = vld [vmem:[#allocation3 + $0x427] sm:$0xff] }
 0x666   :  { %12451 = vst [vmem:[#allocation36_spill] sm:$0xff] %v11037_v29 }
 0x667   :  { %v11025_v10 = vpop.f32.mrb[160].mxu0  ;;  %4385 = vmatmul.mubr.f32.gmra.mrb[160].mxu1 %v11023_v37 }
 0x668   :  { %12446 = vst [vmem:[#allocation32_spill] sm:$0xff] %v11025_v10  ;;  %v11028_v4 = vpop.f32.mrb[161].mxu0  ;;  %4389 = vmatprep.mubr.f32.mxu1 %v3424_v61  ;;  %v3426_v10 = vld [vmem:[#allocation3 + $0x430] sm:$0xff]  ;;  %v3940_v61 = vld [vmem:[#allocation9 + $0x200] sm:$0xff] }
 0x669   :  { %12447 = vst [vmem:[#allocation31_spill] sm:$0xff] %v11028_v4  ;;  %v3941_v4 = vld [vmem:[#allocation9 + $0x208] sm:$0xff] }
 0x66b   :  { %v11032_v3 = vpop.f32.mrb[162].mxu0  ;;  %4390 = vmatmul.mubr.f32.gmra.mrb[162].mxu1 %v11030_v30  ;;  %v3427_v30 = vld [vmem:[#allocation3 + $0x9] sm:$0xff] }
 0x66c   :  { %12449 = vst [vmem:[#allocation34_spill] sm:$0xff] %v11032_v3  ;;  %v11035_v6 = vpop.f32.mrb[163].mxu0  ;;  %4394 = vmatprep.mubr.f32.mxu1 %v3425_v19 }
 0x66d   :  { %12450 = vst [vmem:[#allocation35_spill] sm:$0xff] %v11035_v6  ;;  %v3491_v6 = vld [vmem:[#allocation3 + $0x27] sm:$0xff] }
 0x66f   :  { %v11039_v33 = vpop.f32.mrb[164].mxu0  ;;  %4395 = vmatmul.mubr.f32.gmra.mrb[164].mxu1 %v11037_v29  ;;  %v3943_v29 = vld [vmem:[#allocation9 + $0x218] sm:$0xff] }
 0x670   :  { %12452 = vst [vmem:[#allocation37_spill] sm:$0xff] %v11039_v33  ;;  %v11042_v37 = vpop.f32.mrb[165].mxu0  ;;  %4399 = vmatprep.mubr.f32.mxu1 %v3426_v10  ;;  %v7856_v33 = vpack.c.bf16 %v3941_v4, %v3940_v61  ;;  %v3492_v10 = vld [vmem:[#allocation3 + $0x2f] sm:$0xff]  ;;  %v3493_v4 = vld [vmem:[#allocation3 + $0x47] sm:$0xff] }
 0x671   :  { %12453 = vst [vmem:[#allocation38_spill] sm:$0xff] %v11042_v37  ;;  %v3946_v61 = vld [vmem:[#allocation9 + $0x230] sm:$0xff] }
 0x673   :  { %v11046_v3 = vpop.f32.mrb[166].mxu0  ;;  %4400 = vmatmul.mubr.f32.gmra.mrb[166].mxu1 %v11044_v16  ;;  %v3944_v16 = vld [vmem:[#allocation9 + $0x220] sm:$0xff] }
 0x674   :  { %12455 = vst [vmem:[#allocation40_spill] sm:$0xff] %v11046_v3  ;;  %v11049_v19 = vpop.f32.mrb[167].mxu0  ;;  %4469 = vmatprep.mubr.f32.mxu1 %v3491_v6  ;;  %v7859_v3 = vpack.c.bf16 %v3943_v29, %v3942_v40 }
 0x675   :  { %12456 = vst [vmem:[#allocation41_spill] sm:$0xff] %v11049_v19 }
 0x677   :  { %v11051_v1 = vpop.f32.mrb[168].mxu0  ;;  %4470 = vmatmul.mubr.f32.vlgmr.msra.gmra.mrb[40].mxu1 %v3427_v30  ;;  %v7862_v30 = vpack.c.bf16 %v3945_v0, %v3944_v16  ;;  %v3949_v0 = vld [vmem:[#allocation9 + $0x248] sm:$0xff]  ;;  %v11070_v16 = vld [vmem:[#allocation3 + $0x31] sm:$0xff] }
 0x678   :  { %12457 = vst [vmem:[#allocation42_spill] sm:$0xff] %v11051_v1  ;;  %v11053_v37 = vpop.f32.mrb[169].mxu0  ;;  %4474 = vmatprep.mubr.f32.mxu1 %v3492_v10  ;;  %7857 = vmatpush1.bf16.msra.mxu1 %v7856_v33  ;;  %v3947_v10 = vld [vmem:[#allocation9 + $0x238] sm:$0xff]  ;;  %v11061_v33 = vld [vmem:[#allocation3 + $0x29] sm:$0xff] }
 0x679   :  { %12458 = vst [vmem:[#allocation43_spill] sm:$0xff] %v11053_v37  ;;  %7858 = vmatprep.subr.bf16.mxu1 %v12409_v15  ;;  %v11387_v1 = vld [vmem:[#allocation3 + $0x411] sm:$0xff]  ;;  %v11390_v37 = vld [vmem:[#allocation3 + $0x429] sm:$0xff] }
 0x67b   :  { %v11056_v19 = vpop.f32.mrb[170].mxu0  ;;  %4475 = vmatmul.mubr.f32.gmra.mrb[42].mxu1 %v3428_v54  ;;  %v7865_v54 = vpack.c.bf16 %v3947_v10, %v3946_v61  ;;  %v11079_v61 = vld [vmem:[#allocation3 + $0x49] sm:$0xff] }
 0x67c   :  { %12459 = vst [vmem:[#allocation44_spill] sm:$0xff] %v11056_v19  ;;  %v11058_v6 = vpop.f32.mrb[171].mxu0  ;;  %4479 = vmatprep.mubr.f32.mxu1 %v3493_v4  ;;  %7860 = vmatpush1.bf16.msra.mxu1 %v7859_v3  ;;  %v3948_v3 = vld [vmem:[#allocation9 + $0x240] sm:$0xff] }
 0x67d   :  { %12460 = vst [vmem:[#allocation45_spill] sm:$0xff] %v11058_v6  ;;  %7861 = vmatprep.subr.bf16.mxu1 %v12409_v15  ;;  %v11383_v6 = vld [vmem:[#allocation3 + $0x409] sm:$0xff] }
 0x67f   :  { %v11063_v40 = vpop.f32.mrb[172].mxu0  ;;  %4480 = vmatmul.mubr.f32.gmra.mrb[44].mxu1 %v11061_v33 }
 0x680   :  { %12461 = vst [vmem:[#allocation46_spill] sm:$0xff] %v11063_v40  ;;  %v11066_v29 = vpop.f32.mrb[173].mxu0  ;;  %4484 = vmatprep.mubr.f32.mxu1 %v10711_v14  ;;  %7863 = vmatpush1.bf16.msra.mxu1 %v7862_v30  ;;  %v7868_v40 = vpack.c.bf16 %v3949_v0, %v3948_v3  ;;  %v3950_v14 = vld [vmem:[#allocation9 + $0x250] sm:$0xff]  ;;  %v3951_v30 = vld [vmem:[#allocation9 + $0x258] sm:$0xff] }
 0x681   :  { %12462 = vst [vmem:[#allocation47_spill] sm:$0xff] %v11066_v29  ;;  %7864 = vmatprep.subr.bf16.mxu1 %v12409_v15  ;;  %v11088_v3 = vld [vmem:[#allocation3 + $0x51] sm:$0xff] }
 0x683   :  { %v11072_v4 = vpop.f32.mrb[174].mxu0  ;;  %4485 = vmatmul.mubr.f32.gmra.mrb[46].mxu1 %v11070_v16 }
 0x684   :  { %12463 = vst [vmem:[#allocation48_spill] sm:$0xff] %v11072_v4  ;;  %v11075_v19 = vpop.f32.mrb[175].mxu0  ;;  %4489 = vmatprep.mubr.f32.mxu1 %v10732_v20  ;;  %7866 = vmatpush1.bf16.msra.mxu1 %v7865_v54  ;;  %v7871_v4 = vpack.c.bf16 %v3951_v30, %v3950_v14  ;;  %v3952_v20 = vld [vmem:[#allocation9 + $0x260] sm:$0xff]  ;;  %v3953_v54 = vld [vmem:[#allocation9 + $0x268] sm:$0xff] }
 0x685   :  { %12464 = vst [vmem:[#allocation49_spill] sm:$0xff] %v11075_v19  ;;  %7867 = vmatprep.subr.bf16.mxu1 %v12409_v15  ;;  %v11097_v14 = vld [vmem:[#allocation3 + $0x69] sm:$0xff] }
 0x687   :  { %v11081_v10 = vpop.f32.mrb[176].mxu0  ;;  %4490 = vmatmul.mubr.f32.gmra.mrb[48].mxu1 %v11079_v61 }
 0x688   :  { %12465 = vst [vmem:[#allocation50_spill] sm:$0xff] %v11081_v10  ;;  %v11084_v29 = vpop.f32.mrb[177].mxu0  ;;  %4494 = vmatprep.mubr.f32.mxu1 %v10754_v53  ;;  %7869 = vmatpush1.bf16.msra.mxu1 %v7868_v40  ;;  %v7874_v10 = vpack.c.bf16 %v3953_v54, %v3952_v20  ;;  %v3954_v53 = vld [vmem:[#allocation9 + $0x270] sm:$0xff]  ;;  %v3955_v40 = vld [vmem:[#allocation9 + $0x278] sm:$0xff] }
 0x689   :  { %12466 = vst [vmem:[#allocation51_spill] sm:$0xff] %v11084_v29  ;;  %7870 = vmatprep.subr.bf16.mxu1 %v12409_v15  ;;  %v11106_v20 = vld [vmem:[#allocation3 + $0x71] sm:$0xff] }
 0x68b   :  { %v11090_v0 = vpop.f32.mrb[178].mxu0  ;;  %4495 = vmatmul.mubr.f32.gmra.mrb[50].mxu1 %v11088_v3 }
 0x68c   :  { %12467 = vst [vmem:[#allocation52_spill] sm:$0xff] %v11090_v0  ;;  %v11093_v19 = vpop.f32.mrb[179].mxu0  ;;  %4499 = vmatprep.mubr.f32.mxu1 %v10775_v7  ;;  %7872 = vmatpush1.bf16.msra.mxu1 %v7871_v4  ;;  %v7877_v0 = vpack.c.bf16 %v3955_v40, %v3954_v53  ;;  %v3956_v7 = vld [vmem:[#allocation9 + $0x280] sm:$0xff]  ;;  %v3957_v4 = vld [vmem:[#allocation9 + $0x288] sm:$0xff] }
 0x68d   :  { %12468 = vst [vmem:[#allocation53_spill] sm:$0xff] %v11093_v19  ;;  %7873 = vmatprep.subr.bf16.mxu1 %v12409_v15  ;;  %v11115_v53 = vld [vmem:[#allocation3 + $0x89] sm:$0xff] }
 0x68f   :  { %v11099_v30 = vpop.f32.mrb[180].mxu0  ;;  %4500 = vmatmul.mubr.f32.gmra.mrb[52].mxu1 %v11097_v14 }
 0x690   :  { %12469 = vst [vmem:[#allocation54_spill] sm:$0xff] %v11099_v30  ;;  %v11102_v29 = vpop.f32.mrb[181].mxu0  ;;  %4504 = vmatprep.mubr.f32.mxu1 %v10796_v59  ;;  %7875 = vmatpush1.bf16.msra.mxu1 %v7874_v10  ;;  %v3958_v59 = vld [vmem:[#allocation9 + $0x290] sm:$0xff]  ;;  %v3959_v10 = vld [vmem:[#allocation9 + $0x298] sm:$0xff] }
 0x691   :  { %12470 = vst [vmem:[#allocation55_spill] sm:$0xff] %v11102_v29  ;;  %7876 = vmatprep.subr.bf16.mxu1 %v12409_v15  ;;  %v7880_v29 = vpack.c.bf16 %v3957_v4, %v3956_v7  ;;  %v3961_v7 = vld [vmem:[#allocation9 + $0x2a8] sm:$0xff]  ;;  %v11124_v4 = vld [vmem:[#allocation3 + $0x91] sm:$0xff] }
 0x693   :  { %4505 = vmatmul.mubr.f32.gmra.mrb[54].mxu1 %v11106_v20  ;;  %v11109_v54 = vpop.f32.mrb[182].mxu0 }
 0x694   :  { %12471 = vst [vmem:[#allocation56_spill] sm:$0xff] %v11109_v54  ;;  %4509 = vmatprep.mubr.f32.mxu1 %v10816_v36  ;;  %v11112_v30 = vpop.f32.mrb[183].mxu0  ;;  %7878 = vmatpush1.bf16.msra.mxu1 %v7877_v0  ;;  %v7883_v36 = vpack.c.bf16 %v3959_v10, %v3958_v59  ;;  %v3960_v0 = vld [vmem:[#allocation9 + $0x2a0] sm:$0xff]  ;;  %v11142_v10 = vld [vmem:[#allocation3 + $0xb1] sm:$0xff] }
 0x695   :  { %12472 = vst [vmem:[#allocation57_spill] sm:$0xff] %v11112_v30  ;;  %7879 = vmatprep.subr.bf16.mxu1 %v12409_v15 }
 0x697   :  { %v11117_v40 = vpop.f32.mrb[184].mxu0  ;;  %4510 = vmatmul.mubr.f32.gmra.mrb[56].mxu1 %v11115_v53 }
 0x698   :  { %12473 = vst [vmem:[#allocation58_spill] sm:$0xff] %v11117_v40  ;;  %v11120_v19 = vpop.f32.mrb[185].mxu0  ;;  %4514 = vmatprep.mubr.f32.mxu1 %v10831_v45  ;;  %7881 = vmatpush1.bf16.msra.mxu1 %v7880_v29  ;;  %v7886_v40 = vpack.c.bf16 %v3961_v7, %v3960_v0  ;;  %v11133_v45 = vld [vmem:[#allocation3 + $0xa9] sm:$0xff] }
 0x699   :  { %12474 = vst [vmem:[#allocation59_spill] sm:$0xff] %v11120_v19  ;;  %7882 = vmatprep.subr.bf16.mxu1 %v12409_v15  ;;  %v11150_v0 = vld [vmem:[#allocation3 + $0xc9] sm:$0xff]  ;;  %v11379_v19 = vld [vmem:[#allocation3 + $0x3f1] sm:$0xff] }
 0x69b   :  { %v11126_v54 = vpop.f32.mrb[186].mxu0  ;;  %4515 = vmatmul.mubr.f32.gmra.mrb[58].mxu1 %v11124_v4 }
 0x69c   :  { %12475 = vst [vmem:[#allocation60_spill] sm:$0xff] %v11126_v54  ;;  %v11129_v30 = vpop.f32.mrb[187].mxu0  ;;  %4519 = vmatprep.mubr.f32.mxu1 %v10838_v17  ;;  %7884 = vmatpush1.bf16.msra.mxu1 %v7883_v36 }
 0x69d   :  { %12476 = vst [vmem:[#allocation61_spill] sm:$0xff] %v11129_v30  ;;  %7885 = vmatprep.subr.bf16.mxu1 %v12409_v15  ;;  %v11375_v30 = vld [vmem:[#allocation3 + $0x3e9] sm:$0xff] }
 0x69f   :  { %v11135_v29 = vpop.f32.mrb[188].mxu0  ;;  %4520 = vmatmul.mubr.f32.gmra.mrb[60].mxu1 %v11133_v45 }
 0x6a0   :  { %12477 = vst [vmem:[#allocation62_spill] sm:$0xff] %v11135_v29  ;;  %v11138_v59 = vpop.f32.mrb[189].mxu0  ;;  %4524 = vmatprep.mubr.f32.mxu1 %v10843_v44  ;;  %7887 = vmatpush1.bf16.msra.mxu1 %v7886_v40  ;;  %v3962_v40 = vld [vmem:[#allocation9 + $0x2b0] sm:$0xff]  ;;  %v3963_v29 = vld [vmem:[#allocation9 + $0x2b8] sm:$0xff] }
 0x6a1   :  { %12478 = vst [vmem:[#allocation63_spill] sm:$0xff] %v11138_v59  ;;  %7888 = vmatprep.subr.bf16.mxu1 %v12409_v15  ;;  %v7889_v59 = vpack.c.bf16 %v3963_v29, %v3962_v40  ;;  %v11175_v29 = vld [vmem:[#allocation3 + $0xf1] sm:$0xff] }
 0x6a3   :  { %v11144_v17 = vpop.f32.mrb[190].mxu0  ;;  %4525 = vmatmul.mubr.f32.gmra.mrb[62].mxu1 %v11142_v10 }
 0x6a4   :  { %12479 = vst [vmem:[#allocation64_spill] sm:$0xff] %v11144_v17  ;;  %v11147_v36 = vpop.f32.mrb[191].mxu0  ;;  %4529 = vmatprep.mubr.f32.mxu1 %v10848_v50  ;;  %v11158_v17 = vld [vmem:[#allocation3 + $0xd1] sm:$0xff]  ;;  %7890 = vmatpush1.bf16.msra.mxu1 %v7889_v59  ;;  %v11183_v59 = vld [vmem:[#allocation3 + $0x109] sm:$0xff] }
 0x6a5   :  { %12480 = vst [vmem:[#allocation65_spill] sm:$0xff] %v11147_v36  ;;  %7891 = vmatprep.subr.bf16.mxu1 %v12409_v15 }
 0x6a7   :  { %v11152_v7 = vpop.f32.mrb[192].mxu0  ;;  %4530 = vmatmul.mubr.f32.gmra.mrb[64].mxu1 %v11150_v0 }
 0x6a8   :  { %12481 = vst [vmem:[#allocation66_spill] sm:$0xff] %v11152_v7  ;;  %v11155_v44 = vpop.f32.mrb[193].mxu0  ;;  %4534 = vmatprep.mubr.f32.mxu1 %v10854_v13  ;;  %v11167_v7 = vld [vmem:[#allocation3 + $0xe9] sm:$0xff] }
 0x6a9   :  { %12482 = vst [vmem:[#allocation67_spill] sm:$0xff] %v11155_v44 }
 0x6ab   :  { %v11160_v54 = vpop.f32.mrb[194].mxu0  ;;  %4535 = vmatmul.mubr.f32.gmra.mrb[66].mxu1 %v11158_v17 }
 0x6ac   :  { %12483 = vst [vmem:[#allocation68_spill] sm:$0xff] %v11160_v54  ;;  %v11163_v50 = vpop.f32.mrb[195].mxu0  ;;  %4539 = vmatprep.mubr.f32.mxu1 %v10859_v8 }
 0x6ad   :  { %12484 = vst [vmem:[#allocation69_spill] sm:$0xff] %v11163_v50 }
 0x6af   :  { %v11169_v44 = vpop.f32.mrb[196].mxu0  ;;  %4540 = vmatmul.mubr.f32.gmra.mrb[68].mxu1 %v11167_v7 }
 0x6b0   :  { %12485 = vst [vmem:[#allocation70_spill] sm:$0xff] %v11169_v44  ;;  %v11172_v13 = vpop.f32.mrb[197].mxu0  ;;  %4544 = vmatprep.mubr.f32.mxu1 %v10864_v39  ;;  %v3964_v39 = vld [vmem:[#allocation9 + $0x2c0] sm:$0xff] }
 0x6b1   :  { %12486 = vst [vmem:[#allocation71_spill] sm:$0xff] %v11172_v13  ;;  %v3965_v13 = vld [vmem:[#allocation9 + $0x2c8] sm:$0xff] }
 0x6b2   :  { %v7892_v50 = vpack.c.bf16 %v3965_v13, %v3964_v39  ;;  %v11208_v13 = vld [vmem:[#allocation3 + $0x131] sm:$0xff] }
 0x6b3   :  { %v11177_v40 = vpop.f32.mrb[198].mxu0  ;;  %4545 = vmatmul.mubr.f32.gmra.mrb[70].mxu1 %v11175_v29 }
 0x6b4   :  { %12487 = vst [vmem:[#allocation72_spill] sm:$0xff] %v11177_v40  ;;  %v11180_v8 = vpop.f32.mrb[199].mxu0  ;;  %4549 = vmatprep.mubr.f32.mxu1 %v10869_v27  ;;  %v11191_v40 = vld [vmem:[#allocation3 + $0x111] sm:$0xff]  ;;  %7893 = vmatpush1.bf16.msra.mxu1 %v7892_v50  ;;  %v11216_v50 = vld [vmem:[#allocation3 + $0x149] sm:$0xff] }
 0x6b5   :  { %12488 = vst [vmem:[#allocation73_spill] sm:$0xff] %v11180_v8  ;;  %7894 = vmatprep.subr.bf16.mxu1 %v12409_v15 }
 0x6b7   :  { %v11185_v54 = vpop.f32.mrb[200].mxu0  ;;  %4550 = vmatmul.mubr.f32.gmra.mrb[72].mxu1 %v11183_v59 }
 0x6b8   :  { %12489 = vst [vmem:[#allocation74_spill] sm:$0xff] %v11185_v54  ;;  %v11188_v44 = vpop.f32.mrb[201].mxu0  ;;  %4554 = vmatprep.mubr.f32.mxu1 %v10875_v25  ;;  %v11200_v54 = vld [vmem:[#allocation3 + $0x129] sm:$0xff] }
 0x6b9   :  { %12490 = vst [vmem:[#allocation75_spill] sm:$0xff] %v11188_v44 }
 0x6bb   :  { %v11193_v36 = vpop.f32.mrb[202].mxu0  ;;  %4555 = vmatmul.mubr.f32.gmra.mrb[74].mxu1 %v11191_v40 }
 0x6bc   :  { %12491 = vst [vmem:[#allocation76_spill] sm:$0xff] %v11193_v36  ;;  %v11196_v27 = vpop.f32.mrb[203].mxu0  ;;  %4559 = vmatprep.mubr.f32.mxu1 %v10880_v32 }
 0x6bd   :  { %12492 = vst [vmem:[#allocation77_spill] sm:$0xff] %v11196_v27 }
 0x6bf   :  { %v11202_v44 = vpop.f32.mrb[204].mxu0  ;;  %4560 = vmatmul.mubr.f32.gmra.mrb[76].mxu1 %v11200_v54 }
 0x6c0   :  { %12493 = vst [vmem:[#allocation78_spill] sm:$0xff] %v11202_v44  ;;  %v11205_v25 = vpop.f32.mrb[205].mxu0  ;;  %4564 = vmatprep.mubr.f32.mxu1 %v10885_v26  ;;  %v3966_v26 = vld [vmem:[#allocation9 + $0x2d0] sm:$0xff] }
 0x6c1   :  { %12494 = vst [vmem:[#allocation79_spill] sm:$0xff] %v11205_v25  ;;  %v3967_v25 = vld [vmem:[#allocation9 + $0x2d8] sm:$0xff] }
 0x6c2   :  { %v7895_v27 = vpack.c.bf16 %v3967_v25, %v3966_v26  ;;  %v11241_v25 = vld [vmem:[#allocation3 + $0x171] sm:$0xff]  ;;  %v3969_v26 = vld [vmem:[#allocation9 + $0x2e8] sm:$0xff] }
 0x6c3   :  { %v11210_v39 = vpop.f32.mrb[206].mxu0  ;;  %4565 = vmatmul.mubr.f32.gmra.mrb[78].mxu1 %v11208_v13 }
 0x6c4   :  { %12495 = vst [vmem:[#allocation80_spill] sm:$0xff] %v11210_v39  ;;  %v11213_v32 = vpop.f32.mrb[207].mxu0  ;;  %4569 = vmatprep.mubr.f32.mxu1 %v10890_v63  ;;  %v11224_v39 = vld [vmem:[#allocation3 + $0x151] sm:$0xff]  ;;  %7896 = vmatpush1.bf16.msra.mxu1 %v7895_v27  ;;  %v3968_v27 = vld [vmem:[#allocation9 + $0x2e0] sm:$0xff] }
 0x6c5   :  { %12496 = vst [vmem:[#allocation81_spill] sm:$0xff] %v11213_v32  ;;  %7897 = vmatprep.subr.bf16.mxu1 %v12409_v15  ;;  %v11371_v32 = vld [vmem:[#allocation3 + $0x3d1] sm:$0xff] }
 0x6c7   :  { %v11218_v36 = vpop.f32.mrb[208].mxu0  ;;  %4570 = vmatmul.mubr.f32.gmra.mrb[80].mxu1 %v11216_v50 }
 0x6c8   :  { %12497 = vst [vmem:[#allocation82_spill] sm:$0xff] %v11218_v36  ;;  %v11221_v44 = vpop.f32.mrb[209].mxu0  ;;  %4574 = vmatprep.mubr.f32.mxu1 %v10896_v31  ;;  %v11233_v36 = vld [vmem:[#allocation3 + $0x169] sm:$0xff] }
 0x6c9   :  { %12498 = vst [vmem:[#allocation83_spill] sm:$0xff] %v11221_v44 }
 0x6cb   :  { %v11226_v8 = vpop.f32.mrb[210].mxu0  ;;  %4575 = vmatmul.mubr.f32.gmra.mrb[82].mxu1 %v11224_v39 }
 0x6cc   :  { %12499 = vst [vmem:[#allocation84_spill] sm:$0xff] %v11226_v8  ;;  %v11229_v63 = vpop.f32.mrb[211].mxu0  ;;  %4579 = vmatprep.mubr.f32.mxu1 %v10901_v34  ;;  %v11245_v34 = vld [vmem:[#allocation3 + $0x189] sm:$0xff]  ;;  %v11249_v8 = vld [vmem:[#allocation3 + $0x191] sm:$0xff] }
 0x6cd   :  { %12500 = vst [vmem:[#allocation85_spill] sm:$0xff] %v11229_v63  ;;  %v11273_v63 = vld [vmem:[#allocation3 + $0x1f1] sm:$0xff] }
 0x6cf   :  { %v11235_v44 = vpop.f32.mrb[212].mxu0  ;;  %4580 = vmatmul.mubr.f32.gmra.mrb[84].mxu1 %v11233_v36 }
 0x6d0   :  { %12501 = vst [vmem:[#allocation86_spill] sm:$0xff] %v11235_v44  ;;  %v11238_v31 = vpop.f32.mrb[213].mxu0  ;;  %4584 = vmatprep.mubr.f32.mxu1 %v10906_v9  ;;  %v7898_v44 = vpack.c.bf16 %v3969_v26, %v3968_v27  ;;  %v11254_v9 = vld [vmem:[#allocation3 + $0x1a9] sm:$0xff]  ;;  %v11266_v26 = vld [vmem:[#allocation3 + $0x1d1] sm:$0xff] }
 0x6d1   :  { %12502 = vst [vmem:[#allocation87_spill] sm:$0xff] %v11238_v31  ;;  %v11270_v31 = vld [vmem:[#allocation3 + $0x1e9] sm:$0xff] }
 0x6d2   :  { %7899 = vmatpush1.bf16.msra.mxu1 %v7898_v44  ;;  %v3971_v44 = vld [vmem:[#allocation9 + $0x2f8] sm:$0xff] }
 0x6d3   :  { %4585 = vmatmul.mubr.f32.gmra.mrb[86].mxu1 %v11241_v25  ;;  %7900 = vmatprep.subr.bf16.mxu1 %v12409_v15 }
 0x6d4   :  { %4589 = vmatprep.mubr.f32.mxu1 %v10909_v55  ;;  %v11258_v55 = vld [vmem:[#allocation3 + $0x1b1] sm:$0xff] }
 0x6d7   :  { %4590 = vmatmul.mubr.f32.gmra.mrb[88].mxu1 %v11245_v34 }
 0x6d8   :  { %4594 = vmatprep.mubr.f32.mxu1 %v10913_v52  ;;  %v11262_v52 = vld [vmem:[#allocation3 + $0x1c9] sm:$0xff] }
 0x6db   :  { %4595 = vmatmul.mubr.f32.gmra.mrb[90].mxu1 %v11249_v8 }
 0x6dc   :  { %4599 = vmatprep.mubr.f32.mxu1 %v10916_v58  ;;  %v3970_v58 = vld [vmem:[#allocation9 + $0x2f0] sm:$0xff] }
 0x6dd   :  { %v7901_v27 = vpack.c.bf16 %v3971_v44, %v3970_v58  ;;  %v3460_v58 = vld [vmem:[#allocation3 + $0x251] sm:$0xff]  ;;  %v11279_v44 = vld [vmem:[#allocation3 + $0x269] sm:$0xff] }
 0x6df   :  { %4600 = vmatmul.mubr.f32.gmra.mrb[92].mxu1 %v11254_v9 }
 0x6e0   :  { %4604 = vmatprep.mubr.f32.mxu1 %v10919_v42  ;;  %v3521_v42 = vld [vmem:[#allocation3 + $0x207] sm:$0xff]  ;;  %7902 = vmatpush1.bf16.msra.mxu1 %v7901_v27  ;;  %v11283_v27 = vld [vmem:[#allocation3 + $0x271] sm:$0xff] }
 0x6e1   :  { %7903 = vmatprep.subr.bf16.mxu1 %v12409_v15 }
 0x6e3   :  { %4605 = vmatmul.mubr.f32.gmra.mrb[94].mxu1 %v11258_v55 }
 0x6e4   :  { %4609 = vmatprep.mubr.f32.mxu1 %v10922_v48  ;;  %v3522_v48 = vld [vmem:[#allocation3 + $0x20f] sm:$0xff] }
 0x6e7   :  { %4610 = vmatmul.mubr.f32.gmra.mrb[96].mxu1 %v11262_v52 }
 0x6e8   :  { %4614 = vmatprep.mubr.f32.mxu1 %v10926_v21  ;;  %v3459_v21 = vld [vmem:[#allocation3 + $0x249] sm:$0xff] }
 0x6eb   :  { %4615 = vmatmul.mubr.f32.gmra.mrb[98].mxu1 %v11266_v26 }
 0x6ec   :  { %4619 = vmatprep.mubr.f32.mxu1 %v3521_v42  ;;  %v11355_v42 = vld [vmem:[#allocation3 + $0x391] sm:$0xff] }
 0x6ef   :  { %4620 = vmatmul.mubr.f32.gmra.mrb[100].mxu1 %v11270_v31 }
 0x6f0   :  { %4624 = vmatprep.mubr.f32.mxu1 %v3522_v48  ;;  %v11359_v48 = vld [vmem:[#allocation3 + $0x3a9] sm:$0xff] }
 0x6f3   :  { %4625 = vmatmul.mubr.f32.gmra.mrb[102].mxu1 %v11273_v63 }
 0x6f4   :  { %4629 = vmatprep.mubr.f32.mxu1 %v10929_v47  ;;  %v11287_v47 = vld [vmem:[#allocation3 + $0x289] sm:$0xff] }
 0x6f7   :  { %4630 = vmatmul.mubr.f32.gmra.mrb[104].mxu1 %v3459_v21  ;;  %v11363_v21 = vld [vmem:[#allocation3 + $0x3b1] sm:$0xff] }
 0x6f8   :  { %4634 = vmatprep.mubr.f32.mxu1 %v10932_v11  ;;  %v11291_v11 = vld [vmem:[#allocation3 + $0x291] sm:$0xff] }
 0x6fb   :  { %4635 = vmatmul.mubr.f32.gmra.mrb[106].mxu1 %v3460_v58  ;;  %v11367_v58 = vld [vmem:[#allocation3 + $0x3c9] sm:$0xff] }
 0x6fc   :  { %4639 = vmatprep.mubr.f32.mxu1 %v10935_v60  ;;  %v11295_v60 = vld [vmem:[#allocation3 + $0x2a9] sm:$0xff] }
 0x6ff   :  { %4640 = vmatmul.mubr.f32.gmra.mrb[108].mxu1 %v11279_v44 }
 0x700   :  { %4644 = vmatprep.mubr.f32.mxu1 %v10938_v41  ;;  %v11299_v41 = vld [vmem:[#allocation3 + $0x2b1] sm:$0xff] }
 0x703   :  { %4645 = vmatmul.mubr.f32.gmra.mrb[110].mxu1 %v11283_v27 }
 0x704   :  { %4649 = vmatprep.mubr.f32.mxu1 %v10941_v56  ;;  %v11303_v56 = vld [vmem:[#allocation3 + $0x2c9] sm:$0xff] }
 0x707   :  { %4650 = vmatmul.mubr.f32.gmra.mrb[112].mxu1 %v11287_v47 }
 0x708   :  { %4654 = vmatprep.mubr.f32.mxu1 %v10944_v12  ;;  %v11307_v12 = vld [vmem:[#allocation3 + $0x2d1] sm:$0xff] }
 0x70b   :  { %4655 = vmatmul.mubr.f32.gmra.mrb[114].mxu1 %v11291_v11 }
 0x70c   :  { %4659 = vmatprep.mubr.f32.mxu1 %v10947_v46  ;;  %v11311_v46 = vld [vmem:[#allocation3 + $0x2e9] sm:$0xff] }
 0x70f   :  { %4660 = vmatmul.mubr.f32.gmra.mrb[116].mxu1 %v11295_v60 }
 0x710   :  { %4664 = vmatprep.mubr.f32.mxu1 %v10950_v51  ;;  %v11315_v51 = vld [vmem:[#allocation3 + $0x2f1] sm:$0xff] }
 0x713   :  { %4665 = vmatmul.mubr.f32.gmra.mrb[118].mxu1 %v11299_v41 }
 0x714   :  { %4669 = vmatprep.mubr.f32.mxu1 %v10953_v43  ;;  %v11319_v43 = vld [vmem:[#allocation3 + $0x309] sm:$0xff] }
 0x717   :  { %4670 = vmatmul.mubr.f32.gmra.mrb[120].mxu1 %v11303_v56 }
 0x718   :  { %4674 = vmatprep.mubr.f32.mxu1 %v10956_v23  ;;  %v11323_v23 = vld [vmem:[#allocation3 + $0x311] sm:$0xff] }
 0x71b   :  { %4675 = vmatmul.mubr.f32.gmra.mrb[122].mxu1 %v11307_v12 }
 0x71c   :  { %4679 = vmatprep.mubr.f32.mxu1 %v10959_v57  ;;  %v11327_v57 = vld [vmem:[#allocation3 + $0x329] sm:$0xff] }
 0x71f   :  { %4680 = vmatmul.mubr.f32.gmra.mrb[124].mxu1 %v11311_v46 }
 0x720   :  { %4684 = vmatprep.mubr.f32.mxu1 %v10962_v22  ;;  %v11331_v22 = vld [vmem:[#allocation3 + $0x331] sm:$0xff] }
 0x723   :  { %4685 = vmatmul.mubr.f32.gmra.mrb[126].mxu1 %v11315_v51 }
 0x724   :  { %4689 = vmatprep.mubr.f32.mxu1 %v10965_v28  ;;  %v11335_v28 = vld [vmem:[#allocation3 + $0x349] sm:$0xff] }
 0x727   :  { %4690 = vmatmul.mubr.f32.gmra.mrb[128].mxu1 %v11319_v43 }
 0x728   :  { %4694 = vmatprep.mubr.f32.mxu1 %v10968_v38  ;;  %v11339_v38 = vld [vmem:[#allocation3 + $0x351] sm:$0xff] }
 0x72b   :  { %4695 = vmatmul.mubr.f32.gmra.mrb[130].mxu1 %v11323_v23 }
 0x72c   :  { %4699 = vmatprep.mubr.f32.mxu1 %v10971_v49  ;;  %v11343_v49 = vld [vmem:[#allocation3 + $0x369] sm:$0xff] }
 0x72f   :  { %4700 = vmatmul.mubr.f32.gmra.mrb[132].mxu1 %v11327_v57 }
 0x730   :  { %4704 = vmatprep.mubr.f32.mxu1 %v10974_v62  ;;  %v11347_v62 = vld [vmem:[#allocation3 + $0x371] sm:$0xff] }
 0x733   :  { %4705 = vmatmul.mubr.f32.gmra.mrb[134].mxu1 %v11331_v22 }
 0x734   :  { %4709 = vmatprep.mubr.f32.mxu1 %v10977_v18  ;;  %v11351_v18 = vld [vmem:[#allocation3 + $0x389] sm:$0xff] }
 0x737   :  { %4710 = vmatmul.mubr.f32.gmra.mrb[136].mxu1 %v11335_v28 }
 0x738   :  { %4714 = vmatprep.mubr.f32.mxu1 %v10980_v35  ;;  %v12503_v35 = vld [vmem:[#allocation27_spill] sm:$0xff] }
 0x739   :  { %12507 = vst [vmem:[#allocation27_spill] sm:$0xff] %v11367_v58 }
 0x73b   :  { %4715 = vmatmul.mubr.f32.gmra.mrb[138].mxu1 %v11339_v38 }
 0x73c   :  { %4719 = vmatprep.mubr.f32.mxu1 %v10983_v5  ;;  %v12504_v5 = vld [vmem:[#allocation26_spill] sm:$0xff] }
 0x73d   :  { %12509 = vst [vmem:[#allocation26_spill] sm:$0xff] %v11371_v32 }
 0x73f   :  { %4720 = vmatmul.mubr.f32.gmra.mrb[140].mxu1 %v11343_v49 }
 0x740   :  { %4724 = vmatprep.mubr.f32.mxu1 %v10986_v2  ;;  %v12505_v2 = vld [vmem:[#allocation22_spill] sm:$0xff] }
 0x741   :  { %12511 = vst [vmem:[#allocation22_spill] sm:$0xff] %v11375_v30 }
 0x743   :  { %4725 = vmatmul.mubr.f32.gmra.mrb[142].mxu1 %v11347_v62 }
 0x744   :  { %4729 = vmatprep.mubr.f32.mxu1 %v10989_v24  ;;  %v12506_v24 = vld [vmem:[#allocation24_spill] sm:$0xff] }
 0x745   :  { %12513 = vst [vmem:[#allocation24_spill] sm:$0xff] %v11379_v19 }
 0x747   :  { %4730 = vmatmul.mubr.f32.gmra.mrb[144].mxu1 %v11351_v18 }
 0x748   :  { %4734 = vmatprep.mubr.f32.mxu1 %v12503_v35  ;;  %v12508_v35 = vld [vmem:[#allocation21_spill] sm:$0xff] }
 0x749   :  { %12515 = vst [vmem:[#allocation21_spill] sm:$0xff] %v11383_v6 }
 0x74b   :  { %4735 = vmatmul.mubr.f32.gmra.mrb[146].mxu1 %v11355_v42 }
 0x74c   :  { %4739 = vmatprep.mubr.f32.mxu1 %v12504_v5  ;;  %v12510_v5 = vld [vmem:[#allocation23_spill] sm:$0xff] }
 0x74d   :  { %12517 = vst [vmem:[#allocation23_spill] sm:$0xff] %v11387_v1 }
 0x74f   :  { %4740 = vmatmul.mubr.f32.gmra.mrb[148].mxu1 %v11359_v48 }
 0x750   :  { %4744 = vmatprep.mubr.f32.mxu1 %v12505_v2  ;;  %v12512_v2 = vld [vmem:[#allocation33_spill] sm:$0xff] }
 0x751   :  { %12518 = vst [vmem:[#allocation33_spill] sm:$0xff] %v11390_v37 }
 0x753   :  { %4745 = vmatmul.mubr.f32.gmra.mrb[150].mxu1 %v11363_v21 }
 0x754   :  { %4749 = vmatprep.mubr.f32.mxu1 %v12506_v24  ;;  %v12514_v24 = vld [vmem:[#allocation36_spill] sm:$0xff] }
 0x757   :  { %4750 = vmatmul.mubr.f32.gmra.mrb[152].mxu1 %v11367_v58  ;;  %v3556_v58 = vld [vmem:[#allocation3 + $0x30] sm:$0xff] }
 0x758   :  { %4754 = vmatprep.mubr.f32.mxu1 %v12508_v35  ;;  %v12516_v35 = vld [vmem:[#allocation39_spill] sm:$0xff] }
 0x75b   :  { %4755 = vmatmul.mubr.f32.gmra.mrb[154].mxu1 %v11371_v32  ;;  %v3975_v32 = vld [vmem:[#allocation9 + $0x318] sm:$0xff] }
 0x75c   :  { %4759 = vmatprep.mubr.f32.mxu1 %v12510_v5  ;;  %v3553_v5 = vld [vmem:[#allocation3 + $0x447] sm:$0xff] }
 0x75f   :  { %4760 = vmatmul.mubr.f32.gmra.mrb[156].mxu1 %v11375_v30  ;;  %v11393_v30 = vld [vmem:[#allocation3 + $0x431] sm:$0xff] }
 0x760   :  { %4764 = vmatprep.mubr.f32.mxu1 %v12512_v2  ;;  %v3554_v2 = vld [vmem:[#allocation3 + $0x44f] sm:$0xff]  ;;  %12519 = vst [vmem:[#allocation36_spill] sm:$0xff] %v11393_v30 }
 0x763   :  { %4765 = vmatmul.mubr.f32.gmra.mrb[158].mxu1 %v11379_v19  ;;  %v3972_v19 = vld [vmem:[#allocation9 + $0x300] sm:$0xff] }
 0x764   :  { %4769 = vmatprep.mubr.f32.mxu1 %v12514_v24  ;;  %v3973_v24 = vld [vmem:[#allocation9 + $0x308] sm:$0xff] }
 0x767   :  { %4770 = vmatmul.mubr.f32.gmra.mrb[160].mxu1 %v11383_v6  ;;  %v3974_v6 = vld [vmem:[#allocation9 + $0x310] sm:$0xff] }
 0x768   :  { %4774 = vmatprep.mubr.f32.mxu1 %v12516_v35  ;;  %v7904_v35 = vpack.c.bf16 %v3973_v24, %v3972_v19  ;;  %v3978_v19 = vld [vmem:[#allocation9 + $0x330] sm:$0xff]  ;;  %v11401_v24 = vld [vmem:[#allocation3 + $0x48] sm:$0xff] }
 0x76b   :  { %4775 = vmatmul.mubr.f32.gmra.mrb[162].mxu1 %v11387_v1  ;;  %v3555_v1 = vld [vmem:[#allocation3 + $0x28] sm:$0xff] }
 0x76c   :  { %4779 = vmatprep.mubr.f32.mxu1 %v3553_v5  ;;  %v7907_v5 = vpack.c.bf16 %v3975_v32, %v3974_v6  ;;  %v3980_v6 = vld [vmem:[#allocation9 + $0x340] sm:$0xff]  ;;  %v11406_v32 = vld [vmem:[#allocation3 + $0x50] sm:$0xff] }
 0x76f   :  { %4780 = vmatmul.mubr.f32.gmra.mrb[164].mxu1 %v11390_v37  ;;  %v3977_v37 = vld [vmem:[#allocation9 + $0x328] sm:$0xff] }
 0x770   :  { %4784 = vmatprep.mubr.f32.mxu1 %v3554_v2  ;;  %v3976_v2 = vld [vmem:[#allocation9 + $0x320] sm:$0xff] }
 0x773   :  { %4785 = vmatmul.mubr.f32.gmra.mrb[166].mxu1 %v11393_v30  ;;  %v7910_v30 = vpack.c.bf16 %v3977_v37, %v3976_v2  ;;  %v11416_v2 = vld [vmem:[#allocation3 + $0x70] sm:$0xff] }
 0x774   :  { %4854 = vmatprep.mubr.f32.mxu1 %v11061_v33  ;;  %v3979_v33 = vld [vmem:[#allocation9 + $0x338] sm:$0xff] }
 0x777   :  { %4855 = vmatmul.mubr.f32.vlgmr.msra.gmra.mrb[40].mxu1 %v3555_v1  ;;  %v7913_v1 = vpack.c.bf16 %v3979_v33, %v3978_v19  ;;  %v3986_v19 = vld [vmem:[#allocation9 + $0x370] sm:$0xff]  ;;  %v3987_v33 = vld [vmem:[#allocation9 + $0x378] sm:$0xff] }
 0x778   :  { %4859 = vmatprep.mubr.f32.mxu1 %v11070_v16  ;;  %7905 = vmatpush1.bf16.msra.mxu1 %v7904_v35  ;;  %v3981_v16 = vld [vmem:[#allocation9 + $0x348] sm:$0xff] }
 0x779   :  { %7906 = vmatprep.subr.bf16.mxu1 %v12409_v15  ;;  %v7916_v37 = vpack.c.bf16 %v3981_v16, %v3980_v6  ;;  %v11411_v35 = vld [vmem:[#allocation3 + $0x68] sm:$0xff]  ;;  %v3988_v6 = vld [vmem:[#allocation9 + $0x380] sm:$0xff] }
 0x77a   :  { %v3989_v16 = vld [vmem:[#allocation9 + $0x388] sm:$0xff] }
 0x77b   :  { %4860 = vmatmul.mubr.f32.gmra.mrb[42].mxu1 %v3556_v58  ;;  %v3983_v58 = vld [vmem:[#allocation9 + $0x358] sm:$0xff] }
 0x77c   :  { %4864 = vmatprep.mubr.f32.mxu1 %v11079_v61  ;;  %7908 = vmatpush1.bf16.msra.mxu1 %v7907_v5  ;;  %v3982_v61 = vld [vmem:[#allocation9 + $0x350] sm:$0xff]  ;;  %v3985_v5 = vld [vmem:[#allocation9 + $0x368] sm:$0xff] }
 0x77d   :  { %7909 = vmatprep.subr.bf16.mxu1 %v12409_v15 }
 0x77f   :  { %4865 = vmatmul.mubr.f32.gmra.mrb[44].mxu1 %v11401_v24 }
 0x780   :  { %4869 = vmatprep.mubr.f32.mxu1 %v11088_v3  ;;  %7911 = vmatpush1.bf16.msra.mxu1 %v7910_v30  ;;  %v7919_v3 = vpack.c.bf16 %v3983_v58, %v3982_v61  ;;  %v3984_v30 = vld [vmem:[#allocation9 + $0x360] sm:$0xff]  ;;  %v3990_v61 = vld [vmem:[#allocation9 + $0x390] sm:$0xff]  ;;  %v3991_v58 = vld [vmem:[#allocation9 + $0x398] sm:$0xff] }
 0x781   :  { %7912 = vmatprep.subr.bf16.mxu1 %v12409_v15 }
 0x783   :  { %4870 = vmatmul.mubr.f32.gmra.mrb[46].mxu1 %v11406_v32 }
 0x784   :  { %4874 = vmatprep.mubr.f32.mxu1 %v11097_v14  ;;  %7914 = vmatpush1.bf16.msra.mxu1 %v7913_v1  ;;  %v7922_v14 = vpack.c.bf16 %v3985_v5, %v3984_v30  ;;  %v11421_v1 = vld [vmem:[#allocation3 + $0x88] sm:$0xff]  ;;  %v3992_v30 = vld [vmem:[#allocation9 + $0x3a0] sm:$0xff] }
 0x785   :  { %7915 = vmatprep.subr.bf16.mxu1 %v12409_v15  ;;  %v3993_v5 = vld [vmem:[#allocation9 + $0x3a8] sm:$0xff] }
 0x787   :  { %4875 = vmatmul.mubr.f32.gmra.mrb[48].mxu1 %v11411_v35 }
 0x788   :  { %4879 = vmatprep.mubr.f32.mxu1 %v11106_v20  ;;  %7917 = vmatpush1.bf16.msra.mxu1 %v7916_v37  ;;  %v7925_v20 = vpack.c.bf16 %v3987_v33, %v3986_v19  ;;  %v11426_v37 = vld [vmem:[#allocation3 + $0x90] sm:$0xff]  ;;  %v11441_v19 = vld [vmem:[#allocation3 + $0xc8] sm:$0xff] }
 0x789   :  { %7918 = vmatprep.subr.bf16.mxu1 %v12409_v15  ;;  %v3994_v33 = vld [vmem:[#allocation9 + $0x3b0] sm:$0xff] }
 0x78b   :  { %4880 = vmatmul.mubr.f32.gmra.mrb[50].mxu1 %v11416_v2 }
 0x78c   :  { %4884 = vmatprep.mubr.f32.mxu1 %v11115_v53  ;;  %7920 = vmatpush1.bf16.msra.mxu1 %v7919_v3  ;;  %v7928_v53 = vpack.c.bf16 %v3989_v16, %v3988_v6  ;;  %v11431_v3 = vld [vmem:[#allocation3 + $0xa8] sm:$0xff]  ;;  %v11454_v16 = vld [vmem:[#allocation3 + $0xf0] sm:$0xff] }
 0x78d   :  { %7921 = vmatprep.subr.bf16.mxu1 %v12409_v15 }
 0x78f   :  { %4885 = vmatmul.mubr.f32.gmra.mrb[52].mxu1 %v11421_v1 }
 0x790   :  { %4889 = vmatprep.mubr.f32.mxu1 %v11124_v4  ;;  %7923 = vmatpush1.bf16.msra.mxu1 %v7922_v14  ;;  %v7931_v4 = vpack.c.bf16 %v3991_v58, %v3990_v61  ;;  %v11436_v14 = vld [vmem:[#allocation3 + $0xb0] sm:$0xff] }
 0x791   :  { %7924 = vmatprep.subr.bf16.mxu1 %v12409_v15  ;;  %v11471_v58 = vld [vmem:[#allocation3 + $0x130] sm:$0xff] }
 0x793   :  { %4890 = vmatmul.mubr.f32.gmra.mrb[54].mxu1 %v11426_v37 }
 0x794   :  { %4894 = vmatprep.mubr.f32.mxu1 %v11133_v45  ;;  %7926 = vmatpush1.bf16.msra.mxu1 %v7925_v20  ;;  %v7934_v45 = vpack.c.bf16 %v3993_v5, %v3992_v30  ;;  %v3995_v20 = vld [vmem:[#allocation9 + $0x3b8] sm:$0xff]  ;;  %v11488_v5 = vld [vmem:[#allocation3 + $0x170] sm:$0xff] }
 0x795   :  { %7927 = vmatprep.subr.bf16.mxu1 %v12409_v15  ;;  %v7937_v6 = vpack.c.bf16 %v3995_v20, %v3994_v33  ;;  %v11505_v20 = vld [vmem:[#allocation3 + $0x1b0] sm:$0xff] }
 0x797   :  { %4895 = vmatmul.mubr.f32.gmra.mrb[56].mxu1 %v11431_v3 }
 0x798   :  { %4899 = vmatprep.mubr.f32.mxu1 %v11142_v10  ;;  %7929 = vmatpush1.bf16.msra.mxu1 %v7928_v53  ;;  %v11446_v10 = vld [vmem:[#allocation3 + $0xd0] sm:$0xff]  ;;  %v3997_v53 = vld [vmem:[#allocation9 + $0x3c8] sm:$0xff] }
 0x799   :  { %7930 = vmatprep.subr.bf16.mxu1 %v12409_v15 }
 0x79b   :  { %4900 = vmatmul.mubr.f32.gmra.mrb[58].mxu1 %v11436_v14 }
 0x79c   :  { %4904 = vmatprep.mubr.f32.mxu1 %v11150_v0  ;;  %7932 = vmatpush1.bf16.msra.mxu1 %v7931_v4  ;;  %v11450_v0 = vld [vmem:[#allocation3 + $0xe8] sm:$0xff]  ;;  %v3999_v4 = vld [vmem:[#allocation9 + $0x3d8] sm:$0xff] }
 0x79d   :  { %7933 = vmatprep.subr.bf16.mxu1 %v12409_v15 }
 0x79f   :  { %4905 = vmatmul.mubr.f32.gmra.mrb[60].mxu1 %v11441_v19 }
 0x7a0   :  { %4909 = vmatprep.mubr.f32.mxu1 %v11158_v17  ;;  %7935 = vmatpush1.bf16.msra.mxu1 %v7934_v45  ;;  %v11459_v17 = vld [vmem:[#allocation3 + $0x108] sm:$0xff] }
 0x7a1   :  { %7936 = vmatprep.subr.bf16.mxu1 %v12409_v15  ;;  %v4001_v45 = vld [vmem:[#allocation9 + $0x3e8] sm:$0xff] }
 0x7a3   :  { %4910 = vmatmul.mubr.f32.gmra.mrb[62].mxu1 %v11446_v10 }
 0x7a4   :  { %4914 = vmatprep.mubr.f32.mxu1 %v11167_v7  ;;  %7938 = vmatpush1.bf16.msra.mxu1 %v7937_v6  ;;  %v11463_v7 = vld [vmem:[#allocation3 + $0x110] sm:$0xff] }
 0x7a5   :  { %7939 = vmatprep.subr.bf16.mxu1 %v12409_v15 }
 0x7a7   :  { %4915 = vmatmul.mubr.f32.gmra.mrb[64].mxu1 %v11450_v0 }
 0x7a8   :  { %4919 = vmatprep.mubr.f32.mxu1 %v11175_v29  ;;  %v11467_v29 = vld [vmem:[#allocation3 + $0x128] sm:$0xff] }
 0x7ab   :  { %4920 = vmatmul.mubr.f32.gmra.mrb[66].mxu1 %v11454_v16 }
 0x7ac   :  { %4924 = vmatprep.mubr.f32.mxu1 %v11183_v59  ;;  %v3996_v59 = vld [vmem:[#allocation9 + $0x3c0] sm:$0xff] }
 0x7ad   :  { %v7940_v61 = vpack.c.bf16 %v3997_v53, %v3996_v59  ;;  %v11522_v59 = vld [vmem:[#allocation3 + $0x1f0] sm:$0xff]  ;;  %v11525_v53 = vld [vmem:[#allocation3 + $0x208] sm:$0xff] }
 0x7af   :  { %4925 = vmatmul.mubr.f32.gmra.mrb[68].mxu1 %v11459_v17 }
 0x7b0   :  { %4929 = vmatprep.mubr.f32.mxu1 %v11191_v40  ;;  %7941 = vmatpush1.bf16.msra.mxu1 %v7940_v61  ;;  %v11476_v40 = vld [vmem:[#allocation3 + $0x148] sm:$0xff]  ;;  %v11528_v61 = vld [vmem:[#allocation3 + $0x210] sm:$0xff] }
 0x7b1   :  { %7942 = vmatprep.subr.bf16.mxu1 %v12409_v15 }
 0x7b3   :  { %4930 = vmatmul.mubr.f32.gmra.mrb[70].mxu1 %v11463_v7 }
 0x7b4   :  { %4934 = vmatprep.mubr.f32.mxu1 %v11200_v54  ;;  %v11480_v54 = vld [vmem:[#allocation3 + $0x150] sm:$0xff] }
 0x7b7   :  { %4935 = vmatmul.mubr.f32.gmra.mrb[72].mxu1 %v11467_v29 }
 0x7b8   :  { %4939 = vmatprep.mubr.f32.mxu1 %v11208_v13  ;;  %v11484_v13 = vld [vmem:[#allocation3 + $0x168] sm:$0xff] }
 0x7bb   :  { %4940 = vmatmul.mubr.f32.gmra.mrb[74].mxu1 %v11471_v58 }
 0x7bc   :  { %4944 = vmatprep.mubr.f32.mxu1 %v11216_v50  ;;  %v3998_v50 = vld [vmem:[#allocation9 + $0x3d0] sm:$0xff] }
 0x7bd   :  { %v7943_v30 = vpack.c.bf16 %v3999_v4, %v3998_v50  ;;  %v6151_v50 = vld [vmem:[#allocation10] sm:$0xff]  ;;  %v6152_v4 = vld [vmem:[#allocation10 + $0x8] sm:$0xff] }
 0x7bf   :  { %4945 = vmatmul.mubr.f32.gmra.mrb[76].mxu1 %v11476_v40 }
 0x7c0   :  { %4949 = vmatprep.mubr.f32.mxu1 %v11224_v39  ;;  %7944 = vmatpush1.bf16.msra.mxu1 %v7943_v30  ;;  %v11493_v39 = vld [vmem:[#allocation3 + $0x188] sm:$0xff]  ;;  %v11533_v30 = vpack.c.bf16 %v6152_v4, %v6151_v50  ;;  %v12528_v50 = vld [vmem:[#allocation23_spill] sm:$0xff] }
 0x7c1   :  { %7945 = vmatprep.subr.bf16.mxu1 %v12409_v15  ;;  %v11637_v4 = vld [vmem:[#allocation3 + $0x410] sm:$0xff] }
 0x7c3   :  { %4950 = vmatmul.mubr.f32.gmra.mrb[78].mxu1 %v11480_v54 }
 0x7c4   :  { %4954 = vmatprep.mubr.f32.mxu1 %v11233_v36  ;;  %v11497_v36 = vld [vmem:[#allocation3 + $0x190] sm:$0xff] }
 0x7c7   :  { %4955 = vmatmul.mubr.f32.gmra.mrb[80].mxu1 %v11484_v13 }
 0x7c8   :  { %4959 = vmatprep.mubr.f32.mxu1 %v11241_v25  ;;  %v11501_v25 = vld [vmem:[#allocation3 + $0x1a8] sm:$0xff] }
 0x7cb   :  { %4960 = vmatmul.mubr.f32.gmra.mrb[82].mxu1 %v11488_v5 }
 0x7cc   :  { %4964 = vmatprep.mubr.f32.mxu1 %v11245_v34  ;;  %v4000_v34 = vld [vmem:[#allocation9 + $0x3e0] sm:$0xff] }
 0x7cd   :  { %v7946_v33 = vpack.c.bf16 %v4001_v45, %v4000_v34  ;;  %v3588_v34 = vld [vmem:[#allocation3 + $0x270] sm:$0xff]  ;;  %v11537_v45 = vld [vmem:[#allocation3 + $0x288] sm:$0xff] }
 0x7cf   :  { %4965 = vmatmul.mubr.f32.gmra.mrb[84].mxu1 %v11493_v39 }
 0x7d0   :  { %4969 = vmatprep.mubr.f32.mxu1 %v11249_v8  ;;  %7947 = vmatpush1.bf16.msra.mxu1 %v7946_v33  ;;  %v11510_v8 = vld [vmem:[#allocation3 + $0x1c8] sm:$0xff]  ;;  %v11549_v33 = vld [vmem:[#allocation3 + $0x2b0] sm:$0xff] }
 0x7d1   :  { %7948 = vmatprep.subr.bf16.mxu1 %v12409_v15  ;;  %v4003_v15 = vld [vmem:[#allocation9 + $0x3f8] sm:$0xff] }
 0x7d3   :  { %4970 = vmatmul.mubr.f32.gmra.mrb[86].mxu1 %v11497_v36 }
 0x7d4   :  { %4974 = vmatprep.mubr.f32.mxu1 %v11254_v9  ;;  %v11514_v9 = vld [vmem:[#allocation3 + $0x1d0] sm:$0xff] }
 0x7d7   :  { %4975 = vmatmul.mubr.f32.gmra.mrb[88].mxu1 %v11501_v25 }
 0x7d8   :  { %4979 = vmatprep.mubr.f32.mxu1 %v11258_v55  ;;  %v11518_v55 = vld [vmem:[#allocation3 + $0x1e8] sm:$0xff] }
 0x7db   :  { %4980 = vmatmul.mubr.f32.gmra.mrb[90].mxu1 %v11505_v20 }
 0x7dc   :  { %4984 = vmatprep.mubr.f32.mxu1 %v11262_v52  ;;  %v4002_v52 = vld [vmem:[#allocation9 + $0x3f0] sm:$0xff] }
 0x7dd   :  { %v7949_v6 = vpack.c.bf16 %v4003_v15, %v4002_v52  ;;  %v11617_v52 = vld [vmem:[#allocation3 + $0x3c8] sm:$0xff]  ;;  %v11621_v15 = vld [vmem:[#allocation3 + $0x3d0] sm:$0xff] }
 0x7df   :  { %4985 = vmatmul.mubr.f32.gmra.mrb[92].mxu1 %v11510_v8 }
 0x7e0   :  { %4989 = vmatprep.mubr.f32.mxu1 %v11266_v26  ;;  %v3649_v26 = vld [vmem:[#allocation3 + $0x209] sm:$0xff]  ;;  %7950 = vmatpush1.bf16.msra.mxu1 %v7949_v6 }
 0x7e1   :  { %7984 = vmatprep.subr.bf16.mxu1 %v11533_v30  ;;  %v11625_v6 = vld [vmem:[#allocation3 + $0x3e8] sm:$0xff] }
 0x7e2   :  { %12523 = vst [vmem:[#allocation39_spill] sm:$0xff] %v11625_v6 }
 0x7e3   :  { %4990 = vmatmul.mubr.f32.gmra.mrb[94].mxu1 %v11514_v9 }
 0x7e4   :  { %4994 = vmatprep.mubr.f32.mxu1 %v11270_v31  ;;  %v3650_v31 = vld [vmem:[#allocation3 + $0x211] sm:$0xff] }
 0x7e7   :  { %4995 = vmatmul.mubr.f32.gmra.mrb[96].mxu1 %v11518_v55 }
 0x7e8   :  { %4999 = vmatprep.mubr.f32.mxu1 %v11273_v63  ;;  %v3587_v63 = vld [vmem:[#allocation3 + $0x268] sm:$0xff] }
 0x7eb   :  { %5000 = vmatmul.mubr.f32.gmra.mrb[98].mxu1 %v11522_v59 }
 0x7ec   :  { %5004 = vmatprep.mubr.f32.mxu1 %v3649_v26  ;;  %v11629_v26 = vld [vmem:[#allocation3 + $0x3f0] sm:$0xff] }
 0x7ef   :  { %5005 = vmatmul.mubr.f32.gmra.mrb[100].mxu1 %v11525_v53 }
 0x7f0   :  { %5009 = vmatprep.mubr.f32.mxu1 %v3650_v31  ;;  %v12526_v31 = vld [vmem:[#allocation21_spill] sm:$0xff] }
 0x7f3   :  { %5010 = vmatmul.mubr.f32.gmra.mrb[102].mxu1 %v11528_v61 }
 0x7f4   :  { %5014 = vmatprep.mubr.f32.mxu1 %v11279_v44  ;;  %v11541_v44 = vld [vmem:[#allocation3 + $0x290] sm:$0xff] }
 0x7f7   :  { %5015 = vmatmul.mubr.f32.gmra.mrb[104].mxu1 %v3587_v63  ;;  %v11633_v63 = vld [vmem:[#allocation3 + $0x408] sm:$0xff] }
 0x7f8   :  { %5019 = vmatprep.mubr.f32.mxu1 %v11283_v27  ;;  %v11545_v27 = vld [vmem:[#allocation3 + $0x2a8] sm:$0xff] }
 0x7fb   :  { %5020 = vmatmul.mubr.f32.gmra.mrb[106].mxu1 %v3588_v34  ;;  %v12530_v34 = vld [vmem:[#allocation33_spill] sm:$0xff] }
 0x7fc   :  { %5024 = vmatprep.mubr.f32.mxu1 %v11287_v47  ;;  %v11553_v47 = vld [vmem:[#allocation3 + $0x2c8] sm:$0xff] }
 0x7ff   :  { %5025 = vmatmul.mubr.f32.gmra.mrb[108].mxu1 %v11537_v45 }
 0x800   :  { %5029 = vmatprep.mubr.f32.mxu1 %v11291_v11  ;;  %v11557_v11 = vld [vmem:[#allocation3 + $0x2d0] sm:$0xff] }
 0x803   :  { %5030 = vmatmul.mubr.f32.gmra.mrb[110].mxu1 %v11541_v44 }
 0x804   :  { %5034 = vmatprep.mubr.f32.mxu1 %v11295_v60  ;;  %v11561_v60 = vld [vmem:[#allocation3 + $0x2e8] sm:$0xff] }
 0x807   :  { %5035 = vmatmul.mubr.f32.gmra.mrb[112].mxu1 %v11545_v27 }
 0x808   :  { %5039 = vmatprep.mubr.f32.mxu1 %v11299_v41  ;;  %v11565_v41 = vld [vmem:[#allocation3 + $0x2f0] sm:$0xff] }
 0x80b   :  { %5040 = vmatmul.mubr.f32.gmra.mrb[114].mxu1 %v11549_v33 }
 0x80c   :  { %5044 = vmatprep.mubr.f32.mxu1 %v11303_v56  ;;  %v11569_v56 = vld [vmem:[#allocation3 + $0x308] sm:$0xff] }
 0x80f   :  { %5045 = vmatmul.mubr.f32.gmra.mrb[116].mxu1 %v11553_v47 }
 0x810   :  { %5049 = vmatprep.mubr.f32.mxu1 %v11307_v12  ;;  %v11573_v12 = vld [vmem:[#allocation3 + $0x310] sm:$0xff] }
 0x813   :  { %5050 = vmatmul.mubr.f32.gmra.mrb[118].mxu1 %v11557_v11 }
 0x814   :  { %5054 = vmatprep.mubr.f32.mxu1 %v11311_v46  ;;  %v11577_v46 = vld [vmem:[#allocation3 + $0x328] sm:$0xff] }
 0x817   :  { %5055 = vmatmul.mubr.f32.gmra.mrb[120].mxu1 %v11561_v60 }
 0x818   :  { %5059 = vmatprep.mubr.f32.mxu1 %v11315_v51  ;;  %v11581_v51 = vld [vmem:[#allocation3 + $0x330] sm:$0xff] }
 0x81b   :  { %5060 = vmatmul.mubr.f32.gmra.mrb[122].mxu1 %v11565_v41 }
 0x81c   :  { %5064 = vmatprep.mubr.f32.mxu1 %v11319_v43  ;;  %v11585_v43 = vld [vmem:[#allocation3 + $0x348] sm:$0xff] }
 0x81f   :  { %5065 = vmatmul.mubr.f32.gmra.mrb[124].mxu1 %v11569_v56 }
 0x820   :  { %5069 = vmatprep.mubr.f32.mxu1 %v11323_v23  ;;  %v11589_v23 = vld [vmem:[#allocation3 + $0x350] sm:$0xff] }
 0x823   :  { %5070 = vmatmul.mubr.f32.gmra.mrb[126].mxu1 %v11573_v12 }
 0x824   :  { %5074 = vmatprep.mubr.f32.mxu1 %v11327_v57  ;;  %v11593_v57 = vld [vmem:[#allocation3 + $0x368] sm:$0xff] }
 0x827   :  { %5075 = vmatmul.mubr.f32.gmra.mrb[128].mxu1 %v11577_v46 }
 0x828   :  { %5079 = vmatprep.mubr.f32.mxu1 %v11331_v22  ;;  %v11597_v22 = vld [vmem:[#allocation3 + $0x370] sm:$0xff] }
 0x82b   :  { %5080 = vmatmul.mubr.f32.gmra.mrb[130].mxu1 %v11581_v51 }
 0x82c   :  { %5084 = vmatprep.mubr.f32.mxu1 %v11335_v28  ;;  %v11601_v28 = vld [vmem:[#allocation3 + $0x388] sm:$0xff] }
 0x82f   :  { %5085 = vmatmul.mubr.f32.gmra.mrb[132].mxu1 %v11585_v43 }
 0x830   :  { %5089 = vmatprep.mubr.f32.mxu1 %v11339_v38  ;;  %v11605_v38 = vld [vmem:[#allocation3 + $0x390] sm:$0xff] }
 0x833   :  { %5090 = vmatmul.mubr.f32.gmra.mrb[134].mxu1 %v11589_v23 }
 0x834   :  { %5094 = vmatprep.mubr.f32.mxu1 %v11343_v49  ;;  %v11609_v49 = vld [vmem:[#allocation3 + $0x3a8] sm:$0xff] }
 0x837   :  { %5095 = vmatmul.mubr.f32.gmra.mrb[136].mxu1 %v11593_v57 }
 0x838   :  { %5099 = vmatprep.mubr.f32.mxu1 %v11347_v62  ;;  %v11613_v62 = vld [vmem:[#allocation3 + $0x3b0] sm:$0xff] }
 0x83b   :  { %5100 = vmatmul.mubr.f32.gmra.mrb[138].mxu1 %v11597_v22 }
 0x83c   :  { %5104 = vmatprep.mubr.f32.mxu1 %v11351_v18  ;;  %v12520_v18 = vld [vmem:[#allocation27_spill] sm:$0xff] }
 0x83d   :  { %12525 = vst [vmem:[#allocation27_spill] sm:$0xff] %v11629_v26 }
 0x83f   :  { %5105 = vmatmul.mubr.f32.gmra.mrb[140].mxu1 %v11601_v28 }
 0x840   :  { %5109 = vmatprep.mubr.f32.mxu1 %v11355_v42  ;;  %v12521_v42 = vld [vmem:[#allocation26_spill] sm:$0xff] }
 0x841   :  { %12527 = vst [vmem:[#allocation26_spill] sm:$0xff] %v11633_v63 }
 0x843   :  { %5110 = vmatmul.mubr.f32.gmra.mrb[142].mxu1 %v11605_v38 }
 0x844   :  { %5114 = vmatprep.mubr.f32.mxu1 %v11359_v48  ;;  %v12522_v48 = vld [vmem:[#allocation22_spill] sm:$0xff] }
 0x845   :  { %12529 = vst [vmem:[#allocation22_spill] sm:$0xff] %v11637_v4 }
 0x847   :  { %5115 = vmatmul.mubr.f32.gmra.mrb[144].mxu1 %v11609_v49 }
 0x848   :  { %5119 = vmatprep.mubr.f32.mxu1 %v11363_v21  ;;  %v12524_v21 = vld [vmem:[#allocation24_spill] sm:$0xff] }
 0x84b   :  { %5120 = vmatmul.mubr.f32.gmra.mrb[146].mxu1 %v11613_v62 }
 0x84c   :  { %5124 = vmatprep.mubr.f32.mxu1 %v12520_v18  ;;  %v11641_v18 = vld [vmem:[#allocation3 + $0x428] sm:$0xff] }
 0x84d   :  { %12531 = vst [vmem:[#allocation24_spill] sm:$0xff] %v11641_v18 }
 0x84f   :  { %5125 = vmatmul.mubr.f32.gmra.mrb[148].mxu1 %v11617_v52 }
 0x850   :  { %5129 = vmatprep.mubr.f32.mxu1 %v12521_v42  ;;  %v12532_v42 = vld [vmem:[#allocation36_spill] sm:$0xff] }
 0x853   :  { %5130 = vmatmul.mubr.f32.gmra.mrb[150].mxu1 %v11621_v15 }
 0x854   :  { %5134 = vmatprep.mubr.f32.mxu1 %v12522_v48  ;;  %v11645_v48 = vld [vmem:[#allocation3 + $0x430] sm:$0xff] }
 0x855   :  { %12533 = vst [vmem:[#allocation21_spill] sm:$0xff] %v11645_v48 }
 0x857   :  { %5135 = vmatmul.mubr.f32.gmra.mrb[152].mxu1 %v11625_v6  ;;  %v6158_v6 = vld [vmem:[#allocation10 + $0x38] sm:$0xff] }
 0x858   :  { %5139 = vmatprep.mubr.f32.mxu1 %v12524_v21  ;;  %v3681_v21 = vld [vmem:[#allocation3 + $0x449] sm:$0xff] }
 0x85b   :  { %5140 = vmatmul.mubr.f32.gmra.mrb[154].mxu1 %v11629_v26  ;;  %v6155_v26 = vld [vmem:[#allocation10 + $0x20] sm:$0xff] }
 0x85c   :  { %5144 = vmatprep.mubr.f32.mxu1 %v12526_v31  ;;  %v11648_v31 = vld [vmem:[#allocation3 + $0x448] sm:$0xff] }
 0x85d   :  { %12534 = vst [vmem:[#allocation23_spill] sm:$0xff] %v11648_v31 }
 0x85f   :  { %5145 = vmatmul.mubr.f32.gmra.mrb[156].mxu1 %v11633_v63  ;;  %v6154_v63 = vld [vmem:[#allocation10 + $0x18] sm:$0xff] }
 0x860   :  { %5149 = vmatprep.mubr.f32.mxu1 %v12528_v50  ;;  %v3682_v50 = vld [vmem:[#allocation3 + $0x451] sm:$0xff] }
 0x863   :  { %5150 = vmatmul.mubr.f32.gmra.mrb[158].mxu1 %v11637_v4  ;;  %v11651_v4 = vld [vmem:[#allocation3 + $0x450] sm:$0xff] }
 0x864   :  { %5154 = vmatprep.mubr.f32.mxu1 %v12530_v34  ;;  %12535 = vst [vmem:[#allocation33_spill] sm:$0xff] %v11651_v4  ;;  %v6153_v34 = vld [vmem:[#allocation10 + $0x10] sm:$0xff] }
 0x867   :  { %5155 = vmatmul.mubr.f32.gmra.mrb[160].mxu1 %v11641_v18  ;;  %v3684_v18 = vld [vmem:[#allocation3 + $0x47] sm:$0xff] }
 0x868   :  { %5159 = vmatprep.mubr.f32.mxu1 %v12532_v42  ;;  %v7987_v42 = vpack.c.bf16 %v6154_v63, %v6153_v34  ;;  %v3686_v63 = vld [vmem:[#allocation3 + $0x67] sm:$0xff] }
 0x869   :  { %v6159_v34 = vld [vmem:[#allocation10 + $0x40] sm:$0xff] }
 0x86b   :  { %5160 = vmatmul.mubr.f32.gmra.mrb[162].mxu1 %v11645_v48  ;;  %v6156_v48 = vld [vmem:[#allocation10 + $0x28] sm:$0xff] }
 0x86c   :  { %5164 = vmatprep.mubr.f32.mxu1 %v3681_v21  ;;  %v7991_v21 = vpack.c.bf16 %v6156_v48, %v6155_v26  ;;  %v3688_v26 = vld [vmem:[#allocation3 + $0x87] sm:$0xff]  ;;  %v3693_v48 = vld [vmem:[#allocation3 + $0xcf] sm:$0xff] }
 0x86f   :  { %5165 = vmatmul.mubr.f32.gmra.mrb[164].mxu1 %v11648_v31  ;;  %v6157_v31 = vld [vmem:[#allocation10 + $0x30] sm:$0xff] }
 0x870   :  { %5169 = vmatprep.mubr.f32.mxu1 %v3682_v50  ;;  %v3685_v50 = vld [vmem:[#allocation3 + $0x4f] sm:$0xff] }
 0x873   :  { %5170 = vmatmul.mubr.f32.gmra.mrb[166].mxu1 %v11651_v4  ;;  %v6160_v4 = vld [vmem:[#allocation10 + $0x48] sm:$0xff] }
 0x874   :  { %5239 = vmatprep.mubr.f32.mxu1 %v11401_v24  ;;  %v7995_v24 = vpack.c.bf16 %v6158_v6, %v6157_v31  ;;  %v3690_v6 = vld [vmem:[#allocation3 + $0xa7] sm:$0xff] }
 0x875   :  { %v3698_v31 = vld [vmem:[#allocation3 + $0x127] sm:$0xff] }
 0x877   :  { %5240 = vmatmul.mubr.f32.vlgmr.msra.gmra.mrb[40].mxu1 %v3684_v18  ;;  %v6162_v18 = vld [vmem:[#allocation10 + $0x58] sm:$0xff] }
 0x878   :  { %5244 = vmatprep.mubr.f32.mxu1 %v11406_v32  ;;  %7986 = vmatpush3.bf16.msra.mxu1 %v11533_v30  ;;  %v7999_v32 = vpack.c.bf16 %v6160_v4, %v6159_v34  ;;  %v3687_v30 = vld [vmem:[#allocation3 + $0x6f] sm:$0xff] }
 0x879   :  { %7988 = vmatprep.subr.bf16.mxu1 %v7987_v42  ;;  %v6161_v4 = vld [vmem:[#allocation10 + $0x50] sm:$0xff]  ;;  %v11685_v34 = vld [vmem:[#allocation2 + $0x8] sm:$0xff] }
 0x87b   :  { %5245 = vmatmul.mubr.f32.gmra.mrb[42].mxu1 %v3685_v50  ;;  %v3706_v50 = vld [vmem:[#allocation3 + $0x1a7] sm:$0xff] }
 0x87c   :  { %5249 = vmatprep.mubr.f32.mxu1 %v11411_v35  ;;  %7990 = vmatpush3.bf16.msra.mxu1 %v7987_v42  ;;  %v3689_v35 = vld [vmem:[#allocation3 + $0x8f] sm:$0xff]  ;;  %v6163_v42 = vld [vmem:[#allocation10 + $0x60] sm:$0xff] }
 0x87d   :  { %7992 = vmatprep.subr.bf16.mxu1 %v7991_v21 }
 0x87f   :  { %5250 = vmatmul.mubr.f32.gmra.mrb[44].mxu1 %v3686_v63 }
 0x880   :  { %5254 = vmatprep.mubr.f32.mxu1 %v11416_v2  ;;  %7994 = vmatpush3.bf16.msra.mxu1 %v7991_v21  ;;  %v3691_v2 = vld [vmem:[#allocation3 + $0xaf] sm:$0xff] }
 0x881   :  { %7996 = vmatprep.subr.bf16.mxu1 %v7995_v24 }
 0x883   :  { %5255 = vmatmul.mubr.f32.gmra.mrb[46].mxu1 %v3687_v30  ;;  %v3875_v30 = vld [vmem:[#allocation3 + $0x471] sm:$0xff] }
 0x884   :  { %5259 = vmatprep.mubr.f32.mxu1 %v11421_v1  ;;  %7998 = vmatpush3.bf16.msra.mxu1 %v7995_v24  ;;  %v3692_v1 = vld [vmem:[#allocation3 + $0xc7] sm:$0xff]  ;;  %v6165_v24 = vld [vmem:[#allocation10 + $0x70] sm:$0xff] }
 0x885   :  { %8000 = vmatprep.subr.bf16.mxu1 %v7999_v32 }
 0x887   :  { %5260 = vmatmul.mubr.f32.gmra.mrb[48].mxu1 %v3688_v26  ;;  %v3718_v26 = vld [vmem:[#allocation3 + $0x2a7] sm:$0xff] }
 0x888   :  { %5264 = vmatprep.mubr.f32.mxu1 %v11426_v37  ;;  %8002 = vmatpush3.bf16.msra.mxu1 %v7999_v32  ;;  %v8003_v37 = vpack.c.bf16 %v6162_v18, %v6161_v4  ;;  %v3874_v32 = vld [vmem:[#allocation3 + $0x469] sm:$0xff] }
 0x889   :  { %7404 = vmatprep.mubr.f32.mxu0 %v3874_v32 }
 0x88a   :  { %8004 = vmatprep.subr.bf16.mxu1 %v8003_v37  ;;  %7405 = vmatmul.mubr.f32.gmra.mrb[214].mxu0 %v3875_v30  ;;  %v12549_v30 = vld [vmem:[#allocation23_spill] sm:$0xff] }
 0x88b   :  { %5265 = vmatmul.mubr.f32.gmra.mrb[50].mxu1 %v3689_v35  ;;  %v3719_v35 = vld [vmem:[#allocation3 + $0x2af] sm:$0xff] }
 0x88c   :  { %5269 = vmatprep.mubr.f32.mxu1 %v11431_v3  ;;  %8006 = vmatpush3.bf16.msra.mxu1 %v8003_v37  ;;  %v3694_v3 = vld [vmem:[#allocation3 + $0xe7] sm:$0xff] }
 0x88d   :  { %v3738_v37 = vld [vmem:[#allocation3 + $0x3e7] sm:$0xff] }
 0x88f   :  { %5270 = vmatmul.mubr.f32.gmra.mrb[52].mxu1 %v3690_v6  ;;  %v3720_v6 = vld [vmem:[#allocation3 + $0x2c7] sm:$0xff] }
 0x890   :  { %5274 = vmatprep.mubr.f32.mxu1 %v11436_v14  ;;  %v3695_v14 = vld [vmem:[#allocation3 + $0xef] sm:$0xff] }
 0x893   :  { %5275 = vmatmul.mubr.f32.gmra.mrb[54].mxu1 %v3691_v2  ;;  %v3737_v2 = vld [vmem:[#allocation3 + $0x3cf] sm:$0xff] }
 0x894   :  { %5279 = vmatprep.mubr.f32.mxu1 %v11441_v19  ;;  %v3696_v19 = vld [vmem:[#allocation3 + $0x107] sm:$0xff] }
 0x897   :  { %5280 = vmatmul.mubr.f32.gmra.mrb[56].mxu1 %v3692_v1  ;;  %v12536_v1 = vld [vmem:[#allocation28_spill] sm:$0xff] }
 0x898   :  { %5284 = vmatprep.mubr.f32.mxu1 %v11446_v10  ;;  %v3697_v10 = vld [vmem:[#allocation3 + $0x10f] sm:$0xff] }
 0x89b   :  { %5285 = vmatmul.mubr.f32.gmra.mrb[58].mxu1 %v3693_v48 }
 0x89c   :  { %5289 = vmatprep.mubr.f32.mxu1 %v11450_v0  ;;  %v3699_v0 = vld [vmem:[#allocation3 + $0x12f] sm:$0xff] }
 0x89f   :  { %5290 = vmatmul.mubr.f32.gmra.mrb[60].mxu1 %v3694_v3 }
 0x8a0   :  { %5294 = vmatprep.mubr.f32.mxu1 %v11454_v16  ;;  %v3700_v16 = vld [vmem:[#allocation3 + $0x147] sm:$0xff] }
 0x8a3   :  { %5295 = vmatmul.mubr.f32.gmra.mrb[62].mxu1 %v3695_v14 }
 0x8a4   :  { %5299 = vmatprep.mubr.f32.mxu1 %v11459_v17  ;;  %v6164_v17 = vld [vmem:[#allocation10 + $0x68] sm:$0xff] }
 0x8a5   :  { %v8007_v21 = vpack.c.bf16 %v6164_v17, %v6163_v42  ;;  %v3740_v42 = vld [vmem:[#allocation3 + $0x407] sm:$0xff] }
 0x8a6   :  { %v12542_v17 = vld [vmem:[#allocation18_spill] sm:$0xff] }
 0x8a7   :  { %5300 = vmatmul.mubr.f32.gmra.mrb[64].mxu1 %v3696_v19  ;;  %8008 = vmatprep.subr.bf16.mxu1 %v8007_v21  ;;  %v12540_v19 = vld [vmem:[#allocation29_spill] sm:$0xff] }
 0x8a8   :  { %5304 = vmatprep.mubr.f32.mxu1 %v11463_v7  ;;  %v3701_v7 = vld [vmem:[#allocation3 + $0x14f] sm:$0xff]  ;;  %8010 = vmatpush3.bf16.msra.mxu1 %v8007_v21 }
 0x8ab   :  { %5305 = vmatmul.mubr.f32.gmra.mrb[66].mxu1 %v3697_v10 }
 0x8ac   :  { %5309 = vmatprep.mubr.f32.mxu1 %v11467_v29  ;;  %v3702_v29 = vld [vmem:[#allocation3 + $0x167] sm:$0xff] }
 0x8af   :  { %5310 = vmatmul.mubr.f32.gmra.mrb[68].mxu1 %v3698_v31 }
 0x8b0   :  { %5314 = vmatprep.mubr.f32.mxu1 %v11471_v58  ;;  %v3703_v58 = vld [vmem:[#allocation3 + $0x16f] sm:$0xff] }
 0x8b3   :  { %5315 = vmatmul.mubr.f32.gmra.mrb[70].mxu1 %v3699_v0  ;;  %v12541_v0 = vld [vmem:[#allocation26_spill] sm:$0xff] }
 0x8b4   :  { %5319 = vmatprep.mubr.f32.mxu1 %v11476_v40  ;;  %v3704_v40 = vld [vmem:[#allocation3 + $0x187] sm:$0xff] }
 0x8b7   :  { %5320 = vmatmul.mubr.f32.gmra.mrb[72].mxu1 %v3700_v16 }
 0x8b8   :  { %5324 = vmatprep.mubr.f32.mxu1 %v11480_v54  ;;  %v3705_v54 = vld [vmem:[#allocation3 + $0x18f] sm:$0xff] }
 0x8bb   :  { %5325 = vmatmul.mubr.f32.gmra.mrb[74].mxu1 %v3701_v7 }
 0x8bc   :  { %5329 = vmatprep.mubr.f32.mxu1 %v11484_v13  ;;  %v3707_v13 = vld [vmem:[#allocation3 + $0x1af] sm:$0xff] }
 0x8bf   :  { %5330 = vmatmul.mubr.f32.gmra.mrb[76].mxu1 %v3702_v29  ;;  %v12543_v29 = vld [vmem:[#allocation22_spill] sm:$0xff] }
 0x8c0   :  { %5334 = vmatprep.mubr.f32.mxu1 %v11488_v5  ;;  %v3708_v5 = vld [vmem:[#allocation3 + $0x1c7] sm:$0xff] }
 0x8c3   :  { %5335 = vmatmul.mubr.f32.gmra.mrb[78].mxu1 %v3703_v58 }
 0x8c4   :  { %5339 = vmatprep.mubr.f32.mxu1 %v11493_v39  ;;  %v3709_v39 = vld [vmem:[#allocation3 + $0x1cf] sm:$0xff] }
 0x8c7   :  { %5340 = vmatmul.mubr.f32.gmra.mrb[80].mxu1 %v3704_v40  ;;  %v3741_v40 = vld [vmem:[#allocation3 + $0x40f] sm:$0xff] }
 0x8c8   :  { %5344 = vmatprep.mubr.f32.mxu1 %v11497_v36  ;;  %v6166_v36 = vld [vmem:[#allocation10 + $0x78] sm:$0xff] }
 0x8c9   :  { %v8011_v63 = vpack.c.bf16 %v6166_v36, %v6165_v24  ;;  %v3742_v24 = vld [vmem:[#allocation3 + $0x427] sm:$0xff]  ;;  %v12546_v36 = vld [vmem:[#allocation19_spill] sm:$0xff] }
 0x8cb   :  { %5345 = vmatmul.mubr.f32.gmra.mrb[82].mxu1 %v3705_v54  ;;  %8012 = vmatprep.subr.bf16.mxu1 %v8011_v63  ;;  %v12544_v54 = vld [vmem:[#allocation30_spill] sm:$0xff] }
 0x8cc   :  { %5349 = vmatprep.mubr.f32.mxu1 %v11501_v25  ;;  %v3710_v25 = vld [vmem:[#allocation3 + $0x1e7] sm:$0xff]  ;;  %8014 = vmatpush3.bf16.msra.mxu1 %v8011_v63 }
 0x8cf   :  { %5350 = vmatmul.mubr.f32.gmra.mrb[84].mxu1 %v3706_v50 }
 0x8d0   :  { %5354 = vmatprep.mubr.f32.mxu1 %v11505_v20  ;;  %v3711_v20 = vld [vmem:[#allocation3 + $0x1ef] sm:$0xff] }
 0x8d3   :  { %5355 = vmatmul.mubr.f32.gmra.mrb[86].mxu1 %v3707_v13 }
 0x8d4   :  { %5359 = vmatprep.mubr.f32.mxu1 %v11510_v8  ;;  %v3712_v8 = vld [vmem:[#allocation3 + $0x207] sm:$0xff] }
 0x8d7   :  { %5360 = vmatmul.mubr.f32.gmra.mrb[88].mxu1 %v3708_v5  ;;  %v12545_v5 = vld [vmem:[#allocation24_spill] sm:$0xff] }
 0x8d8   :  { %5364 = vmatprep.mubr.f32.mxu1 %v11514_v9  ;;  %v3713_v9 = vld [vmem:[#allocation3 + $0x20f] sm:$0xff] }
 0x8db   :  { %5365 = vmatmul.mubr.f32.gmra.mrb[90].mxu1 %v3709_v39 }
 0x8dc   :  { %5369 = vmatprep.mubr.f32.mxu1 %v11518_v55  ;;  %v3714_v55 = vld [vmem:[#allocation3 + $0x227] sm:$0xff] }
 0x8df   :  { %5370 = vmatmul.mubr.f32.gmra.mrb[92].mxu1 %v3710_v25 }
 0x8e0   :  { %5374 = vmatprep.mubr.f32.mxu1 %v11522_v59  ;;  %v3715_v59 = vld [vmem:[#allocation3 + $0x22f] sm:$0xff] }
 0x8e3   :  { %5375 = vmatmul.mubr.f32.gmra.mrb[94].mxu1 %v3711_v20  ;;  %v12547_v20 = vld [vmem:[#allocation21_spill] sm:$0xff] }
 0x8e4   :  { %5379 = vmatprep.mubr.f32.mxu1 %v11525_v53  ;;  %v3716_v53 = vld [vmem:[#allocation3 + $0x287] sm:$0xff] }
 0x8e7   :  { %5380 = vmatmul.mubr.f32.gmra.mrb[96].mxu1 %v3712_v8 }
 0x8e8   :  { %5384 = vmatprep.mubr.f32.mxu1 %v11528_v61  ;;  %v3717_v61 = vld [vmem:[#allocation3 + $0x28f] sm:$0xff] }
 0x8eb   :  { %5385 = vmatmul.mubr.f32.gmra.mrb[98].mxu1 %v3713_v9  ;;  %v3743_v9 = vld [vmem:[#allocation3 + $0x42f] sm:$0xff] }
 0x8ec   :  { %5389 = vmatprep.mubr.f32.mxu1 %v11685_v34 }
 0x8ef   :  { %5390 = vmatmul.mubr.f32.gmra.mrb[100].mxu1 %v3714_v55  ;;  %v12548_v55 = vld [vmem:[#allocation25_spill] sm:$0xff] }
 0x8f0   :  { %5394 = vmatprep.mubr.f32.mxu1 %v11685_v34 }
 0x8f3   :  { %5395 = vmatmul.mubr.f32.gmra.mrb[102].mxu1 %v3715_v59 }
 0x8f4   :  { %5399 = vmatprep.mubr.f32.mxu1 %v11537_v45  ;;  %v3721_v45 = vld [vmem:[#allocation3 + $0x2cf] sm:$0xff] }
 0x8f7   :  { %5400 = vmatmul.mubr.f32.gmra.mrb[104].mxu1 %v3716_v53 }
 0x8f8   :  { %5404 = vmatprep.mubr.f32.mxu1 %v11541_v44  ;;  %v3722_v44 = vld [vmem:[#allocation3 + $0x2e7] sm:$0xff] }
 0x8fb   :  { %5405 = vmatmul.mubr.f32.gmra.mrb[106].mxu1 %v3717_v61  ;;  %v3744_v61 = vld [vmem:[#allocation3 + $0x447] sm:$0xff] }
 0x8fc   :  { %5409 = vmatprep.mubr.f32.mxu1 %v11545_v27  ;;  %v3723_v27 = vld [vmem:[#allocation3 + $0x2ef] sm:$0xff] }
 0x8ff   :  { %5410 = vmatmul.mubr.f32.gmra.mrb[108].mxu1 %v3718_v26  ;;  %v12550_v26 = vld [vmem:[#allocation20_spill] sm:$0xff] }
 0x900   :  { %5414 = vmatprep.mubr.f32.mxu1 %v11549_v33  ;;  %v3724_v33 = vld [vmem:[#allocation3 + $0x307] sm:$0xff] }
 0x903   :  { %5415 = vmatmul.mubr.f32.gmra.mrb[110].mxu1 %v3719_v35 }
 0x904   :  { %5419 = vmatprep.mubr.f32.mxu1 %v11553_v47  ;;  %v3725_v47 = vld [vmem:[#allocation3 + $0x30f] sm:$0xff] }
 0x907   :  { %5420 = vmatmul.mubr.f32.gmra.mrb[112].mxu1 %v3720_v6 }
 0x908   :  { %5424 = vmatprep.mubr.f32.mxu1 %v11557_v11  ;;  %v3726_v11 = vld [vmem:[#allocation3 + $0x327] sm:$0xff] }
 0x90b   :  { %5425 = vmatmul.mubr.f32.gmra.mrb[114].mxu1 %v3721_v45  ;;  %v12551_v45 = vld [vmem:[#allocation33_spill] sm:$0xff] }
 0x90c   :  { %5429 = vmatprep.mubr.f32.mxu1 %v11561_v60  ;;  %v3727_v60 = vld [vmem:[#allocation3 + $0x32f] sm:$0xff] }
 0x90f   :  { %5430 = vmatmul.mubr.f32.gmra.mrb[116].mxu1 %v3722_v44 }
 0x910   :  { %5434 = vmatprep.mubr.f32.mxu1 %v11565_v41  ;;  %v3728_v41 = vld [vmem:[#allocation3 + $0x347] sm:$0xff] }
 0x913   :  { %5435 = vmatmul.mubr.f32.gmra.mrb[118].mxu1 %v3723_v27  ;;  %v3745_v27 = vld [vmem:[#allocation3 + $0x44f] sm:$0xff] }
 0x914   :  { %5439 = vmatprep.mubr.f32.mxu1 %v11569_v56  ;;  %v3729_v56 = vld [vmem:[#allocation3 + $0x34f] sm:$0xff] }
 0x917   :  { %5440 = vmatmul.mubr.f32.gmra.mrb[120].mxu1 %v3724_v33  ;;  %v12552_v33 = vld [vmem:[#allocation31_spill] sm:$0xff] }
 0x918   :  { %5444 = vmatprep.mubr.f32.mxu1 %v11573_v12  ;;  %v3730_v12 = vld [vmem:[#allocation3 + $0x367] sm:$0xff] }
 0x91b   :  { %5445 = vmatmul.mubr.f32.gmra.mrb[122].mxu1 %v3725_v47 }
 0x91c   :  { %5449 = vmatprep.mubr.f32.mxu1 %v11577_v46  ;;  %v3731_v46 = vld [vmem:[#allocation3 + $0x36f] sm:$0xff] }
 0x91f   :  { %5450 = vmatmul.mubr.f32.gmra.mrb[124].mxu1 %v3726_v11 }
 0x920   :  { %5454 = vmatprep.mubr.f32.mxu1 %v11581_v51  ;;  %v3732_v51 = vld [vmem:[#allocation3 + $0x387] sm:$0xff] }
 0x923   :  { %5455 = vmatmul.mubr.f32.gmra.mrb[126].mxu1 %v3727_v60  ;;  %v3746_v60 = vld [vmem:[#allocation3 + $0x467] sm:$0xff] }
 0x924   :  { %5459 = vmatprep.mubr.f32.mxu1 %v11585_v43  ;;  %v3733_v43 = vld [vmem:[#allocation3 + $0x38f] sm:$0xff] }
 0x927   :  { %5460 = vmatmul.mubr.f32.gmra.mrb[128].mxu1 %v3728_v41 }
 0x928   :  { %5464 = vmatprep.mubr.f32.mxu1 %v11589_v23  ;;  %v3734_v23 = vld [vmem:[#allocation3 + $0x3a7] sm:$0xff] }
 0x92b   :  { %5465 = vmatmul.mubr.f32.gmra.mrb[130].mxu1 %v3729_v56  ;;  %v12553_v56 = vld [vmem:[#allocation32_spill] sm:$0xff] }
 0x92c   :  { %5469 = vmatprep.mubr.f32.mxu1 %v11593_v57  ;;  %v3735_v57 = vld [vmem:[#allocation3 + $0x3af] sm:$0xff] }
 0x92f   :  { %5470 = vmatmul.mubr.f32.gmra.mrb[132].mxu1 %v3730_v12 }
 0x930   :  { %5474 = vmatprep.mubr.f32.mxu1 %v11597_v22  ;;  %v3736_v22 = vld [vmem:[#allocation3 + $0x3c7] sm:$0xff] }
 0x933   :  { %5475 = vmatmul.mubr.f32.gmra.mrb[134].mxu1 %v3731_v46 }
 0x934   :  { %5479 = vmatprep.mubr.f32.mxu1 %v11601_v28 }
 0x937   :  { %5480 = vmatmul.mubr.f32.gmra.mrb[136].mxu1 %v3732_v51  ;;  %v3747_v51 = vld [vmem:[#allocation3 + $0x46f] sm:$0xff] }
 0x938   :  { %5484 = vmatprep.mubr.f32.mxu1 %v11605_v38 }
 0x93b   :  { %5485 = vmatmul.mubr.f32.gmra.mrb[138].mxu1 %v3733_v43  ;;  %v6087_v43 = vld [vmem:[#allocation4] sm:$0xff] }
 0x93c   :  { %5489 = vmatprep.mubr.f32.mxu1 %v11609_v49  ;;  %v12537_v49 = vld [vmem:[#allocation39_spill] sm:$0xff] }
 0x93f   :  { %5490 = vmatmul.mubr.f32.gmra.mrb[140].mxu1 %v3734_v23 }
 0x940   :  { %5494 = vmatprep.mubr.f32.mxu1 %v11613_v62  ;;  %v12538_v62 = vld [vmem:[#allocation17_spill] sm:$0xff] }
 0x943   :  { %5495 = vmatmul.mubr.f32.gmra.mrb[142].mxu1 %v3735_v57  ;;  %v12554_v57 = vld [vmem:[#allocation35_spill] sm:$0xff] }
 0x944   :  { %5499 = vmatprep.mubr.f32.mxu1 %v11617_v52  ;;  %v12539_v52 = vld [vmem:[#allocation27_spill] sm:$0xff] }
 0x947   :  { %5500 = vmatmul.mubr.f32.gmra.mrb[144].mxu1 %v3736_v22 }
 0x948   :  { %5504 = vmatprep.mubr.f32.mxu1 %v11621_v15  ;;  %v3739_v15 = vld [vmem:[#allocation3 + $0x3ef] sm:$0xff] }
 0x94a   :  { %v5241_v28 = vpop.f32.mrb[40].mxu1 }
 0x94b   :  { %v11712_v38 = vadd.f32 %v12536_v1, %v5241_v28  ;;  %v5243_v4 = vpop.f32.mrb[41].mxu1  ;;  %5505 = vmatmul.mubr.f32.gmra.mrb[146].mxu1 %v3737_v2  ;;  %v6088_v2 = vld [vmem:[#allocation4 + $0x8] sm:$0xff]  ;;  %v6089_v1 = vld [vmem:[#allocation4 + $0x10] sm:$0xff] }
 0x94c   :  { %5509 = vmatprep.mubr.f32.mxu1 %v12537_v49  ;;  %v12555_v49 = vld [vmem:[#allocation34_spill] sm:$0xff] }
 0x94e   :  { %v5246_v18 = vpop.f32.mrb[42].mxu1 }
 0x94f   :  { %v11716_v48 = vadd.f32 %v12538_v62, %v5246_v18  ;;  %v5248_v3 = vpop.f32.mrb[43].mxu1  ;;  %5510 = vmatmul.mubr.f32.gmra.mrb[148].mxu1 %v3738_v37  ;;  %v6090_v62 = vld [vmem:[#allocation4 + $0x18] sm:$0xff] }
 0x950   :  { %5514 = vmatprep.mubr.f32.mxu1 %v12539_v52  ;;  %v12556_v52 = vld [vmem:[#allocation38_spill] sm:$0xff] }
 0x952   :  { %v5251_v14 = vpop.f32.mrb[44].mxu1 }
 0x953   :  { %v11720_v10 = vadd.f32 %v12540_v19, %v5251_v14  ;;  %v5253_v31 = vpop.f32.mrb[45].mxu1  ;;  %5515 = vmatmul.mubr.f32.gmra.mrb[150].mxu1 %v3739_v15  ;;  %v6092_v19 = vld [vmem:[#allocation4 + $0x28] sm:$0xff] }
 0x954   :  { %5519 = vmatprep.mubr.f32.mxu1 %v12541_v0  ;;  %v6093_v31 = vld [vmem:[#allocation4 + $0x30] sm:$0xff] }
 0x956   :  { %v5256_v16 = vpop.f32.mrb[46].mxu1 }
 0x957   :  { %v11724_v21 = vadd.f32 %v12542_v17, %v5256_v16  ;;  %v5258_v7 = vpop.f32.mrb[47].mxu1  ;;  %5520 = vmatmul.mubr.f32.gmra.mrb[152].mxu1 %v3740_v42  ;;  %v12557_v16 = vld [vmem:[#allocation37_spill] sm:$0xff] }
 0x958   :  { %5524 = vmatprep.mubr.f32.mxu1 %v12543_v29  ;;  %v6094_v7 = vld [vmem:[#allocation4 + $0x38] sm:$0xff]  ;;  %v6095_v29 = vld [vmem:[#allocation4 + $0x40] sm:$0xff] }
 0x95a   :  { %v5261_v58 = vpop.f32.mrb[48].mxu1 }
 0x95b   :  { %v11728_v50 = vadd.f32 %v12544_v54, %v5261_v58  ;;  %v5263_v13 = vpop.f32.mrb[49].mxu1  ;;  %5525 = vmatmul.mubr.f32.gmra.mrb[154].mxu1 %v3741_v40  ;;  %v12558_v40 = vld [vmem:[#allocation41_spill] sm:$0xff] }
 0x95c   :  { %5529 = vmatprep.mubr.f32.mxu1 %v12545_v5  ;;  %v6096_v5 = vld [vmem:[#allocation4 + $0x48] sm:$0xff] }
 0x95e   :  { %v5266_v39 = vpop.f32.mrb[50].mxu1 }
 0x95f   :  { %v11732_v63 = vadd.f32 %v12546_v36, %v5266_v39  ;;  %v5268_v25 = vpop.f32.mrb[51].mxu1  ;;  %5530 = vmatmul.mubr.f32.gmra.mrb[156].mxu1 %v3742_v24  ;;  %v6097_v39 = vld [vmem:[#allocation4 + $0x50] sm:$0xff]  ;;  %v12559_v36 = vld [vmem:[#allocation40_spill] sm:$0xff] }
 0x960   :  { %5534 = vmatprep.mubr.f32.mxu1 %v12547_v20 }
 0x962   :  { %v5271_v8 = vpop.f32.mrb[52].mxu1 }
 0x963   :  { %v11736_v32 = vadd.f32 %v12548_v55, %v5271_v8  ;;  %v5273_v59 = vpop.f32.mrb[53].mxu1  ;;  %5535 = vmatmul.mubr.f32.gmra.mrb[158].mxu1 %v3743_v9  ;;  %v6098_v8 = vld [vmem:[#allocation4 + $0x58] sm:$0xff]  ;;  %v6099_v9 = vld [vmem:[#allocation4 + $0x60] sm:$0xff] }
 0x964   :  { %5539 = vmatprep.mubr.f32.mxu1 %v12549_v30  ;;  %v12560_v59 = vld [vmem:[#allocation43_spill] sm:$0xff] }
 0x966   :  { %v5276_v53 = vpop.f32.mrb[54].mxu1 }
 0x967   :  { %v11740_v35 = vadd.f32 %v12550_v26, %v5276_v53  ;;  %v5278_v6 = vpop.f32.mrb[55].mxu1  ;;  %5540 = vmatmul.mubr.f32.gmra.mrb[160].mxu1 %v3744_v61  ;;  %v6100_v61 = vld [vmem:[#allocation4 + $0x68] sm:$0xff]  ;;  %v6101_v26 = vld [vmem:[#allocation4 + $0x70] sm:$0xff] }
 0x968   :  { %5544 = vmatprep.mubr.f32.mxu1 %v12551_v45  ;;  %v12561_v45 = vld [vmem:[#allocation42_spill] sm:$0xff] }
 0x96a   :  { %v5281_v44 = vpop.f32.mrb[56].mxu1 }
 0x96b   :  { %v11744_v47 = vadd.f32 %v12552_v33, %v5281_v44  ;;  %v5283_v11 = vpop.f32.mrb[57].mxu1  ;;  %5545 = vmatmul.mubr.f32.gmra.mrb[162].mxu1 %v3745_v27  ;;  %v6102_v33 = vld [vmem:[#allocation4 + $0x78] sm:$0xff] }
 0x96c   :  { %5549 = vmatprep.mubr.f32.mxu1 %v11685_v34  ;;  %v6103_v11 = vld [vmem:[#allocation4 + $0x80] sm:$0xff] }
 0x96e   :  { %v5286_v41 = vpop.f32.mrb[58].mxu1 }
 0x96f   :  { %v11748_v12 = vadd.f32 %v12553_v56, %v5286_v41  ;;  %v5288_v46 = vpop.f32.mrb[59].mxu1  ;;  %5550 = vmatmul.mubr.f32.gmra.mrb[164].mxu1 %v3746_v60  ;;  %v12562_v41 = vld [vmem:[#allocation45_spill] sm:$0xff] }
 0x970   :  { %5554 = vmatprep.mubr.f32.mxu1 %v11685_v34  ;;  %v6091_v34 = vld [vmem:[#allocation4 + $0x20] sm:$0xff] }
 0x972   :  { %v5291_v23 = vpop.f32.mrb[60].mxu1 }
 0x973   :  { %v11752_v22 = vadd.f32 %v12554_v57, %v5291_v23  ;;  %v5293_v28 = vpop.f32.mrb[61].mxu1  ;;  %5555 = vmatmul.mubr.f32.gmra.mrb[166].mxu1 %v3747_v51  ;;  %v6104_v51 = vld [vmem:[#allocation4 + $0x88] sm:$0xff]  ;;  %v12563_v57 = vld [vmem:[#allocation44_spill] sm:$0xff] }
 0x974   :  { %7439 = vmatprep.mubr.f32.mxu1 %v6087_v43  ;;  %v6105_v43 = vld [vmem:[#allocation4 + $0x90] sm:$0xff] }
 0x976   :  { %v5296_v4 = vpop.f32.mrb[62].mxu1 }
 0x977   :  { %v11755_v18 = vadd.f32 %v12555_v49, %v5296_v4  ;;  %v5298_v37 = vpop.f32.mrb[63].mxu1  ;;  %7440 = vmatmul.mubr.f32.vlgmr.msra.gmra.mrb[168].mxu1 %v6088_v2  ;;  %v6107_v4 = vld [vmem:[#allocation4 + $0xa0] sm:$0xff] }
 0x978   :  { %7442 = vmatprep.mubr.f32.mxu1 %v6089_v1  ;;  %v6106_v1 = vld [vmem:[#allocation4 + $0x98] sm:$0xff]  ;;  %v12564_v37 = vld [vmem:[#allocation47_spill] sm:$0xff] }
 0x97a   :  { %v5301_v3 = vpop.f32.mrb[64].mxu1 }
 0x97b   :  { %v11758_v14 = vadd.f32 %v12556_v52, %v5301_v3  ;;  %v5303_v15 = vpop.f32.mrb[65].mxu1  ;;  %7443 = vmatmul.mubr.f32.gmra.mrb[170].mxu1 %v6090_v62  ;;  %v6108_v3 = vld [vmem:[#allocation4 + $0xa8] sm:$0xff]  ;;  %v6109_v52 = vld [vmem:[#allocation4 + $0xb0] sm:$0xff] }
 0x97c   :  { %7445 = vmatprep.mubr.f32.mxu1 %v6091_v34 }
 0x97e   :  { %v5306_v0 = vpop.f32.mrb[66].mxu1 }
 0x97f   :  { %v11761_v42 = vadd.f32 %v12557_v16, %v5306_v0  ;;  %v5308_v17 = vpop.f32.mrb[67].mxu1  ;;  %7446 = vmatmul.mubr.f32.gmra.mrb[172].mxu1 %v6092_v19  ;;  %v12565_v19 = vld [vmem:[#allocation46_spill] sm:$0xff]  ;;  %v6110_v16 = vld [vmem:[#allocation4 + $0xb8] sm:$0xff] }
 0x980   :  { %7448 = vmatprep.mubr.f32.mxu1 %v6093_v31  ;;  %v6111_v17 = vld [vmem:[#allocation4 + $0xc0] sm:$0xff] }
 0x982   :  { %v5311_v58 = vpop.f32.mrb[68].mxu1 }
 0x983   :  { %v11764_v54 = vadd.f32 %v12558_v40, %v5311_v58  ;;  %v5313_v13 = vpop.f32.mrb[69].mxu1  ;;  %7449 = vmatmul.mubr.f32.gmra.mrb[174].mxu1 %v6094_v7 }
 0x984   :  { %7451 = vmatprep.mubr.f32.mxu1 %v6095_v29  ;;  %v12566_v29 = vld [vmem:[#allocation49_spill] sm:$0xff]  ;;  %v6112_v13 = vld [vmem:[#allocation4 + $0xc8] sm:$0xff] }
 0x986   :  { %v5316_v24 = vpop.f32.mrb[70].mxu1 }
 0x987   :  { %v11767_v25 = vadd.f32 %v12559_v36, %v5316_v24  ;;  %v5318_v20 = vpop.f32.mrb[71].mxu1  ;;  %7452 = vmatmul.mubr.f32.gmra.mrb[176].mxu1 %v6096_v5  ;;  %v6113_v5 = vld [vmem:[#allocation4 + $0xd0] sm:$0xff]  ;;  %v12567_v24 = vld [vmem:[#allocation48_spill] sm:$0xff] }
 0x988   :  { %7454 = vmatprep.mubr.f32.mxu1 %v6097_v39 }
 0x98a   :  { %v5321_v55 = vpop.f32.mrb[72].mxu1 }
 0x98b   :  { %v11770_v30 = vadd.f32 %v12560_v59, %v5321_v55  ;;  %v5323_v53 = vpop.f32.mrb[73].mxu1  ;;  %7455 = vmatmul.mubr.f32.gmra.mrb[178].mxu1 %v6098_v8  ;;  %v6114_v8 = vld [vmem:[#allocation4 + $0xd8] sm:$0xff]  ;;  %v12568_v59 = vld [vmem:[#allocation51_spill] sm:$0xff] }
 0x98c   :  { %7457 = vmatprep.mubr.f32.mxu1 %v6099_v9  ;;  %v6115_v9 = vld [vmem:[#allocation4 + $0xe0] sm:$0xff] }
 0x98e   :  { %v5326_v6 = vpop.f32.mrb[74].mxu1 }
 0x98f   :  { %v11773_v44 = vadd.f32 %v12561_v45, %v5326_v6  ;;  %v5328_v27 = vpop.f32.mrb[75].mxu1  ;;  %7458 = vmatmul.mubr.f32.gmra.mrb[180].mxu1 %v6100_v61  ;;  %v6117_v6 = vld [vmem:[#allocation4 + $0xf0] sm:$0xff] }
 0x990   :  { %7460 = vmatprep.mubr.f32.mxu1 %v6101_v26  ;;  %v6116_v26 = vld [vmem:[#allocation4 + $0xe8] sm:$0xff] }
 0x991   :  { %v12569_v27 = vld [vmem:[#allocation50_spill] sm:$0xff] }
 0x992   :  { %v5331_v60 = vpop.f32.mrb[76].mxu1 }
 0x993   :  { %v11776_v56 = vadd.f32 %v12562_v41, %v5331_v60  ;;  %v5333_v46 = vpop.f32.mrb[77].mxu1  ;;  %7461 = vmatmul.mubr.f32.gmra.mrb[182].mxu1 %v6102_v33  ;;  %v6118_v60 = vld [vmem:[#allocation4 + $0xf8] sm:$0xff]  ;;  %v6119_v41 = vld [vmem:[#allocation4 + $0x100] sm:$0xff] }
 0x994   :  { %7463 = vmatprep.mubr.f32.mxu1 %v6103_v11 }
 0x996   :  { %v5336_v23 = vpop.f32.mrb[78].mxu1 }
 0x997   :  { %v11779_v28 = vadd.f32 %v12563_v57, %v5336_v23  ;;  %v5338_v2 = vpop.f32.mrb[79].mxu1  ;;  %7464 = vmatmul.mubr.f32.gmra.mrb[184].mxu1 %v6104_v51  ;;  %v12570_v51 = vld [vmem:[#allocation53_spill] sm:$0xff]  ;;  %v6120_v57 = vld [vmem:[#allocation4 + $0x108] sm:$0xff] }
 0x998   :  { %7466 = vmatprep.mubr.f32.mxu1 %v6105_v43  ;;  %v6121_v2 = vld [vmem:[#allocation4 + $0x110] sm:$0xff] }
 0x99a   :  { %v5341_v49 = vpop.f32.mrb[80].mxu1 }
 0x99b   :  { %v11782_v62 = vadd.f32 %v12564_v37, %v5341_v49  ;;  %v5343_v34 = vpop.f32.mrb[81].mxu1  ;;  %7467 = vmatmul.mubr.f32.gmra.mrb[186].mxu1 %v6106_v1 }
 0x99c   :  { %7469 = vmatprep.mubr.f32.mxu1 %v6107_v4  ;;  %v12571_v4 = vld [vmem:[#allocation52_spill] sm:$0xff] }
 0x99d   :  { %v6122_v34 = vld [vmem:[#allocation4 + $0x118] sm:$0xff] }
 0x99e   :  { %v5346_v15 = vpop.f32.mrb[82].mxu1 }
 0x99f   :  { %v11785_v31 = vadd.f32 %v12565_v19, %v5346_v15  ;;  %v5348_v0 = vpop.f32.mrb[83].mxu1  ;;  %7470 = vmatmul.mubr.f32.gmra.mrb[188].mxu1 %v6108_v3  ;;  %v6123_v3 = vld [vmem:[#allocation4 + $0x120] sm:$0xff]  ;;  %v12572_v15 = vld [vmem:[#allocation55_spill] sm:$0xff] }
 0x9a0   :  { %7472 = vmatprep.mubr.f32.mxu1 %v6109_v52 }
 0x9a2   :  { %v5351_v7 = vpop.f32.mrb[84].mxu1 }
 0x9a3   :  { %v11788_v58 = vadd.f32 %v12566_v29, %v5351_v7  ;;  %v5353_v40 = vpop.f32.mrb[85].mxu1  ;;  %7473 = vmatmul.mubr.f32.gmra.mrb[190].mxu1 %v6110_v16  ;;  %v6124_v16 = vld [vmem:[#allocation4 + $0x128] sm:$0xff] }
 0x9a4   :  { %7475 = vmatprep.mubr.f32.mxu1 %v6111_v17  ;;  %v6125_v17 = vld [vmem:[#allocation4 + $0x130] sm:$0xff]  ;;  %v12573_v29 = vld [vmem:[#allocation54_spill] sm:$0xff] }
 0x9a6   :  { %v5356_v39 = vpop.f32.mrb[86].mxu1 }
 0x9a7   :  { %v11791_v36 = vadd.f32 %v12567_v24, %v5356_v39  ;;  %v5358_v20 = vpop.f32.mrb[87].mxu1  ;;  %7476 = vmatmul.mubr.f32.gmra.mrb[192].mxu1 %v6112_v13  ;;  %v6127_v39 = vld [vmem:[#allocation4 + $0x140] sm:$0xff] }
 0x9a8   :  { %7478 = vmatprep.mubr.f32.mxu1 %v6113_v5  ;;  %v6126_v5 = vld [vmem:[#allocation4 + $0x138] sm:$0xff]  ;;  %v12574_v20 = vld [vmem:[#allocation57_spill] sm:$0xff] }
 0x9aa   :  { %v5361_v55 = vpop.f32.mrb[88].mxu1 }
 0x9ab   :  { %v11794_v53 = vadd.f32 %v12568_v59, %v5361_v55  ;;  %v5363_v61 = vpop.f32.mrb[89].mxu1  ;;  %7479 = vmatmul.mubr.f32.gmra.mrb[194].mxu1 %v6114_v8  ;;  %v6128_v55 = vld [vmem:[#allocation4 + $0x148] sm:$0xff]  ;;  %v11814_v59 = vpop.f32.mrb[214].mxu0 }
 0x9ac   :  { %7481 = vmatprep.mubr.f32.mxu1 %v6115_v9  ;;  %v6129_v61 = vld [vmem:[#allocation4 + $0x150] sm:$0xff] }
 0x9ae   :  { %v5366_v45 = vpop.f32.mrb[90].mxu1 }
 0x9af   :  { %v11797_v33 = vadd.f32 %v12569_v27, %v5366_v45  ;;  %v5368_v11 = vpop.f32.mrb[91].mxu1  ;;  %7482 = vmatmul.mubr.f32.gmra.mrb[196].mxu1 %v6116_v26  ;;  %v11816_v26 = vpop.f32.mrb[215].mxu0  ;;  %v12575_v45 = vld [vmem:[#allocation56_spill] sm:$0xff] }
 0x9b0   :  { %7484 = vmatprep.mubr.f32.mxu1 %v6117_v6 }
 0x9b2   :  { %v5371_v46 = vpop.f32.mrb[92].mxu1 }
 0x9b3   :  { %v11800_v43 = vadd.f32 %v12570_v51, %v5371_v46  ;;  %v5373_v23 = vpop.f32.mrb[93].mxu1  ;;  %7485 = vmatmul.mubr.f32.gmra.mrb[198].mxu1 %v6118_v60  ;;  %v6130_v60 = vld [vmem:[#allocation4 + $0x158] sm:$0xff]  ;;  %v12576_v51 = vld [vmem:[#allocation59_spill] sm:$0xff] }
 0x9b4   :  { %7487 = vmatprep.mubr.f32.mxu1 %v6119_v41  ;;  %v6131_v41 = vld [vmem:[#allocation4 + $0x160] sm:$0xff] }
 0x9b6   :  { %v5376_v1 = vpop.f32.mrb[94].mxu1 }
 0x9b7   :  { %v11803_v49 = vadd.f32 %v12571_v4, %v5376_v1  ;;  %v5378_v37 = vpop.f32.mrb[95].mxu1  ;;  %7488 = vmatmul.mubr.f32.gmra.mrb[200].mxu1 %v6120_v57  ;;  %v6133_v1 = vld [vmem:[#allocation4 + $0x170] sm:$0xff] }
 0x9b8   :  { %7490 = vmatprep.mubr.f32.mxu1 %v6121_v2  ;;  %v6132_v2 = vld [vmem:[#allocation4 + $0x168] sm:$0xff] }
 0x9b9   :  { %v12577_v37 = vld [vmem:[#allocation58_spill] sm:$0xff] }
 0x9ba   :  { %v5381_v52 = vpop.f32.mrb[96].mxu1 }
 0x9bb   :  { %v11806_v19 = vadd.f32 %v12572_v15, %v5381_v52  ;;  %v5383_v0 = vpop.f32.mrb[97].mxu1  ;;  %7491 = vmatmul.mubr.f32.gmra.mrb[202].mxu1 %v6122_v34  ;;  %v6134_v52 = vld [vmem:[#allocation4 + $0x178] sm:$0xff]  ;;  %v6135_v15 = vld [vmem:[#allocation4 + $0x180] sm:$0xff] }
 0x9bc   :  { %7493 = vmatprep.mubr.f32.mxu1 %v6123_v3 }
 0x9be   :  { %v5386_v7 = vpop.f32.mrb[98].mxu1 }
 0x9bf   :  { %v11809_v40 = vadd.f32 %v12573_v29, %v5386_v7  ;;  %v5388_v13 = vpop.f32.mrb[99].mxu1  ;;  %7494 = vmatmul.mubr.f32.gmra.mrb[204].mxu1 %v6124_v16  ;;  %v12578_v16 = vld [vmem:[#allocation61_spill] sm:$0xff]  ;;  %v6136_v29 = vld [vmem:[#allocation4 + $0x188] sm:$0xff] }
 0x9c0   :  { %7496 = vmatprep.mubr.f32.mxu1 %v6125_v17  ;;  %v6137_v13 = vld [vmem:[#allocation4 + $0x190] sm:$0xff] }
 0x9c2   :  { %v5391_v24 = vpop.f32.mrb[100].mxu1 }
 0x9c3   :  { %v11812_v8 = vadd.f32 %v12574_v20, %v5391_v24  ;;  %v5393_v9 = vpop.f32.mrb[101].mxu1  ;;  %7497 = vmatmul.mubr.f32.gmra.mrb[206].mxu1 %v6126_v5 }
 0x9c4   :  { %7499 = vmatprep.mubr.f32.mxu1 %v6127_v39  ;;  %v12579_v39 = vld [vmem:[#allocation60_spill] sm:$0xff] }
 0x9c5   :  { %v6138_v9 = vld [vmem:[#allocation4 + $0x198] sm:$0xff] }
 0x9c6   :  { %v5396_v6 = vpop.f32.mrb[102].mxu1 }
 0x9c7   :  { %v11819_v27 = vadd.f32 %v12575_v45, %v5396_v6  ;;  %v5398_v11 = vpop.f32.mrb[103].mxu1  ;;  %7500 = vmatmul.mubr.f32.gmra.mrb[208].mxu1 %v6128_v55  ;;  %v6139_v55 = vld [vmem:[#allocation4 + $0x1a0] sm:$0xff]  ;;  %v12580_v6 = vld [vmem:[#allocation63_spill] sm:$0xff] }
 0x9c8   :  { %7502 = vmatprep.mubr.f32.mxu1 %v6129_v61 }
 0x9ca   :  { %v5401_v46 = vpop.f32.mrb[104].mxu1 }
 0x9cb   :  { %v11822_v23 = vadd.f32 %v12576_v51, %v5401_v46  ;;  %v5403_v57 = vpop.f32.mrb[105].mxu1  ;;  %7503 = vmatmul.mubr.f32.gmra.mrb[210].mxu1 %v6130_v60  ;;  %v6140_v60 = vld [vmem:[#allocation4 + $0x1a8] sm:$0xff] }
 0x9cc   :  { %7505 = vmatprep.mubr.f32.mxu1 %v6131_v41  ;;  %v6141_v41 = vld [vmem:[#allocation4 + $0x1b0] sm:$0xff]  ;;  %v12581_v51 = vld [vmem:[#allocation62_spill] sm:$0xff] }
 0x9ce   :  { %v5406_v4 = vpop.f32.mrb[106].mxu1 }
 0x9cf   :  { %v11825_v34 = vadd.f32 %v12577_v37, %v5406_v4  ;;  %v5408_v3 = vpop.f32.mrb[107].mxu1  ;;  %7506 = vmatmul.mubr.f32.gmra.mrb[212].mxu1 %v6132_v2  ;;  %v6143_v4 = vld [vmem:[#allocation4 + $0x1c0] sm:$0xff] }
 0x9d0   :  { %7508 = vmatprep.mubr.f32.mxu1 %v6133_v1  ;;  %v6142_v1 = vld [vmem:[#allocation4 + $0x1b8] sm:$0xff]  ;;  %v12582_v3 = vld [vmem:[#allocation65_spill] sm:$0xff] }
 0x9d2   :  { %v5411_v0 = vpop.f32.mrb[108].mxu1 }
 0x9d3   :  { %v11828_v17 = vadd.f32 %v12578_v16, %v5411_v0  ;;  %v5413_v7 = vpop.f32.mrb[109].mxu1  ;;  %7509 = vmatmul.mubr.f32.gmra.mrb[214].mxu1 %v6134_v52  ;;  %v6144_v0 = vld [vmem:[#allocation4 + $0x1c8] sm:$0xff]  ;;  %v6145_v16 = vld [vmem:[#allocation4 + $0x1d0] sm:$0xff] }
 0x9d4   :  { %7511 = vmatprep.mubr.f32.mxu1 %v6135_v15 }
 0x9d6   :  { %v5416_v5 = vpop.f32.mrb[110].mxu1 }
 0x9d7   :  { %v11831_v24 = vadd.f32 %v12579_v39, %v5416_v5  ;;  %v5418_v20 = vpop.f32.mrb[111].mxu1  ;;  %7512 = vmatmul.mubr.f32.gmra.mrb[216].mxu1 %v6136_v29  ;;  %v12583_v29 = vld [vmem:[#allocation64_spill] sm:$0xff] }
 0x9d8   :  { %7514 = vmatprep.mubr.f32.mxu1 %v6137_v13  ;;  %v6146_v39 = vld [vmem:[#allocation4 + $0x1d8] sm:$0xff]  ;;  %v6147_v20 = vld [vmem:[#allocation4 + $0x1e0] sm:$0xff] }
 0x9da   :  { %v5421_v61 = vpop.f32.mrb[112].mxu1 }
 0x9db   :  { %v11834_v45 = vadd.f32 %v12580_v6, %v5421_v61  ;;  %v5423_v11 = vpop.f32.mrb[113].mxu1  ;;  %7515 = vmatmul.mubr.f32.gmra.mrb[218].mxu1 %v6138_v9 }
 0x9dc   :  { %7517 = vmatprep.mubr.f32.mxu1 %v6139_v55  ;;  %v12584_v55 = vld [vmem:[#allocation67_spill] sm:$0xff]  ;;  %v6148_v11 = vld [vmem:[#allocation4 + $0x1e8] sm:$0xff] }
 0x9de   :  { %v5426_v46 = vpop.f32.mrb[114].mxu1 }
 0x9df   :  { %v11837_v57 = vadd.f32 %v12581_v51, %v5426_v46  ;;  %v5428_v2 = vpop.f32.mrb[115].mxu1  ;;  %7518 = vmatmul.mubr.f32.gmra.mrb[220].mxu1 %v6140_v60  ;;  %v6149_v60 = vld [vmem:[#allocation4 + $0x1f0] sm:$0xff]  ;;  %v12585_v46 = vld [vmem:[#allocation66_spill] sm:$0xff] }
 0x9e0   :  { %7520 = vmatprep.mubr.f32.mxu1 %v6141_v41 }
 0x9e2   :  { %v5431_v37 = vpop.f32.mrb[116].mxu1 }
 0x9e3   :  { %v11840_v52 = vadd.f32 %v12582_v3, %v5431_v37  ;;  %v5433_v15 = vpop.f32.mrb[117].mxu1  ;;  %7521 = vmatmul.mubr.f32.gmra.mrb[222].mxu1 %v6142_v1  ;;  %v6150_v1 = vld [vmem:[#allocation4 + $0x1f8] sm:$0xff]  ;;  %v12586_v37 = vld [vmem:[#allocation69_spill] sm:$0xff] }
 0x9e4   :  { %7523 = vmatprep.mubr.f32.mxu1 %v6143_v4 }
 0x9e6   :  { %v5436_v7 = vpop.f32.mrb[118].mxu1 }
 0x9e7   :  { %v11843_v13 = vadd.f32 %v12583_v29, %v5436_v7  ;;  %v5438_v5 = vpop.f32.mrb[119].mxu1  ;;  %7524 = vmatmul.mubr.f32.gmra.mrb[224].mxu1 %v6144_v0 }
 0x9e8   :  { %7526 = vmatprep.mubr.f32.mxu1 %v6145_v16  ;;  %v12587_v16 = vld [vmem:[#allocation68_spill] sm:$0xff] }
 0x9ea   :  { %v5441_v9 = vpop.f32.mrb[120].mxu1 }
 0x9eb   :  { %v11846_v61 = vadd.f32 %v12584_v55, %v5441_v9  ;;  %v5443_v6 = vpop.f32.mrb[121].mxu1  ;;  %7527 = vmatmul.mubr.f32.gmra.mrb[226].mxu1 %v6146_v39  ;;  %v12588_v39 = vld [vmem:[#allocation71_spill] sm:$0xff] }
 0x9ec   :  { %7529 = vmatprep.mubr.f32.mxu1 %v6147_v20  ;;  %v12590_v6 = vld [vmem:[#allocation70_spill] sm:$0xff] }
 0x9ee   :  { %v5446_v41 = vpop.f32.mrb[122].mxu1 }
 0x9ef   :  { %v11849_v51 = vadd.f32 %v12585_v46, %v5446_v41  ;;  %v5448_v2 = vpop.f32.mrb[123].mxu1  ;;  %7530 = vmatmul.mubr.f32.gmra.mrb[228].mxu1 %v6148_v11  ;;  %v12592_v46 = vld [vmem:[#allocation73_spill] sm:$0xff] }
 0x9f0   :  { %7532 = vmatprep.mubr.f32.mxu1 %v6149_v60 }
 0x9f2   :  { %v5451_v4 = vpop.f32.mrb[124].mxu1 }
 0x9f3   :  { %v11852_v3 = vadd.f32 %v12586_v37, %v5451_v4  ;;  %v5453_v15 = vpop.f32.mrb[125].mxu1  ;;  %7533 = vmatmul.mubr.f32.gmra.mrb[230].mxu1 %v6150_v1  ;;  %v12594_v37 = vld [vmem:[#allocation72_spill] sm:$0xff] }
 0x9f6   :  { %v5456_v0 = vpop.f32.mrb[126].mxu1 }
 0x9f7   :  { %v11855_v7 = vadd.f32 %v12587_v16, %v5456_v0  ;;  %v5458_v29 = vpop.f32.mrb[127].mxu1 }
 0x9f8   :  { %v12596_v29 = vld [vmem:[#allocation75_spill] sm:$0xff] }
 0x9fa   :  { %v5461_v5 = vpop.f32.mrb[128].mxu1 }
 0x9fb   :  { %v11858_v20 = vadd.f32 %v12588_v39, %v5461_v5  ;;  %v5463_v9 = vpop.f32.mrb[129].mxu1 }
 0x9fd   :  { %12589 = vst [vmem:[#allocation36_spill] sm:$0xff] %v11858_v20  ;;  %v12598_v20 = vld [vmem:[#allocation74_spill] sm:$0xff] }
 0x9fe   :  { %v5466_v55 = vpop.f32.mrb[130].mxu1 }
 0x9ff   :  { %v11861_v11 = vadd.f32 %v12590_v6, %v5466_v55  ;;  %v5468_v60 = vpop.f32.mrb[131].mxu1 }
 0xa01   :  { %12591 = vst [vmem:[#allocation28_spill] sm:$0xff] %v11861_v11  ;;  %v12600_v11 = vld [vmem:[#allocation77_spill] sm:$0xff] }
 0xa02   :  { %v5471_v41 = vpop.f32.mrb[132].mxu1 }
 0xa03   :  { %v11864_v2 = vadd.f32 %v12592_v46, %v5471_v41  ;;  %v5473_v1 = vpop.f32.mrb[133].mxu1 }
 0xa05   :  { %12593 = vst [vmem:[#allocation39_spill] sm:$0xff] %v11864_v2  ;;  %v12602_v2 = vld [vmem:[#allocation76_spill] sm:$0xff] }
 0xa06   :  { %v5476_v4 = vpop.f32.mrb[134].mxu1 }
 0xa07   :  { %v11867_v15 = vadd.f32 %v12594_v37, %v5476_v4  ;;  %v5478_v0 = vpop.f32.mrb[135].mxu1 }
 0xa09   :  { %12595 = vst [vmem:[#allocation17_spill] sm:$0xff] %v11867_v15  ;;  %v12604_v15 = vld [vmem:[#allocation79_spill] sm:$0xff] }
 0xa0a   :  { %v5481_v16 = vpop.f32.mrb[136].mxu1 }
 0xa0b   :  { %v11870_v5 = vadd.f32 %v12596_v29, %v5481_v16  ;;  %v5483_v39 = vpop.f32.mrb[137].mxu1 }
 0xa0d   :  { %12597 = vst [vmem:[#allocation27_spill] sm:$0xff] %v11870_v5  ;;  %v12606_v5 = vld [vmem:[#allocation78_spill] sm:$0xff] }
 0xa0e   :  { %v5486_v9 = vpop.f32.mrb[138].mxu1 }
 0xa0f   :  { %v11873_v55 = vadd.f32 %v12598_v20, %v5486_v9  ;;  %v5488_v6 = vpop.f32.mrb[139].mxu1 }
 0xa11   :  { %12599 = vst [vmem:[#allocation29_spill] sm:$0xff] %v11873_v55  ;;  %v12608_v55 = vld [vmem:[#allocation81_spill] sm:$0xff] }
 0xa12   :  { %v5491_v60 = vpop.f32.mrb[140].mxu1 }
 0xa13   :  { %v11876_v41 = vadd.f32 %v12600_v11, %v5491_v60  ;;  %v5493_v46 = vpop.f32.mrb[141].mxu1 }
 0xa15   :  { %12601 = vst [vmem:[#allocation26_spill] sm:$0xff] %v11876_v41  ;;  %v12610_v41 = vld [vmem:[#allocation80_spill] sm:$0xff] }
 0xa16   :  { %v5496_v1 = vpop.f32.mrb[142].mxu1 }
 0xa17   :  { %v11879_v4 = vadd.f32 %v12602_v2, %v5496_v1  ;;  %v5498_v37 = vpop.f32.mrb[143].mxu1 }
 0xa19   :  { %12603 = vst [vmem:[#allocation18_spill] sm:$0xff] %v11879_v4  ;;  %v12612_v4 = vld [vmem:[#allocation83_spill] sm:$0xff] }
 0xa1a   :  { %v5501_v0 = vpop.f32.mrb[144].mxu1 }
 0xa1b   :  { %v11882_v16 = vadd.f32 %v12604_v15, %v5501_v0  ;;  %v5503_v29 = vpop.f32.mrb[145].mxu1 }
 0xa1d   :  { %12605 = vst [vmem:[#allocation22_spill] sm:$0xff] %v11882_v16  ;;  %v12614_v16 = vld [vmem:[#allocation82_spill] sm:$0xff] }
 0xa1e   :  { %v5506_v39 = vpop.f32.mrb[146].mxu1 }
 0xa1f   :  { %v11885_v20 = vadd.f32 %v12606_v5, %v5506_v39  ;;  %v5508_v9 = vpop.f32.mrb[147].mxu1 }
 0xa21   :  { %12607 = vst [vmem:[#allocation30_spill] sm:$0xff] %v11885_v20  ;;  %v12615_v20 = vld [vmem:[#allocation85_spill] sm:$0xff] }
 0xa22   :  { %v5511_v6 = vpop.f32.mrb[148].mxu1 }
 0xa23   :  { %v11888_v11 = vadd.f32 %v12608_v55, %v5511_v6  ;;  %v5513_v60 = vpop.f32.mrb[149].mxu1 }
 0xa25   :  { %12609 = vst [vmem:[#allocation24_spill] sm:$0xff] %v11888_v11  ;;  %v12617_v11 = vld [vmem:[#allocation84_spill] sm:$0xff] }
 0xa26   :  { %v5516_v46 = vpop.f32.mrb[150].mxu1 }
 0xa27   :  { %v11891_v2 = vadd.f32 %v12610_v41, %v5516_v46  ;;  %v5518_v1 = vpop.f32.mrb[151].mxu1 }
 0xa29   :  { %12611 = vst [vmem:[#allocation19_spill] sm:$0xff] %v11891_v2  ;;  %v12618_v2 = vld [vmem:[#allocation87_spill] sm:$0xff] }
 0xa2a   :  { %v5521_v37 = vpop.f32.mrb[152].mxu1 }
 0xa2b   :  { %v11894_v15 = vadd.f32 %v12612_v4, %v5521_v37  ;;  %v5523_v0 = vpop.f32.mrb[153].mxu1 }
 0xa2d   :  { %12613 = vst [vmem:[#allocation21_spill] sm:$0xff] %v11894_v15  ;;  %v12620_v15 = vld [vmem:[#allocation86_spill] sm:$0xff] }
 0xa2e   :  { %v5526_v29 = vpop.f32.mrb[154].mxu1 }
 0xa2f   :  { %v11897_v5 = vadd.f32 %v12614_v16, %v5526_v29  ;;  %v5528_v39 = vpop.f32.mrb[155].mxu1 }
 0xa32   :  { %v5531_v9 = vpop.f32.mrb[156].mxu1 }
 0xa33   :  { %v11900_v55 = vadd.f32 %v12615_v20, %v5531_v9  ;;  %v5533_v6 = vpop.f32.mrb[157].mxu1 }
 0xa35   :  { %12616 = vst [vmem:[#allocation25_spill] sm:$0xff] %v11900_v55 }
 0xa36   :  { %v5536_v60 = vpop.f32.mrb[158].mxu1 }
 0xa37   :  { %v11903_v41 = vadd.f32 %v12617_v11, %v5536_v60  ;;  %v5538_v46 = vpop.f32.mrb[159].mxu1  ;;  %v11917_v11 = vld [vmem:[%s12277_s5] ss:$0 sm:$0xff] }
 0xa38   :  { %v5952_v46 = vmul.f32 %v11917_v11, %v11712_v38  ;;  %v5955_v38 = vmul.f32 %v11917_v11, %v11724_v21  ;;  %v5957_v21 = vmul.f32 %v11917_v11, %v11732_v63 }
 0xa3a   :  { %v5541_v1 = vpop.f32.mrb[160].mxu1 }
 0xa3b   :  { %v11906_v4 = vadd.f32 %v12618_v2, %v5541_v1  ;;  %v5543_v37 = vpop.f32.mrb[161].mxu1 }
 0xa3c   :  { %v11934_v37 = vld [vmem:[%s12281_s9] ss:$0 sm:$0xff] }
 0xa3d   :  { %12619 = vst [vmem:[#allocation23_spill] sm:$0xff] %v11906_v4 }
 0xa3e   :  { %v5546_v0 = vpop.f32.mrb[162].mxu1 }
 0xa3f   :  { %v11909_v16 = vadd.f32 %v12620_v15, %v5546_v0  ;;  %v5548_v29 = vpop.f32.mrb[163].mxu1  ;;  %v11925_v15 = vld [vmem:[%s12280_s8] ss:$0 sm:$0xff] }
 0xa41   :  { %12621 = vst [vmem:[#allocation20_spill] sm:$0xff] %v11909_v16 }
 0xa42   :  { %v5551_v39 = vpop.f32.mrb[164].mxu1 }
 0xa43   :  { %v11912_v20 = vadd.f32 %v11816_v26, %v5551_v39  ;;  %v5553_v9 = vpop.f32.mrb[165].mxu1  ;;  %v5953_v26 = vmul.f32 %v11917_v11, %v11716_v48 }
 0xa45   :  { %12622 = vst [vmem:[#allocation33_spill] sm:$0xff] %v11912_v20 }
 0xa46   :  { %v5556_v6 = vpop.f32.mrb[166].mxu1 }
 0xa47   :  { %v11920_v2 = vadd.f32 %v11814_v59, %v5556_v6  ;;  %v5558_v60 = vpop.f32.mrb[167].mxu1  ;;  %v11939_v59 = vld [vmem:[%s12278_s6] ss:$0 sm:$0xff]  ;;  %s8940_s6 = smov [#allocation12]  }
 0xa48   :  { %v6024_v48 = vadd.f32 %v11939_v59, %v5953_v26  ;;  %v6023_v6 = vadd.f32 %v11939_v59, %v5952_v46  ;;  %v5954_v60 = vmul.f32 %v11917_v11, %v11720_v10  ;;  %v6026_v55 = vadd.f32 %v11939_v59, %v5955_v38  ;;  %s6891_s8 = sshll.u32 %s8940_s6, 4  ;;  %s6892_s8 = int_to_ptr.vmem [resolvable:$true] %s6891_s8 }
 0xa49   :  { %12623 = vst [vmem:[#allocation31_spill] sm:$0xff] %v11920_v2  ;;  %s8902_s9 = scalar_lea.vmem %s6892_s8, 8192  ;;  %p8907_p5 = scmp.lt.s32.totalorder %s6892_s8, %s6892_s8 }
 0xa4a   :  { %v7441_v1 = vpop.f32.mrb[168].mxu1  ;;  %v6025_v10 = vadd.f32 %v11939_v59, %v5954_v60  ;;  %v5959_v60 = vmul.f32 %v11917_v11, %v11740_v35  ;;  %p8903_p4 = scmp.ne.s32.totalorder %s6892_s8, %s8902_s9  ;;  %p8908_p6 = scmp.lt.s32.totalorder %s8902_s9, %s8902_s9 }
 0xa4b   :  { %v6560_v0 = vmul.f32 %v7441_v1, %v11925_v15  ;;  %v6233_v29 = vpop.f32.mrb[169].mxu1 }
 0xa4c   :  { %v6559_v39 = vmul.f32 %v11925_v15, %v6233_v29  ;;  %p8909_p7 = por %p8908_p6, %p8907_p5 }
 0xa4d   :  { %v6631_v9 = vadd.f32 %v11934_v37, %v6560_v0 }
 0xa4e   :  { %v6630_v20 = vadd.f32 %v11934_v37, %v6559_v39  ;;  %v7444_v2 = vpop.f32.mrb[170].mxu1  ;;  %v5956_v39 = vmul.f32 %v11917_v11, %v11728_v50  ;;  %p8910_p8 = pnand %p8909_p7, %p8903_p4 }
 0xa4f   :  { %v6695_v4 = vadd.f32 %v6631_v9, %v6024_v48  ;;  %v6562_v1 = vmul.f32 %v7444_v2, %v11925_v15  ;;  %v6243_v16 = vpop.f32.mrb[171].mxu1 }
 0xa50   :  { %v6694_v29 = vadd.f32 %v6630_v20, %v6023_v6  ;;  %v6561_v26 = vmul.f32 %v11925_v15, %v6243_v16 }
 0xa51   :  { %v6759_v0 = vmax.f32 %v6695_v4, 0.0  ;;  %v6633_v46 = vadd.f32 %v11934_v37, %v6562_v1  ;;  %v6028_v4 = vadd.f32 %v11939_v59, %v5957_v21 }
 0xa52   :  { %v6758_v48 = vmax.f32 %v6694_v29, 0.0  ;;  %v6632_v2 = vadd.f32 %v11934_v37, %v6561_v26  ;;  %v7447_v9 = vpop.f32.mrb[172].mxu1  ;;  %v6027_v29 = vadd.f32 %v11939_v59, %v5956_v39  ;;  %v5961_v39 = vmul.f32 %v11917_v11, %v11748_v12 }
 0xa53   :  { %6823 = vst [vmem:[#allocation12 + $0x8] sm:$0xff] %v6759_v0  ;;  %v6697_v20 = vadd.f32 %v6633_v46, %v6026_v55  ;;  %v6564_v16 = vmul.f32 %v7447_v9, %v11925_v15  ;;  %v6253_v38 = vpop.f32.mrb[173].mxu1  ;;  %v5958_v55 = vmul.f32 %v11917_v11, %v11736_v32  ;;  %v6030_v9 = vadd.f32 %v11939_v59, %v5959_v60 }
 0xa54   :  { %6822 = vst [vmem:[#allocation12] sm:$0xff] %v6758_v48  ;;  %v6696_v6 = vadd.f32 %v6632_v2, %v6025_v10  ;;  %v6563_v63 = vmul.f32 %v11925_v15, %v6253_v38  ;;  %v5960_v38 = vmul.f32 %v11917_v11, %v11744_v47 }
 0xa55   :  { %v6761_v1 = vmax.f32 %v6697_v20, 0.0  ;;  %v6635_v50 = vadd.f32 %v11934_v37, %v6564_v16  ;;  %v6029_v16 = vadd.f32 %v11939_v59, %v5958_v55  ;;  %v5963_v55 = vmul.f32 %v11917_v11, %v11755_v18 }
 0xa56   :  { %v6760_v26 = vmax.f32 %v6696_v6, 0.0  ;;  %v6634_v0 = vadd.f32 %v11934_v37, %v6563_v63  ;;  %v7450_v46 = vpop.f32.mrb[174].mxu1 }
 0xa57   :  { %6825 = vst [vmem:[#allocation12 + $0x18] sm:$0xff] %v6761_v1  ;;  %v6699_v10 = vadd.f32 %v6635_v50, %v6028_v4  ;;  %v6566_v48 = vmul.f32 %v7450_v46, %v11925_v15  ;;  %v6263_v21 = vpop.f32.mrb[175].mxu1  ;;  %v6031_v46 = vadd.f32 %v11939_v59, %v5960_v38 }
 0xa58   :  { %6824 = vst [vmem:[#allocation12 + $0x10] sm:$0xff] %v6760_v26  ;;  %v6698_v2 = vadd.f32 %v6634_v0, %v6027_v29  ;;  %v6565_v35 = vmul.f32 %v11925_v15, %v6263_v21  ;;  %v6032_v26 = vadd.f32 %v11939_v59, %v5961_v39 }
 0xa59   :  { %v6763_v20 = vmax.f32 %v6699_v10, 0.0  ;;  %v6637_v32 = vadd.f32 %v11934_v37, %v6566_v48  ;;  %v5962_v10 = vmul.f32 %v11917_v11, %v11752_v22 }
 0xa5a   :  { %v6762_v6 = vmax.f32 %v6698_v2, 0.0  ;;  %v6636_v63 = vadd.f32 %v11934_v37, %v6565_v35  ;;  %v7453_v4 = vpop.f32.mrb[176].mxu1 }
 0xa5b   :  { %6827 = vst [vmem:[#allocation12 + $0x28] sm:$0xff] %v6763_v20  ;;  %v6701_v1 = vadd.f32 %v6637_v32, %v6030_v9  ;;  %v6568_v50 = vmul.f32 %v7453_v4, %v11925_v15  ;;  %v6273_v60 = vpop.f32.mrb[177].mxu1  ;;  %v6034_v32 = vadd.f32 %v11939_v59, %v5963_v55 }
 0xa5c   :  { %6826 = vst [vmem:[#allocation12 + $0x20] sm:$0xff] %v6762_v6  ;;  %v6700_v29 = vadd.f32 %v6636_v63, %v6029_v16  ;;  %v6567_v12 = vmul.f32 %v11925_v15, %v6273_v60  ;;  %v5965_v16 = vmul.f32 %v11917_v11, %v11761_v42  ;;  %v6033_v6 = vadd.f32 %v11939_v59, %v5962_v10 }
 0xa5d   :  { %v6765_v0 = vmax.f32 %v6701_v1, 0.0  ;;  %v6639_v47 = vadd.f32 %v11934_v37, %v6568_v50  ;;  %v5964_v63 = vmul.f32 %v11917_v11, %v11758_v14  ;;  %v5966_v10 = vmul.f32 %v11917_v11, %v11764_v54 }
 0xa5e   :  { %v6764_v48 = vmax.f32 %v6700_v29, 0.0  ;;  %v6638_v21 = vadd.f32 %v11934_v37, %v6567_v12  ;;  %v7456_v2 = vpop.f32.mrb[178].mxu1  ;;  %v6036_v55 = vadd.f32 %v11939_v59, %v5965_v16 }
 0xa5f   :  { %6829 = vst [vmem:[#allocation12 + $0x38] sm:$0xff] %v6765_v0  ;;  %v6703_v35 = vadd.f32 %v6639_v47, %v6032_v26  ;;  %v6570_v9 = vmul.f32 %v7456_v2, %v11925_v15  ;;  %v6283_v39 = vpop.f32.mrb[179].mxu1  ;;  %v5967_v0 = vmul.f32 %v11917_v11, %v11767_v25 }
 0xa60   :  { %6828 = vst [vmem:[#allocation12 + $0x30] sm:$0xff] %v6764_v48  ;;  %v6702_v20 = vadd.f32 %v6638_v21, %v6031_v46  ;;  %v6569_v18 = vmul.f32 %v11925_v15, %v6283_v39  ;;  %v6035_v46 = vadd.f32 %v11939_v59, %v5964_v63 }
 0xa61   :  { %v6767_v38 = vmax.f32 %v6703_v35, 0.0  ;;  %v6641_v22 = vadd.f32 %v11934_v37, %v6570_v9 }
 0xa62   :  { %v6766_v4 = vmax.f32 %v6702_v20, 0.0  ;;  %v6640_v1 = vadd.f32 %v11934_v37, %v6569_v18  ;;  %v7459_v50 = vpop.f32.mrb[180].mxu1  ;;  %v6038_v18 = vadd.f32 %v11939_v59, %v5967_v0  ;;  %v5970_v0 = vmul.f32 %v11917_v11, %v11776_v56 }
 0xa63   :  { %6831 = vst [vmem:[#allocation12 + $0x48] sm:$0xff] %v6767_v38  ;;  %v6705_v60 = vadd.f32 %v6641_v22, %v6034_v32  ;;  %v6572_v29 = vmul.f32 %v7459_v50, %v11925_v15  ;;  %v6293_v12 = vpop.f32.mrb[181].mxu1  ;;  %v5969_v32 = vmul.f32 %v11917_v11, %v11773_v44  ;;  %v6037_v38 = vadd.f32 %v11939_v59, %v5966_v10 }
 0xa64   :  { %6830 = vst [vmem:[#allocation12 + $0x40] sm:$0xff] %v6766_v4  ;;  %v6704_v26 = vadd.f32 %v6640_v1, %v6033_v6  ;;  %v6571_v42 = vmul.f32 %v11925_v15, %v6293_v12  ;;  %v5968_v22 = vmul.f32 %v11917_v11, %v11770_v30 }
 0xa65   :  { %v6769_v47 = vmax.f32 %v6705_v60, 0.0  ;;  %v6643_v14 = vadd.f32 %v11934_v37, %v6572_v29  ;;  %v6040_v12 = vadd.f32 %v11939_v59, %v5969_v32 }
 0xa66   :  { %v6768_v48 = vmax.f32 %v6704_v26, 0.0  ;;  %v6642_v21 = vadd.f32 %v11934_v37, %v6571_v42  ;;  %v7462_v2 = vpop.f32.mrb[182].mxu1  ;;  %v5971_v26 = vmul.f32 %v11917_v11, %v11779_v28 }
 0xa67   :  { %6833 = vst [vmem:[#allocation12 + $0x58] sm:$0xff] %v6769_v47  ;;  %v6707_v35 = vadd.f32 %v6643_v14, %v6036_v55  ;;  %v6574_v9 = vmul.f32 %v7462_v2, %v11925_v15  ;;  %v6303_v39 = vpop.f32.mrb[183].mxu1  ;;  %v6039_v55 = vadd.f32 %v11939_v59, %v5968_v22 }
 0xa68   :  { %6832 = vst [vmem:[#allocation12 + $0x50] sm:$0xff] %v6768_v48  ;;  %v6706_v20 = vadd.f32 %v6642_v21, %v6035_v46  ;;  %v6573_v25 = vmul.f32 %v11925_v15, %v6303_v39 }
 0xa69   :  { %v6771_v16 = vmax.f32 %v6707_v35, 0.0  ;;  %v6645_v54 = vadd.f32 %v11934_v37, %v6574_v9  ;;  %v6042_v35 = vadd.f32 %v11939_v59, %v5971_v26  ;;  %v5973_v9 = vmul.f32 %v11917_v11, %v11785_v31 }
 0xa6a   :  { %v6770_v6 = vmax.f32 %v6706_v20, 0.0  ;;  %v6644_v63 = vadd.f32 %v11934_v37, %v6573_v25  ;;  %v7465_v4 = vpop.f32.mrb[184].mxu1  ;;  %v6041_v20 = vadd.f32 %v11939_v59, %v5970_v0  ;;  %v5972_v25 = vmul.f32 %v11917_v11, %v11782_v62 }
 0xa6b   :  { %6835 = vst [vmem:[#allocation12 + $0x68] sm:$0xff] %v6771_v16  ;;  %v6709_v1 = vadd.f32 %v6645_v54, %v6038_v18  ;;  %v6576_v50 = vmul.f32 %v7465_v4, %v11925_v15  ;;  %v6313_v60 = vpop.f32.mrb[185].mxu1  ;;  %v5975_v4 = vmul.f32 %v11917_v11, %v11791_v36 }
 0xa6c   :  { %6834 = vst [vmem:[#allocation12 + $0x60] sm:$0xff] %v6770_v6  ;;  %v6708_v29 = vadd.f32 %v6644_v63, %v6037_v38  ;;  %v6575_v44 = vmul.f32 %v11925_v15, %v6313_v60  ;;  %v6044_v63 = vadd.f32 %v11939_v59, %v5973_v9  ;;  %v5974_v60 = vmul.f32 %v11917_v11, %v11788_v58 }
 0xa6d   :  { %v6773_v42 = vmax.f32 %v6709_v1, 0.0  ;;  %v6647_v30 = vadd.f32 %v11934_v37, %v6576_v50  ;;  %v6043_v50 = vadd.f32 %v11939_v59, %v5972_v25  ;;  %v6046_v0 = vadd.f32 %v11939_v59, %v5975_v4 }
 0xa6e   :  { %v6772_v47 = vmax.f32 %v6708_v29, 0.0  ;;  %v6646_v14 = vadd.f32 %v11934_v37, %v6575_v44  ;;  %v7468_v46 = vpop.f32.mrb[186].mxu1 }
 0xa6f   :  { %6837 = vst [vmem:[#allocation12 + $0x78] sm:$0xff] %v6773_v42  ;;  %v6711_v10 = vadd.f32 %v6647_v30, %v6040_v12  ;;  %v6578_v48 = vmul.f32 %v7468_v46, %v11925_v15  ;;  %v6323_v21 = vpop.f32.mrb[187].mxu1  ;;  %v6045_v46 = vadd.f32 %v11939_v59, %v5974_v60  ;;  %v5980_v60 = vmul.f32 %v11917_v11, %v11806_v19 }
 0xa70   :  { %6836 = vst [vmem:[#allocation12 + $0x70] sm:$0xff] %v6772_v47  ;;  %v6710_v2 = vadd.f32 %v6646_v14, %v6039_v55  ;;  %v6577_v28 = vmul.f32 %v11925_v15, %v6323_v21  ;;  %v5977_v47 = vmul.f32 %v11917_v11, %v11797_v33 }
 0xa71   :  { %v6775_v39 = vmax.f32 %v6711_v10, 0.0  ;;  %v6649_v56 = vadd.f32 %v11934_v37, %v6578_v48  ;;  %v5976_v10 = vmul.f32 %v11917_v11, %v11794_v53 }
 0xa72   :  { %v6774_v18 = vmax.f32 %v6710_v2, 0.0  ;;  %v6648_v32 = vadd.f32 %v11934_v37, %v6577_v28  ;;  %v7471_v16 = vpop.f32.mrb[188].mxu1 }
 0xa73   :  { %6839 = vst [vmem:[#allocation12 + $0x88] sm:$0xff] %v6775_v39  ;;  %v6713_v54 = vadd.f32 %v6649_v56, %v6042_v35  ;;  %v6580_v38 = vmul.f32 %v7471_v16, %v11925_v15  ;;  %v6333_v22 = vpop.f32.mrb[189].mxu1  ;;  %v6048_v56 = vadd.f32 %v11939_v59, %v5977_v47 }
 0xa74   :  { %6838 = vst [vmem:[#allocation12 + $0x80] sm:$0xff] %v6774_v18  ;;  %v6712_v6 = vadd.f32 %v6648_v32, %v6041_v20  ;;  %v6579_v31 = vmul.f32 %v11925_v15, %v6333_v22  ;;  %v5979_v20 = vmul.f32 %v11917_v11, %v11803_v49  ;;  %v6047_v18 = vadd.f32 %v11939_v59, %v5976_v10 }
 0xa75   :  { %v6777_v1 = vmax.f32 %v6713_v54, 0.0  ;;  %v6651_v62 = vadd.f32 %v11934_v37, %v6580_v38  ;;  %v5978_v32 = vmul.f32 %v11917_v11, %v11800_v43 }
 0xa76   :  { %v6776_v29 = vmax.f32 %v6712_v6, 0.0  ;;  %v6650_v44 = vadd.f32 %v11934_v37, %v6579_v31  ;;  %v7474_v12 = vpop.f32.mrb[190].mxu1  ;;  %v6050_v4 = vadd.f32 %v11939_v59, %v5979_v20  ;;  %v5984_v20 = vmul.f32 %v11917_v11, %v11822_v23 }
 0xa77   :  { %6841 = vst [vmem:[#allocation12 + $0x98] sm:$0xff] %v6777_v1  ;;  %v6715_v26 = vadd.f32 %v6651_v62, %v6044_v63  ;;  %v6582_v42 = vmul.f32 %v7474_v12, %v11925_v15  ;;  %v6343_v30 = vpop.f32.mrb[191].mxu1  ;;  %v5981_v1 = vmul.f32 %v11917_v11, %v11809_v40 }
 0xa78   :  { %6840 = vst [vmem:[#allocation12 + $0x90] sm:$0xff] %v6776_v29  ;;  %v6714_v55 = vadd.f32 %v6650_v44, %v6043_v50  ;;  %v6581_v36 = vmul.f32 %v11925_v15, %v6343_v30  ;;  %v6049_v50 = vadd.f32 %v11939_v59, %v5978_v32 }
 0xa79   :  { %v6779_v14 = vmax.f32 %v6715_v26, 0.0  ;;  %v6653_v58 = vadd.f32 %v11934_v37, %v6582_v42 }
 0xa7a   :  { %v6778_v48 = vmax.f32 %v6714_v55, 0.0  ;;  %v6652_v21 = vadd.f32 %v11934_v37, %v6581_v36  ;;  %v7477_v2 = vpop.f32.mrb[192].mxu1  ;;  %v6052_v36 = vadd.f32 %v11939_v59, %v5981_v1 }
 0xa7b   :  { %6843 = vst [vmem:[#allocation12 + $0xa8] sm:$0xff] %v6779_v14  ;;  %v6717_v28 = vadd.f32 %v6653_v58, %v6046_v0  ;;  %v6584_v35 = vmul.f32 %v7477_v2, %v11925_v15  ;;  %v6353_v9 = vpop.f32.mrb[193].mxu1  ;;  %v5983_v0 = vmul.f32 %v11917_v11, %v11819_v27  ;;  %v6051_v14 = vadd.f32 %v11939_v59, %v5980_v60 }
 0xa7c   :  { %6842 = vst [vmem:[#allocation12 + $0xa0] sm:$0xff] %v6778_v48  ;;  %v6716_v39 = vadd.f32 %v6652_v21, %v6045_v46  ;;  %v6583_v33 = vmul.f32 %v11925_v15, %v6353_v9  ;;  %v5982_v58 = vmul.f32 %v11917_v11, %v11812_v8 }
 0xa7d   :  { %v6781_v25 = vmax.f32 %v6717_v28, 0.0  ;;  %v6655_v53 = vadd.f32 %v11934_v37, %v6584_v35  ;;  %v6054_v9 = vadd.f32 %v11939_v59, %v5983_v0 }
 0xa7e   :  { %v6780_v16 = vmax.f32 %v6716_v39, 0.0  ;;  %v6654_v54 = vadd.f32 %v11934_v37, %v6583_v33  ;;  %v7480_v38 = vpop.f32.mrb[194].mxu1  ;;  %v5985_v39 = vmul.f32 %v11917_v11, %v11825_v34 }
 0xa7f   :  { %6845 = vst [vmem:[#allocation12 + $0xb8] sm:$0xff] %v6781_v25  ;;  %v6719_v22 = vadd.f32 %v6655_v53, %v6048_v56  ;;  %v6586_v6 = vmul.f32 %v7480_v38, %v11925_v15  ;;  %v6363_v31 = vpop.f32.mrb[195].mxu1  ;;  %v6053_v56 = vadd.f32 %v11939_v59, %v5982_v58 }
 0xa80   :  { %6844 = vst [vmem:[#allocation12 + $0xb0] sm:$0xff] %v6780_v16  ;;  %v6718_v63 = vadd.f32 %v6654_v54, %v6047_v18  ;;  %v6585_v49 = vmul.f32 %v11925_v15, %v6363_v31 }
 0xa81   :  { %v6783_v62 = vmax.f32 %v6719_v22, 0.0  ;;  %v6657_v43 = vadd.f32 %v11934_v37, %v6586_v6  ;;  %v6056_v22 = vadd.f32 %v11939_v59, %v5985_v39  ;;  %v5987_v6 = vmul.f32 %v11917_v11, %v11831_v24 }
 0xa82   :  { %v6782_v29 = vmax.f32 %v6718_v63, 0.0  ;;  %v6656_v44 = vadd.f32 %v11934_v37, %v6585_v49  ;;  %v7483_v12 = vpop.f32.mrb[196].mxu1  ;;  %v6055_v63 = vadd.f32 %v11939_v59, %v5984_v20  ;;  %v5986_v49 = vmul.f32 %v11917_v11, %v11828_v17 }
 0xa83   :  { %6847 = vst [vmem:[#allocation12 + $0xc8] sm:$0xff] %v6783_v62  ;;  %v6721_v26 = vadd.f32 %v6657_v43, %v6050_v4  ;;  %v6588_v42 = vmul.f32 %v7483_v12, %v11925_v15  ;;  %v6373_v30 = vpop.f32.mrb[197].mxu1  ;;  %v5989_v12 = vmul.f32 %v11917_v11, %v11837_v57 }
 0xa84   :  { %6846 = vst [vmem:[#allocation12 + $0xc0] sm:$0xff] %v6782_v29  ;;  %v6720_v55 = vadd.f32 %v6656_v44, %v6049_v50  ;;  %v6587_v40 = vmul.f32 %v11925_v15, %v6373_v30  ;;  %v6058_v44 = vadd.f32 %v11939_v59, %v5987_v6  ;;  %v5988_v30 = vmul.f32 %v11917_v11, %v11834_v45 }
 0xa85   :  { %v6785_v47 = vmax.f32 %v6721_v26, 0.0  ;;  %v6659_v19 = vadd.f32 %v11934_v37, %v6588_v42  ;;  %v6057_v42 = vadd.f32 %v11939_v59, %v5986_v49  ;;  %v6060_v58 = vadd.f32 %v11939_v59, %v5989_v12 }
 0xa86   :  { %v6784_v46 = vmax.f32 %v6720_v55, 0.0  ;;  %v6658_v10 = vadd.f32 %v11934_v37, %v6587_v40  ;;  %v7486_v48 = vpop.f32.mrb[198].mxu1  ;;  %v5994_v49 = vmul.f32 %v11917_v11, %v11852_v3 }
 0xa87   :  { %6849 = vst [vmem:[#allocation12 + $0xd8] sm:$0xff] %v6785_v47  ;;  %v6723_v21 = vadd.f32 %v6659_v19, %v6052_v36  ;;  %v6590_v2 = vmul.f32 %v7486_v48, %v11925_v15  ;;  %v6383_v28 = vpop.f32.mrb[199].mxu1  ;;  %v6059_v48 = vadd.f32 %v11939_v59, %v5988_v30 }
 0xa88   :  { %6848 = vst [vmem:[#allocation12 + $0xd0] sm:$0xff] %v6784_v46  ;;  %v6722_v35 = vadd.f32 %v6658_v10, %v6051_v14  ;;  %v6589_v27 = vmul.f32 %v11925_v15, %v6383_v28  ;;  %v5991_v46 = vmul.f32 %v11917_v11, %v11843_v13 }
 0xa89   :  { %v6787_v33 = vmax.f32 %v6723_v21, 0.0  ;;  %v6661_v8 = vadd.f32 %v11934_v37, %v6590_v2  ;;  %v5990_v21 = vmul.f32 %v11917_v11, %v11840_v52 }
 0xa8a   :  { %v6786_v25 = vmax.f32 %v6722_v35, 0.0  ;;  %v6660_v53 = vadd.f32 %v11934_v37, %v6589_v27  ;;  %v7489_v18 = vpop.f32.mrb[200].mxu1 }
 0xa8b   :  { %6851 = vst [vmem:[#allocation12 + $0xe8] sm:$0xff] %v6787_v33  ;;  %v6725_v32 = vadd.f32 %v6661_v8, %v6054_v9  ;;  %v6592_v16 = vmul.f32 %v7489_v18, %v11925_v15  ;;  %v6393_v54 = vpop.f32.mrb[201].mxu1  ;;  %v6062_v8 = vadd.f32 %v11939_v59, %v5991_v46  ;;  %v12626_v46 = vld [vmem:[#allocation17_spill] sm:$0xff] }
 0xa8c   :  { %6850 = vst [vmem:[#allocation12 + $0xe0] sm:$0xff] %v6786_v25  ;;  %v6724_v38 = vadd.f32 %v6660_v53, %v6053_v56  ;;  %v6591_v34 = vmul.f32 %v11925_v15, %v6393_v54  ;;  %v5993_v56 = vmul.f32 %v11917_v11, %v11849_v51  ;;  %v6061_v25 = vadd.f32 %v11939_v59, %v5990_v21 }
 0xa8d   :  { %v6789_v31 = vmax.f32 %v6725_v32, 0.0  ;;  %v6663_v23 = vadd.f32 %v11934_v37, %v6592_v16  ;;  %v5992_v53 = vmul.f32 %v11917_v11, %v11846_v61 }
 0xa8e   :  { %v6788_v4 = vmax.f32 %v6724_v38, 0.0  ;;  %v6662_v1 = vadd.f32 %v11934_v37, %v6591_v34  ;;  %v7492_v62 = vpop.f32.mrb[202].mxu1  ;;  %v6064_v6 = vadd.f32 %v11939_v59, %v5993_v56 }
 0xa8f   :  { %6853 = vst [vmem:[#allocation12 + $0xf8] sm:$0xff] %v6789_v31  ;;  %v6727_v43 = vadd.f32 %v6663_v23, %v6056_v22  ;;  %v6594_v50 = vmul.f32 %v7492_v62, %v11925_v15  ;;  %v6403_v60 = vpop.f32.mrb[203].mxu1  ;;  %v5995_v31 = vmul.f32 %v11917_v11, %v11855_v7 }
 0xa90   :  { %6852 = vst [vmem:[#allocation12 + $0xf0] sm:$0xff] %v6788_v4  ;;  %v6726_v29 = vadd.f32 %v6662_v1, %v6055_v63  ;;  %v6593_v24 = vmul.f32 %v11925_v15, %v6403_v60  ;;  %v6063_v63 = vadd.f32 %v11939_v59, %v5992_v53 }
 0xa91   :  { %v6791_v26 = vmax.f32 %v6727_v43, 0.0  ;;  %v6665_v17 = vadd.f32 %v11934_v37, %v6594_v50 }
 0xa92   :  { %v6790_v55 = vmax.f32 %v6726_v29, 0.0  ;;  %v6664_v40 = vadd.f32 %v11934_v37, %v6593_v24  ;;  %v7495_v36 = vpop.f32.mrb[204].mxu1  ;;  %v6066_v24 = vadd.f32 %v11939_v59, %v5995_v31 }
 0xa93   :  { %6855 = vst [vmem:[#allocation12 + $0x108] sm:$0xff] %v6791_v26  ;;  %v6729_v0 = vadd.f32 %v6665_v17, %v6058_v44  ;;  %v6596_v47 = vmul.f32 %v7495_v36, %v11925_v15  ;;  %v6413_v19 = vpop.f32.mrb[205].mxu1  ;;  %v12624_v44 = vld [vmem:[#allocation28_spill] sm:$0xff]  ;;  %v6065_v17 = vadd.f32 %v11939_v59, %v5994_v49  ;;  %v12630_v49 = vld [vmem:[#allocation18_spill] sm:$0xff] }
 0xa94   :  { %6854 = vst [vmem:[#allocation12 + $0x100] sm:$0xff] %v6790_v55  ;;  %v6728_v14 = vadd.f32 %v6664_v40, %v6057_v42  ;;  %v6595_v57 = vmul.f32 %v11925_v15, %v6413_v19  ;;  %v5997_v12 = vmul.f32 %v11917_v11, %v12624_v44  ;;  %v12625_v42 = vld [vmem:[#allocation36_spill] sm:$0xff] }
 0xa95   :  { %v6793_v10 = vmax.f32 %v6729_v0, 0.0  ;;  %v6667_v45 = vadd.f32 %v11934_v37, %v6596_v47  ;;  %v5996_v30 = vmul.f32 %v11917_v11, %v12625_v42 }
 0xa96   :  { %v6792_v2 = vmax.f32 %v6728_v14, 0.0  ;;  %v6666_v28 = vadd.f32 %v11934_v37, %v6595_v57  ;;  %v7498_v35 = vpop.f32.mrb[206].mxu1 }
 0xa97   :  { %6857 = vst [vmem:[#allocation12 + $0x118] sm:$0xff] %v6793_v10  ;;  %v6731_v27 = vadd.f32 %v6667_v45, %v6060_v58  ;;  %v6598_v9 = vmul.f32 %v7498_v35, %v11925_v15  ;;  %v6423_v39 = vpop.f32.mrb[207].mxu1  ;;  %v6068_v58 = vadd.f32 %v11939_v59, %v5997_v12  ;;  %v5999_v10 = vmul.f32 %v11917_v11, %v12626_v46 }
 0xa98   :  { %6856 = vst [vmem:[#allocation12 + $0x110] sm:$0xff] %v6792_v2  ;;  %v6730_v33 = vadd.f32 %v6666_v28, %v6059_v48  ;;  %v6597_v13 = vmul.f32 %v11925_v15, %v6423_v39  ;;  %v6067_v21 = vadd.f32 %v11939_v59, %v5996_v30  ;;  %v12627_v2 = vld [vmem:[#allocation39_spill] sm:$0xff]  ;;  %v12632_v30 = vld [vmem:[#allocation30_spill] sm:$0xff] }
 0xa99   :  { %v6795_v20 = vmax.f32 %v6731_v27, 0.0  ;;  %v6669_v52 = vadd.f32 %v11934_v37, %v6598_v9  ;;  %v5998_v28 = vmul.f32 %v11917_v11, %v12627_v2 }
 0xa9a   :  { %v6794_v18 = vmax.f32 %v6730_v33, 0.0  ;;  %v6668_v32 = vadd.f32 %v11934_v37, %v6597_v13  ;;  %v7501_v16 = vpop.f32.mrb[208].mxu1 }
 0xa9b   :  { %6859 = vst [vmem:[#allocation12 + $0x128] sm:$0xff] %v6795_v20  ;;  %v6733_v54 = vadd.f32 %v6669_v52, %v6062_v8  ;;  %v6600_v38 = vmul.f32 %v7501_v16, %v11925_v15  ;;  %v6433_v34 = vpop.f32.mrb[209].mxu1  ;;  %v6070_v20 = vadd.f32 %v11939_v59, %v5999_v10  ;;  %v12628_v52 = vld [vmem:[#allocation29_spill] sm:$0xff]  ;;  %v12629_v16 = vld [vmem:[#allocation27_spill] sm:$0xff] }
 0xa9c   :  { %6858 = vst [vmem:[#allocation12 + $0x120] sm:$0xff] %v6794_v18  ;;  %v6732_v22 = vadd.f32 %v6668_v32, %v6061_v25  ;;  %v6599_v51 = vmul.f32 %v11925_v15, %v6433_v34  ;;  %v6001_v25 = vmul.f32 %v11917_v11, %v12628_v52  ;;  %v6069_v32 = vadd.f32 %v11939_v59, %v5998_v28  ;;  %v12634_v28 = vld [vmem:[#allocation19_spill] sm:$0xff] }
 0xa9d   :  { %v6797_v23 = vmax.f32 %v6733_v54, 0.0  ;;  %v6671_v61 = vadd.f32 %v11934_v37, %v6600_v38  ;;  %v6000_v54 = vmul.f32 %v11917_v11, %v12629_v16 }
 0xa9e   :  { %v6796_v4 = vmax.f32 %v6732_v22, 0.0  ;;  %v6670_v1 = vadd.f32 %v11934_v37, %v6599_v51  ;;  %v7504_v62 = vpop.f32.mrb[210].mxu1 }
 0xa9f   :  { %6861 = vst [vmem:[#allocation12 + $0x138] sm:$0xff] %v6797_v23  ;;  %v6735_v43 = vadd.f32 %v6671_v61, %v6064_v6  ;;  %v6602_v50 = vmul.f32 %v7504_v62, %v11925_v15  ;;  %v6443_v60 = vpop.f32.mrb[211].mxu1 }
 0xaa0   :  { %6860 = vst [vmem:[#allocation12 + $0x130] sm:$0xff] %v6796_v4  ;;  %v6734_v29 = vadd.f32 %v6670_v1, %v6063_v63  ;;  %v6601_v7 = vmul.f32 %v11925_v15, %v6443_v60  ;;  %v6072_v63 = vadd.f32 %v11939_v59, %v6001_v25  ;;  %v6003_v4 = vmul.f32 %v11917_v11, %v12630_v49 }
 0xaa1   :  { %v6799_v26 = vmax.f32 %v6735_v43, 0.0  ;;  %v6673_v3 = vadd.f32 %v11934_v37, %v6602_v50  ;;  %v6071_v43 = vadd.f32 %v11939_v59, %v6000_v54  ;;  %v12631_v50 = vld [vmem:[#allocation26_spill] sm:$0xff]  ;;  %v6009_v54 = vmul.f32 %v11917_v11, %v11897_v5 }
 0xaa2   :  { %v6798_v55 = vmax.f32 %v6734_v29, 0.0  ;;  %v6672_v40 = vadd.f32 %v11934_v37, %v6601_v7  ;;  %v7507_v36 = vpop.f32.mrb[212].mxu1  ;;  %v6002_v60 = vmul.f32 %v11917_v11, %v12631_v50  ;;  %v6074_v42 = vadd.f32 %v11939_v59, %v6003_v4 }
 0xaa3   :  { %6863 = vst [vmem:[#allocation12 + $0x148] sm:$0xff] %v6799_v26  ;;  %v6737_v0 = vadd.f32 %v6673_v3, %v6066_v24  ;;  %v6604_v47 = vmul.f32 %v7507_v36, %v11925_v15  ;;  %v6453_v19 = vpop.f32.mrb[213].mxu1 }
 0xaa4   :  { %6862 = vst [vmem:[#allocation12 + $0x140] sm:$0xff] %v6798_v55  ;;  %v6736_v14 = vadd.f32 %v6672_v40, %v6065_v17  ;;  %v6603_v57 = vmul.f32 %v11925_v15, %v6453_v19  ;;  %v6005_v55 = vmul.f32 %v11917_v11, %v12632_v30 }
 0xaa5   :  { %v6801_v45 = vmax.f32 %v6737_v0, 0.0  ;;  %v6675_v48 = vadd.f32 %v11934_v37, %v6604_v47  ;;  %v6073_v0 = vadd.f32 %v11939_v59, %v6002_v60  ;;  %v12633_v47 = vld [vmem:[#allocation22_spill] sm:$0xff] }
 0xaa6   :  { %v6800_v35 = vmax.f32 %v6736_v14, 0.0  ;;  %v6674_v27 = vadd.f32 %v11934_v37, %v6603_v57  ;;  %v7510_v9 = vpop.f32.mrb[214].mxu1  ;;  %v6004_v19 = vmul.f32 %v11917_v11, %v12633_v47  ;;  %v6076_v2 = vadd.f32 %v11939_v59, %v6005_v55 }
 0xaa7   :  { %6865 = vst [vmem:[#allocation12 + $0x158] sm:$0xff] %v6801_v45  ;;  %v6739_v39 = vadd.f32 %v6675_v48, %v6068_v58  ;;  %v6606_v33 = vmul.f32 %v7510_v9, %v11925_v15  ;;  %v6463_v13 = vpop.f32.mrb[215].mxu1 }
 0xaa8   :  { %6864 = vst [vmem:[#allocation12 + $0x150] sm:$0xff] %v6800_v35  ;;  %v6738_v8 = vadd.f32 %v6674_v27, %v6067_v21  ;;  %v6605_v56 = vmul.f32 %v11925_v15, %v6463_v13  ;;  %v6007_v35 = vmul.f32 %v11917_v11, %v12634_v28 }
 0xaa9   :  { %v6803_v53 = vmax.f32 %v6739_v39, 0.0  ;;  %v6677_v18 = vadd.f32 %v11934_v37, %v6606_v33  ;;  %v6075_v39 = vadd.f32 %v11939_v59, %v6004_v19  ;;  %v12635_v33 = vld [vmem:[#allocation24_spill] sm:$0xff] }
 0xaaa   :  { %v6802_v38 = vmax.f32 %v6738_v8, 0.0  ;;  %v6676_v34 = vadd.f32 %v11934_v37, %v6605_v56  ;;  %v7513_v22 = vpop.f32.mrb[216].mxu1  ;;  %v6006_v13 = vmul.f32 %v11917_v11, %v12635_v33  ;;  %v6078_v16 = vadd.f32 %v11939_v59, %v6007_v35 }
 0xaab   :  { %6867 = vst [vmem:[#allocation12 + $0x168] sm:$0xff] %v6803_v53  ;;  %v6741_v51 = vadd.f32 %v6677_v18, %v6070_v20  ;;  %v6608_v6 = vmul.f32 %v7513_v22, %v11925_v15  ;;  %v6473_v31 = vpop.f32.mrb[217].mxu1 }
 0xaac   :  { %6866 = vst [vmem:[#allocation12 + $0x160] sm:$0xff] %v6802_v38  ;;  %v6740_v23 = vadd.f32 %v6676_v34, %v6069_v32  ;;  %v6607_v61 = vmul.f32 %v11925_v15, %v6473_v31  ;;  %v6077_v22 = vadd.f32 %v11939_v59, %v6006_v13 }
 0xaad   :  { %v6805_v1 = vmax.f32 %v6741_v51, 0.0  ;;  %v6679_v62 = vadd.f32 %v11934_v37, %v6608_v6  ;;  %v12636_v51 = vld [vmem:[#allocation21_spill] sm:$0xff] }
 0xaae   :  { %v6804_v29 = vmax.f32 %v6740_v23, 0.0  ;;  %v6678_v7 = vadd.f32 %v11934_v37, %v6607_v61  ;;  %v7516_v24 = vpop.f32.mrb[218].mxu1  ;;  %v6008_v6 = vmul.f32 %v11917_v11, %v12636_v51 }
 0xaaf   :  { %6869 = vst [vmem:[#allocation12 + $0x178] sm:$0xff] %v6805_v1  ;;  %v6743_v44 = vadd.f32 %v6679_v62, %v6072_v63  ;;  %v6610_v12 = vmul.f32 %v7516_v24, %v11925_v15  ;;  %v6483_v26 = vpop.f32.mrb[219].mxu1  ;;  %v6080_v62 = vadd.f32 %v11939_v59, %v6009_v54 }
 0xab0   :  { %6868 = vst [vmem:[#allocation12 + $0x170] sm:$0xff] %v6804_v29  ;;  %v6742_v3 = vadd.f32 %v6678_v7, %v6071_v43  ;;  %v6609_v17 = vmul.f32 %v11925_v15, %v6483_v26  ;;  %v6011_v43 = vmul.f32 %v11917_v11, %v11903_v41  ;;  %v6079_v29 = vadd.f32 %v11939_v59, %v6008_v6  ;;  %v12637_v7 = vld [vmem:[#allocation25_spill] sm:$0xff] }
 0xab1   :  { %v6807_v40 = vmax.f32 %v6743_v44, 0.0  ;;  %v6681_v36 = vadd.f32 %v11934_v37, %v6610_v12  ;;  %v6010_v24 = vmul.f32 %v11917_v11, %v12637_v7 }
 0xab2   :  { %v6806_v14 = vmax.f32 %v6742_v3, 0.0  ;;  %v6680_v57 = vadd.f32 %v11934_v37, %v6609_v17  ;;  %v7519_v58 = vpop.f32.mrb[220].mxu1  ;;  %v6082_v55 = vadd.f32 %v11939_v59, %v6011_v43 }
 0xab3   :  { %6871 = vst [vmem:[#allocation12 + $0x188] sm:$0xff] %v6807_v40  ;;  %v6745_v46 = vadd.f32 %v6681_v36, %v6074_v42  ;;  %v6612_v10 = vmul.f32 %v7519_v58, %v11925_v15  ;;  %v6493_v45 = vpop.f32.mrb[221].mxu1  ;;  %v12638_v40 = vld [vmem:[#allocation20_spill] sm:$0xff]  ;;  %v6081_v19 = vadd.f32 %v11939_v59, %v6010_v24 }
 0xab4   :  { %6870 = vst [vmem:[#allocation12 + $0x180] sm:$0xff] %v6806_v14  ;;  %v6744_v48 = vadd.f32 %v6680_v57, %v6073_v0  ;;  %v6611_v21 = vmul.f32 %v11925_v15, %v6493_v45  ;;  %v6013_v36 = vmul.f32 %v11917_v11, %v12638_v40  ;;  %v12639_v14 = vld [vmem:[#allocation23_spill] sm:$0xff] }
 0xab5   :  { %v6809_v27 = vmax.f32 %v6745_v46, 0.0  ;;  %v6683_v9 = vadd.f32 %v11934_v37, %v6612_v10  ;;  %v6012_v57 = vmul.f32 %v11917_v11, %v12639_v14 }
 0xab6   :  { %v6808_v8 = vmax.f32 %v6744_v48, 0.0  ;;  %v6682_v56 = vadd.f32 %v11934_v37, %v6611_v21  ;;  %v7522_v20 = vpop.f32.mrb[222].mxu1  ;;  %v6084_v35 = vadd.f32 %v11939_v59, %v6013_v36 }
 0xab7   :  { %6873 = vst [vmem:[#allocation12 + $0x198] sm:$0xff] %v6809_v27  ;;  %v6747_v52 = vadd.f32 %v6683_v9, %v6076_v2  ;;  %v6614_v25 = vmul.f32 %v7522_v20, %v11925_v15  ;;  %v6503_v53 = vpop.f32.mrb[223].mxu1  ;;  %v12640_v27 = vld [vmem:[#allocation31_spill] sm:$0xff]  ;;  %v6083_v13 = vadd.f32 %v11939_v59, %v6012_v57 }
 0xab8   :  { %6872 = vst [vmem:[#allocation12 + $0x190] sm:$0xff] %v6808_v8  ;;  %v6746_v18 = vadd.f32 %v6682_v56, %v6075_v39  ;;  %v6613_v32 = vmul.f32 %v11925_v15, %v6503_v53  ;;  %v6015_v9 = vmul.f32 %v11917_v11, %v12640_v27  ;;  %v12641_v8 = vld [vmem:[#allocation33_spill] sm:$0xff] }
 0xab9   :  { %v6811_v38 = vmax.f32 %v6747_v52, 0.0  ;;  %v6685_v34 = vadd.f32 %v11934_v37, %v6614_v25  ;;  %v6014_v56 = vmul.f32 %v11917_v11, %v12641_v8 }
 0xaba   :  { %v6810_v31 = vmax.f32 %v6746_v18, 0.0  ;;  %v6684_v23 = vadd.f32 %v11934_v37, %v6613_v32  ;;  %v7525_v61 = vpop.f32.mrb[224].mxu1 }
 0xabb   :  { %6875 = vst [vmem:[#allocation12 + $0x1a8] sm:$0xff] %v6811_v38  ;;  %v6749_v63 = vadd.f32 %v6685_v34, %v6078_v16  ;;  %v6616_v49 = vmul.f32 %v7525_v61, %v11925_v15  ;;  %v6513_v4 = vpop.f32.mrb[225].mxu1  ;;  %v6086_v38 = vadd.f32 %v11939_v59, %v6015_v9  ;;  %v6085_v11 = vadd.f32 %v11939_v59, %v6014_v56 }
 0xabc   :  { %6874 = vst [vmem:[#allocation12 + $0x1a0] sm:$0xff] %v6810_v31  ;;  %v6748_v1 = vadd.f32 %v6684_v23, %v6077_v22  ;;  %v6615_v5 = vmul.f32 %v11925_v15, %v6513_v4 }
 0xabd   :  { %v6813_v50 = vmax.f32 %v6749_v63, 0.0  ;;  %v6687_v60 = vadd.f32 %v11934_v37, %v6616_v49 }
 0xabe   :  { %v6812_v44 = vmax.f32 %v6748_v1, 0.0  ;;  %v6686_v12 = vadd.f32 %v11934_v37, %v6615_v5  ;;  %v7528_v26 = vpop.f32.mrb[226].mxu1 }
 0xabf   :  { %6877 = vst [vmem:[#allocation12 + $0x1b8] sm:$0xff] %v6813_v50  ;;  %v6751_v3 = vadd.f32 %v6687_v60, %v6080_v62  ;;  %v6618_v17 = vmul.f32 %v7528_v26, %v11925_v15  ;;  %v6523_v42 = vpop.f32.mrb[227].mxu1 }
 0xac0   :  { %6876 = vst [vmem:[#allocation12 + $0x1b0] sm:$0xff] %v6812_v44  ;;  %v6750_v30 = vadd.f32 %v6686_v12, %v6079_v29  ;;  %v6617_v41 = vmul.f32 %v11925_v15, %v6523_v42 }
 0xac1   :  { %v6815_v0 = vmax.f32 %v6751_v3, 0.0  ;;  %v6689_v47 = vadd.f32 %v11934_v37, %v6618_v17 }
 0xac2   :  { %v6814_v58 = vmax.f32 %v6750_v30, 0.0  ;;  %v6688_v46 = vadd.f32 %v11934_v37, %v6617_v41  ;;  %v7531_v10 = vpop.f32.mrb[228].mxu1 }
 0xac3   :  { %6879 = vst [vmem:[#allocation12 + $0x1c8] sm:$0xff] %v6815_v0  ;;  %v6753_v45 = vadd.f32 %v6689_v47, %v6082_v55  ;;  %v6620_v48 = vmul.f32 %v7531_v10, %v11925_v15  ;;  %v6533_v21 = vpop.f32.mrb[229].mxu1 }
 0xac4   :  { %6878 = vst [vmem:[#allocation12 + $0x1c0] sm:$0xff] %v6814_v58  ;;  %v6752_v2 = vadd.f32 %v6688_v46, %v6081_v19  ;;  %v6619_v28 = vmul.f32 %v11925_v15, %v6533_v21 }
 0xac5   :  { %v6817_v39 = vmax.f32 %v6753_v45, 0.0  ;;  %v6691_v33 = vadd.f32 %v11934_v37, %v6620_v48 }
 0xac6   :  { %v6816_v20 = vmax.f32 %v6752_v2, 0.0  ;;  %v6690_v52 = vadd.f32 %v11934_v37, %v6619_v28  ;;  %v7534_v25 = vpop.f32.mrb[230].mxu1 }
 0xac7   :  { %6881 = vst [vmem:[#allocation12 + $0x1d8] sm:$0xff] %v6817_v39  ;;  %v6755_v53 = vadd.f32 %v6691_v33, %v6084_v35  ;;  %v6622_v18 = vmul.f32 %v7534_v25, %v11925_v15  ;;  %v6543_v32 = vpop.f32.mrb[231].mxu1 }
 0xac8   :  { %6880 = vst [vmem:[#allocation12 + $0x1d0] sm:$0xff] %v6816_v20  ;;  %v6754_v16 = vadd.f32 %v6690_v52, %v6083_v13  ;;  %v6621_v54 = vmul.f32 %v11925_v15, %v6543_v32 }
 0xac9   :  { %v6819_v34 = vmax.f32 %v6755_v53, 0.0  ;;  %v6693_v22 = vadd.f32 %v11934_v37, %v6622_v18 }
 0xaca   :  { %v6818_v51 = vmax.f32 %v6754_v16, 0.0  ;;  %v6692_v6 = vadd.f32 %v11934_v37, %v6621_v54 }
 0xacb   :  { %6883 = vst [vmem:[#allocation12 + $0x1e8] sm:$0xff] %v6819_v34  ;;  %v6757_v31 = vadd.f32 %v6693_v22, %v6086_v38 }
 0xacc   :  { %6882 = vst [vmem:[#allocation12 + $0x1e0] sm:$0xff] %v6818_v51  ;;  %v6756_v23 = vadd.f32 %v6692_v6, %v6085_v11 }
 0xacd   :  { %v6821_v61 = vmax.f32 %v6757_v31, 0.0 }
 0xace   :  { %v6820_v63 = vmax.f32 %v6756_v23, 0.0 }
 0xacf   :  { %6885 = vst [vmem:[#allocation12 + $0x1f8] sm:$0xff] %v6821_v61 }
 0xad0   :  { %6884 = vst [vmem:[#allocation12 + $0x1f0] sm:$0xff] %v6820_v63 }
 0xad1   :  { %8913 = shalt.err (!%p8910_p8)
}
 0xad2   :  { %s8914_s18 = scalar_lea.hbm %s12282_s10, 8192 }
 0xad3   :  { %p8915_p9 = scmp.ne.s32.totalorder %s12282_s10, %s8914_s18  ;;  %p8918_p10 = scmp.lt.u32.totalorder %s8914_s18, %s12282_s10 }
 0xad5   :  { %p8920_p11 = pnand %p8918_p10, %p8915_p9 }
 0xad7   :  { %8923 = shalt.err (!%p8920_p11)
}
 0xad8   :  { %6897 = dma.vmem_to_hbm [thread:$0]  %s6892_s8, 8192, %s12282_s10, [#allocation6], %s8934_s25, %s8934_s25, %s8935_s26  }
 0xad9   :  { %8930 = dma.done.wait [#allocation6], 8192  }
 0xada   :  { %8931 = vsyncadd [#allocation6], 4294959104 }
 0xadb   :  { %6901 = vsyncpa [#allocation5], 1 }
 0xadc   :  { %6902 = vsyncpa [#allocation8], 1 }
 0xadd   :  { %6903 = vsyncpa [#allocation11], 1 }
 0xade   :  { %6904 = vsyncpa [#allocation6], 1 }

</bundles_post_ra>
